<compile_context>
chip_gen: v7x
topology: tpu7x:2x2x1
jax: 0.10.0
libtpu: 0.0.40
codegen_flags: <defaults>
</compile_context>

<pallas_src>
import functools

import jax
import jax.numpy as jnp
from jax.experimental import pallas as pl
from jax.experimental.pallas import tpu as pltpu

NUM_ACTIONS = 3
HEAD_WIDTH = 128     # lane-dense packed head output width
LSE_COL = 4          # packed-output column holding logsumexp(logits)


def _round_up(x, m):
    return ((x + m - 1) // m) * m


def _padded_bytes(shape, dtype):
    """Bytes of one VMEM block after sublane/lane padding."""
    shape = list(shape)
    if len(shape) >= 1:
        shape[-1] = _round_up(shape[-1], 128)
    if len(shape) >= 2:
        shape[-2] = _round_up(shape[-2], 8)
    n = 1
    for s in shape:
        n *= s
    return n * jnp.dtype(dtype).itemsize


def _vmem_limit(block_defs):
    """Scoped-VMEM limit derived from actual double-buffered block sizes.
    Clamped so it is always safe on v7x (64 MiB physical VMEM)."""
    total = sum(2 * _padded_bytes(s, d) for s, d in block_defs)
    total += 4 << 20                                  # scratch + headroom
    return int(min(max(total, 16 << 20), 48 << 20))


def _choose_tm(m, cap=512):
    """Row tile for the fc1+heads kernel: >=2 balanced tiles once M is large
    enough (keeps both v7x TensorCores busy), capped for VMEM."""
    if m <= 16:
        return m                                      # single full block
    tm = _round_up(pl.cdiv(m, 2), 16)
    return min(tm, cap)


# ----------------------------------------------------------------------------
# Conv layer = in-kernel tap accumulation over a flattened space-to-depth image
# ----------------------------------------------------------------------------
def _conv_tap_kernel(x_ref, w_ref, b_ref, o_ref, acc_ref, *, offsets):
    mfull = o_ref.shape[0]
    acc_ref[...] = jnp.zeros_like(acc_ref)
    for t, d in enumerate(offsets):                   # static unrolled taps
        acc_ref[...] += jnp.dot(x_ref[d:d + mfull, :], w_ref[t],
                                preferred_element_type=jnp.float32)
    o_ref[...] = jnp.maximum(acc_ref[...] + b_ref[...], 0.0).astype(o_ref.dtype)


def conv_tap_call(x_flat, w_taps, bias, *, batch, mfull, offsets):
    """x_flat: [B*R, Cin] bf16 (per-image flattened+padded spatial grid),
    w_taps: [T, Cin, Cout] bf16, bias: [Cout] f32.
    Returns [B, mfull, Cout] bf16 (bias+ReLU fused); rows where the tap window
    wraps around the grid edge are garbage and are dropped by the caller."""
    br, cin = x_flat.shape
    r = br // batch
    t, cin2, cout = w_taps.shape
    assert cin == cin2 and t == len(offsets) and br == batch * r
    assert offsets[-1] + mfull <= r

    kernel = functools.partial(_conv_tap_kernel, offsets=tuple(offsets))
    blocks = [((r, cin), x_flat.dtype), ((t, cin, cout), w_taps.dtype),
              ((1, cout), jnp.float32), ((mfull, cout), jnp.bfloat16)]
    flops = 2 * batch * mfull * t * cin * cout
    bytes_accessed = int(br * cin * 2 + t * cin * cout * 2 + cout * 4
                         + batch * mfull * cout * 2)

    out = pl.pallas_call(
        kernel,
        out_shape=jax.ShapeDtypeStruct((batch * mfull, cout), jnp.bfloat16),
        grid=(batch,),
        in_specs=[
            pl.BlockSpec((r, cin), lambda i: (i, 0)),
            pl.BlockSpec((t, cin, cout), lambda i: (0, 0, 0)),   # resident weights
            pl.BlockSpec((1, cout), lambda i: (0, 0)),
        ],
        out_specs=pl.BlockSpec((mfull, cout), lambda i: (i, 0)),
        scratch_shapes=[pltpu.VMEM((mfull, cout), jnp.float32)],
        compiler_params=pltpu.CompilerParams(
            dimension_semantics=("parallel",),        # batch -> 2 TCs on v7x
            vmem_limit_bytes=_vmem_limit(blocks)),
        cost_estimate=pl.CostEstimate(flops=flops, transcendentals=0,
                                      bytes_accessed=bytes_accessed),
    )(x_flat, w_taps, bias.reshape(1, cout))
    return out.reshape(batch, mfull, cout)


# ----------------------------------------------------------------------------
# Fused fc1(+ReLU) + packed heads + masked log-sum-exp kernel
# ----------------------------------------------------------------------------
def _fc1_heads_kernel(feat_ref, w1_ref, b1_ref, wh_ref, bh_ref, out_ref):
    h = jnp.dot(feat_ref[...], w1_ref[...], preferred_element_type=jnp.float32)
    h = jnp.maximum(h + b1_ref[...], 0.0)                       # hidden stays in VMEM
    acc = jnp.dot(h.astype(jnp.bfloat16), wh_ref[...],
                  preferred_element_type=jnp.float32)
    acc = acc + bh_ref[...]                                     # (tm, 128) f32

    # masked log-sum-exp over the first NUM_ACTIONS columns (Categorical logits)
    cols = jax.lax.broadcasted_iota(jnp.int32, acc.shape, 1)
    amask = cols < NUM_ACTIONS
    neg = jnp.float32(-1e30)
    m = jnp.max(jnp.where(amask, acc, neg), axis=-1, keepdims=True)
    denom = jnp.sum(jnp.exp(jnp.where(amask, acc - m, neg)), axis=-1, keepdims=True)
    lse = m + jnp.log(denom)

    # single packed writeback: cols 0..2 logits, col 3 value, col 4 lse, rest 0
    out_ref[...] = jnp.where(cols < LSE_COL, acc,
                             jnp.where(cols == LSE_COL, lse, 0.0))


def fc1_heads_forward(feat, w1, b1, wh, bh):
    """feat: [M, 3136] bf16, w1: [3136, 512] bf16, wh: [512, 128] bf16 (cols 0..2
    fc2_mean, col 3 fc3, rest zero).  Returns packed [M, 128] f32."""
    m, k = feat.shape
    k2, n1 = w1.shape
    n1b, nh = wh.shape
    assert k == k2 and n1 == n1b and nh == HEAD_WIDTH
    tm = _choose_tm(m)
    grid = (pl.cdiv(m, tm),)
    blocks = [((tm, k), feat.dtype), ((k, n1), w1.dtype), ((1, n1), jnp.float32),
              ((n1, nh), wh.dtype), ((1, nh), jnp.float32), ((tm, nh), jnp.float32)]
    flops = 2 * m * (k * n1 + n1 * nh)
    bytes_accessed = int(m * k * 2 + k * n1 * 2 + n1 * 4
                         + n1 * nh * 2 + nh * 4 + m * nh * 4)

    return pl.pallas_call(
        _fc1_heads_kernel,
        out_shape=jax.ShapeDtypeStruct((m, nh), jnp.float32),
        grid=grid,
        in_specs=[
            pl.BlockSpec((tm, k), lambda i: (i, 0)),
            pl.BlockSpec((k, n1), lambda i: (0, 0)),            # resident fc1 weight
            pl.BlockSpec((1, n1), lambda i: (0, 0)),
            pl.BlockSpec((n1, nh), lambda i: (0, 0)),           # resident head weight
            pl.BlockSpec((1, nh), lambda i: (0, 0)),
        ],
        out_specs=pl.BlockSpec((tm, nh), lambda i: (i, 0)),
        compiler_params=pltpu.CompilerParams(
            dimension_semantics=("parallel",),
            vmem_limit_bytes=_vmem_limit(blocks)),
        cost_estimate=pl.CostEstimate(flops=flops, transcendentals=2 * m * nh,
                                      bytes_accessed=bytes_accessed),
    )(feat, w1, b1.reshape(1, n1), wh, bh.reshape(1, nh))


# ----------------------------------------------------------------------------
# Parameters (deterministic synthetic init; shapes follow Policy.__init__)
# ----------------------------------------------------------------------------
def init_policy_params(key, frames=4):
    ks = jax.random.split(key, 6)

    def normal(k, shape, scale=0.05):
        return (scale * jax.random.normal(k, shape)).astype(jnp.float32)

    return {
        # nn.Conv2d(frames, 32, 8, stride=4)   (kh, kw, cin, cout)
        "conv1_w": normal(ks[0], (8, 8, frames, 32)),
        "conv1_b": jnp.zeros((32,), jnp.float32),
        # nn.Conv2d(32, 64, 3, stride=2)
        "conv2_w": normal(ks[1], (3, 3, 32, 64)),
        "conv2_b": jnp.zeros((64,), jnp.float32),
        # nn.Conv2d(64, 64, 3, stride=1)
        "conv3_w": normal(ks[2], (3, 3, 64, 64)),
        "conv3_b": jnp.zeros((64,), jnp.float32),
        # nn.Linear(3136, 512) -- (in, out), rows in PyTorch (C,H,W)-flat order
        "fc1_w": normal(ks[3], (3136, 512)),
        "fc1_b": jnp.zeros((512,), jnp.float32),
        # fc2_mean: nn.Linear(512, 3) (normal_ init, zero bias)
        "fc2_mean_w": normal(ks[4], (512, 3), scale=1.0),
        "fc2_mean_b": jnp.zeros((3,), jnp.float32),
        # fc3: nn.Linear(512, 1)
        "fc3_w": normal(ks[5], (512, 1), scale=1.0),
        "fc3_b": jnp.zeros((1,), jnp.float32),
        # sigma exists on the module but is not part of forward's output
        "sigma": jnp.array([10.0], jnp.float32),
    }


def prepare_params(params):
    """One-time host-side prep.
    NOTE: real PyTorch nn.Linear weights are (out, in); this synthetic init is
    (in, out).  A weight-import path must transpose before this prep."""
    bf16 = lambda a: a.astype(jnp.bfloat16)

    # conv1 8x8 stride4 -> space-to-depth(4) 2x2 taps, 64 input channels
    w1 = (params["conv1_w"].reshape(2, 4, 2, 4, 4, 32)       # (dh,rh,dw,rw,c,co)
          .transpose(0, 2, 1, 3, 4, 5)                       # (dh,dw,rh,rw,c,co)
          .reshape(4, 64, 32))                               # tap=dh*2+dw, ch=rh*16+rw*4+c

    # conv2 3x3 stride2 -> pad kernel to 4x4, space-to-depth(2) 2x2 taps, 128 channels
    w2pad = jnp.zeros((4, 4, 32, 64), params["conv2_w"].dtype)
    w2pad = w2pad.at[:3, :3].set(params["conv2_w"])
    w2 = (w2pad.reshape(2, 2, 2, 2, 32, 64)
          .transpose(0, 2, 1, 3, 4, 5)
          .reshape(4, 128, 64))                              # ch = rh*64+rw*32+c

    # conv3 3x3 stride1 -> 9 taps
    w3 = params["conv3_w"].reshape(9, 64, 64)

    # fc1 rows: PyTorch (C,H,W)-flat -> our NHWC (H,W,C)-flat (no transpose at runtime)
    fc1_w = (params["fc1_w"].reshape(64, 7, 7, 512)
             .transpose(1, 2, 0, 3)
             .reshape(3136, 512))

    # pack both heads into one lane-dense, zero-padded [512, 128] weight
    heads_w = jnp.zeros((512, HEAD_WIDTH), jnp.float32)
    heads_w = heads_w.at[:, :NUM_ACTIONS].set(params["fc2_mean_w"])
    heads_w = heads_w.at[:, NUM_ACTIONS:NUM_ACTIONS + 1].set(params["fc3_w"])
    heads_b = jnp.zeros((HEAD_WIDTH,), jnp.float32)
    heads_b = heads_b.at[:NUM_ACTIONS].set(params["fc2_mean_b"])
    heads_b = heads_b.at[NUM_ACTIONS:NUM_ACTIONS + 1].set(params["fc3_b"])

    return {
        "conv1_w": bf16(w1), "conv1_b": params["conv1_b"],
        "conv2_w": bf16(w2), "conv2_b": params["conv2_b"],
        "conv3_w": bf16(w3), "conv3_b": params["conv3_b"],
        "fc1_w": bf16(fc1_w), "fc1_b": params["fc1_b"],
        "heads_w": bf16(heads_w), "heads_b": heads_b,
        "sigma": params["sigma"],
    }


# ----------------------------------------------------------------------------
# Forward pass (== Policy.forward)
# ----------------------------------------------------------------------------
def policy_forward(params, x_nchw):
    """x_nchw: [B, 4, 84, 84] float32 (PyTorch NCHW; Linear(3136,512) fixes 84x84).
    Returns (action_logits, action_log_probs, state_val); `Categorical(logits=...)`
    is represented by its logits and normalized log-probabilities."""
    B = x_nchw.shape[0]
    assert x_nchw.shape[1:] == (4, 84, 84)

    # ---- conv1: space-to-depth(4) folds the NCHW->NHWC transpose + bf16 cast ----
    x = x_nchw.reshape(B, 4, 21, 4, 21, 4)                     # (b,c,bh,rh,bw,rw)
    x = x.transpose(0, 2, 4, 3, 5, 1).reshape(B, 441, 64).astype(jnp.bfloat16)
    x = jnp.pad(x, ((0, 0), (0, 464 - 441), (0, 0))).reshape(B * 464, 64)
    o1 = conv_tap_call(x, params["conv1_w"], params["conv1_b"],
                       batch=B, mfull=432, offsets=(0, 1, 21, 22))   # (B,432,32)
    y1 = o1[:, :420, :].reshape(B, 20, 21, 32)[:, :, :20, :]         # (B,20,20,32)

    # ---- conv2: space-to-depth(2) ----
    x = y1.reshape(B, 10, 2, 10, 2, 32).transpose(0, 1, 3, 2, 4, 5).reshape(B, 100, 128)
    x = jnp.pad(x, ((0, 0), (0, 112 - 100), (0, 0))).reshape(B * 112, 128)
    o2 = conv_tap_call(x, params["conv2_w"], params["conv2_b"],
                       batch=B, mfull=96, offsets=(0, 1, 10, 11))    # (B,96,64)
    y2 = o2[:, :90, :].reshape(B, 9, 10, 64)[:, :, :9, :]            # (B,9,9,64)

    # ---- conv3: stride 1, 9 taps ----
    x = y2.reshape(B, 81, 64)
    x = jnp.pad(x, ((0, 0), (0, 96 - 81), (0, 0))).reshape(B * 96, 64)
    o3 = conv_tap_call(x, params["conv3_w"], params["conv3_b"],
                       batch=B, mfull=64,
                       offsets=(0, 1, 2, 9, 10, 11, 18, 19, 20))     # (B,64,64)
    y3 = o3[:, :63, :].reshape(B, 7, 9, 64)[:, :, :7, :]             # (B,7,7,64)

    # ---- fused fc1(+ReLU) + packed heads + masked logsumexp ----
    feat = y3.reshape(B, 7 * 7 * 64)                                 # (H,W,C)-flat bf16
    packed = fc1_heads_forward(feat, params["fc1_w"], params["fc1_b"],
                               params["heads_w"], params["heads_b"])  # (B,128) f32

    # TODO(synk): torch.distributions.Categorical has no Pallas equivalent; we
    # return its defining quantities (logits + normalized log-probs).
    action_logits = packed[:, :NUM_ACTIONS]                          # (B, 3)
    state_val = packed[:, NUM_ACTIONS:NUM_ACTIONS + 1]               # (B, 1)
    lse = packed[:, LSE_COL:LSE_COL + 1]
    action_log_probs = action_logits - lse                           # (B, 3)
    return action_logits, action_log_probs, state_val


# ----------------------------------------------------------------------------
if __name__ == "__main__":
    key = jax.random.PRNGKey(0)
    pkey, xkey = jax.random.split(key)

    params = prepare_params(init_policy_params(pkey, frames=4))
    # Input shape is dictated by Linear(3136, 512): 84x84 frames (Atari-style).
    x = jax.random.normal(xkey, (2, 4, 84, 84), dtype=jnp.float32)

    fwd = jax.jit(policy_forward)
    logits, log_probs, state_val = fwd(params, x)
    jax.block_until_ready((logits, log_probs, state_val))

    assert logits.shape == (2, 3)
    assert log_probs.shape == (2, 3)
    assert state_val.shape == (2, 1)
    # log-probs of a Categorical must sum to 1 after exp
    assert bool(jnp.all(jnp.abs(jnp.sum(jnp.exp(log_probs), axis=-1) - 1.0) < 1e-4))

    print("KERNEL_OK")
</pallas_src>

<mosaic_0001>
module attributes {stable_mosaic.version = 11 : i64} {
  func.func @_conv_tap_kernel(%arg0: i32, %arg1: memref<464x64xbf16, #tpu.memory_space<vmem>>, %arg2: memref<4x64x32xbf16, #tpu.memory_space<vmem>>, %arg3: memref<1x32xf32, #tpu.memory_space<vmem>>, %arg4: memref<432x32xbf16, #tpu.memory_space<vmem>>, %arg5: memref<432x32xf32, #tpu.memory_space<vmem>>) attributes {dimension_semantics = [#tpu.dimension_semantics<parallel>], iteration_bounds = array<i64: 2>, scalar_prefetch = 0 : i64, scratch_operands = 1 : i64, tpu.core_type = #tpu.core_type<tc>, window_params = [{transform_indices = @transform_0, window_bounds = array<i64: 464, 64>}, {pipeline_mode = #tpu.pipeline_mode<synchronous>, transform_indices = @transform_1, window_bounds = array<i64: 4, 64, 32>}, {pipeline_mode = #tpu.pipeline_mode<synchronous>, transform_indices = @transform_2, window_bounds = array<i64: 1, 32>}, {transform_indices = @transform_3, window_bounds = array<i64: 432, 32>}]} {
    %cst = arith.constant 0.000000e+00 : f32
    %0 = vector.broadcast %cst : f32 to vector<432x32xf32>
    %c0 = arith.constant 0 : index
    %c0_0 = arith.constant 0 : index
    %1 = vector.load %arg5[%c0, %c0_0] : memref<432x32xf32, #tpu.memory_space<vmem>>, vector<432x32xf32>
    tpu.vector_store %arg5[%c0, %c0_0], %0 {strides = array<i32>} : memref<432x32xf32, #tpu.memory_space<vmem>>, vector<432x32xf32>,
    %c0_1 = arith.constant 0 : index
    %c0_2 = arith.constant 0 : index
    %2 = vector.load %arg5[%c0_1, %c0_2] : memref<432x32xf32, #tpu.memory_space<vmem>>, vector<432x32xf32>
    %c0_3 = arith.constant 0 : index
    %c0_4 = arith.constant 0 : index
    %3 = vector.load %arg1[%c0_3, %c0_4] : memref<464x64xbf16, #tpu.memory_space<vmem>>, vector<432x64xbf16>
    %c0_5 = arith.constant 0 : index
    %c0_6 = arith.constant 0 : index
    %c0_7 = arith.constant 0 : index
    %4 = vector.load %arg2[%c0_5, %c0_6, %c0_7] : memref<4x64x32xbf16, #tpu.memory_space<vmem>>, vector<1x64x32xbf16>
    %5 = vector.shape_cast %4 : vector<1x64x32xbf16> to vector<64x32xbf16>
    %cst_8 = arith.constant dense<0.000000e+00> : vector<432x32xf32>
    %6 = tpu.matmul %3, %5, %cst_8 {dimension_numbers = #tpu.dot_dimension_numbers<[1], [0], [0], [1], [0, 0, 1, 1], [], []>} : vector<432x64xbf16>, vector<64x32xbf16>, vector<432x32xf32> -> vector<432x32xf32>
    %7 = arith.addf %2, %6 : vector<432x32xf32>
    %c0_9 = arith.constant 0 : index
    %c0_10 = arith.constant 0 : index
    %8 = vector.load %arg5[%c0_9, %c0_10] : memref<432x32xf32, #tpu.memory_space<vmem>>, vector<432x32xf32>
    tpu.vector_store %arg5[%c0_9, %c0_10], %7 {strides = array<i32>} : memref<432x32xf32, #tpu.memory_space<vmem>>, vector<432x32xf32>,
    %c0_11 = arith.constant 0 : index
    %c0_12 = arith.constant 0 : index
    %9 = vector.load %arg5[%c0_11, %c0_12] : memref<432x32xf32, #tpu.memory_space<vmem>>, vector<432x32xf32>
    %c1 = arith.constant 1 : index
    %c0_13 = arith.constant 0 : index
    %10 = vector.load %arg1[%c1, %c0_13] : memref<464x64xbf16, #tpu.memory_space<vmem>>, vector<432x64xbf16>
    %c1_14 = arith.constant 1 : index
    %c0_15 = arith.constant 0 : index
    %c0_16 = arith.constant 0 : index
    %11 = vector.load %arg2[%c1_14, %c0_15, %c0_16] : memref<4x64x32xbf16, #tpu.memory_space<vmem>>, vector<1x64x32xbf16>
    %12 = vector.shape_cast %11 : vector<1x64x32xbf16> to vector<64x32xbf16>
    %cst_17 = arith.constant dense<0.000000e+00> : vector<432x32xf32>
    %13 = tpu.matmul %10, %12, %cst_17 {dimension_numbers = #tpu.dot_dimension_numbers<[1], [0], [0], [1], [0, 0, 1, 1], [], []>} : vector<432x64xbf16>, vector<64x32xbf16>, vector<432x32xf32> -> vector<432x32xf32>
    %14 = arith.addf %9, %13 : vector<432x32xf32>
    %c0_18 = arith.constant 0 : index
    %c0_19 = arith.constant 0 : index
    %15 = vector.load %arg5[%c0_18, %c0_19] : memref<432x32xf32, #tpu.memory_space<vmem>>, vector<432x32xf32>
    tpu.vector_store %arg5[%c0_18, %c0_19], %14 {strides = array<i32>} : memref<432x32xf32, #tpu.memory_space<vmem>>, vector<432x32xf32>,
    %c0_20 = arith.constant 0 : index
    %c0_21 = arith.constant 0 : index
    %16 = vector.load %arg5[%c0_20, %c0_21] : memref<432x32xf32, #tpu.memory_space<vmem>>, vector<432x32xf32>
    %c21 = arith.constant 21 : index
    %c0_22 = arith.constant 0 : index
    %17 = vector.load %arg1[%c21, %c0_22] : memref<464x64xbf16, #tpu.memory_space<vmem>>, vector<432x64xbf16>
    %c2 = arith.constant 2 : index
    %c0_23 = arith.constant 0 : index
    %c0_24 = arith.constant 0 : index
    %18 = vector.load %arg2[%c2, %c0_23, %c0_24] : memref<4x64x32xbf16, #tpu.memory_space<vmem>>, vector<1x64x32xbf16>
    %19 = vector.shape_cast %18 : vector<1x64x32xbf16> to vector<64x32xbf16>
    %cst_25 = arith.constant dense<0.000000e+00> : vector<432x32xf32>
    %20 = tpu.matmul %17, %19, %cst_25 {dimension_numbers = #tpu.dot_dimension_numbers<[1], [0], [0], [1], [0, 0, 1, 1], [], []>} : vector<432x64xbf16>, vector<64x32xbf16>, vector<432x32xf32> -> vector<432x32xf32>
    %21 = arith.addf %16, %20 : vector<432x32xf32>
    %c0_26 = arith.constant 0 : index
    %c0_27 = arith.constant 0 : index
    %22 = vector.load %arg5[%c0_26, %c0_27] : memref<432x32xf32, #tpu.memory_space<vmem>>, vector<432x32xf32>
    tpu.vector_store %arg5[%c0_26, %c0_27], %21 {strides = array<i32>} : memref<432x32xf32, #tpu.memory_space<vmem>>, vector<432x32xf32>,
    %c0_28 = arith.constant 0 : index
    %c0_29 = arith.constant 0 : index
    %23 = vector.load %arg5[%c0_28, %c0_29] : memref<432x32xf32, #tpu.memory_space<vmem>>, vector<432x32xf32>
    %c22 = arith.constant 22 : index
    %c0_30 = arith.constant 0 : index
    %24 = vector.load %arg1[%c22, %c0_30] : memref<464x64xbf16, #tpu.memory_space<vmem>>, vector<432x64xbf16>
    %c3 = arith.constant 3 : index
    %c0_31 = arith.constant 0 : index
    %c0_32 = arith.constant 0 : index
    %25 = vector.load %arg2[%c3, %c0_31, %c0_32] : memref<4x64x32xbf16, #tpu.memory_space<vmem>>, vector<1x64x32xbf16>
    %26 = vector.shape_cast %25 : vector<1x64x32xbf16> to vector<64x32xbf16>
    %cst_33 = arith.constant dense<0.000000e+00> : vector<432x32xf32>
    %27 = tpu.matmul %24, %26, %cst_33 {dimension_numbers = #tpu.dot_dimension_numbers<[1], [0], [0], [1], [0, 0, 1, 1], [], []>} : vector<432x64xbf16>, vector<64x32xbf16>, vector<432x32xf32> -> vector<432x32xf32>
    %28 = arith.addf %23, %27 : vector<432x32xf32>
    %c0_34 = arith.constant 0 : index
    %c0_35 = arith.constant 0 : index
    %29 = vector.load %arg5[%c0_34, %c0_35] : memref<432x32xf32, #tpu.memory_space<vmem>>, vector<432x32xf32>
    tpu.vector_store %arg5[%c0_34, %c0_35], %28 {strides = array<i32>} : memref<432x32xf32, #tpu.memory_space<vmem>>, vector<432x32xf32>,
    %c0_36 = arith.constant 0 : index
    %c0_37 = arith.constant 0 : index
    %30 = vector.load %arg5[%c0_36, %c0_37] : memref<432x32xf32, #tpu.memory_space<vmem>>, vector<432x32xf32>
    %c0_38 = arith.constant 0 : index
    %c0_39 = arith.constant 0 : index
    %31 = vector.load %arg3[%c0_38, %c0_39] : memref<1x32xf32, #tpu.memory_space<vmem>>, vector<1x32xf32>
    %32 = vector.broadcast %31 : vector<1x32xf32> to vector<432x32xf32>
    %33 = arith.addf %30, %32 : vector<432x32xf32>
    %cst_40 = arith.constant 0.000000e+00 : f32
    %34 = vector.broadcast %cst_40 : f32 to vector<432x32xf32>
    %35 = arith.maximumf %33, %34 : vector<432x32xf32>
    %36 = arith.truncf %35 : vector<432x32xf32> to vector<432x32xbf16>
    %c0_41 = arith.constant 0 : index
    %c0_42 = arith.constant 0 : index
    %37 = vector.load %arg4[%c0_41, %c0_42] : memref<432x32xbf16, #tpu.memory_space<vmem>>, vector<432x32xbf16>
    tpu.vector_store %arg4[%c0_41, %c0_42], %36 {strides = array<i32>} : memref<432x32xbf16, #tpu.memory_space<vmem>>, vector<432x32xbf16>,
    return
  }
  func.func @transform_0(%arg0: i32) -> (i32, i32) {
    %c0_i32 = arith.constant 0 : i32
    %c0_i32_0 = arith.constant 0 : i32
    return %arg0, %c0_i32 : i32, i32
  }
  func.func @transform_1(%arg0: i32) -> (i32, i32, i32) {
    %c0_i32 = arith.constant 0 : i32
    %c0_i32_0 = arith.constant 0 : i32
    %c0_i32_1 = arith.constant 0 : i32
    %c0_i32_2 = arith.constant 0 : i32
    return %c0_i32, %c0_i32_0, %c0_i32_1 : i32, i32, i32
  }
  func.func @transform_2(%arg0: i32) -> (i32, i32) {
    %c0_i32 = arith.constant 0 : i32
    %c0_i32_0 = arith.constant 0 : i32
    %c0_i32_1 = arith.constant 0 : i32
    return %c0_i32, %c0_i32_0 : i32, i32
  }
  func.func @transform_3(%arg0: i32) -> (i32, i32) {
    %c0_i32 = arith.constant 0 : i32
    %c0_i32_0 = arith.constant 0 : i32
    return %arg0, %c0_i32 : i32, i32
  }
}

module attributes {stable_mosaic.version = 11 : i64} {
  func.func @_conv_tap_kernel(%arg0: i32, %arg1: memref<112x128xbf16, #tpu.memory_space<vmem>>, %arg2: memref<4x128x64xbf16, #tpu.memory_space<vmem>>, %arg3: memref<1x64xf32, #tpu.memory_space<vmem>>, %arg4: memref<96x64xbf16, #tpu.memory_space<vmem>>, %arg5: memref<96x64xf32, #tpu.memory_space<vmem>>) attributes {dimension_semantics = [#tpu.dimension_semantics<parallel>], iteration_bounds = array<i64: 2>, scalar_prefetch = 0 : i64, scratch_operands = 1 : i64, tpu.core_type = #tpu.core_type<tc>, window_params = [{transform_indices = @transform_0, window_bounds = array<i64: 112, 128>}, {pipeline_mode = #tpu.pipeline_mode<synchronous>, transform_indices = @transform_1, window_bounds = array<i64: 4, 128, 64>}, {pipeline_mode = #tpu.pipeline_mode<synchronous>, transform_indices = @transform_2, window_bounds = array<i64: 1, 64>}, {transform_indices = @transform_3, window_bounds = array<i64: 96, 64>}]} {
    %cst = arith.constant 0.000000e+00 : f32
    %0 = vector.broadcast %cst : f32 to vector<96x64xf32>
    %c0 = arith.constant 0 : index
    %c0_0 = arith.constant 0 : index
    %1 = vector.load %arg5[%c0, %c0_0] : memref<96x64xf32, #tpu.memory_space<vmem>>, vector<96x64xf32>
    tpu.vector_store %arg5[%c0, %c0_0], %0 {strides = array<i32>} : memref<96x64xf32, #tpu.memory_space<vmem>>, vector<96x64xf32>,
    %c0_1 = arith.constant 0 : index
    %c0_2 = arith.constant 0 : index
    %2 = vector.load %arg5[%c0_1, %c0_2] : memref<96x64xf32, #tpu.memory_space<vmem>>, vector<96x64xf32>
    %c0_3 = arith.constant 0 : index
    %c0_4 = arith.constant 0 : index
    %3 = vector.load %arg1[%c0_3, %c0_4] : memref<112x128xbf16, #tpu.memory_space<vmem>>, vector<96x128xbf16>
    %c0_5 = arith.constant 0 : index
    %c0_6 = arith.constant 0 : index
    %c0_7 = arith.constant 0 : index
    %4 = vector.load %arg2[%c0_5, %c0_6, %c0_7] : memref<4x128x64xbf16, #tpu.memory_space<vmem>>, vector<1x128x64xbf16>
    %5 = vector.shape_cast %4 : vector<1x128x64xbf16> to vector<128x64xbf16>
    %cst_8 = arith.constant dense<0.000000e+00> : vector<96x64xf32>
    %6 = tpu.matmul %3, %5, %cst_8 {dimension_numbers = #tpu.dot_dimension_numbers<[1], [0], [0], [1], [0, 0, 1, 1], [], []>} : vector<96x128xbf16>, vector<128x64xbf16>, vector<96x64xf32> -> vector<96x64xf32>
    %7 = arith.addf %2, %6 : vector<96x64xf32>
    %c0_9 = arith.constant 0 : index
    %c0_10 = arith.constant 0 : index
    %8 = vector.load %arg5[%c0_9, %c0_10] : memref<96x64xf32, #tpu.memory_space<vmem>>, vector<96x64xf32>
    tpu.vector_store %arg5[%c0_9, %c0_10], %7 {strides = array<i32>} : memref<96x64xf32, #tpu.memory_space<vmem>>, vector<96x64xf32>,
    %c0_11 = arith.constant 0 : index
    %c0_12 = arith.constant 0 : index
    %9 = vector.load %arg5[%c0_11, %c0_12] : memref<96x64xf32, #tpu.memory_space<vmem>>, vector<96x64xf32>
    %c1 = arith.constant 1 : index
    %c0_13 = arith.constant 0 : index
    %10 = vector.load %arg1[%c1, %c0_13] : memref<112x128xbf16, #tpu.memory_space<vmem>>, vector<96x128xbf16>
    %c1_14 = arith.constant 1 : index
    %c0_15 = arith.constant 0 : index
    %c0_16 = arith.constant 0 : index
    %11 = vector.load %arg2[%c1_14, %c0_15, %c0_16] : memref<4x128x64xbf16, #tpu.memory_space<vmem>>, vector<1x128x64xbf16>
    %12 = vector.shape_cast %11 : vector<1x128x64xbf16> to vector<128x64xbf16>
    %cst_17 = arith.constant dense<0.000000e+00> : vector<96x64xf32>
    %13 = tpu.matmul %10, %12, %cst_17 {dimension_numbers = #tpu.dot_dimension_numbers<[1], [0], [0], [1], [0, 0, 1, 1], [], []>} : vector<96x128xbf16>, vector<128x64xbf16>, vector<96x64xf32> -> vector<96x64xf32>
    %14 = arith.addf %9, %13 : vector<96x64xf32>
    %c0_18 = arith.constant 0 : index
    %c0_19 = arith.constant 0 : index
    %15 = vector.load %arg5[%c0_18, %c0_19] : memref<96x64xf32, #tpu.memory_space<vmem>>, vector<96x64xf32>
    tpu.vector_store %arg5[%c0_18, %c0_19], %14 {strides = array<i32>} : memref<96x64xf32, #tpu.memory_space<vmem>>, vector<96x64xf32>,
    %c0_20 = arith.constant 0 : index
    %c0_21 = arith.constant 0 : index
    %16 = vector.load %arg5[%c0_20, %c0_21] : memref<96x64xf32, #tpu.memory_space<vmem>>, vector<96x64xf32>
    %c10 = arith.constant 10 : index
    %c0_22 = arith.constant 0 : index
    %17 = vector.load %arg1[%c10, %c0_22] : memref<112x128xbf16, #tpu.memory_space<vmem>>, vector<96x128xbf16>
    %c2 = arith.constant 2 : index
    %c0_23 = arith.constant 0 : index
    %c0_24 = arith.constant 0 : index
    %18 = vector.load %arg2[%c2, %c0_23, %c0_24] : memref<4x128x64xbf16, #tpu.memory_space<vmem>>, vector<1x128x64xbf16>
    %19 = vector.shape_cast %18 : vector<1x128x64xbf16> to vector<128x64xbf16>
    %cst_25 = arith.constant dense<0.000000e+00> : vector<96x64xf32>
    %20 = tpu.matmul %17, %19, %cst_25 {dimension_numbers = #tpu.dot_dimension_numbers<[1], [0], [0], [1], [0, 0, 1, 1], [], []>} : vector<96x128xbf16>, vector<128x64xbf16>, vector<96x64xf32> -> vector<96x64xf32>
    %21 = arith.addf %16, %20 : vector<96x64xf32>
    %c0_26 = arith.constant 0 : index
    %c0_27 = arith.constant 0 : index
    %22 = vector.load %arg5[%c0_26, %c0_27] : memref<96x64xf32, #tpu.memory_space<vmem>>, vector<96x64xf32>
    tpu.vector_store %arg5[%c0_26, %c0_27], %21 {strides = array<i32>} : memref<96x64xf32, #tpu.memory_space<vmem>>, vector<96x64xf32>,
    %c0_28 = arith.constant 0 : index
    %c0_29 = arith.constant 0 : index
    %23 = vector.load %arg5[%c0_28, %c0_29] : memref<96x64xf32, #tpu.memory_space<vmem>>, vector<96x64xf32>
    %c11 = arith.constant 11 : index
    %c0_30 = arith.constant 0 : index
    %24 = vector.load %arg1[%c11, %c0_30] : memref<112x128xbf16, #tpu.memory_space<vmem>>, vector<96x128xbf16>
    %c3 = arith.constant 3 : index
    %c0_31 = arith.constant 0 : index
    %c0_32 = arith.constant 0 : index
    %25 = vector.load %arg2[%c3, %c0_31, %c0_32] : memref<4x128x64xbf16, #tpu.memory_space<vmem>>, vector<1x128x64xbf16>
    %26 = vector.shape_cast %25 : vector<1x128x64xbf16> to vector<128x64xbf16>
    %cst_33 = arith.constant dense<0.000000e+00> : vector<96x64xf32>
    %27 = tpu.matmul %24, %26, %cst_33 {dimension_numbers = #tpu.dot_dimension_numbers<[1], [0], [0], [1], [0, 0, 1, 1], [], []>} : vector<96x128xbf16>, vector<128x64xbf16>, vector<96x64xf32> -> vector<96x64xf32>
    %28 = arith.addf %23, %27 : vector<96x64xf32>
    %c0_34 = arith.constant 0 : index
    %c0_35 = arith.constant 0 : index
    %29 = vector.load %arg5[%c0_34, %c0_35] : memref<96x64xf32, #tpu.memory_space<vmem>>, vector<96x64xf32>
    tpu.vector_store %arg5[%c0_34, %c0_35], %28 {strides = array<i32>} : memref<96x64xf32, #tpu.memory_space<vmem>>, vector<96x64xf32>,
    %c0_36 = arith.constant 0 : index
    %c0_37 = arith.constant 0 : index
    %30 = vector.load %arg5[%c0_36, %c0_37] : memref<96x64xf32, #tpu.memory_space<vmem>>, vector<96x64xf32>
    %c0_38 = arith.constant 0 : index
    %c0_39 = arith.constant 0 : index
    %31 = vector.load %arg3[%c0_38, %c0_39] : memref<1x64xf32, #tpu.memory_space<vmem>>, vector<1x64xf32>
    %32 = vector.broadcast %31 : vector<1x64xf32> to vector<96x64xf32>
    %33 = arith.addf %30, %32 : vector<96x64xf32>
    %cst_40 = arith.constant 0.000000e+00 : f32
    %34 = vector.broadcast %cst_40 : f32 to vector<96x64xf32>
    %35 = arith.maximumf %33, %34 : vector<96x64xf32>
    %36 = arith.truncf %35 : vector<96x64xf32> to vector<96x64xbf16>
    %c0_41 = arith.constant 0 : index
    %c0_42 = arith.constant 0 : index
    %37 = vector.load %arg4[%c0_41, %c0_42] : memref<96x64xbf16, #tpu.memory_space<vmem>>, vector<96x64xbf16>
    tpu.vector_store %arg4[%c0_41, %c0_42], %36 {strides = array<i32>} : memref<96x64xbf16, #tpu.memory_space<vmem>>, vector<96x64xbf16>,
    return
  }
  func.func @transform_0(%arg0: i32) -> (i32, i32) {
    %c0_i32 = arith.constant 0 : i32
    %c0_i32_0 = arith.constant 0 : i32
    return %arg0, %c0_i32 : i32, i32
  }
  func.func @transform_1(%arg0: i32) -> (i32, i32, i32) {
    %c0_i32 = arith.constant 0 : i32
    %c0_i32_0 = arith.constant 0 : i32
    %c0_i32_1 = arith.constant 0 : i32
    %c0_i32_2 = arith.constant 0 : i32
    return %c0_i32, %c0_i32_0, %c0_i32_1 : i32, i32, i32
  }
  func.func @transform_2(%arg0: i32) -> (i32, i32) {
    %c0_i32 = arith.constant 0 : i32
    %c0_i32_0 = arith.constant 0 : i32
    %c0_i32_1 = arith.constant 0 : i32
    return %c0_i32, %c0_i32_0 : i32, i32
  }
  func.func @transform_3(%arg0: i32) -> (i32, i32) {
    %c0_i32 = arith.constant 0 : i32
    %c0_i32_0 = arith.constant 0 : i32
    return %arg0, %c0_i32 : i32, i32
  }
}

module attributes {stable_mosaic.version = 11 : i64} {
  func.func @_conv_tap_kernel(%arg0: i32, %arg1: memref<96x64xbf16, #tpu.memory_space<vmem>>, %arg2: memref<9x64x64xbf16, #tpu.memory_space<vmem>>, %arg3: memref<1x64xf32, #tpu.memory_space<vmem>>, %arg4: memref<64x64xbf16, #tpu.memory_space<vmem>>, %arg5: memref<64x64xf32, #tpu.memory_space<vmem>>) attributes {dimension_semantics = [#tpu.dimension_semantics<parallel>], iteration_bounds = array<i64: 2>, scalar_prefetch = 0 : i64, scratch_operands = 1 : i64, tpu.core_type = #tpu.core_type<tc>, window_params = [{transform_indices = @transform_0, window_bounds = array<i64: 96, 64>}, {pipeline_mode = #tpu.pipeline_mode<synchronous>, transform_indices = @transform_1, window_bounds = array<i64: 9, 64, 64>}, {pipeline_mode = #tpu.pipeline_mode<synchronous>, transform_indices = @transform_2, window_bounds = array<i64: 1, 64>}, {transform_indices = @transform_3, window_bounds = array<i64: 64, 64>}]} {
    %cst = arith.constant 0.000000e+00 : f32
    %0 = vector.broadcast %cst : f32 to vector<64x64xf32>
    %c0 = arith.constant 0 : index
    %c0_0 = arith.constant 0 : index
    %1 = vector.load %arg5[%c0, %c0_0] : memref<64x64xf32, #tpu.memory_space<vmem>>, vector<64x64xf32>
    tpu.vector_store %arg5[%c0, %c0_0], %0 {strides = array<i32>} : memref<64x64xf32, #tpu.memory_space<vmem>>, vector<64x64xf32>,
    %c0_1 = arith.constant 0 : index
    %c0_2 = arith.constant 0 : index
    %2 = vector.load %arg5[%c0_1, %c0_2] : memref<64x64xf32, #tpu.memory_space<vmem>>, vector<64x64xf32>
    %c0_3 = arith.constant 0 : index
    %c0_4 = arith.constant 0 : index
    %3 = vector.load %arg1[%c0_3, %c0_4] : memref<96x64xbf16, #tpu.memory_space<vmem>>, vector<64x64xbf16>
    %c0_5 = arith.constant 0 : index
    %c0_6 = arith.constant 0 : index
    %c0_7 = arith.constant 0 : index
    %4 = vector.load %arg2[%c0_5, %c0_6, %c0_7] : memref<9x64x64xbf16, #tpu.memory_space<vmem>>, vector<1x64x64xbf16>
    %5 = vector.shape_cast %4 : vector<1x64x64xbf16> to vector<64x64xbf16>
    %cst_8 = arith.constant dense<0.000000e+00> : vector<64x64xf32>
    %6 = tpu.matmul %3, %5, %cst_8 {dimension_numbers = #tpu.dot_dimension_numbers<[1], [0], [0], [1], [0, 0, 1, 1], [], []>} : vector<64x64xbf16>, vector<64x64xbf16>, vector<64x64xf32> -> vector<64x64xf32>
    %7 = arith.addf %2, %6 : vector<64x64xf32>
    %c0_9 = arith.constant 0 : index
    %c0_10 = arith.constant 0 : index
    %8 = vector.load %arg5[%c0_9, %c0_10] : memref<64x64xf32, #tpu.memory_space<vmem>>, vector<64x64xf32>
    tpu.vector_store %arg5[%c0_9, %c0_10], %7 {strides = array<i32>} : memref<64x64xf32, #tpu.memory_space<vmem>>, vector<64x64xf32>,
    %c0_11 = arith.constant 0 : index
    %c0_12 = arith.constant 0 : index
    %9 = vector.load %arg5[%c0_11, %c0_12] : memref<64x64xf32, #tpu.memory_space<vmem>>, vector<64x64xf32>
    %c1 = arith.constant 1 : index
    %c0_13 = arith.constant 0 : index
    %10 = vector.load %arg1[%c1, %c0_13] : memref<96x64xbf16, #tpu.memory_space<vmem>>, vector<64x64xbf16>
    %c1_14 = arith.constant 1 : index
    %c0_15 = arith.constant 0 : index
    %c0_16 = arith.constant 0 : index
    %11 = vector.load %arg2[%c1_14, %c0_15, %c0_16] : memref<9x64x64xbf16, #tpu.memory_space<vmem>>, vector<1x64x64xbf16>
    %12 = vector.shape_cast %11 : vector<1x64x64xbf16> to vector<64x64xbf16>
    %cst_17 = arith.constant dense<0.000000e+00> : vector<64x64xf32>
    %13 = tpu.matmul %10, %12, %cst_17 {dimension_numbers = #tpu.dot_dimension_numbers<[1], [0], [0], [1], [0, 0, 1, 1], [], []>} : vector<64x64xbf16>, vector<64x64xbf16>, vector<64x64xf32> -> vector<64x64xf32>
    %14 = arith.addf %9, %13 : vector<64x64xf32>
    %c0_18 = arith.constant 0 : index
    %c0_19 = arith.constant 0 : index
    %15 = vector.load %arg5[%c0_18, %c0_19] : memref<64x64xf32, #tpu.memory_space<vmem>>, vector<64x64xf32>
    tpu.vector_store %arg5[%c0_18, %c0_19], %14 {strides = array<i32>} : memref<64x64xf32, #tpu.memory_space<vmem>>, vector<64x64xf32>,
    %c0_20 = arith.constant 0 : index
    %c0_21 = arith.constant 0 : index
    %16 = vector.load %arg5[%c0_20, %c0_21] : memref<64x64xf32, #tpu.memory_space<vmem>>, vector<64x64xf32>
    %c2 = arith.constant 2 : index
    %c0_22 = arith.constant 0 : index
    %17 = vector.load %arg1[%c2, %c0_22] : memref<96x64xbf16, #tpu.memory_space<vmem>>, vector<64x64xbf16>
    %c2_23 = arith.constant 2 : index
    %c0_24 = arith.constant 0 : index
    %c0_25 = arith.constant 0 : index
    %18 = vector.load %arg2[%c2_23, %c0_24, %c0_25] : memref<9x64x64xbf16, #tpu.memory_space<vmem>>, vector<1x64x64xbf16>
    %19 = vector.shape_cast %18 : vector<1x64x64xbf16> to vector<64x64xbf16>
    %cst_26 = arith.constant dense<0.000000e+00> : vector<64x64xf32>
    %20 = tpu.matmul %17, %19, %cst_26 {dimension_numbers = #tpu.dot_dimension_numbers<[1], [0], [0], [1], [0, 0, 1, 1], [], []>} : vector<64x64xbf16>, vector<64x64xbf16>, vector<64x64xf32> -> vector<64x64xf32>
    %21 = arith.addf %16, %20 : vector<64x64xf32>
    %c0_27 = arith.constant 0 : index
    %c0_28 = arith.constant 0 : index
    %22 = vector.load %arg5[%c0_27, %c0_28] : memref<64x64xf32, #tpu.memory_space<vmem>>, vector<64x64xf32>
    tpu.vector_store %arg5[%c0_27, %c0_28], %21 {strides = array<i32>} : memref<64x64xf32, #tpu.memory_space<vmem>>, vector<64x64xf32>,
    %c0_29 = arith.constant 0 : index
    %c0_30 = arith.constant 0 : index
    %23 = vector.load %arg5[%c0_29, %c0_30] : memref<64x64xf32, #tpu.memory_space<vmem>>, vector<64x64xf32>
    %c9 = arith.constant 9 : index
    %c0_31 = arith.constant 0 : index
    %24 = vector.load %arg1[%c9, %c0_31] : memref<96x64xbf16, #tpu.memory_space<vmem>>, vector<64x64xbf16>
    %c3 = arith.constant 3 : index
    %c0_32 = arith.constant 0 : index
    %c0_33 = arith.constant 0 : index
    %25 = vector.load %arg2[%c3, %c0_32, %c0_33] : memref<9x64x64xbf16, #tpu.memory_space<vmem>>, vector<1x64x64xbf16>
    %26 = vector.shape_cast %25 : vector<1x64x64xbf16> to vector<64x64xbf16>
    %cst_34 = arith.constant dense<0.000000e+00> : vector<64x64xf32>
    %27 = tpu.matmul %24, %26, %cst_34 {dimension_numbers = #tpu.dot_dimension_numbers<[1], [0], [0], [1], [0, 0, 1, 1], [], []>} : vector<64x64xbf16>, vector<64x64xbf16>, vector<64x64xf32> -> vector<64x64xf32>
    %28 = arith.addf %23, %27 : vector<64x64xf32>
    %c0_35 = arith.constant 0 : index
    %c0_36 = arith.constant 0 : index
    %29 = vector.load %arg5[%c0_35, %c0_36] : memref<64x64xf32, #tpu.memory_space<vmem>>, vector<64x64xf32>
    tpu.vector_store %arg5[%c0_35, %c0_36], %28 {strides = array<i32>} : memref<64x64xf32, #tpu.memory_space<vmem>>, vector<64x64xf32>,
    %c0_37 = arith.constant 0 : index
    %c0_38 = arith.constant 0 : index
    %30 = vector.load %arg5[%c0_37, %c0_38] : memref<64x64xf32, #tpu.memory_space<vmem>>, vector<64x64xf32>
    %c10 = arith.constant 10 : index
    %c0_39 = arith.constant 0 : index
    %31 = vector.load %arg1[%c10, %c0_39] : memref<96x64xbf16, #tpu.memory_space<vmem>>, vector<64x64xbf16>
    %c4 = arith.constant 4 : index
    %c0_40 = arith.constant 0 : index
    %c0_41 = arith.constant 0 : index
    %32 = vector.load %arg2[%c4, %c0_40, %c0_41] : memref<9x64x64xbf16, #tpu.memory_space<vmem>>, vector<1x64x64xbf16>
    %33 = vector.shape_cast %32 : vector<1x64x64xbf16> to vector<64x64xbf16>
    %cst_42 = arith.constant dense<0.000000e+00> : vector<64x64xf32>
    %34 = tpu.matmul %31, %33, %cst_42 {dimension_numbers = #tpu.dot_dimension_numbers<[1], [0], [0], [1], [0, 0, 1, 1], [], []>} : vector<64x64xbf16>, vector<64x64xbf16>, vector<64x64xf32> -> vector<64x64xf32>
    %35 = arith.addf %30, %34 : vector<64x64xf32>
    %c0_43 = arith.constant 0 : index
    %c0_44 = arith.constant 0 : index
    %36 = vector.load %arg5[%c0_43, %c0_44] : memref<64x64xf32, #tpu.memory_space<vmem>>, vector<64x64xf32>
    tpu.vector_store %arg5[%c0_43, %c0_44], %35 {strides = array<i32>} : memref<64x64xf32, #tpu.memory_space<vmem>>, vector<64x64xf32>,
    %c0_45 = arith.constant 0 : index
    %c0_46 = arith.constant 0 : index
    %37 = vector.load %arg5[%c0_45, %c0_46] : memref<64x64xf32, #tpu.memory_space<vmem>>, vector<64x64xf32>
    %c11 = arith.constant 11 : index
    %c0_47 = arith.constant 0 : index
    %38 = vector.load %arg1[%c11, %c0_47] : memref<96x64xbf16, #tpu.memory_space<vmem>>, vector<64x64xbf16>
    %c5 = arith.constant 5 : index
    %c0_48 = arith.constant 0 : index
    %c0_49 = arith.constant 0 : index
    %39 = vector.load %arg2[%c5, %c0_48, %c0_49] : memref<9x64x64xbf16, #tpu.memory_space<vmem>>, vector<1x64x64xbf16>
    %40 = vector.shape_cast %39 : vector<1x64x64xbf16> to vector<64x64xbf16>
    %cst_50 = arith.constant dense<0.000000e+00> : vector<64x64xf32>
    %41 = tpu.matmul %38, %40, %cst_50 {dimension_numbers = #tpu.dot_dimension_numbers<[1], [0], [0], [1], [0, 0, 1, 1], [], []>} : vector<64x64xbf16>, vector<64x64xbf16>, vector<64x64xf32> -> vector<64x64xf32>
    %42 = arith.addf %37, %41 : vector<64x64xf32>
    %c0_51 = arith.constant 0 : index
    %c0_52 = arith.constant 0 : index
    %43 = vector.load %arg5[%c0_51, %c0_52] : memref<64x64xf32, #tpu.memory_space<vmem>>, vector<64x64xf32>
    tpu.vector_store %arg5[%c0_51, %c0_52], %42 {strides = array<i32>} : memref<64x64xf32, #tpu.memory_space<vmem>>, vector<64x64xf32>,
    %c0_53 = arith.constant 0 : index
    %c0_54 = arith.constant 0 : index
    %44 = vector.load %arg5[%c0_53, %c0_54] : memref<64x64xf32, #tpu.memory_space<vmem>>, vector<64x64xf32>
    %c18 = arith.constant 18 : index
    %c0_55 = arith.constant 0 : index
    %45 = vector.load %arg1[%c18, %c0_55] : memref<96x64xbf16, #tpu.memory_space<vmem>>, vector<64x64xbf16>
    %c6 = arith.constant 6 : index
    %c0_56 = arith.constant 0 : index
    %c0_57 = arith.constant 0 : index
    %46 = vector.load %arg2[%c6, %c0_56, %c0_57] : memref<9x64x64xbf16, #tpu.memory_space<vmem>>, vector<1x64x64xbf16>
    %47 = vector.shape_cast %46 : vector<1x64x64xbf16> to vector<64x64xbf16>
    %cst_58 = arith.constant dense<0.000000e+00> : vector<64x64xf32>
    %48 = tpu.matmul %45, %47, %cst_58 {dimension_numbers = #tpu.dot_dimension_numbers<[1], [0], [0], [1], [0, 0, 1, 1], [], []>} : vector<64x64xbf16>, vector<64x64xbf16>, vector<64x64xf32> -> vector<64x64xf32>
    %49 = arith.addf %44, %48 : vector<64x64xf32>
    %c0_59 = arith.constant 0 : index
    %c0_60 = arith.constant 0 : index
    %50 = vector.load %arg5[%c0_59, %c0_60] : memref<64x64xf32, #tpu.memory_space<vmem>>, vector<64x64xf32>
    tpu.vector_store %arg5[%c0_59, %c0_60], %49 {strides = array<i32>} : memref<64x64xf32, #tpu.memory_space<vmem>>, vector<64x64xf32>,
    %c0_61 = arith.constant 0 : index
    %c0_62 = arith.constant 0 : index
    %51 = vector.load %arg5[%c0_61, %c0_62] : memref<64x64xf32, #tpu.memory_space<vmem>>, vector<64x64xf32>
    %c19 = arith.constant 19 : index
    %c0_63 = arith.constant 0 : index
    %52 = vector.load %arg1[%c19, %c0_63] : memref<96x64xbf16, #tpu.memory_space<vmem>>, vector<64x64xbf16>
    %c7 = arith.constant 7 : index
    %c0_64 = arith.constant 0 : index
    %c0_65 = arith.constant 0 : index
    %53 = vector.load %arg2[%c7, %c0_64, %c0_65] : memref<9x64x64xbf16, #tpu.memory_space<vmem>>, vector<1x64x64xbf16>
    %54 = vector.shape_cast %53 : vector<1x64x64xbf16> to vector<64x64xbf16>
    %cst_66 = arith.constant dense<0.000000e+00> : vector<64x64xf32>
    %55 = tpu.matmul %52, %54, %cst_66 {dimension_numbers = #tpu.dot_dimension_numbers<[1], [0], [0], [1], [0, 0, 1, 1], [], []>} : vector<64x64xbf16>, vector<64x64xbf16>, vector<64x64xf32> -> vector<64x64xf32>
    %56 = arith.addf %51, %55 : vector<64x64xf32>
    %c0_67 = arith.constant 0 : index
    %c0_68 = arith.constant 0 : index
    %57 = vector.load %arg5[%c0_67, %c0_68] : memref<64x64xf32, #tpu.memory_space<vmem>>, vector<64x64xf32>
    tpu.vector_store %arg5[%c0_67, %c0_68], %56 {strides = array<i32>} : memref<64x64xf32, #tpu.memory_space<vmem>>, vector<64x64xf32>,
    %c0_69 = arith.constant 0 : index
    %c0_70 = arith.constant 0 : index
    %58 = vector.load %arg5[%c0_69, %c0_70] : memref<64x64xf32, #tpu.memory_space<vmem>>, vector<64x64xf32>
    %c20 = arith.constant 20 : index
    %c0_71 = arith.constant 0 : index
    %59 = vector.load %arg1[%c20, %c0_71] : memref<96x64xbf16, #tpu.memory_space<vmem>>, vector<64x64xbf16>
    %c8 = arith.constant 8 : index
    %c0_72 = arith.constant 0 : index
    %c0_73 = arith.constant 0 : index
    %60 = vector.load %arg2[%c8, %c0_72, %c0_73] : memref<9x64x64xbf16, #tpu.memory_space<vmem>>, vector<1x64x64xbf16>
    %61 = vector.shape_cast %60 : vector<1x64x64xbf16> to vector<64x64xbf16>
    %cst_74 = arith.constant dense<0.000000e+00> : vector<64x64xf32>
    %62 = tpu.matmul %59, %61, %cst_74 {dimension_numbers = #tpu.dot_dimension_numbers<[1], [0], [0], [1], [0, 0, 1, 1], [], []>} : vector<64x64xbf16>, vector<64x64xbf16>, vector<64x64xf32> -> vector<64x64xf32>
    %63 = arith.addf %58, %62 : vector<64x64xf32>
    %c0_75 = arith.constant 0 : index
    %c0_76 = arith.constant 0 : index
    %64 = vector.load %arg5[%c0_75, %c0_76] : memref<64x64xf32, #tpu.memory_space<vmem>>, vector<64x64xf32>
    tpu.vector_store %arg5[%c0_75, %c0_76], %63 {strides = array<i32>} : memref<64x64xf32, #tpu.memory_space<vmem>>, vector<64x64xf32>,
    %c0_77 = arith.constant 0 : index
    %c0_78 = arith.constant 0 : index
    %65 = vector.load %arg5[%c0_77, %c0_78] : memref<64x64xf32, #tpu.memory_space<vmem>>, vector<64x64xf32>
    %c0_79 = arith.constant 0 : index
    %c0_80 = arith.constant 0 : index
    %66 = vector.load %arg3[%c0_79, %c0_80] : memref<1x64xf32, #tpu.memory_space<vmem>>, vector<1x64xf32>
    %67 = vector.broadcast %66 : vector<1x64xf32> to vector<64x64xf32>
    %68 = arith.addf %65, %67 : vector<64x64xf32>
    %cst_81 = arith.constant 0.000000e+00 : f32
    %69 = vector.broadcast %cst_81 : f32 to vector<64x64xf32>
    %70 = arith.maximumf %68, %69 : vector<64x64xf32>
    %71 = arith.truncf %70 : vector<64x64xf32> to vector<64x64xbf16>
    %c0_82 = arith.constant 0 : index
    %c0_83 = arith.constant 0 : index
    %72 = vector.load %arg4[%c0_82, %c0_83] : memref<64x64xbf16, #tpu.memory_space<vmem>>, vector<64x64xbf16>
    tpu.vector_store %arg4[%c0_82, %c0_83], %71 {strides = array<i32>} : memref<64x64xbf16, #tpu.memory_space<vmem>>, vector<64x64xbf16>,
    return
  }
  func.func @transform_0(%arg0: i32) -> (i32, i32) {
    %c0_i32 = arith.constant 0 : i32
    %c0_i32_0 = arith.constant 0 : i32
    return %arg0, %c0_i32 : i32, i32
  }
  func.func @transform_1(%arg0: i32) -> (i32, i32, i32) {
    %c0_i32 = arith.constant 0 : i32
    %c0_i32_0 = arith.constant 0 : i32
    %c0_i32_1 = arith.constant 0 : i32
    %c0_i32_2 = arith.constant 0 : i32
    return %c0_i32, %c0_i32_0, %c0_i32_1 : i32, i32, i32
  }
  func.func @transform_2(%arg0: i32) -> (i32, i32) {
    %c0_i32 = arith.constant 0 : i32
    %c0_i32_0 = arith.constant 0 : i32
    %c0_i32_1 = arith.constant 0 : i32
    return %c0_i32, %c0_i32_0 : i32, i32
  }
  func.func @transform_3(%arg0: i32) -> (i32, i32) {
    %c0_i32 = arith.constant 0 : i32
    %c0_i32_0 = arith.constant 0 : i32
    return %arg0, %c0_i32 : i32, i32
  }
}

module attributes {stable_mosaic.version = 11 : i64} {
  func.func @_fc1_heads_kernel(%arg0: i32, %arg1: memref<2x3136xbf16, #tpu.memory_space<vmem>>, %arg2: memref<3136x512xbf16, #tpu.memory_space<vmem>>, %arg3: memref<1x512xf32, #tpu.memory_space<vmem>>, %arg4: memref<512x128xbf16, #tpu.memory_space<vmem>>, %arg5: memref<1x128xf32, #tpu.memory_space<vmem>>, %arg6: memref<2x128xf32, #tpu.memory_space<vmem>>) attributes {dimension_semantics = [#tpu.dimension_semantics<parallel>], iteration_bounds = array<i64: 1>, scalar_prefetch = 0 : i64, scratch_operands = 0 : i64, tpu.core_type = #tpu.core_type<tc>, window_params = [{transform_indices = @transform_0, window_bounds = array<i64: 2, 3136>}, {pipeline_mode = #tpu.pipeline_mode<synchronous>, transform_indices = @transform_1, window_bounds = array<i64: 3136, 512>}, {pipeline_mode = #tpu.pipeline_mode<synchronous>, transform_indices = @transform_2, window_bounds = array<i64: 1, 512>}, {pipeline_mode = #tpu.pipeline_mode<synchronous>, transform_indices = @transform_3, window_bounds = array<i64: 512, 128>}, {pipeline_mode = #tpu.pipeline_mode<synchronous>, transform_indices = @transform_4, window_bounds = array<i64: 1, 128>}, {transform_indices = @transform_5, window_bounds = array<i64: 2, 128>}]} {
    %c0 = arith.constant 0 : index
    %c0_0 = arith.constant 0 : index
    %0 = vector.load %arg1[%c0, %c0_0] : memref<2x3136xbf16, #tpu.memory_space<vmem>>, vector<2x3136xbf16>
    %c0_1 = arith.constant 0 : index
    %c0_2 = arith.constant 0 : index
    %1 = vector.load %arg2[%c0_1, %c0_2] : memref<3136x512xbf16, #tpu.memory_space<vmem>>, vector<3136x512xbf16>
    %cst = arith.constant dense<0.000000e+00> : vector<2x512xf32>
    %2 = tpu.matmul %0, %1, %cst {dimension_numbers = #tpu.dot_dimension_numbers<[1], [0], [0], [1], [0, 0, 1, 1], [], []>} : vector<2x3136xbf16>, vector<3136x512xbf16>, vector<2x512xf32> -> vector<2x512xf32>
    %c0_3 = arith.constant 0 : index
    %c0_4 = arith.constant 0 : index
    %3 = vector.load %arg3[%c0_3, %c0_4] : memref<1x512xf32, #tpu.memory_space<vmem>>, vector<1x512xf32>
    %4 = vector.broadcast %3 : vector<1x512xf32> to vector<2x512xf32>
    %5 = arith.addf %2, %4 : vector<2x512xf32>
    %cst_5 = arith.constant 0.000000e+00 : f32
    %6 = vector.broadcast %cst_5 : f32 to vector<2x512xf32>
    %7 = arith.maximumf %5, %6 : vector<2x512xf32>
    %8 = arith.truncf %7 : vector<2x512xf32> to vector<2x512xbf16>
    %c0_6 = arith.constant 0 : index
    %c0_7 = arith.constant 0 : index
    %9 = vector.load %arg4[%c0_6, %c0_7] : memref<512x128xbf16, #tpu.memory_space<vmem>>, vector<512x128xbf16>
    %cst_8 = arith.constant dense<0.000000e+00> : vector<2x128xf32>
    %10 = tpu.matmul %8, %9, %cst_8 {dimension_numbers = #tpu.dot_dimension_numbers<[1], [0], [0], [1], [0, 0, 1, 1], [], []>} : vector<2x512xbf16>, vector<512x128xbf16>, vector<2x128xf32> -> vector<2x128xf32>
    %c0_9 = arith.constant 0 : index
    %c0_10 = arith.constant 0 : index
    %11 = vector.load %arg5[%c0_9, %c0_10] : memref<1x128xf32, #tpu.memory_space<vmem>>, vector<1x128xf32>
    %12 = vector.broadcast %11 : vector<1x128xf32> to vector<2x128xf32>
    %13 = arith.addf %10, %12 : vector<2x128xf32>
    %14 = tpu.iota {dimensions = array<i32: 1>} : vector<2x128xi32>
    %c3_i32 = arith.constant 3 : i32
    %15 = vector.broadcast %c3_i32 : i32 to vector<2x128xi32>
    %16 = arith.cmpi slt, %14, %15 : vector<2x128xi32>
    %cst_11 = arith.constant -1.000000e+30 : f32
    %17 = vector.broadcast %cst_11 : f32 to vector<2x128xf32>
    %18 = arith.select %16, %13, %17 : vector<2x128xi1>, vector<2x128xf32>
    %cst_12 = arith.constant dense<0xFF800000> : vector<2xf32>
    %19 = vector.multi_reduction <maximumf>, %18, %cst_12 [1] : vector<2x128xf32> to vector<2xf32>
    %20 = vector.shape_cast %19 : vector<2xf32> to vector<2x1xf32>
    %21 = vector.broadcast %20 : vector<2x1xf32> to vector<2x128xf32>
    %22 = arith.subf %13, %21 : vector<2x128xf32>
    %cst_13 = arith.constant -1.000000e+30 : f32
    %23 = vector.broadcast %cst_13 : f32 to vector<2x128xf32>
    %24 = arith.select %16, %22, %23 : vector<2x128xi1>, vector<2x128xf32>
    %25 = math.exp %24 : vector<2x128xf32>
    %cst_14 = arith.constant dense<0.000000e+00> : vector<2xf32>
    %26 = vector.multi_reduction <add>, %25, %cst_14 [1] : vector<2x128xf32> to vector<2xf32>
    %27 = vector.shape_cast %26 : vector<2xf32> to vector<2x1xf32>
    %28 = math.log %27 : vector<2x1xf32>
    %29 = arith.addf %20, %28 : vector<2x1xf32>
    %c4_i32 = arith.constant 4 : i32
    %30 = vector.broadcast %c4_i32 : i32 to vector<2x128xi32>
    %31 = arith.cmpi slt, %14, %30 : vector<2x128xi32>
    %c4_i32_15 = arith.constant 4 : i32
    %32 = vector.broadcast %c4_i32_15 : i32 to vector<2x128xi32>
    %33 = arith.cmpi eq, %14, %32 : vector<2x128xi32>
    %cst_16 = arith.constant 0.000000e+00 : f32
    %34 = vector.shape_cast %29 : vector<2x1xf32> to vector<2x1xf32>
    %35 = vector.broadcast %34 : vector<2x1xf32> to vector<2x128xf32>
    %36 = vector.broadcast %cst_16 : f32 to vector<2x128xf32>
    %37 = arith.select %33, %35, %36 : vector<2x128xi1>, vector<2x128xf32>
    %38 = arith.select %31, %13, %37 : vector<2x128xi1>, vector<2x128xf32>
    %c0_17 = arith.constant 0 : index
    %c0_18 = arith.constant 0 : index
    %39 = vector.load %arg6[%c0_17, %c0_18] : memref<2x128xf32, #tpu.memory_space<vmem>>, vector<2x128xf32>
    tpu.vector_store %arg6[%c0_17, %c0_18], %38 {strides = array<i32>} : memref<2x128xf32, #tpu.memory_space<vmem>>, vector<2x128xf32>,
    return
  }
  func.func @transform_0(%arg0: i32) -> (i32, i32) {
    %c0_i32 = arith.constant 0 : i32
    %c0_i32_0 = arith.constant 0 : i32
    return %arg0, %c0_i32 : i32, i32
  }
  func.func @transform_1(%arg0: i32) -> (i32, i32) {
    %c0_i32 = arith.constant 0 : i32
    %c0_i32_0 = arith.constant 0 : i32
    %c0_i32_1 = arith.constant 0 : i32
    return %c0_i32, %c0_i32_0 : i32, i32
  }
  func.func @transform_2(%arg0: i32) -> (i32, i32) {
    %c0_i32 = arith.constant 0 : i32
    %c0_i32_0 = arith.constant 0 : i32
    %c0_i32_1 = arith.constant 0 : i32
    return %c0_i32, %c0_i32_0 : i32, i32
  }
  func.func @transform_3(%arg0: i32) -> (i32, i32) {
    %c0_i32 = arith.constant 0 : i32
    %c0_i32_0 = arith.constant 0 : i32
    %c0_i32_1 = arith.constant 0 : i32
    return %c0_i32, %c0_i32_0 : i32, i32
  }
  func.func @transform_4(%arg0: i32) -> (i32, i32) {
    %c0_i32 = arith.constant 0 : i32
    %c0_i32_0 = arith.constant 0 : i32
    %c0_i32_1 = arith.constant 0 : i32
    return %c0_i32, %c0_i32_0 : i32, i32
  }
  func.func @transform_5(%arg0: i32) -> (i32, i32) {
    %c0_i32 = arith.constant 0 : i32
    %c0_i32_0 = arith.constant 0 : i32
    return %arg0, %c0_i32 : i32, i32
  }
}

</mosaic_0001>

<bundles_post_ra>
// kernel: policy_forward.4
= control target key start
LH: loop header
LB: loop body
LE: loop exit
PB: predicated region body
PF: predicated region fallthrough
CT: control target
= control target key end

     0   :  { %s5256_s12 = smov 0   ;;  %s6452_s0 = inlined_call_operand.vmem [shape: bf16[928,64], index: 0, kind: input, shape index: {}]   ;;  %s6453_s1 = inlined_call_operand.vmem [shape: bf16[4,64,32], index: 1, kind: input, shape index: {}]   ;;  %s6454_s2 = inlined_call_operand.vmem [shape: f32[1,32], index: 2, kind: input, shape index: {}]   ;;  %s6455_s3 = inlined_call_operand.vmem [shape: bf16[864,32], index: 3, kind: output, shape index: {}]  }
   0x1 LB: > { %s4123_s13 = sadd.s32 4294967295, %s5232_s12   ;;  %p4127_p0 = scmp.ge.s32.totalorder %s5232_s12, 1  ;;  %s5232_s12 = sphi %s5256_s12, %s13_s12  }
   0x2   : > { %p138_p1 = scmp.lt.s32.totalorder %s5232_s12, 3 }
   0x4   : > { %p139_p2 = pnand %p4127_p0, %p138_p1 }
   0x5   : > { %v5098_v0 = vld [vmem:[%s6453_s1] sm:$0xff] (!%p139_p2)   ;;  %v5234_v1 = vmov (!%p139_p2), 0.0   ;;  %v5099_v2 = vld [vmem:[%s6453_s1 + $0x8] sm:$0xff] (!%p139_p2)   ;;  %vm5235_vm0 = vmmov (!%p139_p2), 0   ;;  %s162_s18 = smul.u32 (!%p139_p2), 58, %s4123_s13  ;;  %v5100_v5 = vld [vmem:[%s6453_s1 + $0x10] sm:$0xff] (!%p139_p2)  }
   0x6   : > { %142 = sbr.rel (%p139_p2) target bundleno = 687 (0x2af), region = 32  ;;  %4624 = vmatprep.subr.bf16.mxu0 (!%p139_p2), %v5234_v1  ;;  %4740 = vmatprep.subr.bf16.mxu1 (!%p139_p2), %v5234_v1  ;;  %v5101_v3 = vld [vmem:[%s6453_s1 + $0x20] sm:$0xff] (!%p139_p2)   ;;  %v5103_v4 = vld [vmem:[%s6453_s1 + $0x28] sm:$0xff] (!%p139_p2)   ;;  %v5105_v6 = vld [vmem:[%s6453_s1 + $0x30] sm:$0xff] (!%p139_p2)   ;;  %vm505_vm1 = vcmask (!%p139_p2), 523264   ;;  %vm175_vm3 = vcmask (!%p139_p2), 261120  }
   0x7   : > { %4625 = vmatpush3.bf16.msra.mxu0 (!%p139_p2), %v5098_v0  ;;  %4632 = vmatprep.mubr.msk.bf16.mxu0 (!%p139_p2), %vm5235_vm0, %v5234_v1  ;;  %p163_p3 = scmp.lt.s32.totalorder (!%p139_p2), %s162_s18, 115  ;;  %v5102_v7 = vld [vmem:[%s6453_s1 + $0x18] sm:$0xff] (!%p139_p2)   ;;  %v5106_v12 = vld [vmem:[%s6453_s1 + $0x40] sm:$0xff] (!%p139_p2)   ;;  %vm1200_vm2 = vsmask.f32 (!%p139_p2), 7424  ;;  %v5122_v28 = vld [vmem:[%s6453_s1 + $0x48] sm:$0xff] (!%p139_p2)  }
   0x8   : > { %4626 = vmatprep.subr.bf16.mxu0 (!%p139_p2), %v5234_v1  ;;  %4748 = vmatprep.mubr.msk.bf16.mxu1 (!%p139_p2), %vm5235_vm0, %v5234_v1  ;;  %v5107_v9 = vld [vmem:[%s6453_s1 + $0x38] sm:$0xff] (!%p139_p2)   ;;  %v5111_v19 = vld [vmem:[%s6453_s1 + $0x60] sm:$0xff] (!%p139_p2)   ;;  %v5127_v36 = vld [vmem:[%s6453_s1 + $0x68] sm:$0xff] (!%p139_p2)   ;;  %176 = vst.msk [vmem:[#allocation2] sm:$0xff] (!%p139_p2), %vm175_vm3, %v5234_v1  ;;  %vm2139_vm4 = vsmask.f32 (!%p139_p2), 5376 }
   0x9   : > { %4741 = vmatpush3.bf16.msra.mxu1 (!%p139_p2), %v5101_v3  ;;  %v5138_v46 = vld [vmem:[%s6453_s1 + $0x50] sm:$0xff] (!%p139_p2)   ;;  %v5154_v63 = vld [vmem:[%s6453_s1 + $0x58] sm:$0xff] (!%p139_p2)   ;;  %177 = vst.msk [vmem:[#allocation2 + $0x8] sm:$0xff] (!%p139_p2), %vm175_vm3, %v5234_v1  ;;  %178 = vst.msk [vmem:[#allocation2 + $0x10] sm:$0xff] (!%p139_p2), %vm175_vm3, %v5234_v1  ;;  %vm3109_vm5 = vcmask (!%p139_p2), 1044480   ;;  %s168_s26 = smul.u32 (!%p139_p2), 54, %s4123_s13 }
   0xa   : > { %4742 = vmatprep.subr.bf16.mxu1 (!%p139_p2), %v5234_v1  ;;  %v5141_v49 = vld [vmem:[%s6453_s1 + $0x70] sm:$0xff] (!%p139_p2)   ;;  %179 = vst.msk [vmem:[#allocation2 + $0x18] sm:$0xff] (!%p139_p2), %vm175_vm3, %v5234_v1  ;;  %180 = vst.msk [vmem:[#allocation2 + $0x20] sm:$0xff] (!%p139_p2), %vm175_vm3, %v5234_v1  ;;  %vm4012_vm6 = vcmask (!%p139_p2), 257024  }
   0xb   : > { %4627 = vmatpush3.bf16.msra.mxu0 (!%p139_p2), %v5099_v2  ;;  %v5157_v2 = vld [vmem:[%s6453_s1 + $0x78] sm:$0xff] (!%p139_p2)   ;;  %181 = vst.msk [vmem:[#allocation2 + $0x28] sm:$0xff] (!%p139_p2), %vm175_vm3, %v5234_v1  ;;  %182 = vst.msk [vmem:[#allocation2 + $0x30] sm:$0xff] (!%p139_p2), %vm175_vm3, %v5234_v1  ;;  %p169_p4 = scmp.lt.s32.totalorder (!%p139_p2), %s168_s26, 107 }
   0xc   : > { %4628 = vmatprep.subr.bf16.mxu0 (!%p139_p2), %v5234_v1  ;;  %183 = vst.msk [vmem:[#allocation2 + $0x38] sm:$0xff] (!%p139_p2), %vm175_vm3, %v5234_v1  ;;  %184 = vst.msk [vmem:[#allocation2 + $0x40] sm:$0xff] (!%p139_p2), %vm175_vm3, %v5234_v1 }
   0xd   : > { %s6457_s18 = smov (!%p163_p3, %s162_s18), 115  ;;  %4743 = vmatpush3.bf16.msra.mxu1 %v5103_v4  ;;  %185 = vst.msk [vmem:[#allocation2 + $0x48] sm:$0xff] %vm175_vm3, %v5234_v1  ;;  %186 = vst.msk [vmem:[#allocation2 + $0x50] sm:$0xff] %vm175_vm3, %v5234_v1  ;;  %s6459_s26 = smov (!%p169_p4, %s168_s26), 107 }
   0xe   : > { %s4128_s25 = sshll.u32 %s6457_s18, 2  ;;  %4744 = vmatprep.subr.bf16.mxu1 %v5234_v1  ;;  %187 = vst.msk [vmem:[#allocation2 + $0x58] sm:$0xff] %vm175_vm3, %v5234_v1  ;;  %188 = vst.msk [vmem:[#allocation2 + $0x60] sm:$0xff] %vm175_vm3, %v5234_v1 }
   0xf   : > { %s5293_s28 = scalar_lea.vmem %s6452_s0, %s4128_s25  ;;  %4629 = vmatpush3.bf16.msra.mxu0 %v5100_v5  ;;  %189 = vst.msk [vmem:[#allocation2 + $0x68] sm:$0xff] %vm175_vm3, %v5234_v1  ;;  %190 = vst.msk [vmem:[#allocation2 + $0x70] sm:$0xff] %vm175_vm3, %v5234_v1 }
  0x10   : > { %4630 = vmatprep.subr.bf16.mxu0 %v5234_v1  ;;  %v5104_v8 = vld [vmem:[%s5293_s28] sm:$0xff]   ;;  %v5110_v11 = vld [vmem:[%s5293_s28 + $0x8] sm:$0xff]   ;;  %v5113_v16 = vld [vmem:[%s5293_s28 + $0x10] sm:$0xff]   ;;  %191 = vst.msk [vmem:[#allocation2 + $0x78] sm:$0xff] %vm175_vm3, %v5234_v1 }
  0x11   : > { %4745 = vmatpush3.bf16.msra.mxu1 %v5105_v6  ;;  %v5109_v10 = vld [vmem:[%s5293_s28] sm:$0xff]   ;;  %v1209_v15 = vshll.u32 %v5110_v11, 16  ;;  %v1213_v21 = vshrl.u32 %v5110_v11, 16  ;;  %v1217_v22 = vshll.u32 %v5113_v16, 16  ;;  %v5108_v23 = vld [vmem:[%s5293_s28 + $0x8] sm:$0xff]   ;;  %v5115_v27 = vld [vmem:[%s5293_s28 + $0x18] sm:$0xff]  }
  0x12   : > { %4746 = vmatprep.subr.bf16.mxu1 %v5234_v1  ;;  %v1202_v13 = vshrl.u32 %v5109_v10, 16  ;;  %v1204_v14 = vshll.u32 %v5109_v10, 16  ;;  %v1221_v30 = vshrl.u32 %v5113_v16, 16  ;;  %v1225_v31 = vshll.u32 %v5115_v27, 16  ;;  %v5112_v32 = vld [vmem:[%s5293_s28 + $0x10] sm:$0xff]   ;;  %v5117_v33 = vld [vmem:[%s5293_s28 + $0x20] sm:$0xff]  }
  0x13   : > { %4631 = vmatpush3.bf16.msra.mxu0 %v5102_v7  ;;  %v1211_v18 = vrot.slane %v1209_v15, 1  ;;  %v1219_v26 = vrot.slane %v1217_v22, 1  ;;  %v1229_v38 = vshrl.u32 %v5115_v27, 16  ;;  %v1233_v39 = vshll.u32 %v5117_v33, 16  ;;  %v5114_v40 = vld [vmem:[%s5293_s28 + $0x18] sm:$0xff]   ;;  %v5119_v41 = vld [vmem:[%s5293_s28 + $0x28] sm:$0xff]  }
  0x14   : > { %4856 = vmatprep.subr.bf16.mxu0 %v5234_v1  ;;  %v1206_v17 = vrot.slane %v1204_v14, 1  ;;  %v1227_v35 = vrot.slane %v1225_v31, 1  ;;  %v1237_v44 = vshrl.u32 %v5117_v33, 16  ;;  %v1241_v45 = vshll.u32 %v5119_v41, 16  ;;  %v5116_v48 = vld [vmem:[%s5293_s28 + $0x20] sm:$0xff]   ;;  %v5121_v50 = vld [vmem:[%s5293_s28 + $0x30] sm:$0xff]  }
  0x15   : > { %4747 = vmatpush3.bf16.msra.mxu1 %v5107_v9  ;;  %v1215_v25 = vor.u32 %v1213_v21, %v1211_v18  ;;  %v1223_v34 = vor.u32 %v1221_v30, %v1219_v26  ;;  %v1235_v43 = vrot.slane %v1233_v39, 1  ;;  %v1245_v53 = vshrl.u32 %v5119_v41, 16  ;;  %v5118_v56 = vld [vmem:[%s5293_s28 + $0x28] sm:$0xff]   ;;  %v5124_v59 = vld [vmem:[%s5293_s28 + $0x38] sm:$0xff]   ;;  %v5120_v0 = vld [vmem:[%s5293_s28 + $0x30] sm:$0xff]   ;;  %192 = vst.msk [vmem:[#allocation2 + $0x80] sm:$0xff] %vm175_vm3, %v5234_v1 }
  0x16   : > { %4633 = vmatmul.mubr.msk.bf16.vlgmr.msra.gmra.mrb[0].mxu0 %vm505_vm1, %v5104_v8  ;;  %v1207_v20 = vor.u32 %v1206_v17, %v1202_v13  ;;  %4972 = vmatprep.subr.bf16.mxu1 %v5234_v1  ;;  %v1231_v42 = vor.u32 %v1229_v38, %v1227_v35  ;;  %v1243_v52 = vrot.slane %v1241_v45, 1  ;;  %v1249_v54 = vshll.u32 %v5121_v50, 16  ;;  %v5126_v5 = vld [vmem:[%s5293_s28 + $0x40] sm:$0xff]   ;;  %v5123_v9 = vld [vmem:[%s5293_s28 + $0x38] sm:$0xff]   ;;  %v5129_v10 = vld [vmem:[%s5293_s28 + $0x48] sm:$0xff]   ;;  %193 = vst.msk [vmem:[#allocation2 + $0x88] sm:$0xff] %vm175_vm3, %v5234_v1 }
  0x17   : > { %4857 = vmatpush3.bf16.msra.mxu0 %v5106_v12  ;;  %4636 = vmatprep.mubr.msk.bf16.mxu0 %vm5235_vm0, %v5234_v1  ;;  %v1220_v29 = vsel %vm1200_vm2, %v1215_v25, %v1219_v26  ;;  %v1228_v37 = vsel %vm1200_vm2, %v1223_v34, %v1227_v35  ;;  %v1239_v51 = vor.u32 %v1237_v44, %v1235_v43  ;;  %v1253_v61 = vshrl.u32 %v5121_v50, 16  ;;  %v5125_v14 = vld [vmem:[%s5293_s28 + $0x40] sm:$0xff]   ;;  %v5128_v21 = vld [vmem:[%s5293_s28 + $0x48] sm:$0xff]   ;;  %v5426_v25 = vld [vmem:[%s5293_s28 + $0x58] sm:$0xff]  }
  0x18   : > { %4858 = vmatprep.subr.bf16.mxu0 %v5234_v1  ;;  %v1212_v24 = vsel %vm1200_vm2, %v1207_v20, %v1211_v18  ;;  %v1236_v47 = vsel %vm1200_vm2, %v1231_v42, %v1235_v43  ;;  %v1247_v57 = vor.u32 %v1245_v53, %v1243_v52  ;;  %v1251_v58 = vrot.slane %v1249_v54, 1  ;;  %v5412_v18 = vld [vmem:[%s5293_s28 + $0x50] sm:$0xff]   ;;  %194 = vst.msk [vmem:[#allocation2 + $0x90] sm:$0xff] %vm175_vm3, %v5234_v1  ;;  %v5137_v38 = vld [vmem:[%s5293_s28 + $0x68] sm:$0xff]   ;;  %v5134_v44 = vld [vmem:[%s5293_s28 + $0x60] sm:$0xff]  }
  0x19   : > { %4749 = vmatmul.mubr.msk.bf16.vlgmr.msra.gmra.mrb[0].mxu1 %vm505_vm1, %v1212_v24  ;;  %v1244_v55 = vsel %vm1200_vm2, %v1239_v51, %v1243_v52  ;;  %v1257_v62 = vshll.u32 %v5124_v59, 16  ;;  %v1261_v7 = vshrl.u32 %v5124_v59, 16  ;;  %v1265_v8 = vshll.u32 %v5126_v5, 16  ;;  %v5130_v30 = vld [vmem:[%s5293_s28 + $0x50] sm:$0xff]   ;;  %195 = vst.msk [vmem:[#allocation2 + $0x98] sm:$0xff] %vm175_vm3, %v5234_v1  ;;  %196 = vst.msk [vmem:[#allocation2 + $0xa0] sm:$0xff] %vm175_vm3, %v5234_v1 }
  0x1a   : > { %4973 = vmatpush3.bf16.msra.mxu1 %v5111_v19  ;;  %4752 = vmatprep.mubr.msk.bf16.mxu1 %vm5235_vm0, %v5234_v1  ;;  %v1252_v60 = vsel %vm1200_vm2, %v1247_v57, %v1251_v58  ;;  %v1255_v3 = vor.u32 %v1253_v61, %v1251_v58  ;;  %v1273_v13 = vshll.u32 %v5129_v10, 16  ;;  %v1269_v16 = vshrl.u32 %v5126_v5, 16  ;;  %197 = vst.msk [vmem:[#allocation2 + $0xa8] sm:$0xff] %vm175_vm3, %v5234_v1  ;;  %v5136_v51 = vld [vmem:[%s5293_s28 + $0x68] sm:$0xff]   ;;  %v5143_v53 = vld [vmem:[%s5293_s28 + $0x78] sm:$0xff]   ;;  %v5139_v58 = vld [vmem:[%s5293_s28 + $0x70] sm:$0xff]  }
  0x1b   : > { %4974 = vmatprep.subr.bf16.mxu1 %v5234_v1  ;;  %4859 = vmatpush3.bf16.msra.mxu0 %v5122_v28  ;;  %v1259_v4 = vrot.slane %v1257_v62, 1  ;;  %v1267_v12 = vrot.slane %v1265_v8, 1  ;;  %v1281_v20 = vshll.u32 %v5412_v18, 16  ;;  %v1289_v27 = vshll.u32 %v5426_v25, 16  ;;  %198 = vst.msk [vmem:[#allocation2 + $0xb0] sm:$0xff] %vm175_vm3, %v5234_v1  ;;  %199 = vst.msk [vmem:[#allocation2 + $0xb8] sm:$0xff] %vm175_vm3, %v5234_v1 }
  0x1c   : > { %4860 = vmatprep.subr.bf16.mxu0 %v5234_v1  ;;  %v1275_v17 = vrot.slane %v1273_v13, 1  ;;  %200 = vst.msk [vmem:[#allocation2 + $0xc0] sm:$0xff] %vm175_vm3, %v5234_v1  ;;  %201 = vst.msk [vmem:[#allocation2 + $0xc8] sm:$0xff] %vm175_vm3, %v5234_v1  ;;  %v1293_v35 = vshrl.u32 %v5426_v25, 16  ;;  %v1305_v41 = vshll.u32 %v5137_v38, 16  ;;  %v1309_v50 = vshrl.u32 %v5137_v38, 16 }
  0x1d   : > { %v1260_v6 = vsel %vm1200_vm2, %v1255_v3, %v1259_v4  ;;  %v1263_v11 = vor.u32 %v1261_v7, %v1259_v4  ;;  %v1271_v19 = vor.u32 %v1269_v16, %v1267_v12  ;;  %v5423_v24 = vrot.slane %v1281_v20, 1  ;;  %202 = vst.msk [vmem:[#allocation2 + $0xd0] sm:$0xff] %vm175_vm3, %v5234_v1  ;;  %203 = vst.msk [vmem:[#allocation2 + $0xd8] sm:$0xff] %vm175_vm3, %v5234_v1  ;;  %v5145_v61 = vld [vmem:[%s5293_s28 + $0x80] sm:$0xff]   ;;  %v5147_v5 = vld [vmem:[%s5293_s28 + $0x88] sm:$0xff]  }
  0x1e   : > { %4637 = vmatmul.mubr.msk.bf16.gmra.mrb[4].mxu0 %vm505_vm1, %v5108_v23  ;;  %4975 = vmatpush3.bf16.msra.mxu1 %v5127_v36  ;;  %v1277_v23 = vshrl.u32 %v5129_v10, 16  ;;  %v5439_v31 = vrot.slane %v1289_v27, 1  ;;  %204 = vst.msk [vmem:[#allocation2 + $0xe0] sm:$0xff] %vm175_vm3, %v5234_v1  ;;  %205 = vst.msk [vmem:[#allocation2 + $0xe8] sm:$0xff] %vm175_vm3, %v5234_v1  ;;  %v1307_v45 = vrot.slane %v1305_v41, 1  ;;  %v1321_v57 = vshll.u32 %v5143_v53, 16 }
  0x1f   : > { %4640 = vmatprep.mubr.msk.bf16.mxu0 %vm5235_vm0, %v5234_v1  ;;  %4976 = vmatprep.subr.bf16.mxu1 %v5234_v1  ;;  %v1268_v15 = vsel %vm1200_vm2, %v1263_v11, %v1267_v12  ;;  %v1276_v22 = vsel %vm1200_vm2, %v1271_v19, %v1275_v17  ;;  %206 = vst.msk [vmem:[#allocation2 + $0xf0] sm:$0xff] %vm175_vm3, %v5234_v1  ;;  %207 = vst.msk [vmem:[#allocation2 + $0xf8] sm:$0xff] %vm175_vm3, %v5234_v1  ;;  %v1333_v7 = vshrl.u32 %v5145_v61, 16  ;;  %v5149_v12 = vld [vmem:[%s5293_s28 + $0x90] sm:$0xff]   ;;  %v5146_v16 = vld [vmem:[%s5293_s28 + $0x88] sm:$0xff]  }
  0x20   : > { %4861 = vmatpush3.bf16.msra.mxu0 %v5138_v46  ;;  %v1279_v26 = vor.u32 %v1277_v23, %v1275_v17  ;;  %208 = vst.msk [vmem:[#allocation2 + $0x100] sm:$0xff] %vm175_vm3, %v5234_v1  ;;  %209 = vst.msk [vmem:[#allocation2 + $0x108] sm:$0xff] %vm175_vm3, %v5234_v1  ;;  %v1295_v39 = vor.u32 %v1293_v35, %v5439_v31  ;;  %v5140_v46 = vld [vmem:[%s5293_s28 + $0x70] sm:$0xff]   ;;  %v1311_v54 = vor.u32 %v1309_v50, %v1307_v45  ;;  %v5151_v19 = vld [vmem:[%s5293_s28 + $0x98] sm:$0xff]  }
  0x21   : > { %4753 = vmatmul.mubr.msk.bf16.gmra.mrb[4].mxu1 %vm505_vm1, %v1220_v29  ;;  %4862 = vmatprep.subr.bf16.mxu0 %v5234_v1  ;;  %v1285_v29 = vshrl.u32 %v5412_v18, 16  ;;  %210 = vst.msk [vmem:[#allocation2 + $0x110] sm:$0xff] %vm175_vm3, %v5234_v1  ;;  %211 = vst.msk [vmem:[#allocation2 + $0x118] sm:$0xff] %vm175_vm3, %v5234_v1  ;;  %v1337_v8 = vshll.u32 %v5147_v5, 16  ;;  %v5148_v23 = vld [vmem:[%s5293_s28 + $0x90] sm:$0xff]  }
  0x22   : > { %4756 = vmatprep.mubr.msk.bf16.mxu1 %vm5235_vm0, %v5234_v1  ;;  %4977 = vmatpush3.bf16.msra.mxu1 %v5141_v49  ;;  %v1284_v28 = vsel %vm1200_vm2, %v1279_v26, %v5423_v24  ;;  %212 = vst.msk [vmem:[#allocation2 + $0x120] sm:$0xff] %vm175_vm3, %v5234_v1  ;;  %213 = vst.msk [vmem:[#allocation2 + $0x128] sm:$0xff] %vm175_vm3, %v5234_v1  ;;  %v5153_v26 = vld [vmem:[%s5293_s28 + $0xa0] sm:$0xff]  }
  0x23   : > { %4978 = vmatprep.subr.bf16.mxu1 %v5234_v1  ;;  %214 = vst.msk [vmem:[#allocation2 + $0x130] sm:$0xff] %vm175_vm3, %v5234_v1  ;;  %215 = vst.msk [vmem:[#allocation2 + $0x138] sm:$0xff] %vm175_vm3, %v5234_v1  ;;  %v1287_v33 = vor.u32 %v1285_v29, %v5423_v24  ;;  %v1339_v11 = vrot.slane %v1337_v8, 1  ;;  %v1361_v29 = vshll.u32 %v5153_v26, 16  ;;  %v1365_v35 = vshrl.u32 %v5153_v26, 16 }
  0x24   : > { %4863 = vmatpush3.bf16.msra.mxu0 %v5154_v63  ;;  %216 = vst.msk [vmem:[#allocation2 + $0x140] sm:$0xff] %vm175_vm3, %v5234_v1  ;;  %217 = vst.msk [vmem:[#allocation2 + $0x148] sm:$0xff] %vm175_vm3, %v5234_v1  ;;  %v1325_v63 = vshrl.u32 %v5143_v53, 16 }
  0x25   : > { %218 = vst.msk [vmem:[#allocation2 + $0x150] sm:$0xff] %vm175_vm3, %v5234_v1  ;;  %219 = vst.msk [vmem:[#allocation2 + $0x158] sm:$0xff] %vm175_vm3, %v5234_v1  ;;  %v1292_v34 = vsel %vm1200_vm2, %v1287_v33, %v5439_v31  ;;  %v5156_v33 = vld [vmem:[%s5293_s28 + $0xa8] sm:$0xff]  }
  0x26   : > { %4641 = vmatmul.mubr.msk.bf16.gmra.mrb[8].mxu0 %vm505_vm1, %v5112_v32  ;;  %4979 = vmatpush3.bf16.msra.mxu1 %v5157_v2  ;;  %v5442_v32 = vld [vmem:[%s5293_s28 + $0x60] sm:$0xff]   ;;  %220 = vst.msk [vmem:[#allocation2 + $0x160] sm:$0xff] %vm175_vm3, %v5234_v1  ;;  %221 = vst.msk [vmem:[#allocation2 + $0x168] sm:$0xff] %vm175_vm3, %v5234_v1  ;;  %v5142_v2 = vld [vmem:[%s5293_s28 + $0x78] sm:$0xff]  }
  0x27   : > { %4644 = vmatprep.mubr.msk.bf16.mxu0 %vm5235_vm0, %v5234_v1  ;;  %222 = vst.msk [vmem:[#allocation2 + $0x170] sm:$0xff] %vm175_vm3, %v5234_v1  ;;  %223 = vst.msk [vmem:[#allocation2 + $0x178] sm:$0xff] %vm175_vm3, %v5234_v1  ;;  %v1297_v36 = vshll.u32 %v5442_v32, 16  ;;  %v1301_v43 = vshrl.u32 %v5442_v32, 16  ;;  %v1363_v32 = vrot.slane %v1361_v29, 1 }
  0x28   : > { %224 = vst.msk [vmem:[#allocation2 + $0x180] sm:$0xff] %vm175_vm3, %v5234_v1  ;;  %225 = vst.msk [vmem:[#allocation2 + $0x188] sm:$0xff] %vm175_vm3, %v5234_v1 }
  0x29   : > { %4757 = vmatmul.mubr.msk.bf16.gmra.mrb[8].mxu1 %vm505_vm1, %v1228_v37  ;;  %226 = vst.msk [vmem:[#allocation2 + $0x190] sm:$0xff] %vm175_vm3, %v5234_v1  ;;  %227 = vst.msk [vmem:[#allocation2 + $0x198] sm:$0xff] %vm175_vm3, %v5234_v1  ;;  %v5132_v37 = vld [vmem:[%s5293_s28 + $0x58] sm:$0xff]   ;;  %v1367_v38 = vor.u32 %v1365_v35, %v1363_v32 }
  0x2a   : > { %4760 = vmatprep.mubr.msk.bf16.mxu1 %vm5235_vm0, %v5234_v1  ;;  %228 = vst.msk [vmem:[#allocation2 + $0x1a0] sm:$0xff] %vm175_vm3, %v5234_v1  ;;  %229 = vst.msk [vmem:[#allocation2 + $0x1a8] sm:$0xff] %vm175_vm3, %v5234_v1 }
  0x2e   : > { %4645 = vmatmul.mubr.msk.bf16.gmra.mrb[12].mxu0 %vm505_vm1, %v5114_v40  ;;  %v1299_v40 = vrot.slane %v1297_v36, 1  ;;  %v1369_v36 = vshll.u32 %v5156_v33, 16 }
  0x2f   : > { %4648 = vmatprep.mubr.msk.bf16.mxu0 %vm5235_vm0, %v5234_v1 }
  0x30   : > { %v1300_v42 = vsel %vm1200_vm2, %v1295_v39, %v1299_v40  ;;  %v1371_v39 = vrot.slane %v1369_v36, 1  ;;  %v5172_v36 = vld [vmem:[%s5293_s28 + $0x8] sm:$0xf8]  }
  0x31   : > { %4761 = vmatmul.mubr.msk.bf16.gmra.mrb[12].mxu1 %vm505_vm1, %v1236_v47  ;;  %v1303_v47 = vor.u32 %v1301_v43, %v1299_v40  ;;  %v5159_v40 = vld [vmem:[%s5293_s28 + $0xb0] sm:$0xff]  }
  0x32   : > { %4764 = vmatprep.mubr.msk.bf16.mxu1 %vm5235_vm0, %v5234_v1  ;;  %v1372_v41 = vsel %vm1200_vm2, %v1367_v38, %v1371_v39  ;;  %v1377_v43 = vshll.u32 %v5159_v40, 16 }
  0x33   : > { %v1308_v49 = vsel %vm1200_vm2, %v1303_v47, %v1307_v45  ;;  %v5161_v47 = vld [vmem:[%s5293_s28 + $0xb8] sm:$0xff]  }
  0x34   : > { %v1385_v50 = vshll.u32 %v5161_v47, 16 }
  0x36   : > { %4649 = vmatmul.mubr.msk.bf16.gmra.mrb[16].mxu0 %vm505_vm1, %v5116_v48  ;;  %v1313_v48 = vshll.u32 %v5140_v46, 16  ;;  %v1387_v53 = vrot.slane %v1385_v50, 1 }
  0x37   : > { %4652 = vmatprep.mubr.msk.bf16.mxu0 %vm5235_vm0, %v5234_v1 }
  0x38   : > { %v1315_v52 = vrot.slane %v1313_v48, 1 }
  0x39   : > { %4765 = vmatmul.mubr.msk.bf16.gmra.mrb[16].mxu1 %vm505_vm1, %v1244_v55 }
  0x3a   : > { %4768 = vmatprep.mubr.msk.bf16.mxu1 %vm5235_vm0, %v5234_v1  ;;  %v1316_v55 = vsel %vm1200_vm2, %v1311_v54, %v1315_v52  ;;  %v5163_v54 = vld [vmem:[%s5293_s28 + $0xc0] sm:$0xff]  }
  0x3e   : > { %4653 = vmatmul.mubr.msk.bf16.gmra.mrb[20].mxu0 %vm505_vm1, %v5118_v56  ;;  %v1317_v56 = vshrl.u32 %v5140_v46, 16  ;;  %v1379_v46 = vrot.slane %v1377_v43, 1 }
  0x3f   : > { %4656 = vmatprep.mubr.msk.bf16.mxu0 %vm5235_vm0, %v5234_v1 }
  0x40   : > { %v1319_v59 = vor.u32 %v1317_v56, %v1315_v52  ;;  %v1389_v56 = vshrl.u32 %v5161_v47, 16 }
  0x41   : > { %4769 = vmatmul.mubr.msk.bf16.gmra.mrb[20].mxu1 %vm505_vm1, %v1252_v60  ;;  %v1323_v60 = vrot.slane %v1321_v57, 1  ;;  %v1393_v57 = vshll.u32 %v5163_v54, 16 }
  0x42   : > { %4772 = vmatprep.mubr.msk.bf16.mxu1 %vm5235_vm0, %v5234_v1 }
  0x43   : > { %v1324_v62 = vsel %vm1200_vm2, %v1319_v59, %v1323_v60  ;;  %v1327_v3 = vor.u32 %v1325_v63, %v1323_v60  ;;  %v1391_v59 = vor.u32 %v1389_v56, %v1387_v53  ;;  %v1395_v60 = vrot.slane %v1393_v57, 1 }
  0x44   : > { %v1397_v63 = vshrl.u32 %v5163_v54, 16 }
  0x46   : > { %4657 = vmatmul.mubr.msk.bf16.gmra.mrb[24].mxu0 %vm505_vm1, %v5120_v0  ;;  %v1329_v0 = vshll.u32 %v5145_v61, 16  ;;  %v5165_v61 = vld [vmem:[%s5293_s28 + $0xc8] sm:$0xff]  }
  0x47   : > { %4660 = vmatprep.mubr.msk.bf16.mxu0 %vm5235_vm0, %v5234_v1 }
  0x48   : > { %v1331_v4 = vrot.slane %v1329_v0, 1  ;;  %v1401_v0 = vshll.u32 %v5165_v61, 16 }
  0x49   : > { %4773 = vmatmul.mubr.msk.bf16.gmra.mrb[24].mxu1 %vm505_vm1, %v1260_v6 }
  0x4a   : > { %4776 = vmatprep.mubr.msk.bf16.mxu1 %vm5235_vm0, %v5234_v1  ;;  %v1332_v6 = vsel %vm1200_vm2, %v1327_v3, %v1331_v4  ;;  %v1335_v10 = vor.u32 %v1333_v7, %v1331_v4  ;;  %v1399_v3 = vor.u32 %v1397_v63, %v1395_v60  ;;  %v1403_v4 = vrot.slane %v1401_v0, 1 }
  0x4b   : > { %v1405_v7 = vshrl.u32 %v5165_v61, 16  ;;  %v233_v61 = vld [vmem:[#allocation2 + $0x18] sm:$0xff] }
  0x4c   : > { %v1340_v13 = vsel %vm1200_vm2, %v1335_v10, %v1339_v11  ;;  %v5169_v10 = vld [vmem:[%s5293_s28 + $0x8] sm:$0xfc]  }
  0x4e   : > { %4661 = vmatmul.mubr.msk.bf16.gmra.mrb[28].mxu0 %vm505_vm1, %v5123_v9  ;;  %v5144_v9 = vld [vmem:[%s5293_s28 + $0x80] sm:$0xff]  }
  0x4f   : > { %4664 = vmatprep.mubr.msk.bf16.mxu0 %vm5235_vm0, %v5234_v1 }
  0x51   : > { %4777 = vmatmul.mubr.msk.bf16.gmra.mrb[28].mxu1 %vm505_vm1, %v1268_v15  ;;  %v1345_v15 = vshll.u32 %v5149_v12, 16 }
  0x52   : > { %4780 = vmatprep.mubr.msk.bf16.mxu1 %vm5235_vm0, %v5234_v1 }
  0x53   : > { %v1347_v18 = vrot.slane %v1345_v15, 1  ;;  %v2141_v15 = vshrl.u32 %v5169_v10, 16 }
  0x56   : > { %4665 = vmatmul.mubr.msk.bf16.gmra.mrb[32].mxu0 %vm505_vm1, %v5125_v14  ;;  %v1341_v14 = vshrl.u32 %v5147_v5, 16  ;;  %v5167_v5 = vld [vmem:[%s5293_s28 + $0xd0] sm:$0xff]  }
  0x57   : > { %4668 = vmatprep.mubr.msk.bf16.mxu0 %vm5235_vm0, %v5234_v1  ;;  %v1409_v8 = vshll.u32 %v5167_v5, 16 }
  0x58   : > { %v1343_v17 = vor.u32 %v1341_v14, %v1339_v11  ;;  %v5170_v11 = vld [vmem:[%s5293_s28 + $0x10] sm:$0xff]   ;;  %v5168_v14 = vld [vmem:[%s5293_s28 + $0xd8] ss:$0 sps:$4 sm:$0x11]  }
  0x59   : > { %4781 = vmatmul.mubr.msk.bf16.gmra.mrb[32].mxu1 %vm505_vm1, %v1276_v22  ;;  %v1353_v22 = vshll.u32 %v5151_v19, 16 }
  0x5a   : > { %4784 = vmatprep.mubr.msk.bf16.mxu1 %vm5235_vm0, %v5234_v1  ;;  %v1348_v20 = vsel %vm1200_vm2, %v1343_v17, %v1347_v18  ;;  %v2149_v17 = vshrl.u32 %v5170_v11, 16 }
  0x5b   : > { %v1355_v25 = vrot.slane %v1353_v22, 1  ;;  %v5166_v22 = vld [vmem:[%s5293_s28 + $0xd0] sm:$0xff]  }
  0x5e   : > { %4669 = vmatmul.mubr.msk.bf16.gmra.mrb[36].mxu0 %vm505_vm1, %v5128_v21  ;;  %v1349_v21 = vshrl.u32 %v5149_v12, 16  ;;  %v1407_v12 = vor.u32 %v1405_v7, %v1403_v4  ;;  %v5176_v7 = vld [vmem:[%s5293_s28 + $0x28] sm:$0xff]  }
  0x5f   : > { %4672 = vmatprep.mubr.msk.bf16.mxu0 %vm5235_vm0, %v5234_v1 }
  0x60   : > { %v1351_v24 = vor.u32 %v1349_v21, %v1347_v18  ;;  %v2152_v18 = vshll.u32 %v5170_v11, 16  ;;  %v1417_v21 = vshll.u32 %v5168_v14, 16 }
  0x61   : > { %4785 = vmatmul.mubr.msk.bf16.gmra.mrb[36].mxu1 %vm505_vm1, %v1284_v28  ;;  %v1357_v28 = vshrl.u32 %v5151_v19, 16 }
  0x62   : > { %4788 = vmatprep.mubr.msk.bf16.mxu1 %vm5235_vm0, %v5234_v1  ;;  %v1356_v27 = vsel %vm1200_vm2, %v1351_v24, %v1355_v25  ;;  %v2154_v26 = vrot.slane %v2152_v18, 3  ;;  %v1419_v29 = vrot.slane %v1417_v21, 1  ;;  %v2176_v18 = vshrl.u32 %v5176_v7, 16 }
  0x63   : > { %v1359_v31 = vor.u32 %v1357_v28, %v1355_v25  ;;  %v2151_v25 = vrot.slane %v2149_v17, 2 }
  0x66   : > { %4673 = vmatmul.mubr.msk.bf16.gmra.mrb[40].mxu0 %vm505_vm1, %v5130_v30  ;;  %v5150_v30 = vld [vmem:[%s5293_s28 + $0x98] sm:$0xff]  }
  0x67   : > { %4676 = vmatprep.mubr.msk.bf16.mxu0 %vm5235_vm0, %v5234_v1 }
  0x69   : > { %4789 = vmatmul.mubr.msk.bf16.gmra.mrb[40].mxu1 %vm505_vm1, %v1292_v34  ;;  %v1364_v34 = vsel %vm1200_vm2, %v1359_v31, %v1363_v32  ;;  %v2155_v32 = vor.u32 %v2154_v26, %v2151_v25 }
  0x6a   : > { %4792 = vmatprep.mubr.msk.bf16.mxu1 %vm5235_vm0, %v5234_v1 }
  0x6e   : > { %4677 = vmatmul.mubr.msk.bf16.gmra.mrb[44].mxu0 %vm505_vm1, %v5132_v37  ;;  %v5152_v37 = vld [vmem:[%s5293_s28 + $0xa0] sm:$0xff]  }
  0x6f   : > { %4680 = vmatprep.mubr.msk.bf16.mxu0 %vm5235_vm0, %v5234_v1 }
  0x71   : > { %4793 = vmatmul.mubr.msk.bf16.gmra.mrb[44].mxu1 %vm505_vm1, %v1300_v42  ;;  %v1373_v42 = vshrl.u32 %v5156_v33, 16 }
  0x72   : > { %4796 = vmatprep.mubr.msk.bf16.mxu1 %vm5235_vm0, %v5234_v1 }
  0x73   : > { %v1375_v45 = vor.u32 %v1373_v42, %v1371_v39  ;;  %v231_v39 = vld [vmem:[#allocation2 + $0x8] sm:$0xff] }
  0x75   : > { %v1380_v48 = vsel %vm1200_vm2, %v1375_v45, %v1379_v46 }
  0x76   : > { %4681 = vmatmul.mubr.msk.bf16.gmra.mrb[48].mxu0 %vm505_vm1, %v5134_v44  ;;  %v5155_v44 = vld [vmem:[%s5293_s28 + $0xa8] sm:$0xff]  }
  0x77   : > { %4684 = vmatprep.mubr.msk.bf16.mxu0 %vm5235_vm0, %v5234_v1 }
  0x79   : > { %4797 = vmatmul.mubr.msk.bf16.gmra.mrb[48].mxu1 %vm505_vm1, %v1308_v49  ;;  %v1381_v49 = vshrl.u32 %v5159_v40, 16 }
  0x7a   : > { %4800 = vmatprep.mubr.msk.bf16.mxu1 %vm5235_vm0, %v5234_v1 }
  0x7b   : > { %v1383_v52 = vor.u32 %v1381_v49, %v1379_v46  ;;  %v5174_v46 = vld [vmem:[%s5293_s28 + $0x20] sm:$0xff]   ;;  %v3110_v49 = vrot.slane %v5172_v36, 3 }
  0x7c   : > { %v2170_v56 = vshll.u32 %v5174_v46, 16 }
  0x7e   : > { %4685 = vmatmul.mubr.msk.bf16.gmra.mrb[52].mxu0 %vm505_vm1, %v5136_v51  ;;  %v5158_v51 = vld [vmem:[%s5293_s28 + $0xb0] sm:$0xff]  }
  0x7f   : > { %4688 = vmatprep.mubr.msk.bf16.mxu0 %vm5235_vm0, %v5234_v1 }
  0x81   : > { %4801 = vmatmul.mubr.msk.bf16.gmra.mrb[52].mxu1 %vm505_vm1, %v1316_v55  ;;  %v1388_v55 = vsel %vm1200_vm2, %v1383_v52, %v1387_v53  ;;  %v232_v52 = vld [vmem:[#allocation2 + $0x10] sm:$0xff] }
  0x82   : > { %4804 = vmatprep.mubr.msk.bf16.mxu1 %vm5235_vm0, %v5234_v1 }
  0x86   : > { %4689 = vmatmul.mubr.msk.bf16.gmra.mrb[56].mxu0 %vm505_vm1, %v5139_v58  ;;  %v5160_v58 = vld [vmem:[%s5293_s28 + $0xb8] sm:$0xff]  }
  0x87   : > { %4692 = vmatprep.mubr.msk.bf16.mxu0 %vm5235_vm0, %v5234_v1 }
  0x89   : > { %4805 = vmatmul.mubr.msk.bf16.gmra.mrb[56].mxu1 %vm505_vm1, %v1324_v62  ;;  %v1396_v62 = vsel %vm1200_vm2, %v1391_v59, %v1395_v60  ;;  %v5728_v59 = vld [vmem:[%s5293_s28 + $0x18] sm:$0xff]  }
  0x8a   : > { %4808 = vmatprep.mubr.msk.bf16.mxu1 %vm5235_vm0, %v5234_v1  ;;  %v3113_v11 = vrot.slane %v5728_v59, 3  ;;  %v5180_v59 = vld [vmem:[%s5293_s28 + $0x38] sm:$0xff]  }
  0x8e   : > { %4693 = vmatmul.mubr.msk.bf16.gmra.mrb[60].mxu0 %vm505_vm1, %v5142_v2  ;;  %v5162_v2 = vld [vmem:[%s5293_s28 + $0xc0] sm:$0xff]  }
  0x8f   : > { %4696 = vmatprep.mubr.msk.bf16.mxu0 %vm5235_vm0, %v5234_v1 }
  0x91   : > { %4809 = vmatmul.mubr.msk.bf16.gmra.mrb[60].mxu1 %vm505_vm1, %v1332_v6  ;;  %v1404_v6 = vsel %vm1200_vm2, %v1399_v3, %v1403_v4 }
  0x92   : > { %4812 = vmatprep.mubr.msk.bf16.mxu1 %vm5235_vm0, %v5234_v1 }
  0x96   : > { %4697 = vmatmul.mubr.msk.bf16.gmra.mrb[64].mxu0 %vm505_vm1, %v5144_v9  ;;  %v5164_v9 = vld [vmem:[%s5293_s28 + $0xc8] sm:$0xff]  }
  0x97   : > { %4700 = vmatprep.mubr.msk.bf16.mxu0 %vm5235_vm0, %v5234_v1 }
  0x99   : > { %4813 = vmatmul.mubr.msk.bf16.gmra.mrb[64].mxu1 %vm505_vm1, %v1340_v13  ;;  %v1411_v13 = vrot.slane %v1409_v8, 1 }
  0x9a   : > { %4816 = vmatprep.mubr.msk.bf16.mxu1 %vm5235_vm0, %v5234_v1 }
  0x9b   : > { %v1412_v19 = vsel %vm1200_vm2, %v1407_v12, %v1411_v13 }
  0x9e   : > { %4701 = vmatmul.mubr.msk.bf16.gmra.mrb[68].mxu0 %vm505_vm1, %v5146_v16  ;;  %v2144_v16 = vshll.u32 %v5169_v10, 16 }
  0x9f   : > { %4704 = vmatprep.mubr.msk.bf16.mxu0 %vm5235_vm0, %v5234_v1 }
  0xa0   : > { %v2146_v24 = vrot.slane %v2144_v16, 3 }
  0xa1   : > { %4817 = vmatmul.mubr.msk.bf16.gmra.mrb[68].mxu1 %vm505_vm1, %v1348_v20  ;;  %v1413_v20 = vshrl.u32 %v5167_v5, 16 }
  0xa2   : > { %4820 = vmatprep.mubr.msk.bf16.mxu1 %vm5235_vm0, %v5234_v1 }
  0xa3   : > { %v1415_v28 = vor.u32 %v1413_v20, %v1411_v13 }
  0xa5   : > { %v1420_v35 = vsel %vm1200_vm2, %v1415_v28, %v1419_v29 }
  0xa6   : > { %4705 = vmatmul.mubr.msk.bf16.gmra.mrb[72].mxu0 %vm505_vm1, %v5148_v23  ;;  %v2143_v23 = vrot.slane %v2141_v15, 2  ;;  %v234_v15 = vld [vmem:[#allocation2 + $0x20] sm:$0xff] }
  0xa7   : > { %4708 = vmatprep.mubr.msk.bf16.mxu0 %vm5235_vm0, %v5234_v1 }
  0xa8   : > { %v2147_v31 = vor.u32 %v2146_v24, %v2143_v23  ;;  %v235_v24 = vld [vmem:[#allocation2 + $0x28] sm:$0xff] }
  0xa9   : > { %4821 = vmatmul.mubr.msk.bf16.gmra.mrb[72].mxu1 %vm505_vm1, %v1356_v27  ;;  %v5171_v27 = vld [vmem:[%s5293_s28 + $0x18] sm:$0xff]  }
  0xaa   : > { %4824 = vmatprep.mubr.msk.bf16.mxu1 %vm5235_vm0, %v5234_v1  ;;  %v2158_v33 = vshrl.u32 %v5171_v27, 16  ;;  %v2156_v43 = vsel %vm2139_vm4, %v2147_v31, %v2155_v32  ;;  %v2178_v31 = vrot.slane %v2176_v18, 2 }
  0xae   : > { %4709 = vmatmul.mubr.msk.bf16.gmra.mrb[76].mxu0 %vm505_vm1, %v5150_v30  ;;  %v230_v30 = vld [vmem:[#allocation2] sm:$0xff] }
  0xaf   : > { %4712 = vmatprep.mubr.msk.bf16.mxu0 %vm5235_vm0, %v5234_v1 }
  0xb1   : > { %4825 = vmatmul.mubr.msk.bf16.gmra.mrb[76].mxu1 %vm505_vm1, %v1364_v34  ;;  %v2161_v34 = vshll.u32 %v5171_v27, 16 }
  0xb2   : > { %4828 = vmatprep.mubr.msk.bf16.mxu1 %vm5235_vm0, %v5234_v1 }
  0xb3   : > { %v2163_v45 = vrot.slane %v2161_v34, 3 }
  0xb6   : > { %4713 = vmatmul.mubr.msk.bf16.gmra.mrb[80].mxu0 %vm505_vm1, %v5152_v37  ;;  %v5713_v37 = vld [vmem:[%s5293_s28 + $0x10] sm:$0xff]  }
  0xb7   : > { %4716 = vmatprep.mubr.msk.bf16.mxu0 %vm5235_vm0, %v5234_v1  ;;  %v3111_v50 = vrot.slane %v5713_v37, 3 }
  0xb9   : > { %4829 = vmatmul.mubr.msk.bf16.gmra.mrb[80].mxu1 %vm505_vm1, %v1372_v41  ;;  %v3114_v21 = vsel %vm3109_vm5, %v3111_v50, %v3113_v11 }
  0xba   : > { %4832 = vmatprep.mubr.msk.bf16.mxu1 %vm5235_vm0, %v5234_v1 }
  0xbe   : > { %4717 = vmatmul.mubr.msk.bf16.gmra.mrb[84].mxu0 %vm505_vm1, %v5155_v44  ;;  %v2160_v44 = vrot.slane %v2158_v33, 2  ;;  %v5178_v33 = vld [vmem:[%s5293_s28 + $0x30] sm:$0xff]  }
  0xbf   : > { %4720 = vmatprep.mubr.msk.bf16.mxu0 %vm5235_vm0, %v5234_v1 }
  0xc0   : > { %v2164_v54 = vor.u32 %v2163_v45, %v2160_v44  ;;  %v2185_v44 = vshrl.u32 %v5178_v33, 16  ;;  %v2188_v45 = vshll.u32 %v5178_v33, 16 }
  0xc1   : > { %4833 = vmatmul.mubr.msk.bf16.gmra.mrb[84].mxu1 %vm505_vm1, %v1380_v48 }
  0xc2   : > { %4836 = vmatprep.mubr.msk.bf16.mxu1 %vm5235_vm0, %v5234_v1  ;;  %v2165_v4 = vsel %vm2139_vm4, %v2155_v32, %v2164_v54 }
  0xc6   : > { %4721 = vmatmul.mubr.msk.bf16.gmra.mrb[88].mxu0 %vm505_vm1, %v5158_v51 }
  0xc7   : > { %4724 = vmatprep.mubr.msk.bf16.mxu0 %vm5235_vm0, %v5234_v1 }
  0xc9   : > { %4837 = vmatmul.mubr.msk.bf16.gmra.mrb[88].mxu1 %vm505_vm1, %v1388_v55  ;;  %v2167_v55 = vshrl.u32 %v5174_v46, 16 }
  0xca   : > { %4840 = vmatprep.mubr.msk.bf16.mxu1 %vm5235_vm0, %v5234_v1 }
  0xcb   : > { %v2169_v5 = vrot.slane %v2167_v55, 2 }
  0xce   : > { %4725 = vmatmul.mubr.msk.bf16.gmra.mrb[92].mxu0 %vm505_vm1, %v5160_v58  ;;  %v3112_v58 = vsel %vm3109_vm5, %v3110_v49, %v3111_v50  ;;  %v237_v50 = vld [vmem:[#allocation2 + $0x38] sm:$0xff] }
  0xcf   : > { %4728 = vmatprep.mubr.msk.bf16.mxu0 %vm5235_vm0, %v5234_v1 }
  0xd1   : > { %4841 = vmatmul.mubr.msk.bf16.gmra.mrb[92].mxu1 %vm505_vm1, %v1396_v62 }
  0xd2   : > { %4844 = vmatprep.mubr.msk.bf16.mxu1 %vm5235_vm0, %v5234_v1 }
  0xd6   : > { %4729 = vmatmul.mubr.msk.bf16.gmra.mrb[96].mxu0 %vm505_vm1, %v5162_v2 }
  0xd7   : > { %4732 = vmatprep.mubr.msk.bf16.mxu0 %vm5235_vm0, %v5234_v1 }
  0xd9   : > { %4845 = vmatmul.mubr.msk.bf16.gmra.mrb[96].mxu1 %vm505_vm1, %v1404_v6  ;;  %v2172_v6 = vrot.slane %v2170_v56, 3 }
  0xda   : > { %4848 = vmatprep.mubr.msk.bf16.mxu1 %vm5235_vm0, %v5234_v1 }
  0xdb   : > { %v2173_v17 = vor.u32 %v2172_v6, %v2169_v5 }
  0xde   : > { %4733 = vmatmul.mubr.msk.bf16.gmra.mrb[100].mxu0 %vm505_vm1, %v5164_v9 }
  0xdf   : > { %4736 = vmatprep.mubr.msk.bf16.mxu0 %vm5235_vm0, %v5234_v1 }
  0xe1   : > { %4849 = vmatmul.mubr.msk.bf16.gmra.mrb[100].mxu1 %vm505_vm1, %v1412_v19  ;;  %v2179_v19 = vshll.u32 %v5176_v7, 16  ;;  %v2194_v7 = vshrl.u32 %v5180_v59, 16 }
  0xe2   : > { %4852 = vmatprep.mubr.msk.bf16.mxu1 %vm5235_vm0, %v5234_v1 }
  0xe3   : > { %v2181_v32 = vrot.slane %v2179_v19, 3 }
  0xe6   : > { %4737 = vmatmul.mubr.msk.bf16.gmra.mrb[104].mxu0 %vm505_vm1, %v5166_v22  ;;  %v5745_v22 = vld [vmem:[%s5293_s28 + $0x20] sm:$0xff]  }
  0xe7   : > { %4864 = vmatprep.mubr.msk.bf16.mxu0 %vm5235_vm0, %v5234_v1  ;;  %v3115_v37 = vrot.slane %v5745_v22, 3  ;;  %v5182_v22 = vld [vmem:[%s5293_s28 + $0x40] sm:$0xff]  }
  0xe8   : > { %v2203_v33 = vshrl.u32 %v5182_v22, 16 }
  0xe9   : > { %v621_v38 = vpop.f32.mrb[0].mxu0  ;;  %4853 = vmatmul.mubr.msk.bf16.gmra.mrb[104].mxu1 %vm505_vm1, %v1420_v35 }
  0xea   : > { %v836_v40 = vadd.f32 %v621_v38, %v230_v30  ;;  %v4634_v41 = vpop.f32.mrb[1].mxu0  ;;  %4980 = vmatprep.mubr.msk.bf16.mxu1 %vm5235_vm0, %v5234_v1  ;;  %v2174_v30 = vsel %vm2139_vm4, %v2164_v54, %v2173_v17 }
  0xeb   : > { %v624_v42 = vpop.f32.mrb[2].mxu0  ;;  %v236_v41 = vld [vmem:[#allocation2 + $0x30] sm:$0xff] }
  0xec   : > { %890 = vst.msk [vmem:[#allocation2] sm:$0xff] %vm175_vm3, %v836_v40  ;;  %v837_v47 = vadd.f32 %v624_v42, %v231_v39  ;;  %v4635_v48 = vpop.f32.mrb[3].mxu0  ;;  %v1560_v51 = vpop.f32.mrb[0].mxu1 }
  0xed   : > { %v4750_v53 = vpop.f32.mrb[1].mxu1  ;;  %v5762_v48 = vld [vmem:[%s5293_s28 + $0x28] sm:$0xff]  }
  0xee   : > { %891 = vst.msk [vmem:[#allocation2 + $0x8] sm:$0xff] %vm175_vm3, %v837_v47  ;;  %4865 = vmatmul.mubr.msk.bf16.vlgmr.msra.gmra.mrb[108].mxu0 %vm505_vm1, %v2156_v43  ;;  %v1563_v57 = vpop.f32.mrb[2].mxu1  ;;  %v2182_v43 = vor.u32 %v2181_v32, %v2178_v31  ;;  %v3116_v47 = vsel %vm3109_vm5, %v3113_v11, %v3115_v37  ;;  %v5779_v11 = vld [vmem:[%s5293_s28 + $0x30] sm:$0xff]  }
  0xef   : > { %4868 = vmatprep.mubr.msk.bf16.mxu0 %vm5235_vm0, %v5234_v1  ;;  %v4751_v62 = vpop.f32.mrb[3].mxu1 }
  0xf0   : > { %v2183_v56 = vsel %vm2139_vm4, %v2173_v17, %v2182_v43 }
  0xf1   : > { %v629_v60 = vpop.f32.mrb[4].mxu0  ;;  %4981 = vmatmul.mubr.msk.bf16.vlgmr.msra.gmra.mrb[108].mxu1 %vm505_vm1, %v3112_v58  ;;  %v2190_v58 = vrot.slane %v2188_v45, 3 }
  0xf2   : > { %v838_v63 = vadd.f32 %v629_v60, %v232_v52  ;;  %v4638_v0 = vpop.f32.mrb[5].mxu0  ;;  %4984 = vmatprep.mubr.msk.bf16.mxu1 %vm5235_vm0, %v5234_v1 }
  0xf3   : > { %v944_v2 = vld [vmem:[#allocation2] sm:$0xff]  ;;  %v632_v3 = vpop.f32.mrb[6].mxu0 }
  0xf4   : > { %892 = vst.msk [vmem:[#allocation2 + $0x10] sm:$0xff] %vm175_vm3, %v838_v63  ;;  %v1775_v8 = vadd.f32 %v1560_v51, %v944_v2  ;;  %v839_v9 = vadd.f32 %v632_v3, %v233_v61  ;;  %v4639_v10 = vpop.f32.mrb[7].mxu0  ;;  %v1568_v14 = vpop.f32.mrb[4].mxu1  ;;  %v3117_v63 = vrot.slane %v5762_v48, 3  ;;  %v5184_v48 = vld [vmem:[%s5293_s28 + $0x48] sm:$0xff]  }
  0xf5   : > { %v945_v12 = vld [vmem:[#allocation2 + $0x8] sm:$0xff]  ;;  %v4754_v16 = vpop.f32.mrb[5].mxu1 }
  0xf6   : > { %1829 = vst.msk [vmem:[#allocation2] sm:$0xff] %vm175_vm3, %v1775_v8  ;;  %893 = vst.msk [vmem:[#allocation2 + $0x18] sm:$0xff] %vm175_vm3, %v839_v9  ;;  %v1776_v13 = vadd.f32 %v1563_v57, %v945_v12  ;;  %4869 = vmatmul.mubr.msk.bf16.gmra.mrb[112].mxu0 %vm505_vm1, %v2165_v4  ;;  %v1571_v20 = vpop.f32.mrb[6].mxu1  ;;  %v2187_v57 = vrot.slane %v2185_v44, 2  ;;  %v238_v4 = vld [vmem:[#allocation2 + $0x40] sm:$0xff]  ;;  %v2197_v8 = vshll.u32 %v5180_v59, 16  ;;  %v3118_v10 = vsel %vm3109_vm5, %v3115_v37, %v3117_v63 }
  0xf7   : > { %4872 = vmatprep.mubr.msk.bf16.mxu0 %vm5235_vm0, %v5234_v1  ;;  %v4755_v25 = vpop.f32.mrb[7].mxu1  ;;  %v5796_v37 = vld [vmem:[%s5293_s28 + $0x38] sm:$0xff]   ;;  %v2212_v59 = vshrl.u32 %v5184_v48, 16 }
  0xf8   : > { %1830 = vst.msk [vmem:[#allocation2 + $0x8] sm:$0xff] %vm175_vm3, %v1776_v13  ;;  %v2191_v6 = vor.u32 %v2190_v58, %v2187_v57  ;;  %v239_v13 = vld [vmem:[#allocation2 + $0x48] sm:$0xff] }
  0xf9   : > { %v637_v23 = vpop.f32.mrb[8].mxu0  ;;  %4985 = vmatmul.mubr.msk.bf16.gmra.mrb[112].mxu1 %vm505_vm1, %v3114_v21  ;;  %v2199_v21 = vrot.slane %v2197_v8, 3 }
  0xfa   : > { %v840_v26 = vadd.f32 %v637_v23, %v234_v15  ;;  %v4642_v27 = vpop.f32.mrb[9].mxu0  ;;  %4988 = vmatprep.mubr.msk.bf16.mxu1 %vm5235_vm0, %v5234_v1  ;;  %v2192_v19 = vsel %vm2139_vm4, %v2182_v43, %v2191_v6 }
  0xfb   : > { %v946_v28 = vld [vmem:[#allocation2 + $0x10] sm:$0xff]  ;;  %v640_v29 = vpop.f32.mrb[10].mxu0 }
  0xfc   : > { %894 = vst.msk [vmem:[#allocation2 + $0x20] sm:$0xff] %vm175_vm3, %v840_v26  ;;  %v1777_v34 = vadd.f32 %v1568_v14, %v946_v28  ;;  %v841_v35 = vadd.f32 %v640_v29, %v235_v24  ;;  %v4643_v36 = vpop.f32.mrb[11].mxu0  ;;  %v1576_v40 = vpop.f32.mrb[8].mxu1  ;;  %v3119_v26 = vrot.slane %v5779_v11, 3  ;;  %v5186_v11 = vld [vmem:[%s5293_s28 + $0x50] sm:$0xff]  }
  0xfd   : > { %v947_v38 = vld [vmem:[#allocation2 + $0x18] sm:$0xff]  ;;  %v4758_v42 = vpop.f32.mrb[9].mxu1 }
  0xfe   : > { %1831 = vst.msk [vmem:[#allocation2 + $0x10] sm:$0xff] %vm175_vm3, %v1777_v34  ;;  %895 = vst.msk [vmem:[#allocation2 + $0x28] sm:$0xff] %vm175_vm3, %v841_v35  ;;  %v1778_v39 = vadd.f32 %v1571_v20, %v947_v38  ;;  %4873 = vmatmul.mubr.msk.bf16.gmra.mrb[116].mxu0 %vm505_vm1, %v2174_v30  ;;  %v1579_v46 = vpop.f32.mrb[10].mxu1  ;;  %v2196_v20 = vrot.slane %v2194_v7, 2  ;;  %v240_v30 = vld [vmem:[#allocation2 + $0x50] sm:$0xff]  ;;  %v2206_v34 = vshll.u32 %v5182_v22, 16  ;;  %v3120_v36 = vsel %vm3109_vm5, %v3117_v63, %v3119_v26 }
  0xff   : > { %4876 = vmatprep.mubr.msk.bf16.mxu0 %vm5235_vm0, %v5234_v1  ;;  %v4759_v51 = vpop.f32.mrb[11].mxu1  ;;  %v5813_v63 = vld [vmem:[%s5293_s28 + $0x40] sm:$0xff]   ;;  %v2221_v22 = vshrl.u32 %v5186_v11, 16 }
 0x100   : > { %1832 = vst.msk [vmem:[#allocation2 + $0x18] sm:$0xff] %vm175_vm3, %v1778_v39  ;;  %v2200_v32 = vor.u32 %v2199_v21, %v2196_v20  ;;  %v241_v39 = vld [vmem:[#allocation2 + $0x58] sm:$0xff] }
 0x101   : > { %v645_v49 = vpop.f32.mrb[12].mxu0  ;;  %4989 = vmatmul.mubr.msk.bf16.gmra.mrb[116].mxu1 %vm505_vm1, %v3116_v47  ;;  %v2208_v47 = vrot.slane %v2206_v34, 3 }
 0x102   : > { %v842_v52 = vadd.f32 %v645_v49, %v236_v41  ;;  %v4646_v53 = vpop.f32.mrb[13].mxu0  ;;  %4992 = vmatprep.mubr.msk.bf16.mxu1 %vm5235_vm0, %v5234_v1  ;;  %v2201_v45 = vsel %vm2139_vm4, %v2191_v6, %v2200_v32 }
 0x103   : > { %v948_v54 = vld [vmem:[#allocation2 + $0x20] sm:$0xff]  ;;  %v648_v55 = vpop.f32.mrb[14].mxu0 }
 0x104   : > { %896 = vst.msk [vmem:[#allocation2 + $0x30] sm:$0xff] %vm175_vm3, %v842_v52  ;;  %v1779_v60 = vadd.f32 %v1576_v40, %v948_v54  ;;  %v843_v61 = vadd.f32 %v648_v55, %v237_v50  ;;  %v4647_v62 = vpop.f32.mrb[15].mxu0  ;;  %v1584_v3 = vpop.f32.mrb[12].mxu1  ;;  %v3121_v52 = vrot.slane %v5796_v37, 3  ;;  %v5188_v37 = vld [vmem:[%s5293_s28 + $0x58] sm:$0xff]  }
 0x105   : > { %v949_v0 = vld [vmem:[#allocation2 + $0x28] sm:$0xff]  ;;  %v4762_v5 = vpop.f32.mrb[13].mxu1 }
 0x106   : > { %1833 = vst.msk [vmem:[#allocation2 + $0x20] sm:$0xff] %vm175_vm3, %v1779_v60  ;;  %897 = vst.msk [vmem:[#allocation2 + $0x38] sm:$0xff] %vm175_vm3, %v843_v61  ;;  %v1780_v2 = vadd.f32 %v1579_v46, %v949_v0  ;;  %4877 = vmatmul.mubr.msk.bf16.gmra.mrb[120].mxu0 %vm505_vm1, %v2183_v56  ;;  %v1587_v9 = vpop.f32.mrb[14].mxu1  ;;  %v2205_v46 = vrot.slane %v2203_v33, 2  ;;  %v242_v56 = vld [vmem:[#allocation2 + $0x60] sm:$0xff]  ;;  %v2215_v60 = vshll.u32 %v5184_v48, 16  ;;  %v3122_v62 = vsel %vm3109_vm5, %v3119_v26, %v3121_v52 }
 0x107   : > { %4880 = vmatprep.mubr.msk.bf16.mxu0 %vm5235_vm0, %v5234_v1  ;;  %v4763_v14 = vpop.f32.mrb[15].mxu1  ;;  %v5830_v26 = vld [vmem:[%s5293_s28 + $0x48] sm:$0xff]   ;;  %v2230_v48 = vshrl.u32 %v5188_v37, 16 }
 0x108   : > { %1834 = vst.msk [vmem:[#allocation2 + $0x28] sm:$0xff] %vm175_vm3, %v1780_v2  ;;  %v2209_v58 = vor.u32 %v2208_v47, %v2205_v46  ;;  %v243_v2 = vld [vmem:[#allocation2 + $0x68] sm:$0xff] }
 0x109   : > { %v653_v12 = vpop.f32.mrb[16].mxu0  ;;  %4993 = vmatmul.mubr.msk.bf16.gmra.mrb[120].mxu1 %vm505_vm1, %v3118_v10  ;;  %v2217_v10 = vrot.slane %v2215_v60, 3 }
 0x10a   : > { %v844_v15 = vadd.f32 %v653_v12, %v238_v4  ;;  %v4650_v16 = vpop.f32.mrb[17].mxu0  ;;  %4996 = vmatprep.mubr.msk.bf16.mxu1 %vm5235_vm0, %v5234_v1  ;;  %v2210_v8 = vsel %vm2139_vm4, %v2200_v32, %v2209_v58 }
 0x10b   : > { %v950_v17 = vld [vmem:[#allocation2 + $0x30] sm:$0xff]  ;;  %v656_v18 = vpop.f32.mrb[18].mxu0 }
 0x10c   : > { %898 = vst.msk [vmem:[#allocation2 + $0x40] sm:$0xff] %vm175_vm3, %v844_v15  ;;  %v1781_v23 = vadd.f32 %v1584_v3, %v950_v17  ;;  %v845_v24 = vadd.f32 %v656_v18, %v239_v13  ;;  %v4651_v25 = vpop.f32.mrb[19].mxu0  ;;  %v1592_v29 = vpop.f32.mrb[16].mxu1  ;;  %v3123_v15 = vrot.slane %v5813_v63, 3  ;;  %v5190_v63 = vld [vmem:[%s5293_s28 + $0x60] sm:$0xff]  }
 0x10d   : > { %v951_v27 = vld [vmem:[#allocation2 + $0x38] sm:$0xff]  ;;  %v4766_v31 = vpop.f32.mrb[17].mxu1 }
 0x10e   : > { %1835 = vst.msk [vmem:[#allocation2 + $0x30] sm:$0xff] %vm175_vm3, %v1781_v23  ;;  %899 = vst.msk [vmem:[#allocation2 + $0x48] sm:$0xff] %vm175_vm3, %v845_v24  ;;  %v1782_v28 = vadd.f32 %v1587_v9, %v951_v27  ;;  %4881 = vmatmul.mubr.msk.bf16.gmra.mrb[124].mxu0 %vm505_vm1, %v2192_v19  ;;  %v1595_v35 = vpop.f32.mrb[18].mxu1  ;;  %v2214_v9 = vrot.slane %v2212_v59, 2  ;;  %v244_v19 = vld [vmem:[#allocation2 + $0x70] sm:$0xff]  ;;  %v2224_v23 = vshll.u32 %v5186_v11, 16  ;;  %v3124_v25 = vsel %vm3109_vm5, %v3121_v52, %v3123_v15 }
 0x10f   : > { %4884 = vmatprep.mubr.msk.bf16.mxu0 %vm5235_vm0, %v5234_v1  ;;  %v4767_v40 = vpop.f32.mrb[19].mxu1  ;;  %v5847_v52 = vld [vmem:[%s5293_s28 + $0x50] sm:$0xff]   ;;  %v2239_v11 = vshrl.u32 %v5190_v63, 16 }
 0x110   : > { %1836 = vst.msk [vmem:[#allocation2 + $0x38] sm:$0xff] %vm175_vm3, %v1782_v28  ;;  %v2218_v21 = vor.u32 %v2217_v10, %v2214_v9  ;;  %v245_v28 = vld [vmem:[#allocation2 + $0x78] sm:$0xff] }
 0x111   : > { %v661_v38 = vpop.f32.mrb[20].mxu0  ;;  %4997 = vmatmul.mubr.msk.bf16.gmra.mrb[124].mxu1 %vm505_vm1, %v3120_v36  ;;  %v2226_v36 = vrot.slane %v2224_v23, 3 }
 0x112   : > { %v846_v41 = vadd.f32 %v661_v38, %v240_v30  ;;  %v4654_v42 = vpop.f32.mrb[21].mxu0  ;;  %5000 = vmatprep.mubr.msk.bf16.mxu1 %vm5235_vm0, %v5234_v1  ;;  %v2219_v34 = vsel %vm2139_vm4, %v2209_v58, %v2218_v21 }
 0x113   : > { %v952_v43 = vld [vmem:[#allocation2 + $0x40] sm:$0xff]  ;;  %v664_v44 = vpop.f32.mrb[22].mxu0 }
 0x114   : > { %900 = vst.msk [vmem:[#allocation2 + $0x50] sm:$0xff] %vm175_vm3, %v846_v41  ;;  %v1783_v49 = vadd.f32 %v1592_v29, %v952_v43  ;;  %v847_v50 = vadd.f32 %v664_v44, %v241_v39  ;;  %v4655_v51 = vpop.f32.mrb[23].mxu0  ;;  %v1600_v55 = vpop.f32.mrb[20].mxu1  ;;  %v3125_v41 = vrot.slane %v5830_v26, 3  ;;  %v5192_v26 = vld [vmem:[%s5293_s28 + $0x68] sm:$0xff]  }
 0x115   : > { %v953_v53 = vld [vmem:[#allocation2 + $0x48] sm:$0xff]  ;;  %v4770_v57 = vpop.f32.mrb[21].mxu1 }
 0x116   : > { %1837 = vst.msk [vmem:[#allocation2 + $0x40] sm:$0xff] %vm175_vm3, %v1783_v49  ;;  %901 = vst.msk [vmem:[#allocation2 + $0x58] sm:$0xff] %vm175_vm3, %v847_v50  ;;  %v1784_v54 = vadd.f32 %v1595_v35, %v953_v53  ;;  %4885 = vmatmul.mubr.msk.bf16.gmra.mrb[128].mxu0 %vm505_vm1, %v2201_v45  ;;  %v1603_v61 = vpop.f32.mrb[22].mxu1  ;;  %v2223_v35 = vrot.slane %v2221_v22, 2  ;;  %v246_v45 = vld [vmem:[#allocation2 + $0x80] sm:$0xff]  ;;  %v2233_v49 = vshll.u32 %v5188_v37, 16  ;;  %v3126_v51 = vsel %vm3109_vm5, %v3123_v15, %v3125_v41 }
 0x117   : > { %4888 = vmatprep.mubr.msk.bf16.mxu0 %vm5235_vm0, %v5234_v1  ;;  %v4771_v3 = vpop.f32.mrb[23].mxu1  ;;  %v5864_v15 = vld [vmem:[%s5293_s28 + $0x58] sm:$0xff]   ;;  %v2248_v37 = vshrl.u32 %v5192_v26, 16 }
 0x118   : > { %1838 = vst.msk [vmem:[#allocation2 + $0x48] sm:$0xff] %vm175_vm3, %v1784_v54  ;;  %v2227_v47 = vor.u32 %v2226_v36, %v2223_v35  ;;  %v247_v54 = vld [vmem:[#allocation2 + $0x88] sm:$0xff] }
 0x119   : > { %v669_v0 = vpop.f32.mrb[24].mxu0  ;;  %5001 = vmatmul.mubr.msk.bf16.gmra.mrb[128].mxu1 %vm505_vm1, %v3122_v62  ;;  %v2235_v62 = vrot.slane %v2233_v49, 3 }
 0x11a   : > { %v848_v4 = vadd.f32 %v669_v0, %v242_v56  ;;  %v4658_v5 = vpop.f32.mrb[25].mxu0  ;;  %5004 = vmatprep.mubr.msk.bf16.mxu1 %vm5235_vm0, %v5234_v1  ;;  %v2228_v60 = vsel %vm2139_vm4, %v2218_v21, %v2227_v47 }
 0x11b   : > { %v954_v6 = vld [vmem:[#allocation2 + $0x50] sm:$0xff]  ;;  %v672_v7 = vpop.f32.mrb[26].mxu0 }
 0x11c   : > { %902 = vst.msk [vmem:[#allocation2 + $0x60] sm:$0xff] %vm175_vm3, %v848_v4  ;;  %v1785_v12 = vadd.f32 %v1600_v55, %v954_v6  ;;  %v849_v13 = vadd.f32 %v672_v7, %v243_v2  ;;  %v4659_v14 = vpop.f32.mrb[27].mxu0  ;;  %v1608_v18 = vpop.f32.mrb[24].mxu1  ;;  %v3127_v4 = vrot.slane %v5847_v52, 3  ;;  %v5194_v52 = vld [vmem:[%s5293_s28 + $0x70] sm:$0xff]  }
 0x11d   : > { %v955_v16 = vld [vmem:[#allocation2 + $0x58] sm:$0xff]  ;;  %v4774_v20 = vpop.f32.mrb[25].mxu1 }
 0x11e   : > { %1839 = vst.msk [vmem:[#allocation2 + $0x50] sm:$0xff] %vm175_vm3, %v1785_v12  ;;  %903 = vst.msk [vmem:[#allocation2 + $0x68] sm:$0xff] %vm175_vm3, %v849_v13  ;;  %v1786_v17 = vadd.f32 %v1603_v61, %v955_v16  ;;  %4889 = vmatmul.mubr.msk.bf16.gmra.mrb[132].mxu0 %vm505_vm1, %v2210_v8  ;;  %v1611_v24 = vpop.f32.mrb[26].mxu1  ;;  %v2232_v61 = vrot.slane %v2230_v48, 2  ;;  %v248_v8 = vld [vmem:[#allocation2 + $0x90] sm:$0xff]  ;;  %v2242_v12 = vshll.u32 %v5190_v63, 16  ;;  %v3128_v14 = vsel %vm3109_vm5, %v3125_v41, %v3127_v4 }
 0x11f   : > { %4892 = vmatprep.mubr.msk.bf16.mxu0 %vm5235_vm0, %v5234_v1  ;;  %v4775_v29 = vpop.f32.mrb[27].mxu1  ;;  %v5881_v41 = vld [vmem:[%s5293_s28 + $0x60] sm:$0xff]   ;;  %v2257_v63 = vshrl.u32 %v5194_v52, 16 }
 0x120   : > { %1840 = vst.msk [vmem:[#allocation2 + $0x58] sm:$0xff] %vm175_vm3, %v1786_v17  ;;  %v2236_v10 = vor.u32 %v2235_v62, %v2232_v61  ;;  %v249_v17 = vld [vmem:[#allocation2 + $0x98] sm:$0xff] }
 0x121   : > { %v677_v27 = vpop.f32.mrb[28].mxu0  ;;  %5005 = vmatmul.mubr.msk.bf16.gmra.mrb[132].mxu1 %vm505_vm1, %v3124_v25  ;;  %v2244_v25 = vrot.slane %v2242_v12, 3 }
 0x122   : > { %v850_v30 = vadd.f32 %v677_v27, %v244_v19  ;;  %v4662_v31 = vpop.f32.mrb[29].mxu0  ;;  %5008 = vmatprep.mubr.msk.bf16.mxu1 %vm5235_vm0, %v5234_v1  ;;  %v2237_v23 = vsel %vm2139_vm4, %v2227_v47, %v2236_v10 }
 0x123   : > { %v956_v32 = vld [vmem:[#allocation2 + $0x60] sm:$0xff]  ;;  %v680_v33 = vpop.f32.mrb[30].mxu0 }
 0x124   : > { %904 = vst.msk [vmem:[#allocation2 + $0x70] sm:$0xff] %vm175_vm3, %v850_v30  ;;  %v1787_v38 = vadd.f32 %v1608_v18, %v956_v32  ;;  %v851_v39 = vadd.f32 %v680_v33, %v245_v28  ;;  %v4663_v40 = vpop.f32.mrb[31].mxu0  ;;  %v1616_v44 = vpop.f32.mrb[28].mxu1  ;;  %v3129_v30 = vrot.slane %v5864_v15, 3  ;;  %v5196_v15 = vld [vmem:[%s5293_s28 + $0x78] sm:$0xff]  }
 0x125   : > { %v957_v42 = vld [vmem:[#allocation2 + $0x68] sm:$0xff]  ;;  %v4778_v46 = vpop.f32.mrb[29].mxu1 }
 0x126   : > { %1841 = vst.msk [vmem:[#allocation2 + $0x60] sm:$0xff] %vm175_vm3, %v1787_v38  ;;  %905 = vst.msk [vmem:[#allocation2 + $0x78] sm:$0xff] %vm175_vm3, %v851_v39  ;;  %v1788_v43 = vadd.f32 %v1611_v24, %v957_v42  ;;  %4893 = vmatmul.mubr.msk.bf16.gmra.mrb[136].mxu0 %vm505_vm1, %v2219_v34  ;;  %v1619_v50 = vpop.f32.mrb[30].mxu1  ;;  %v2241_v24 = vrot.slane %v2239_v11, 2  ;;  %v250_v34 = vld [vmem:[#allocation2 + $0xa0] sm:$0xff]  ;;  %v2251_v38 = vshll.u32 %v5192_v26, 16  ;;  %v3130_v40 = vsel %vm3109_vm5, %v3127_v4, %v3129_v30 }
 0x127   : > { %4896 = vmatprep.mubr.msk.bf16.mxu0 %vm5235_vm0, %v5234_v1  ;;  %v4779_v55 = vpop.f32.mrb[31].mxu1  ;;  %v5898_v4 = vld [vmem:[%s5293_s28 + $0x68] sm:$0xff]   ;;  %v2266_v26 = vshrl.u32 %v5196_v15, 16 }
 0x128   : > { %1842 = vst.msk [vmem:[#allocation2 + $0x68] sm:$0xff] %vm175_vm3, %v1788_v43  ;;  %v2245_v36 = vor.u32 %v2244_v25, %v2241_v24  ;;  %v251_v43 = vld [vmem:[#allocation2 + $0xa8] sm:$0xff] }
 0x129   : > { %v685_v53 = vpop.f32.mrb[32].mxu0  ;;  %5009 = vmatmul.mubr.msk.bf16.gmra.mrb[136].mxu1 %vm505_vm1, %v3126_v51  ;;  %v2253_v51 = vrot.slane %v2251_v38, 3 }
 0x12a   : > { %v852_v56 = vadd.f32 %v685_v53, %v246_v45  ;;  %v4666_v57 = vpop.f32.mrb[33].mxu0  ;;  %5012 = vmatprep.mubr.msk.bf16.mxu1 %vm5235_vm0, %v5234_v1  ;;  %v2246_v49 = vsel %vm2139_vm4, %v2236_v10, %v2245_v36 }
 0x12b   : > { %v958_v58 = vld [vmem:[#allocation2 + $0x70] sm:$0xff]  ;;  %v688_v59 = vpop.f32.mrb[34].mxu0 }
 0x12c   : > { %906 = vst.msk [vmem:[#allocation2 + $0x80] sm:$0xff] %vm175_vm3, %v852_v56  ;;  %v1789_v0 = vadd.f32 %v1616_v44, %v958_v58  ;;  %v853_v2 = vadd.f32 %v688_v59, %v247_v54  ;;  %v4667_v3 = vpop.f32.mrb[35].mxu0  ;;  %v1624_v7 = vpop.f32.mrb[32].mxu1  ;;  %v3131_v56 = vrot.slane %v5881_v41, 3  ;;  %v5198_v41 = vld [vmem:[%s5293_s28 + $0x80] sm:$0xff]  }
 0x12d   : > { %v959_v5 = vld [vmem:[#allocation2 + $0x78] sm:$0xff]  ;;  %v4782_v9 = vpop.f32.mrb[33].mxu1 }
 0x12e   : > { %1843 = vst.msk [vmem:[#allocation2 + $0x70] sm:$0xff] %vm175_vm3, %v1789_v0  ;;  %907 = vst.msk [vmem:[#allocation2 + $0x88] sm:$0xff] %vm175_vm3, %v853_v2  ;;  %v1790_v6 = vadd.f32 %v1619_v50, %v959_v5  ;;  %4897 = vmatmul.mubr.msk.bf16.gmra.mrb[140].mxu0 %vm505_vm1, %v2228_v60  ;;  %v1627_v13 = vpop.f32.mrb[34].mxu1  ;;  %v2250_v50 = vrot.slane %v2248_v37, 2  ;;  %v252_v60 = vld [vmem:[#allocation2 + $0xb0] sm:$0xff]  ;;  %v2260_v0 = vshll.u32 %v5194_v52, 16  ;;  %v3132_v3 = vsel %vm3109_vm5, %v3129_v30, %v3131_v56 }
 0x12f   : > { %4900 = vmatprep.mubr.msk.bf16.mxu0 %vm5235_vm0, %v5234_v1  ;;  %v4783_v18 = vpop.f32.mrb[35].mxu1  ;;  %v5915_v30 = vld [vmem:[%s5293_s28 + $0x70] sm:$0xff]   ;;  %v2275_v52 = vshrl.u32 %v5198_v41, 16 }
 0x130   : > { %1844 = vst.msk [vmem:[#allocation2 + $0x78] sm:$0xff] %vm175_vm3, %v1790_v6  ;;  %v2254_v62 = vor.u32 %v2253_v51, %v2250_v50  ;;  %v253_v6 = vld [vmem:[#allocation2 + $0xb8] sm:$0xff] }
 0x131   : > { %v693_v16 = vpop.f32.mrb[36].mxu0  ;;  %5013 = vmatmul.mubr.msk.bf16.gmra.mrb[140].mxu1 %vm505_vm1, %v3128_v14  ;;  %v2262_v14 = vrot.slane %v2260_v0, 3 }
 0x132   : > { %v854_v19 = vadd.f32 %v693_v16, %v248_v8  ;;  %v4670_v20 = vpop.f32.mrb[37].mxu0  ;;  %5016 = vmatprep.mubr.msk.bf16.mxu1 %vm5235_vm0, %v5234_v1  ;;  %v2255_v12 = vsel %vm2139_vm4, %v2245_v36, %v2254_v62 }
 0x133   : > { %v960_v21 = vld [vmem:[#allocation2 + $0x80] sm:$0xff]  ;;  %v696_v22 = vpop.f32.mrb[38].mxu0 }
 0x134   : > { %908 = vst.msk [vmem:[#allocation2 + $0x90] sm:$0xff] %vm175_vm3, %v854_v19  ;;  %v1791_v27 = vadd.f32 %v1624_v7, %v960_v21  ;;  %v855_v28 = vadd.f32 %v696_v22, %v249_v17  ;;  %v4671_v29 = vpop.f32.mrb[39].mxu0  ;;  %v1632_v33 = vpop.f32.mrb[36].mxu1  ;;  %v3133_v19 = vrot.slane %v5898_v4, 3  ;;  %v5200_v4 = vld [vmem:[%s5293_s28 + $0x88] sm:$0xff]  }
 0x135   : > { %v961_v31 = vld [vmem:[#allocation2 + $0x88] sm:$0xff]  ;;  %v4786_v35 = vpop.f32.mrb[37].mxu1 }
 0x136   : > { %1845 = vst.msk [vmem:[#allocation2 + $0x80] sm:$0xff] %vm175_vm3, %v1791_v27  ;;  %909 = vst.msk [vmem:[#allocation2 + $0x98] sm:$0xff] %vm175_vm3, %v855_v28  ;;  %v1792_v32 = vadd.f32 %v1627_v13, %v961_v31  ;;  %4901 = vmatmul.mubr.msk.bf16.gmra.mrb[144].mxu0 %vm505_vm1, %v2237_v23  ;;  %v1635_v39 = vpop.f32.mrb[38].mxu1  ;;  %v2259_v13 = vrot.slane %v2257_v63, 2  ;;  %v254_v23 = vld [vmem:[#allocation2 + $0xc0] sm:$0xff]  ;;  %v2269_v27 = vshll.u32 %v5196_v15, 16  ;;  %v3134_v29 = vsel %vm3109_vm5, %v3131_v56, %v3133_v19 }
 0x137   : > { %4904 = vmatprep.mubr.msk.bf16.mxu0 %vm5235_vm0, %v5234_v1  ;;  %v4787_v44 = vpop.f32.mrb[39].mxu1  ;;  %v5932_v56 = vld [vmem:[%s5293_s28 + $0x78] sm:$0xff]   ;;  %v2284_v15 = vshrl.u32 %v5200_v4, 16 }
 0x138   : > { %1846 = vst.msk [vmem:[#allocation2 + $0x88] sm:$0xff] %vm175_vm3, %v1792_v32  ;;  %v2263_v25 = vor.u32 %v2262_v14, %v2259_v13  ;;  %v255_v32 = vld [vmem:[#allocation2 + $0xc8] sm:$0xff] }
 0x139   : > { %v701_v42 = vpop.f32.mrb[40].mxu0  ;;  %5017 = vmatmul.mubr.msk.bf16.gmra.mrb[144].mxu1 %vm505_vm1, %v3130_v40  ;;  %v2271_v40 = vrot.slane %v2269_v27, 3 }
 0x13a   : > { %v856_v45 = vadd.f32 %v701_v42, %v250_v34  ;;  %v4674_v46 = vpop.f32.mrb[41].mxu0  ;;  %5020 = vmatprep.mubr.msk.bf16.mxu1 %vm5235_vm0, %v5234_v1  ;;  %v2264_v38 = vsel %vm2139_vm4, %v2254_v62, %v2263_v25 }
 0x13b   : > { %v962_v47 = vld [vmem:[#allocation2 + $0x90] sm:$0xff]  ;;  %v704_v48 = vpop.f32.mrb[42].mxu0 }
 0x13c   : > { %910 = vst.msk [vmem:[#allocation2 + $0xa0] sm:$0xff] %vm175_vm3, %v856_v45  ;;  %v1793_v53 = vadd.f32 %v1632_v33, %v962_v47  ;;  %v857_v54 = vadd.f32 %v704_v48, %v251_v43  ;;  %v4675_v55 = vpop.f32.mrb[43].mxu0  ;;  %v1640_v59 = vpop.f32.mrb[40].mxu1  ;;  %v3135_v45 = vrot.slane %v5915_v30, 3  ;;  %v5202_v30 = vld [vmem:[%s5293_s28 + $0x90] sm:$0xff]  }
 0x13d   : > { %v963_v57 = vld [vmem:[#allocation2 + $0x98] sm:$0xff]  ;;  %v4790_v61 = vpop.f32.mrb[41].mxu1 }
 0x13e   : > { %1847 = vst.msk [vmem:[#allocation2 + $0x90] sm:$0xff] %vm175_vm3, %v1793_v53  ;;  %911 = vst.msk [vmem:[#allocation2 + $0xa8] sm:$0xff] %vm175_vm3, %v857_v54  ;;  %v1794_v58 = vadd.f32 %v1635_v39, %v963_v57  ;;  %4905 = vmatmul.mubr.msk.bf16.gmra.mrb[148].mxu0 %vm505_vm1, %v2246_v49  ;;  %v1643_v2 = vpop.f32.mrb[42].mxu1  ;;  %v2268_v39 = vrot.slane %v2266_v26, 2  ;;  %v256_v49 = vld [vmem:[#allocation2 + $0xd0] sm:$0xff]  ;;  %v2278_v53 = vshll.u32 %v5198_v41, 16  ;;  %v3136_v55 = vsel %vm3109_vm5, %v3133_v19, %v3135_v45 }
 0x13f   : > { %4908 = vmatprep.mubr.msk.bf16.mxu0 %vm5235_vm0, %v5234_v1  ;;  %v4791_v7 = vpop.f32.mrb[43].mxu1  ;;  %v5949_v19 = vld [vmem:[%s5293_s28 + $0x80] sm:$0xff]   ;;  %v2293_v41 = vshrl.u32 %v5202_v30, 16 }
 0x140   : > { %1848 = vst.msk [vmem:[#allocation2 + $0x98] sm:$0xff] %vm175_vm3, %v1794_v58  ;;  %v2272_v51 = vor.u32 %v2271_v40, %v2268_v39  ;;  %v257_v58 = vld [vmem:[#allocation2 + $0xd8] sm:$0xff] }
 0x141   : > { %v709_v5 = vpop.f32.mrb[44].mxu0  ;;  %5021 = vmatmul.mubr.msk.bf16.gmra.mrb[148].mxu1 %vm505_vm1, %v3132_v3  ;;  %v2280_v3 = vrot.slane %v2278_v53, 3 }
 0x142   : > { %v858_v8 = vadd.f32 %v709_v5, %v252_v60  ;;  %v4678_v9 = vpop.f32.mrb[45].mxu0  ;;  %5024 = vmatprep.mubr.msk.bf16.mxu1 %vm5235_vm0, %v5234_v1  ;;  %v2273_v0 = vsel %vm2139_vm4, %v2263_v25, %v2272_v51 }
 0x143   : > { %v964_v10 = vld [vmem:[#allocation2 + $0xa0] sm:$0xff]  ;;  %v712_v11 = vpop.f32.mrb[46].mxu0 }
 0x144   : > { %912 = vst.msk [vmem:[#allocation2 + $0xb0] sm:$0xff] %vm175_vm3, %v858_v8  ;;  %v1795_v16 = vadd.f32 %v1640_v59, %v964_v10  ;;  %v859_v17 = vadd.f32 %v712_v11, %v253_v6  ;;  %v4679_v18 = vpop.f32.mrb[47].mxu0  ;;  %v1648_v22 = vpop.f32.mrb[44].mxu1  ;;  %v3137_v8 = vrot.slane %v5932_v56, 3  ;;  %v5204_v56 = vld [vmem:[%s5293_s28 + $0x98] sm:$0xff]  }
 0x145   : > { %v965_v20 = vld [vmem:[#allocation2 + $0xa8] sm:$0xff]  ;;  %v4794_v24 = vpop.f32.mrb[45].mxu1 }
 0x146   : > { %1849 = vst.msk [vmem:[#allocation2 + $0xa0] sm:$0xff] %vm175_vm3, %v1795_v16  ;;  %913 = vst.msk [vmem:[#allocation2 + $0xb8] sm:$0xff] %vm175_vm3, %v859_v17  ;;  %v1796_v21 = vadd.f32 %v1643_v2, %v965_v20  ;;  %4909 = vmatmul.mubr.msk.bf16.gmra.mrb[152].mxu0 %vm505_vm1, %v2255_v12  ;;  %v1651_v28 = vpop.f32.mrb[46].mxu1  ;;  %v2277_v2 = vrot.slane %v2275_v52, 2  ;;  %v258_v12 = vld [vmem:[#allocation2 + $0xe0] sm:$0xff]  ;;  %v2287_v16 = vshll.u32 %v5200_v4, 16  ;;  %v3138_v18 = vsel %vm3109_vm5, %v3135_v45, %v3137_v8 }
 0x147   : > { %4912 = vmatprep.mubr.msk.bf16.mxu0 %vm5235_vm0, %v5234_v1  ;;  %v4795_v33 = vpop.f32.mrb[47].mxu1  ;;  %v5966_v45 = vld [vmem:[%s5293_s28 + $0x88] sm:$0xff]   ;;  %v2302_v4 = vshrl.u32 %v5204_v56, 16 }
 0x148   : > { %1850 = vst.msk [vmem:[#allocation2 + $0xa8] sm:$0xff] %vm175_vm3, %v1796_v21  ;;  %v2281_v14 = vor.u32 %v2280_v3, %v2277_v2  ;;  %v259_v21 = vld [vmem:[#allocation2 + $0xe8] sm:$0xff] }
 0x149   : > { %v717_v31 = vpop.f32.mrb[48].mxu0  ;;  %5025 = vmatmul.mubr.msk.bf16.gmra.mrb[152].mxu1 %vm505_vm1, %v3134_v29  ;;  %v2289_v29 = vrot.slane %v2287_v16, 3 }
 0x14a   : > { %v860_v34 = vadd.f32 %v717_v31, %v254_v23  ;;  %v4682_v35 = vpop.f32.mrb[49].mxu0  ;;  %5028 = vmatprep.mubr.msk.bf16.mxu1 %vm5235_vm0, %v5234_v1  ;;  %v2282_v27 = vsel %vm2139_vm4, %v2272_v51, %v2281_v14 }
 0x14b   : > { %v966_v36 = vld [vmem:[#allocation2 + $0xb0] sm:$0xff]  ;;  %v720_v37 = vpop.f32.mrb[50].mxu0 }
 0x14c   : > { %914 = vst.msk [vmem:[#allocation2 + $0xc0] sm:$0xff] %vm175_vm3, %v860_v34  ;;  %v1797_v42 = vadd.f32 %v1648_v22, %v966_v36  ;;  %v861_v43 = vadd.f32 %v720_v37, %v255_v32  ;;  %v4683_v44 = vpop.f32.mrb[51].mxu0  ;;  %v1656_v48 = vpop.f32.mrb[48].mxu1  ;;  %v3139_v34 = vrot.slane %v5949_v19, 3  ;;  %v5206_v19 = vld [vmem:[%s5293_s28 + $0xa0] sm:$0xff]  }
 0x14d   : > { %v967_v46 = vld [vmem:[#allocation2 + $0xb8] sm:$0xff]  ;;  %v4798_v50 = vpop.f32.mrb[49].mxu1 }
 0x14e   : > { %1851 = vst.msk [vmem:[#allocation2 + $0xb0] sm:$0xff] %vm175_vm3, %v1797_v42  ;;  %915 = vst.msk [vmem:[#allocation2 + $0xc8] sm:$0xff] %vm175_vm3, %v861_v43  ;;  %v1798_v47 = vadd.f32 %v1651_v28, %v967_v46  ;;  %4913 = vmatmul.mubr.msk.bf16.gmra.mrb[156].mxu0 %vm505_vm1, %v2264_v38  ;;  %v1659_v54 = vpop.f32.mrb[50].mxu1  ;;  %v2286_v28 = vrot.slane %v2284_v15, 2  ;;  %v260_v38 = vld [vmem:[#allocation2 + $0xf0] sm:$0xff]  ;;  %v2296_v42 = vshll.u32 %v5202_v30, 16  ;;  %v3140_v44 = vsel %vm3109_vm5, %v3137_v8, %v3139_v34 }
 0x14f   : > { %4916 = vmatprep.mubr.msk.bf16.mxu0 %vm5235_vm0, %v5234_v1  ;;  %v4799_v59 = vpop.f32.mrb[51].mxu1  ;;  %v5983_v8 = vld [vmem:[%s5293_s28 + $0x90] sm:$0xff]   ;;  %v2311_v30 = vshrl.u32 %v5206_v19, 16 }
 0x150   : > { %1852 = vst.msk [vmem:[#allocation2 + $0xb8] sm:$0xff] %vm175_vm3, %v1798_v47  ;;  %v2290_v40 = vor.u32 %v2289_v29, %v2286_v28  ;;  %v261_v47 = vld [vmem:[#allocation2 + $0xf8] sm:$0xff] }
 0x151   : > { %v725_v57 = vpop.f32.mrb[52].mxu0  ;;  %5029 = vmatmul.mubr.msk.bf16.gmra.mrb[156].mxu1 %vm505_vm1, %v3136_v55  ;;  %v2298_v55 = vrot.slane %v2296_v42, 3 }
 0x152   : > { %v862_v60 = vadd.f32 %v725_v57, %v256_v49  ;;  %v4686_v61 = vpop.f32.mrb[53].mxu0  ;;  %5032 = vmatprep.mubr.msk.bf16.mxu1 %vm5235_vm0, %v5234_v1  ;;  %v2291_v53 = vsel %vm2139_vm4, %v2281_v14, %v2290_v40 }
 0x153   : > { %v968_v62 = vld [vmem:[#allocation2 + $0xc0] sm:$0xff]  ;;  %v728_v63 = vpop.f32.mrb[54].mxu0 }
 0x154   : > { %916 = vst.msk [vmem:[#allocation2 + $0xd0] sm:$0xff] %vm175_vm3, %v862_v60  ;;  %v1799_v5 = vadd.f32 %v1656_v48, %v968_v62  ;;  %v863_v6 = vadd.f32 %v728_v63, %v257_v58  ;;  %v4687_v7 = vpop.f32.mrb[55].mxu0  ;;  %v1664_v11 = vpop.f32.mrb[52].mxu1  ;;  %v3141_v60 = vrot.slane %v5966_v45, 3  ;;  %v5208_v45 = vld [vmem:[%s5293_s28 + $0xa8] sm:$0xff]  }
 0x155   : > { %v969_v9 = vld [vmem:[#allocation2 + $0xc8] sm:$0xff]  ;;  %v4802_v13 = vpop.f32.mrb[53].mxu1 }
 0x156   : > { %1853 = vst.msk [vmem:[#allocation2 + $0xc0] sm:$0xff] %vm175_vm3, %v1799_v5  ;;  %917 = vst.msk [vmem:[#allocation2 + $0xd8] sm:$0xff] %vm175_vm3, %v863_v6  ;;  %v1800_v10 = vadd.f32 %v1659_v54, %v969_v9  ;;  %4917 = vmatmul.mubr.msk.bf16.gmra.mrb[160].mxu0 %vm505_vm1, %v2273_v0  ;;  %v1667_v17 = vpop.f32.mrb[54].mxu1  ;;  %v2295_v54 = vrot.slane %v2293_v41, 2  ;;  %v262_v0 = vld [vmem:[#allocation2 + $0x100] sm:$0xff]  ;;  %v2305_v5 = vshll.u32 %v5204_v56, 16  ;;  %v3142_v7 = vsel %vm3109_vm5, %v3139_v34, %v3141_v60 }
 0x157   : > { %4920 = vmatprep.mubr.msk.bf16.mxu0 %vm5235_vm0, %v5234_v1  ;;  %v4803_v22 = vpop.f32.mrb[55].mxu1  ;;  %v6000_v34 = vld [vmem:[%s5293_s28 + $0x98] sm:$0xff]   ;;  %v2320_v56 = vshrl.u32 %v5208_v45, 16 }
 0x158   : > { %1854 = vst.msk [vmem:[#allocation2 + $0xc8] sm:$0xff] %vm175_vm3, %v1800_v10  ;;  %v2299_v3 = vor.u32 %v2298_v55, %v2295_v54  ;;  %v263_v10 = vld [vmem:[#allocation2 + $0x108] sm:$0xff] }
 0x159   : > { %v733_v20 = vpop.f32.mrb[56].mxu0  ;;  %5033 = vmatmul.mubr.msk.bf16.gmra.mrb[160].mxu1 %vm505_vm1, %v3138_v18  ;;  %v2307_v18 = vrot.slane %v2305_v5, 3 }
 0x15a   : > { %v864_v23 = vadd.f32 %v733_v20, %v258_v12  ;;  %v4690_v24 = vpop.f32.mrb[57].mxu0  ;;  %5036 = vmatprep.mubr.msk.bf16.mxu1 %vm5235_vm0, %v5234_v1  ;;  %v2300_v16 = vsel %vm2139_vm4, %v2290_v40, %v2299_v3 }
 0x15b   : > { %v970_v25 = vld [vmem:[#allocation2 + $0xd0] sm:$0xff]  ;;  %v736_v26 = vpop.f32.mrb[58].mxu0 }
 0x15c   : > { %918 = vst.msk [vmem:[#allocation2 + $0xe0] sm:$0xff] %vm175_vm3, %v864_v23  ;;  %v1801_v31 = vadd.f32 %v1664_v11, %v970_v25  ;;  %v865_v32 = vadd.f32 %v736_v26, %v259_v21  ;;  %v4691_v33 = vpop.f32.mrb[59].mxu0  ;;  %v1672_v37 = vpop.f32.mrb[56].mxu1  ;;  %v3143_v23 = vrot.slane %v5983_v8, 3  ;;  %v5210_v8 = vld [vmem:[%s5293_s28 + $0xb0] sm:$0xff]  }
 0x15d   : > { %v971_v35 = vld [vmem:[#allocation2 + $0xd8] sm:$0xff]  ;;  %v4806_v39 = vpop.f32.mrb[57].mxu1 }
 0x15e   : > { %1855 = vst.msk [vmem:[#allocation2 + $0xd0] sm:$0xff] %vm175_vm3, %v1801_v31  ;;  %919 = vst.msk [vmem:[#allocation2 + $0xe8] sm:$0xff] %vm175_vm3, %v865_v32  ;;  %v1802_v36 = vadd.f32 %v1667_v17, %v971_v35  ;;  %4921 = vmatmul.mubr.msk.bf16.gmra.mrb[164].mxu0 %vm505_vm1, %v2282_v27  ;;  %v1675_v43 = vpop.f32.mrb[58].mxu1  ;;  %v2304_v17 = vrot.slane %v2302_v4, 2  ;;  %v264_v27 = vld [vmem:[#allocation2 + $0x110] sm:$0xff]  ;;  %v2314_v31 = vshll.u32 %v5206_v19, 16  ;;  %v3144_v33 = vsel %vm3109_vm5, %v3141_v60, %v3143_v23 }
 0x15f   : > { %4924 = vmatprep.mubr.msk.bf16.mxu0 %vm5235_vm0, %v5234_v1  ;;  %v4807_v48 = vpop.f32.mrb[59].mxu1  ;;  %v6017_v60 = vld [vmem:[%s5293_s28 + $0xa0] sm:$0xff]   ;;  %v2329_v19 = vshrl.u32 %v5210_v8, 16 }
 0x160   : > { %1856 = vst.msk [vmem:[#allocation2 + $0xd8] sm:$0xff] %vm175_vm3, %v1802_v36  ;;  %v2308_v29 = vor.u32 %v2307_v18, %v2304_v17  ;;  %v265_v36 = vld [vmem:[#allocation2 + $0x118] sm:$0xff] }
 0x161   : > { %v741_v46 = vpop.f32.mrb[60].mxu0  ;;  %5037 = vmatmul.mubr.msk.bf16.gmra.mrb[164].mxu1 %vm505_vm1, %v3140_v44  ;;  %v2316_v44 = vrot.slane %v2314_v31, 3 }
 0x162   : > { %v866_v49 = vadd.f32 %v741_v46, %v260_v38  ;;  %v4694_v50 = vpop.f32.mrb[61].mxu0  ;;  %5040 = vmatprep.mubr.msk.bf16.mxu1 %vm5235_vm0, %v5234_v1  ;;  %v2309_v42 = vsel %vm2139_vm4, %v2299_v3, %v2308_v29 }
 0x163   : > { %v972_v51 = vld [vmem:[#allocation2 + $0xe0] sm:$0xff]  ;;  %v744_v52 = vpop.f32.mrb[62].mxu0 }
 0x164   : > { %920 = vst.msk [vmem:[#allocation2 + $0xf0] sm:$0xff] %vm175_vm3, %v866_v49  ;;  %v1803_v57 = vadd.f32 %v1672_v37, %v972_v51  ;;  %v867_v58 = vadd.f32 %v744_v52, %v261_v47  ;;  %v4695_v59 = vpop.f32.mrb[63].mxu0  ;;  %v1680_v63 = vpop.f32.mrb[60].mxu1  ;;  %v3145_v49 = vrot.slane %v6000_v34, 3  ;;  %v5212_v34 = vld [vmem:[%s5293_s28 + $0xb8] sm:$0xff]  }
 0x165   : > { %v973_v61 = vld [vmem:[#allocation2 + $0xe8] sm:$0xff]  ;;  %v4810_v2 = vpop.f32.mrb[61].mxu1 }
 0x166   : > { %1857 = vst.msk [vmem:[#allocation2 + $0xe0] sm:$0xff] %vm175_vm3, %v1803_v57  ;;  %921 = vst.msk [vmem:[#allocation2 + $0xf8] sm:$0xff] %vm175_vm3, %v867_v58  ;;  %v1804_v62 = vadd.f32 %v1675_v43, %v973_v61  ;;  %4925 = vmatmul.mubr.msk.bf16.gmra.mrb[168].mxu0 %vm505_vm1, %v2291_v53  ;;  %v1683_v6 = vpop.f32.mrb[62].mxu1  ;;  %v2313_v43 = vrot.slane %v2311_v30, 2  ;;  %v266_v53 = vld [vmem:[#allocation2 + $0x120] sm:$0xff]  ;;  %v2323_v57 = vshll.u32 %v5208_v45, 16  ;;  %v3146_v59 = vsel %vm3109_vm5, %v3143_v23, %v3145_v49 }
 0x167   : > { %4928 = vmatprep.mubr.msk.bf16.mxu0 %vm5235_vm0, %v5234_v1  ;;  %v4811_v11 = vpop.f32.mrb[63].mxu1  ;;  %v6034_v23 = vld [vmem:[%s5293_s28 + $0xa8] sm:$0xff]   ;;  %v2338_v45 = vshrl.u32 %v5212_v34, 16 }
 0x168   : > { %1858 = vst.msk [vmem:[#allocation2 + $0xe8] sm:$0xff] %vm175_vm3, %v1804_v62  ;;  %v2317_v55 = vor.u32 %v2316_v44, %v2313_v43  ;;  %v267_v62 = vld [vmem:[#allocation2 + $0x128] sm:$0xff] }
 0x169   : > { %v749_v9 = vpop.f32.mrb[64].mxu0  ;;  %5041 = vmatmul.mubr.msk.bf16.gmra.mrb[168].mxu1 %vm505_vm1, %v3142_v7  ;;  %v2325_v7 = vrot.slane %v2323_v57, 3 }
 0x16a   : > { %v868_v12 = vadd.f32 %v749_v9, %v262_v0  ;;  %v4698_v13 = vpop.f32.mrb[65].mxu0  ;;  %5044 = vmatprep.mubr.msk.bf16.mxu1 %vm5235_vm0, %v5234_v1  ;;  %v2318_v5 = vsel %vm2139_vm4, %v2308_v29, %v2317_v55 }
 0x16b   : > { %v974_v14 = vld [vmem:[#allocation2 + $0xf0] sm:$0xff]  ;;  %v752_v15 = vpop.f32.mrb[66].mxu0 }
 0x16c   : > { %922 = vst.msk [vmem:[#allocation2 + $0x100] sm:$0xff] %vm175_vm3, %v868_v12  ;;  %v1805_v20 = vadd.f32 %v1680_v63, %v974_v14  ;;  %v869_v21 = vadd.f32 %v752_v15, %v263_v10  ;;  %v4699_v22 = vpop.f32.mrb[67].mxu0  ;;  %v1688_v26 = vpop.f32.mrb[64].mxu1  ;;  %v3147_v12 = vrot.slane %v6017_v60, 3  ;;  %v5214_v60 = vld [vmem:[%s5293_s28 + $0xc0] sm:$0xff]  }
 0x16d   : > { %v975_v24 = vld [vmem:[#allocation2 + $0xf8] sm:$0xff]  ;;  %v4814_v28 = vpop.f32.mrb[65].mxu1 }
 0x16e   : > { %1859 = vst.msk [vmem:[#allocation2 + $0xf0] sm:$0xff] %vm175_vm3, %v1805_v20  ;;  %923 = vst.msk [vmem:[#allocation2 + $0x108] sm:$0xff] %vm175_vm3, %v869_v21  ;;  %v1806_v25 = vadd.f32 %v1683_v6, %v975_v24  ;;  %4929 = vmatmul.mubr.msk.bf16.gmra.mrb[172].mxu0 %vm505_vm1, %v2300_v16  ;;  %v1691_v32 = vpop.f32.mrb[66].mxu1  ;;  %v2322_v6 = vrot.slane %v2320_v56, 2  ;;  %v268_v16 = vld [vmem:[#allocation2 + $0x130] sm:$0xff]  ;;  %v2332_v20 = vshll.u32 %v5210_v8, 16  ;;  %v3148_v22 = vsel %vm3109_vm5, %v3145_v49, %v3147_v12 }
 0x16f   : > { %4932 = vmatprep.mubr.msk.bf16.mxu0 %vm5235_vm0, %v5234_v1  ;;  %v4815_v37 = vpop.f32.mrb[67].mxu1  ;;  %v6051_v49 = vld [vmem:[%s5293_s28 + $0xb0] sm:$0xff]   ;;  %v2347_v8 = vshrl.u32 %v5214_v60, 16 }
 0x170   : > { %1860 = vst.msk [vmem:[#allocation2 + $0xf8] sm:$0xff] %vm175_vm3, %v1806_v25  ;;  %v2326_v18 = vor.u32 %v2325_v7, %v2322_v6  ;;  %v269_v25 = vld [vmem:[#allocation2 + $0x138] sm:$0xff] }
 0x171   : > { %v757_v35 = vpop.f32.mrb[68].mxu0  ;;  %5045 = vmatmul.mubr.msk.bf16.gmra.mrb[172].mxu1 %vm505_vm1, %v3144_v33  ;;  %v2334_v33 = vrot.slane %v2332_v20, 3 }
 0x172   : > { %v870_v38 = vadd.f32 %v757_v35, %v264_v27  ;;  %v4702_v39 = vpop.f32.mrb[69].mxu0  ;;  %5048 = vmatprep.mubr.msk.bf16.mxu1 %vm5235_vm0, %v5234_v1  ;;  %v2327_v31 = vsel %vm2139_vm4, %v2317_v55, %v2326_v18 }
 0x173   : > { %v976_v40 = vld [vmem:[#allocation2 + $0x100] sm:$0xff]  ;;  %v760_v41 = vpop.f32.mrb[70].mxu0 }
 0x174   : > { %924 = vst.msk [vmem:[#allocation2 + $0x110] sm:$0xff] %vm175_vm3, %v870_v38  ;;  %v1807_v46 = vadd.f32 %v1688_v26, %v976_v40  ;;  %v871_v47 = vadd.f32 %v760_v41, %v265_v36  ;;  %v4703_v48 = vpop.f32.mrb[71].mxu0  ;;  %v1696_v52 = vpop.f32.mrb[68].mxu1  ;;  %v3149_v38 = vrot.slane %v6034_v23, 3  ;;  %v5216_v23 = vld [vmem:[%s5293_s28 + $0xc8] sm:$0xff]  }
 0x175   : > { %v977_v50 = vld [vmem:[#allocation2 + $0x108] sm:$0xff]  ;;  %v4818_v54 = vpop.f32.mrb[69].mxu1 }
 0x176   : > { %1861 = vst.msk [vmem:[#allocation2 + $0x100] sm:$0xff] %vm175_vm3, %v1807_v46  ;;  %925 = vst.msk [vmem:[#allocation2 + $0x118] sm:$0xff] %vm175_vm3, %v871_v47  ;;  %v1808_v51 = vadd.f32 %v1691_v32, %v977_v50  ;;  %4933 = vmatmul.mubr.msk.bf16.gmra.mrb[176].mxu0 %vm505_vm1, %v2309_v42  ;;  %v1699_v58 = vpop.f32.mrb[70].mxu1  ;;  %v2331_v32 = vrot.slane %v2329_v19, 2  ;;  %v270_v42 = vld [vmem:[#allocation2 + $0x140] sm:$0xff]  ;;  %v2341_v46 = vshll.u32 %v5212_v34, 16  ;;  %v3150_v48 = vsel %vm3109_vm5, %v3147_v12, %v3149_v38 }
 0x177   : > { %4936 = vmatprep.mubr.msk.bf16.mxu0 %vm5235_vm0, %v5234_v1  ;;  %v4819_v63 = vpop.f32.mrb[71].mxu1  ;;  %v6068_v12 = vld [vmem:[%s5293_s28 + $0xb8] sm:$0xff]   ;;  %v2356_v34 = vshrl.u32 %v5216_v23, 16 }
 0x178   : > { %1862 = vst.msk [vmem:[#allocation2 + $0x108] sm:$0xff] %vm175_vm3, %v1808_v51  ;;  %v2335_v44 = vor.u32 %v2334_v33, %v2331_v32  ;;  %v271_v51 = vld [vmem:[#allocation2 + $0x148] sm:$0xff] }
 0x179   : > { %v765_v61 = vpop.f32.mrb[72].mxu0  ;;  %5049 = vmatmul.mubr.msk.bf16.gmra.mrb[176].mxu1 %vm505_vm1, %v3146_v59  ;;  %v2343_v59 = vrot.slane %v2341_v46, 3 }
 0x17a   : > { %v872_v0 = vadd.f32 %v765_v61, %v266_v53  ;;  %v4706_v2 = vpop.f32.mrb[73].mxu0  ;;  %5052 = vmatprep.mubr.msk.bf16.mxu1 %vm5235_vm0, %v5234_v1  ;;  %v2336_v57 = vsel %vm2139_vm4, %v2326_v18, %v2335_v44 }
 0x17b   : > { %v978_v3 = vld [vmem:[#allocation2 + $0x110] sm:$0xff]  ;;  %v768_v4 = vpop.f32.mrb[74].mxu0 }
 0x17c   : > { %926 = vst.msk [vmem:[#allocation2 + $0x120] sm:$0xff] %vm175_vm3, %v872_v0  ;;  %v1809_v9 = vadd.f32 %v1696_v52, %v978_v3  ;;  %v873_v10 = vadd.f32 %v768_v4, %v267_v62  ;;  %v4707_v11 = vpop.f32.mrb[75].mxu0  ;;  %v1704_v15 = vpop.f32.mrb[72].mxu1  ;;  %v3151_v0 = vrot.slane %v6051_v49, 3  ;;  %v5218_v49 = vld [vmem:[%s5293_s28 + $0xd0] sm:$0xff]  }
 0x17d   : > { %v979_v13 = vld [vmem:[#allocation2 + $0x118] sm:$0xff]  ;;  %v4822_v17 = vpop.f32.mrb[73].mxu1 }
 0x17e   : > { %1863 = vst.msk [vmem:[#allocation2 + $0x110] sm:$0xff] %vm175_vm3, %v1809_v9  ;;  %927 = vst.msk [vmem:[#allocation2 + $0x128] sm:$0xff] %vm175_vm3, %v873_v10  ;;  %v1810_v14 = vadd.f32 %v1699_v58, %v979_v13  ;;  %4937 = vmatmul.mubr.msk.bf16.gmra.mrb[180].mxu0 %vm505_vm1, %v2318_v5  ;;  %v1707_v21 = vpop.f32.mrb[74].mxu1  ;;  %v2340_v58 = vrot.slane %v2338_v45, 2  ;;  %v272_v5 = vld [vmem:[#allocation2 + $0x150] sm:$0xff]  ;;  %v2350_v9 = vshll.u32 %v5214_v60, 16  ;;  %v3152_v11 = vsel %vm3109_vm5, %v3149_v38, %v3151_v0 }
 0x17f   : > { %4940 = vmatprep.mubr.msk.bf16.mxu0 %vm5235_vm0, %v5234_v1  ;;  %v4823_v26 = vpop.f32.mrb[75].mxu1  ;;  %v6085_v38 = vld [vmem:[%s5293_s28 + $0xc0] sm:$0xff]   ;;  %v2365_v60 = vshrl.u32 %v5218_v49, 16 }
 0x180   : > { %1864 = vst.msk [vmem:[#allocation2 + $0x118] sm:$0xff] %vm175_vm3, %v1810_v14  ;;  %v2344_v7 = vor.u32 %v2343_v59, %v2340_v58  ;;  %v273_v14 = vld [vmem:[#allocation2 + $0x158] sm:$0xff] }
 0x181   : > { %v773_v24 = vpop.f32.mrb[76].mxu0  ;;  %5053 = vmatmul.mubr.msk.bf16.gmra.mrb[180].mxu1 %vm505_vm1, %v3148_v22  ;;  %v2352_v22 = vrot.slane %v2350_v9, 3 }
 0x182   : > { %v874_v27 = vadd.f32 %v773_v24, %v268_v16  ;;  %v4710_v28 = vpop.f32.mrb[77].mxu0  ;;  %5056 = vmatprep.mubr.msk.bf16.mxu1 %vm5235_vm0, %v5234_v1  ;;  %v2345_v20 = vsel %vm2139_vm4, %v2335_v44, %v2344_v7 }
 0x183   : > { %v980_v29 = vld [vmem:[#allocation2 + $0x120] sm:$0xff]  ;;  %v776_v30 = vpop.f32.mrb[78].mxu0 }
 0x184   : > { %928 = vst.msk [vmem:[#allocation2 + $0x130] sm:$0xff] %vm175_vm3, %v874_v27  ;;  %v1811_v35 = vadd.f32 %v1704_v15, %v980_v29  ;;  %v875_v36 = vadd.f32 %v776_v30, %v269_v25  ;;  %v4711_v37 = vpop.f32.mrb[79].mxu0  ;;  %v1712_v41 = vpop.f32.mrb[76].mxu1  ;;  %v3153_v27 = vrot.slane %v6068_v12, 3 }
 0x185   : > { %v981_v39 = vld [vmem:[#allocation2 + $0x128] sm:$0xff]  ;;  %v4826_v43 = vpop.f32.mrb[77].mxu1 }
 0x186   : > { %1865 = vst.msk [vmem:[#allocation2 + $0x120] sm:$0xff] %vm175_vm3, %v1811_v35  ;;  %929 = vst.msk [vmem:[#allocation2 + $0x138] sm:$0xff] %vm175_vm3, %v875_v36  ;;  %v1812_v40 = vadd.f32 %v1707_v21, %v981_v39  ;;  %4941 = vmatmul.mubr.msk.bf16.gmra.mrb[184].mxu0 %vm505_vm1, %v2327_v31  ;;  %v1715_v47 = vpop.f32.mrb[78].mxu1  ;;  %v2349_v21 = vrot.slane %v2347_v8, 2  ;;  %v274_v31 = vld [vmem:[#allocation2 + $0x160] sm:$0xff]  ;;  %v2359_v35 = vshll.u32 %v5216_v23, 16  ;;  %v3154_v37 = vsel %vm3109_vm5, %v3151_v0, %v3153_v27 }
 0x187   : > { %4944 = vmatprep.mubr.msk.bf16.mxu0 %vm5235_vm0, %v5234_v1  ;;  %v4827_v52 = vpop.f32.mrb[79].mxu1  ;;  %v6102_v0 = vld [vmem:[%s5293_s28 + $0xc8] sm:$0xff]  }
 0x188   : > { %1866 = vst.msk [vmem:[#allocation2 + $0x128] sm:$0xff] %vm175_vm3, %v1812_v40  ;;  %v2353_v33 = vor.u32 %v2352_v22, %v2349_v21  ;;  %v275_v40 = vld [vmem:[#allocation2 + $0x168] sm:$0xff]  ;;  %v278_v21 = vld [vmem:[#allocation2 + $0x180] sm:$0xff] }
 0x189   : > { %v781_v50 = vpop.f32.mrb[80].mxu0  ;;  %5057 = vmatmul.mubr.msk.bf16.gmra.mrb[184].mxu1 %vm505_vm1, %v3150_v48  ;;  %v2361_v48 = vrot.slane %v2359_v35, 3 }
 0x18a   : > { %v876_v53 = vadd.f32 %v781_v50, %v270_v42  ;;  %v4714_v54 = vpop.f32.mrb[81].mxu0  ;;  %5060 = vmatprep.mubr.msk.bf16.mxu1 %vm5235_vm0, %v5234_v1  ;;  %v2354_v46 = vsel %vm2139_vm4, %v2344_v7, %v2353_v33  ;;  %v5220_v7 = vld [vmem:[%s5293_s28 + $0xd8] sm:$0xff]  }
 0x18b   : > { %v982_v55 = vld [vmem:[#allocation2 + $0x130] sm:$0xff]  ;;  %v784_v56 = vpop.f32.mrb[82].mxu0 }
 0x18c   : > { %930 = vst.msk [vmem:[#allocation2 + $0x140] sm:$0xff] %vm175_vm3, %v876_v53  ;;  %v1813_v61 = vadd.f32 %v1712_v41, %v982_v55  ;;  %v877_v62 = vadd.f32 %v784_v56, %v271_v51  ;;  %v4715_v63 = vpop.f32.mrb[83].mxu0  ;;  %v1720_v4 = vpop.f32.mrb[80].mxu1  ;;  %v3155_v53 = vrot.slane %v6085_v38, 3 }
 0x18d   : > { %v983_v2 = vld [vmem:[#allocation2 + $0x138] sm:$0xff]  ;;  %v4830_v6 = vpop.f32.mrb[81].mxu1  ;;  %v5222_v38 = vld [vmem:[%s5293_s28 + $0xe0] ss:$0 sps:$4 sm:$0x77]  }
 0x18e   : > { %1867 = vst.msk [vmem:[#allocation2 + $0x130] sm:$0xff] %vm175_vm3, %v1813_v61  ;;  %931 = vst.msk [vmem:[#allocation2 + $0x148] sm:$0xff] %vm175_vm3, %v877_v62  ;;  %v1814_v3 = vadd.f32 %v1715_v47, %v983_v2  ;;  %4945 = vmatmul.mubr.msk.bf16.gmra.mrb[188].mxu0 %vm505_vm1, %v2336_v57  ;;  %v1723_v10 = vpop.f32.mrb[82].mxu1  ;;  %v2358_v47 = vrot.slane %v2356_v34, 2  ;;  %v276_v57 = vld [vmem:[#allocation2 + $0x170] sm:$0xff]  ;;  %v2368_v61 = vshll.u32 %v5218_v49, 16  ;;  %v3156_v63 = vsel %vm3109_vm5, %v3153_v27, %v3155_v53 }
 0x18f   : > { %4948 = vmatprep.mubr.msk.bf16.mxu0 %vm5235_vm0, %v5234_v1  ;;  %v4831_v15 = vpop.f32.mrb[83].mxu1  ;;  %v6119_v27 = vld [vmem:[%s5293_s28 + $0xd0] sm:$0xff]   ;;  %v2383_v49 = vshrl.u32 %v5222_v38, 16 }
 0x190   : > { %1868 = vst.msk [vmem:[#allocation2 + $0x138] sm:$0xff] %vm175_vm3, %v1814_v3  ;;  %v2362_v59 = vor.u32 %v2361_v48, %v2358_v47  ;;  %v277_v3 = vld [vmem:[#allocation2 + $0x178] sm:$0xff]  ;;  %v2370_v12 = vrot.slane %v2368_v61, 3 }
 0x191   : > { %v789_v13 = vpop.f32.mrb[84].mxu0  ;;  %5061 = vmatmul.mubr.msk.bf16.gmra.mrb[188].mxu1 %vm505_vm1, %v3152_v11  ;;  %v2367_v11 = vrot.slane %v2365_v60, 2 }
 0x192   : > { %v878_v16 = vadd.f32 %v789_v13, %v272_v5  ;;  %v4718_v17 = vpop.f32.mrb[85].mxu0  ;;  %5064 = vmatprep.mubr.msk.bf16.mxu1 %vm5235_vm0, %v5234_v1 }
 0x193   : > { %v984_v18 = vld [vmem:[#allocation2 + $0x140] sm:$0xff]  ;;  %v792_v19 = vpop.f32.mrb[86].mxu0  ;;  %v2371_v23 = vor.u32 %v2370_v12, %v2367_v11 }
 0x194   : > { %932 = vst.msk [vmem:[#allocation2 + $0x150] sm:$0xff] %vm175_vm3, %v878_v16  ;;  %v1815_v24 = vadd.f32 %v1720_v4, %v984_v18  ;;  %v879_v25 = vadd.f32 %v792_v19, %v273_v14  ;;  %v4719_v26 = vpop.f32.mrb[87].mxu0  ;;  %v1728_v30 = vpop.f32.mrb[84].mxu1  ;;  %v3157_v16 = vrot.slane %v6102_v0, 3 }
 0x195   : > { %v985_v28 = vld [vmem:[#allocation2 + $0x148] sm:$0xff]  ;;  %v4834_v32 = vpop.f32.mrb[85].mxu1 }
 0x196   : > { %1869 = vst.msk [vmem:[#allocation2 + $0x140] sm:$0xff] %vm175_vm3, %v1815_v24  ;;  %933 = vst.msk [vmem:[#allocation2 + $0x158] sm:$0xff] %vm175_vm3, %v879_v25  ;;  %v1816_v29 = vadd.f32 %v1723_v10, %v985_v28  ;;  %4949 = vmatmul.mubr.msk.bf16.gmra.mrb[192].mxu0 %vm505_vm1, %v2345_v20  ;;  %v1731_v36 = vpop.f32.mrb[86].mxu1  ;;  %v2363_v10 = vsel %vm2139_vm4, %v2353_v33, %v2362_v59  ;;  %v2374_v20 = vshrl.u32 %v5220_v7, 16  ;;  %v2377_v24 = vshll.u32 %v5220_v7, 16 }
 0x197   : > { %4952 = vmatprep.mubr.msk.bf16.mxu0 %vm5235_vm0, %v5234_v1  ;;  %v4835_v41 = vpop.f32.mrb[87].mxu1  ;;  %v3158_v26 = vsel %vm3109_vm5, %v3155_v53, %v3157_v16  ;;  %v5223_v53 = vld [vmem:[%s5293_s28 + $0xd8] sm:$0xff]  }
 0x198   : > { %1870 = vst.msk [vmem:[#allocation2 + $0x148] sm:$0xff] %vm175_vm3, %v1816_v29  ;;  %v279_v29 = vld [vmem:[#allocation2 + $0x188] sm:$0xff]  ;;  %v2376_v33 = vrot.slane %v2374_v20, 2 }
 0x199   : > { %v797_v39 = vpop.f32.mrb[88].mxu0  ;;  %5065 = vmatmul.mubr.msk.bf16.gmra.mrb[192].mxu1 %vm505_vm1, %v3154_v37  ;;  %v2379_v37 = vrot.slane %v2377_v24, 3 }
 0x19a   : > { %v880_v42 = vadd.f32 %v797_v39, %v274_v31  ;;  %v4722_v43 = vpop.f32.mrb[89].mxu0  ;;  %5068 = vmatprep.mubr.msk.bf16.mxu1 %vm5235_vm0, %v5234_v1 }
 0x19b   : > { %v986_v44 = vld [vmem:[#allocation2 + $0x150] sm:$0xff]  ;;  %v800_v45 = vpop.f32.mrb[90].mxu0  ;;  %v2380_v48 = vor.u32 %v2379_v37, %v2376_v33  ;;  %v1884_v37 = vld [vmem:[#allocation2 + $0x8] sm:$0xff] }
 0x19c   : > { %934 = vst.msk [vmem:[#allocation2 + $0x160] sm:$0xff] %vm175_vm3, %v880_v42  ;;  %v1817_v50 = vadd.f32 %v1728_v30, %v986_v44  ;;  %v881_v51 = vadd.f32 %v800_v45, %v275_v40  ;;  %v4723_v52 = vpop.f32.mrb[91].mxu0  ;;  %v1736_v56 = vpop.f32.mrb[88].mxu1  ;;  %v3159_v42 = vrot.slane %v6119_v27, 3 }
 0x19d   : > { %v987_v54 = vld [vmem:[#allocation2 + $0x158] sm:$0xff]  ;;  %v4838_v58 = vpop.f32.mrb[89].mxu1  ;;  %v2381_v61 = vsel %vm2139_vm4, %v2371_v23, %v2380_v48 }
 0x19e   : > { %1871 = vst.msk [vmem:[#allocation2 + $0x150] sm:$0xff] %vm175_vm3, %v1817_v50  ;;  %935 = vst.msk [vmem:[#allocation2 + $0x168] sm:$0xff] %vm175_vm3, %v881_v51  ;;  %v1818_v55 = vadd.f32 %v1731_v36, %v987_v54  ;;  %4953 = vmatmul.mubr.msk.bf16.gmra.mrb[196].mxu0 %vm505_vm1, %v2354_v46  ;;  %v1739_v62 = vpop.f32.mrb[90].mxu1  ;;  %v2372_v36 = vsel %vm2139_vm4, %v2362_v59, %v2371_v23  ;;  %v280_v46 = vld [vmem:[#allocation2 + $0x190] sm:$0xff]  ;;  %v2386_v50 = vshll.u32 %v5222_v38, 16 }
 0x19f   : > { %4956 = vmatprep.mubr.msk.bf16.mxu0 %vm5235_vm0, %v5234_v1  ;;  %v4839_v4 = vpop.f32.mrb[91].mxu1  ;;  %v3160_v52 = vsel %vm3109_vm5, %v3157_v16, %v3159_v42 }
 0x1a0   : > { %1872 = vst.msk [vmem:[#allocation2 + $0x158] sm:$0xff] %vm175_vm3, %v1818_v55  ;;  %v281_v55 = vld [vmem:[#allocation2 + $0x198] sm:$0xff]  ;;  %v3161_v4 = vrot.slane %v5223_v53, 3 }
 0x1a1   : > { %v805_v2 = vpop.f32.mrb[92].mxu0  ;;  %5069 = vmatmul.mubr.msk.bf16.gmra.mrb[196].mxu1 %vm505_vm1, %v3156_v63  ;;  %v2388_v63 = vrot.slane %v2386_v50, 3  ;;  %v1886_v53 = vld [vmem:[#allocation2 + $0x18] sm:$0xff] }
 0x1a2   : > { %v882_v5 = vadd.f32 %v805_v2, %v276_v57  ;;  %v4726_v6 = vpop.f32.mrb[93].mxu0  ;;  %5072 = vmatprep.mubr.msk.bf16.mxu1 %vm5235_vm0, %v5234_v1  ;;  %v3162_v12 = vsel %vm3109_vm5, %v3159_v42, %v3161_v4 }
 0x1a3   : > { %v988_v8 = vld [vmem:[#allocation2 + $0x160] sm:$0xff]  ;;  %v808_v9 = vpop.f32.mrb[94].mxu0 }
 0x1a4   : > { %936 = vst.msk [vmem:[#allocation2 + $0x170] sm:$0xff] %vm175_vm3, %v882_v5  ;;  %v1819_v13 = vadd.f32 %v1736_v56, %v988_v8  ;;  %v883_v14 = vadd.f32 %v808_v9, %v277_v3  ;;  %v4727_v15 = vpop.f32.mrb[95].mxu0  ;;  %v1744_v19 = vpop.f32.mrb[92].mxu1  ;;  %v282_v8 = vld [vmem:[#allocation2 + $0x1a0] sm:$0xff] }
 0x1a5   : > { %v989_v17 = vld [vmem:[#allocation2 + $0x168] sm:$0xff]  ;;  %v4842_v22 = vpop.f32.mrb[93].mxu1 }
 0x1a6   : > { %1873 = vst.msk [vmem:[#allocation2 + $0x160] sm:$0xff] %vm175_vm3, %v1819_v13  ;;  %937 = vst.msk [vmem:[#allocation2 + $0x178] sm:$0xff] %vm175_vm3, %v883_v14  ;;  %v1820_v18 = vadd.f32 %v1739_v62, %v989_v17  ;;  %4957 = vmatmul.mubr.msk.bf16.gmra.mrb[200].mxu0 %vm505_vm1, %v2363_v10  ;;  %v1747_v25 = vpop.f32.mrb[94].mxu1  ;;  %v2385_v62 = vrot.slane %v2383_v49, 2  ;;  %v283_v15 = vld [vmem:[#allocation2 + $0x1a8] sm:$0xff] }
 0x1a7   : > { %4960 = vmatprep.mubr.msk.bf16.mxu0 %vm5235_vm0, %v5234_v1  ;;  %v4843_v30 = vpop.f32.mrb[95].mxu1  ;;  %v5224_v13 = vld [vmem:[%s5293_s28 + $0xe0] ss:$0 sps:$4 sm:$0x77]   ;;  %s4129_s28 = sshll.u32 %s6459_s26, 2 }
 0x1a8   : > { %1874 = vst.msk [vmem:[#allocation2 + $0x168] sm:$0xff] %vm175_vm3, %v1820_v18  ;;  %v2389_v10 = vor.u32 %v2388_v63, %v2385_v62  ;;  %v1887_v63 = vld [vmem:[#allocation2 + $0x20] sm:$0xff]  ;;  %s6184_s4 = scalar_lea.vmem %s6455_s3, %s4129_s28 }
 0x1a9   : > { %v813_v28 = vpop.f32.mrb[96].mxu0  ;;  %5073 = vmatmul.mubr.msk.bf16.gmra.mrb[200].mxu1 %vm505_vm1, %v3158_v26 }
 0x1aa   : > { %v884_v31 = vadd.f32 %v813_v28, %v278_v21  ;;  %v4730_v32 = vpop.f32.mrb[97].mxu0  ;;  %5076 = vmatprep.mubr.msk.bf16.mxu1 %vm5235_vm0, %v5234_v1  ;;  %v2390_v21 = vsel %vm2139_vm4, %v2380_v48, %v2389_v10 }
 0x1ab   : > { %v990_v34 = vld [vmem:[#allocation2 + $0x170] sm:$0xff]  ;;  %v816_v35 = vpop.f32.mrb[98].mxu0  ;;  %v1883_v32 = vld [vmem:[#allocation2] sm:$0xff] }
 0x1ac   : > { %938 = vst.msk [vmem:[#allocation2 + $0x180] sm:$0xff] %vm175_vm3, %v884_v31  ;;  %v1821_v39 = vadd.f32 %v1744_v19, %v990_v34  ;;  %v885_v40 = vadd.f32 %v816_v35, %v279_v29  ;;  %v4731_v41 = vpop.f32.mrb[99].mxu0  ;;  %v1752_v45 = vpop.f32.mrb[96].mxu1 }
 0x1ad   : > { %v991_v43 = vld [vmem:[#allocation2 + $0x178] sm:$0xff]  ;;  %v4846_v47 = vpop.f32.mrb[97].mxu1 }
 0x1ae   : > { %1875 = vst.msk [vmem:[#allocation2 + $0x170] sm:$0xff] %vm175_vm3, %v1821_v39  ;;  %939 = vst.msk [vmem:[#allocation2 + $0x188] sm:$0xff] %vm175_vm3, %v885_v40  ;;  %v1822_v44 = vadd.f32 %v1747_v25, %v991_v43  ;;  %4961 = vmatmul.mubr.msk.bf16.gmra.mrb[204].mxu0 %vm505_vm1, %v2372_v36  ;;  %v1755_v51 = vpop.f32.mrb[98].mxu1  ;;  %v3163_v25 = vrot.slane %v5224_v13, 3  ;;  %v1885_v47 = vld [vmem:[#allocation2 + $0x10] sm:$0xff] }
 0x1af   : > { %4964 = vmatprep.mubr.msk.bf16.mxu0 %vm5235_vm0, %v5234_v1  ;;  %v4847_v56 = vpop.f32.mrb[99].mxu1 }
 0x1b0   : > { %1876 = vst.msk [vmem:[#allocation2 + $0x178] sm:$0xff] %vm175_vm3, %v1822_v44  ;;  %v3164_v31 = vsel %vm3109_vm5, %v3161_v4, %v3163_v25 }
 0x1b1   : > { %v821_v54 = vpop.f32.mrb[100].mxu0  ;;  %5077 = vmatmul.mubr.msk.bf16.gmra.mrb[204].mxu1 %vm505_vm1, %v3160_v52 }
 0x1b2   : > { %v886_v57 = vadd.f32 %v821_v54, %v280_v46  ;;  %v4734_v58 = vpop.f32.mrb[101].mxu0  ;;  %5080 = vmatprep.mubr.msk.bf16.mxu1 %vm5235_vm0, %v5234_v1 }
 0x1b3   : > { %v992_v59 = vld [vmem:[#allocation2 + $0x180] sm:$0xff]  ;;  %v824_v60 = vpop.f32.mrb[102].mxu0 }
 0x1b4   : > { %940 = vst.msk [vmem:[#allocation2 + $0x190] sm:$0xff] %vm175_vm3, %v886_v57  ;;  %v1823_v0 = vadd.f32 %v1752_v45, %v992_v59  ;;  %v887_v2 = vadd.f32 %v824_v60, %v281_v55  ;;  %v4735_v3 = vpop.f32.mrb[103].mxu0  ;;  %v1760_v7 = vpop.f32.mrb[100].mxu1 }
 0x1b5   : > { %v993_v5 = vld [vmem:[#allocation2 + $0x188] sm:$0xff]  ;;  %v4850_v9 = vpop.f32.mrb[101].mxu1 }
 0x1b6   : > { %1877 = vst.msk [vmem:[#allocation2 + $0x180] sm:$0xff] %vm175_vm3, %v1823_v0  ;;  %941 = vst.msk [vmem:[#allocation2 + $0x198] sm:$0xff] %vm175_vm3, %v887_v2  ;;  %v1824_v6 = vadd.f32 %v1755_v51, %v993_v5  ;;  %4965 = vmatmul.mubr.msk.bf16.gmra.mrb[208].mxu0 %vm505_vm1, %v2381_v61  ;;  %v1763_v11 = vpop.f32.mrb[102].mxu1  ;;  %v6173_v5 = vld [vmem:[%s6454_s2] ss:$0 sm:$0xff] }
 0x1b7   : > { %4968 = vmatprep.mubr.msk.bf16.mxu0 %vm5235_vm0, %v5234_v1  ;;  %v4851_v16 = vpop.f32.mrb[103].mxu1 }
 0x1b8   : > { %1878 = vst.msk [vmem:[#allocation2 + $0x188] sm:$0xff] %vm175_vm3, %v1824_v6 }
 0x1b9   : > { %v829_v14 = vpop.f32.mrb[104].mxu0  ;;  %5081 = vmatmul.mubr.msk.bf16.gmra.mrb[208].mxu1 %vm505_vm1, %v3162_v12 }
 0x1ba   : > { %v888_v17 = vadd.f32 %v829_v14, %v282_v8  ;;  %v4738_v18 = vpop.f32.mrb[105].mxu0  ;;  %5084 = vmatprep.mubr.msk.bf16.mxu1 %vm5235_vm0, %v5234_v1 }
 0x1bb   : > { %v994_v19 = vld [vmem:[#allocation2 + $0x190] sm:$0xff]  ;;  %v832_v20 = vpop.f32.mrb[106].mxu0 }
 0x1bc   : > { %942 = vst.msk [vmem:[#allocation2 + $0x1a0] sm:$0xff] %vm175_vm3, %v888_v17  ;;  %v1825_v22 = vadd.f32 %v1760_v7, %v994_v19  ;;  %v889_v23 = vadd.f32 %v832_v20, %v283_v15  ;;  %v4739_v24 = vpop.f32.mrb[107].mxu0  ;;  %v1768_v28 = vpop.f32.mrb[104].mxu1  ;;  %v1888_v7 = vld [vmem:[#allocation2 + $0x28] sm:$0xff] }
 0x1bd   : > { %v995_v26 = vld [vmem:[#allocation2 + $0x198] sm:$0xff]  ;;  %v4854_v29 = vpop.f32.mrb[105].mxu1 }
 0x1be   : > { %1879 = vst.msk [vmem:[#allocation2 + $0x190] sm:$0xff] %vm175_vm3, %v1825_v22  ;;  %943 = vst.msk [vmem:[#allocation2 + $0x1a8] sm:$0xff] %vm175_vm3, %v889_v23  ;;  %v1826_v27 = vadd.f32 %v1763_v11, %v995_v26  ;;  %4969 = vmatmul.mubr.msk.bf16.gmra.mrb[212].mxu0 %vm505_vm1, %v2390_v21  ;;  %v1771_v30 = vpop.f32.mrb[106].mxu1  ;;  %v1889_v22 = vld [vmem:[#allocation2 + $0x30] sm:$0xff] }
 0x1bf   : > { %v4855_v34 = vpop.f32.mrb[107].mxu1 }
 0x1c0   : > { %1880 = vst.msk [vmem:[#allocation2 + $0x198] sm:$0xff] %vm175_vm3, %v1826_v27 }
 0x1c1   : > { %v2530_v33 = vpop.f32.mrb[108].mxu0  ;;  %5085 = vmatmul.mubr.msk.bf16.gmra.mrb[212].mxu1 %vm505_vm1, %v3164_v31 }
 0x1c2   : > { %v2745_v1 = vadd.f32 %v2530_v33, %v1883_v32  ;;  %v4866_v35 = vpop.f32.mrb[109].mxu0 }
 0x1c3   : > { %v996_v36 = vld [vmem:[#allocation2 + $0x1a0] sm:$0xff]  ;;  %v2533_v38 = vpop.f32.mrb[110].mxu0 }
 0x1c4   : > { %v1827_v39 = vadd.f32 %v1768_v28, %v996_v36  ;;  %2799 = vst.msk [vmem:[#allocation2] sm:$0xff] %vm175_vm3, %v2745_v1  ;;  %v2746_v40 = vadd.f32 %v2533_v38, %v1884_v37  ;;  %v4867_v41 = vpop.f32.mrb[111].mxu0  ;;  %v3304_v44 = vpop.f32.mrb[108].mxu1 }
 0x1c5   : > { %v997_v42 = vld [vmem:[#allocation2 + $0x1a8] sm:$0xff]  ;;  %v4982_v45 = vpop.f32.mrb[109].mxu1 }
 0x1c6   : > { %1881 = vst.msk [vmem:[#allocation2 + $0x1a0] sm:$0xff] %vm175_vm3, %v1827_v39  ;;  %v1828_v43 = vadd.f32 %v1771_v30, %v997_v42  ;;  %2800 = vst.msk [vmem:[#allocation2 + $0x8] sm:$0xff] %vm175_vm3, %v2746_v40  ;;  %v3307_v46 = vpop.f32.mrb[110].mxu1  ;;  %v1890_v30 = vld [vmem:[#allocation2 + $0x38] sm:$0xff]  ;;  %v1891_v45 = vld [vmem:[#allocation2 + $0x40] sm:$0xff] }
 0x1c7   : > { %v4983_v49 = vpop.f32.mrb[111].mxu1 }
 0x1c8   : > { %1882 = vst.msk [vmem:[#allocation2 + $0x1a8] sm:$0xff] %vm175_vm3, %v1828_v43 }
 0x1c9   : > { %v2538_v48 = vpop.f32.mrb[112].mxu0 }
 0x1ca   : > { %v2747_v50 = vadd.f32 %v2538_v48, %v1885_v47  ;;  %v4870_v51 = vpop.f32.mrb[113].mxu0 }
 0x1cb   : > { %v2853_v52 = vld [vmem:[#allocation2] sm:$0xff]  ;;  %v2541_v54 = vpop.f32.mrb[114].mxu0 }
 0x1cc   : > { %2801 = vst.msk [vmem:[#allocation2 + $0x10] sm:$0xff] %vm175_vm3, %v2747_v50  ;;  %v3519_v55 = vadd.f32 %v3304_v44, %v2853_v52  ;;  %v2748_v56 = vadd.f32 %v2541_v54, %v1886_v53  ;;  %v4871_v57 = vpop.f32.mrb[115].mxu0  ;;  %v3312_v60 = vpop.f32.mrb[112].mxu1  ;;  %v1892_v53 = vld [vmem:[#allocation2 + $0x48] sm:$0xff] }
 0x1cd   : > { %v2854_v58 = vld [vmem:[#allocation2 + $0x8] sm:$0xff]  ;;  %v4986_v61 = vpop.f32.mrb[113].mxu1 }
 0x1ce   : > { %3573 = vst.msk [vmem:[#allocation2] sm:$0xff] %vm175_vm3, %v3519_v55  ;;  %2802 = vst.msk [vmem:[#allocation2 + $0x18] sm:$0xff] %vm175_vm3, %v2748_v56  ;;  %v3520_v59 = vadd.f32 %v3307_v46, %v2854_v58  ;;  %v3315_v62 = vpop.f32.mrb[114].mxu1 }
 0x1cf   : > { %v4987_v2 = vpop.f32.mrb[115].mxu1 }
 0x1d0   : > { %3574 = vst.msk [vmem:[#allocation2 + $0x8] sm:$0xff] %vm175_vm3, %v3520_v59 }
 0x1d1   : > { %v2546_v0 = vpop.f32.mrb[116].mxu0 }
 0x1d2   : > { %v2749_v3 = vadd.f32 %v2546_v0, %v1887_v63  ;;  %v4874_v4 = vpop.f32.mrb[117].mxu0 }
 0x1d3   : > { %v2855_v6 = vld [vmem:[#allocation2 + $0x10] sm:$0xff]  ;;  %v2549_v8 = vpop.f32.mrb[118].mxu0 }
 0x1d4   : > { %2803 = vst.msk [vmem:[#allocation2 + $0x20] sm:$0xff] %vm175_vm3, %v2749_v3  ;;  %v3521_v9 = vadd.f32 %v3312_v60, %v2855_v6  ;;  %v2750_v10 = vadd.f32 %v2549_v8, %v1888_v7  ;;  %v4875_v11 = vpop.f32.mrb[119].mxu0  ;;  %v3320_v16 = vpop.f32.mrb[116].mxu1  ;;  %v1893_v7 = vld [vmem:[#allocation2 + $0x50] sm:$0xff] }
 0x1d5   : > { %v3627_v12 = vld [vmem:[#allocation2] sm:$0xff]  ;;  %v2856_v13 = vld [vmem:[#allocation2 + $0x18] sm:$0xff]  ;;  %v4990_v18 = vpop.f32.mrb[117].mxu1 }
 0x1d6   : > { %v3688_v14 = vadd.f32 %v6173_v5, %v3627_v12  ;;  %3575 = vst.msk [vmem:[#allocation2 + $0x10] sm:$0xff] %vm175_vm3, %v3521_v9  ;;  %2804 = vst.msk [vmem:[#allocation2 + $0x28] sm:$0xff] %vm175_vm3, %v2750_v10  ;;  %v3522_v15 = vadd.f32 %v3315_v62, %v2856_v13  ;;  %v3323_v21 = vpop.f32.mrb[118].mxu1 }
 0x1d7   : > { %v3628_v17 = vld [vmem:[#allocation2 + $0x8] sm:$0xff]  ;;  %v4991_v24 = vpop.f32.mrb[119].mxu1 }
 0x1d8   : > { %v3742_v19 = vmax.f32 %v3688_v14, 0.0  ;;  %v3689_v20 = vadd.f32 %v6173_v5, %v3628_v17  ;;  %3576 = vst.msk [vmem:[#allocation2 + $0x18] sm:$0xff] %vm175_vm3, %v3522_v15  ;;  %v1894_v15 = vld [vmem:[#allocation2 + $0x58] sm:$0xff] }
 0x1d9   : > { %v2554_v23 = vpop.f32.mrb[120].mxu0 }
 0x1da   : > { %v4446_v25 = vpack.c.bf16 %v3742_v19, %v3742_v19  ;;  %v3743_v26 = vmax.f32 %v3689_v20, 0.0  ;;  %v2751_v27 = vadd.f32 %v2554_v23, %v1889_v22  ;;  %v4878_v28 = vpop.f32.mrb[121].mxu0 }
 0x1db   : > { %v2857_v29 = vld [vmem:[#allocation2 + $0x20] sm:$0xff]  ;;  %v2557_v31 = vpop.f32.mrb[122].mxu0 }
 0x1dc   : > { %4013 = vst.msk [vmem:[%s6184_s4] sm:$0xf] %vm4012_vm6, %v4446_v25  ;;  %v4447_v32 = vpack.c.bf16 %v3743_v26, %v3743_v26  ;;  %v3523_v33 = vadd.f32 %v3320_v16, %v2857_v29  ;;  %v2752_v34 = vadd.f32 %v2557_v31, %v1890_v30  ;;  %v4879_v1 = vpop.f32.mrb[123].mxu0  ;;  %v3328_v39 = vpop.f32.mrb[120].mxu1  ;;  %v1895_v31 = vld [vmem:[#allocation2 + $0x60] sm:$0xff] }
 0x1dd   : > { %2805 = vst.msk [vmem:[#allocation2 + $0x30] sm:$0xff] %vm175_vm3, %v2751_v27  ;;  %v3629_v35 = vld [vmem:[#allocation2 + $0x10] sm:$0xff]  ;;  %v2858_v36 = vld [vmem:[#allocation2 + $0x28] sm:$0xff]  ;;  %v4994_v41 = vpop.f32.mrb[121].mxu1 }
 0x1de   : > { %4014 = vst.msk [vmem:[%s6184_s4 + $0x4] sm:$0xf] %vm4012_vm6, %v4447_v32  ;;  %v3690_v37 = vadd.f32 %v6173_v5, %v3629_v35  ;;  %v3524_v38 = vadd.f32 %v3323_v21, %v2858_v36  ;;  %v3331_v44 = vpop.f32.mrb[122].mxu1 }
 0x1df   : > { %3577 = vst.msk [vmem:[#allocation2 + $0x20] sm:$0xff] %vm175_vm3, %v3523_v33  ;;  %2806 = vst.msk [vmem:[#allocation2 + $0x38] sm:$0xff] %vm175_vm3, %v2752_v34  ;;  %v3630_v40 = vld [vmem:[#allocation2 + $0x18] sm:$0xff]  ;;  %v4995_v47 = vpop.f32.mrb[123].mxu1 }
 0x1e0   : > { %v3744_v42 = vmax.f32 %v3690_v37, 0.0  ;;  %v3691_v43 = vadd.f32 %v6173_v5, %v3630_v40  ;;  %3578 = vst.msk [vmem:[#allocation2 + $0x28] sm:$0xff] %vm175_vm3, %v3524_v38  ;;  %v1896_v38 = vld [vmem:[#allocation2 + $0x68] sm:$0xff] }
 0x1e1   : > { %v2562_v46 = vpop.f32.mrb[124].mxu0 }
 0x1e2   : > { %v4448_v48 = vpack.c.bf16 %v3744_v42, %v3744_v42  ;;  %v3745_v49 = vmax.f32 %v3691_v43, 0.0  ;;  %v2753_v50 = vadd.f32 %v2562_v46, %v1891_v45  ;;  %v4882_v51 = vpop.f32.mrb[125].mxu0 }
 0x1e3   : > { %v2565_v54 = vpop.f32.mrb[126].mxu0 }
 0x1e4   : > { %v2859_v52 = vld [vmem:[#allocation2 + $0x30] sm:$0xff]  ;;  %4015 = vst.msk [vmem:[%s6184_s4 + $0x8] sm:$0xf] %vm4012_vm6, %v4448_v48  ;;  %v4449_v55 = vpack.c.bf16 %v3745_v49, %v3745_v49  ;;  %v2754_v57 = vadd.f32 %v2565_v54, %v1892_v53  ;;  %v4883_v58 = vpop.f32.mrb[127].mxu0  ;;  %v3336_v63 = vpop.f32.mrb[124].mxu1 }
 0x1e5   : > { %2807 = vst.msk [vmem:[#allocation2 + $0x40] sm:$0xff] %vm175_vm3, %v2753_v50  ;;  %v3525_v56 = vadd.f32 %v3328_v39, %v2859_v52  ;;  %v4998_v2 = vpop.f32.mrb[125].mxu1  ;;  %v1897_v54 = vld [vmem:[#allocation2 + $0x70] sm:$0xff] }
 0x1e6   : > { %v3631_v59 = vld [vmem:[#allocation2 + $0x20] sm:$0xff]  ;;  %v2860_v60 = vld [vmem:[#allocation2 + $0x38] sm:$0xff]  ;;  %4016 = vst.msk [vmem:[%s6184_s4 + $0xc] sm:$0xf] %vm4012_vm6, %v4449_v55  ;;  %v3339_v6 = vpop.f32.mrb[126].mxu1 }
 0x1e7   : > { %v3692_v61 = vadd.f32 %v6173_v5, %v3631_v59  ;;  %3579 = vst.msk [vmem:[#allocation2 + $0x30] sm:$0xff] %vm175_vm3, %v3525_v56  ;;  %2808 = vst.msk [vmem:[#allocation2 + $0x48] sm:$0xff] %vm175_vm3, %v2754_v57  ;;  %v3526_v62 = vadd.f32 %v3331_v44, %v2860_v60  ;;  %v3632_v0 = vld [vmem:[#allocation2 + $0x28] sm:$0xff]  ;;  %v4999_v9 = vpop.f32.mrb[127].mxu1 }
 0x1e8   : > { %v3693_v4 = vadd.f32 %v6173_v5, %v3632_v0 }
 0x1e9   : > { %v3746_v3 = vmax.f32 %v3692_v61, 0.0  ;;  %3580 = vst.msk [vmem:[#allocation2 + $0x38] sm:$0xff] %vm175_vm3, %v3526_v62  ;;  %v2570_v8 = vpop.f32.mrb[128].mxu0  ;;  %v1898_v62 = vld [vmem:[#allocation2 + $0x78] sm:$0xff] }
 0x1ea   : > { %v3747_v11 = vmax.f32 %v3693_v4, 0.0  ;;  %v2755_v12 = vadd.f32 %v2570_v8, %v1893_v7  ;;  %v4886_v13 = vpop.f32.mrb[129].mxu0 }
 0x1eb   : > { %v4450_v10 = vpack.c.bf16 %v3746_v3, %v3746_v3  ;;  %v2573_v16 = vpop.f32.mrb[130].mxu0 }
 0x1ec   : > { %v2861_v14 = vld [vmem:[#allocation2 + $0x40] sm:$0xff]  ;;  %v4451_v17 = vpack.c.bf16 %v3747_v11, %v3747_v11  ;;  %2809 = vst.msk [vmem:[#allocation2 + $0x50] sm:$0xff] %vm175_vm3, %v2755_v12  ;;  %v2756_v19 = vadd.f32 %v2573_v16, %v1894_v15  ;;  %v4887_v20 = vpop.f32.mrb[131].mxu0  ;;  %v3344_v25 = vpop.f32.mrb[128].mxu1 }
 0x1ed   : > { %4017 = vst.msk [vmem:[%s6184_s4 + $0x10] sm:$0xf] %vm4012_vm6, %v4450_v10  ;;  %v3527_v18 = vadd.f32 %v3336_v63, %v2861_v14  ;;  %v5002_v27 = vpop.f32.mrb[129].mxu1  ;;  %v1899_v16 = vld [vmem:[#allocation2 + $0x80] sm:$0xff] }
 0x1ee   : > { %v3633_v21 = vld [vmem:[#allocation2 + $0x30] sm:$0xff]  ;;  %v2862_v22 = vld [vmem:[#allocation2 + $0x48] sm:$0xff]  ;;  %4018 = vst.msk [vmem:[%s6184_s4 + $0x14] sm:$0xf] %vm4012_vm6, %v4451_v17  ;;  %v3347_v30 = vpop.f32.mrb[130].mxu1 }
 0x1ef   : > { %v3694_v23 = vadd.f32 %v6173_v5, %v3633_v21  ;;  %3581 = vst.msk [vmem:[#allocation2 + $0x40] sm:$0xff] %vm175_vm3, %v3527_v18  ;;  %2810 = vst.msk [vmem:[#allocation2 + $0x58] sm:$0xff] %vm175_vm3, %v2756_v19  ;;  %v3528_v24 = vadd.f32 %v3339_v6, %v2862_v22  ;;  %v5003_v33 = vpop.f32.mrb[131].mxu1 }
 0x1f0   : > { %v3634_v26 = vld [vmem:[#allocation2 + $0x38] sm:$0xff] }
 0x1f1   : > { %v3748_v28 = vmax.f32 %v3694_v23, 0.0  ;;  %v3695_v29 = vadd.f32 %v6173_v5, %v3634_v26  ;;  %3582 = vst.msk [vmem:[#allocation2 + $0x48] sm:$0xff] %vm175_vm3, %v3528_v24  ;;  %v2578_v32 = vpop.f32.mrb[132].mxu0  ;;  %v1900_v24 = vld [vmem:[#allocation2 + $0x88] sm:$0xff] }
 0x1f2   : > { %v2757_v35 = vadd.f32 %v2578_v32, %v1895_v31  ;;  %v4890_v36 = vpop.f32.mrb[133].mxu0 }
 0x1f3   : > { %v4452_v34 = vpack.c.bf16 %v3748_v28, %v3748_v28  ;;  %v3749_v1 = vmax.f32 %v3695_v29, 0.0  ;;  %v2863_v37 = vld [vmem:[#allocation2 + $0x50] sm:$0xff]  ;;  %v2581_v39 = vpop.f32.mrb[134].mxu0 }
 0x1f4   : > { %2811 = vst.msk [vmem:[#allocation2 + $0x60] sm:$0xff] %vm175_vm3, %v2757_v35  ;;  %v3529_v41 = vadd.f32 %v3344_v25, %v2863_v37  ;;  %v2758_v42 = vadd.f32 %v2581_v39, %v1896_v38  ;;  %v4891_v43 = vpop.f32.mrb[135].mxu0  ;;  %v3352_v48 = vpop.f32.mrb[132].mxu1  ;;  %v1901_v39 = vld [vmem:[#allocation2 + $0x90] sm:$0xff] }
 0x1f5   : > { %4019 = vst.msk [vmem:[%s6184_s4 + $0x18] sm:$0xf] %vm4012_vm6, %v4452_v34  ;;  %v4453_v40 = vpack.c.bf16 %v3749_v1, %v3749_v1  ;;  %v5006_v50 = vpop.f32.mrb[133].mxu1 }
 0x1f6   : > { %v3635_v44 = vld [vmem:[#allocation2 + $0x40] sm:$0xff]  ;;  %v2864_v45 = vld [vmem:[#allocation2 + $0x58] sm:$0xff]  ;;  %3583 = vst.msk [vmem:[#allocation2 + $0x50] sm:$0xff] %vm175_vm3, %v3529_v41  ;;  %2812 = vst.msk [vmem:[#allocation2 + $0x68] sm:$0xff] %vm175_vm3, %v2758_v42  ;;  %v3355_v53 = vpop.f32.mrb[134].mxu1 }
 0x1f7   : > { %4020 = vst.msk [vmem:[%s6184_s4 + $0x1c] sm:$0xf] %vm4012_vm6, %v4453_v40  ;;  %v3696_v46 = vadd.f32 %v6173_v5, %v3635_v44  ;;  %v3530_v47 = vadd.f32 %v3347_v30, %v2864_v45  ;;  %v5007_v56 = vpop.f32.mrb[135].mxu1 }
 0x1f8   : > { %v3636_v49 = vld [vmem:[#allocation2 + $0x48] sm:$0xff] }
 0x1f9   : > { %v3750_v51 = vmax.f32 %v3696_v46, 0.0  ;;  %v3697_v52 = vadd.f32 %v6173_v5, %v3636_v49  ;;  %3584 = vst.msk [vmem:[#allocation2 + $0x58] sm:$0xff] %vm175_vm3, %v3530_v47  ;;  %v2586_v55 = vpop.f32.mrb[136].mxu0  ;;  %v1902_v47 = vld [vmem:[#allocation2 + $0x98] sm:$0xff] }
 0x1fa   : > { %v2759_v59 = vadd.f32 %v2586_v55, %v1897_v54  ;;  %v4894_v60 = vpop.f32.mrb[137].mxu0 }
 0x1fb   : > { %v4454_v57 = vpack.c.bf16 %v3750_v51, %v3750_v51  ;;  %v3751_v58 = vmax.f32 %v3697_v52, 0.0  ;;  %v2865_v61 = vld [vmem:[#allocation2 + $0x60] sm:$0xff]  ;;  %v2589_v63 = vpop.f32.mrb[138].mxu0 }
 0x1fc   : > { %2813 = vst.msk [vmem:[#allocation2 + $0x70] sm:$0xff] %vm175_vm3, %v2759_v59  ;;  %v3531_v2 = vadd.f32 %v3352_v48, %v2865_v61  ;;  %v2760_v3 = vadd.f32 %v2589_v63, %v1898_v62  ;;  %v4895_v4 = vpop.f32.mrb[139].mxu0  ;;  %v3360_v10 = vpop.f32.mrb[136].mxu1  ;;  %v1903_v63 = vld [vmem:[#allocation2 + $0xa0] sm:$0xff] }
 0x1fd   : > { %4021 = vst.msk [vmem:[%s6184_s4 + $0x20] sm:$0xf] %vm4012_vm6, %v4454_v57  ;;  %v4455_v0 = vpack.c.bf16 %v3751_v58, %v3751_v58  ;;  %v3637_v6 = vld [vmem:[#allocation2 + $0x50] sm:$0xff]  ;;  %v2866_v7 = vld [vmem:[#allocation2 + $0x68] sm:$0xff]  ;;  %v5010_v12 = vpop.f32.mrb[137].mxu1 }
 0x1fe   : > { %v3698_v8 = vadd.f32 %v6173_v5, %v3637_v6  ;;  %3585 = vst.msk [vmem:[#allocation2 + $0x60] sm:$0xff] %vm175_vm3, %v3531_v2  ;;  %2814 = vst.msk [vmem:[#allocation2 + $0x78] sm:$0xff] %vm175_vm3, %v2760_v3  ;;  %v3532_v9 = vadd.f32 %v3355_v53, %v2866_v7  ;;  %v3363_v15 = vpop.f32.mrb[138].mxu1 }
 0x1ff   : > { %4022 = vst.msk [vmem:[%s6184_s4 + $0x24] sm:$0xf] %vm4012_vm6, %v4455_v0  ;;  %v5011_v18 = vpop.f32.mrb[139].mxu1 }
 0x200   : > { %v3638_v11 = vld [vmem:[#allocation2 + $0x58] sm:$0xff]  ;;  %v3752_v13 = vmax.f32 %v3698_v8, 0.0  ;;  %3586 = vst.msk [vmem:[#allocation2 + $0x68] sm:$0xff] %vm175_vm3, %v3532_v9  ;;  %v1904_v9 = vld [vmem:[#allocation2 + $0xa8] sm:$0xff] }
 0x201   : > { %v3699_v14 = vadd.f32 %v6173_v5, %v3638_v11  ;;  %v2594_v17 = vpop.f32.mrb[140].mxu0 }
 0x202   : > { %v4456_v19 = vpack.c.bf16 %v3752_v13, %v3752_v13  ;;  %v2761_v21 = vadd.f32 %v2594_v17, %v1899_v16  ;;  %v4898_v22 = vpop.f32.mrb[141].mxu0 }
 0x203   : > { %v3753_v20 = vmax.f32 %v3699_v14, 0.0  ;;  %v2867_v23 = vld [vmem:[#allocation2 + $0x70] sm:$0xff]  ;;  %v2597_v25 = vpop.f32.mrb[142].mxu0 }
 0x204   : > { %4023 = vst.msk [vmem:[%s6184_s4 + $0x28] sm:$0xf] %vm4012_vm6, %v4456_v19  ;;  %v3533_v27 = vadd.f32 %v3360_v10, %v2867_v23  ;;  %v2762_v28 = vadd.f32 %v2597_v25, %v1900_v24  ;;  %v4899_v29 = vpop.f32.mrb[143].mxu0  ;;  %v3368_v34 = vpop.f32.mrb[140].mxu1  ;;  %v1905_v25 = vld [vmem:[#allocation2 + $0xb0] sm:$0xff] }
 0x205   : > { %v4457_v26 = vpack.c.bf16 %v3753_v20, %v3753_v20  ;;  %2815 = vst.msk [vmem:[#allocation2 + $0x80] sm:$0xff] %vm175_vm3, %v2761_v21  ;;  %v3639_v30 = vld [vmem:[#allocation2 + $0x60] sm:$0xff]  ;;  %v2868_v31 = vld [vmem:[#allocation2 + $0x78] sm:$0xff]  ;;  %v5014_v35 = vpop.f32.mrb[141].mxu1 }
 0x206   : > { %v3700_v32 = vadd.f32 %v6173_v5, %v3639_v30  ;;  %3587 = vst.msk [vmem:[#allocation2 + $0x70] sm:$0xff] %vm175_vm3, %v3533_v27  ;;  %2816 = vst.msk [vmem:[#allocation2 + $0x88] sm:$0xff] %vm175_vm3, %v2762_v28  ;;  %v3534_v33 = vadd.f32 %v3363_v15, %v2868_v31  ;;  %v3371_v38 = vpop.f32.mrb[142].mxu1 }
 0x207   : > { %4024 = vst.msk [vmem:[%s6184_s4 + $0x2c] sm:$0xf] %vm4012_vm6, %v4457_v26  ;;  %v3640_v1 = vld [vmem:[#allocation2 + $0x68] sm:$0xff]  ;;  %v5015_v41 = vpop.f32.mrb[143].mxu1 }
 0x208   : > { %v3754_v36 = vmax.f32 %v3700_v32, 0.0  ;;  %v3701_v37 = vadd.f32 %v6173_v5, %v3640_v1  ;;  %3588 = vst.msk [vmem:[#allocation2 + $0x78] sm:$0xff] %vm175_vm3, %v3534_v33  ;;  %v1906_v33 = vld [vmem:[#allocation2 + $0xb8] sm:$0xff] }
 0x209   : > { %v2602_v40 = vpop.f32.mrb[144].mxu0 }
 0x20a   : > { %v4458_v42 = vpack.c.bf16 %v3754_v36, %v3754_v36  ;;  %v3755_v43 = vmax.f32 %v3701_v37, 0.0  ;;  %v2763_v44 = vadd.f32 %v2602_v40, %v1901_v39  ;;  %v4902_v45 = vpop.f32.mrb[145].mxu0 }
 0x20b   : > { %v2605_v48 = vpop.f32.mrb[146].mxu0 }
 0x20c   : > { %v2869_v46 = vld [vmem:[#allocation2 + $0x80] sm:$0xff]  ;;  %4025 = vst.msk [vmem:[%s6184_s4 + $0x30] sm:$0xf] %vm4012_vm6, %v4458_v42  ;;  %v4459_v49 = vpack.c.bf16 %v3755_v43, %v3755_v43  ;;  %v2764_v51 = vadd.f32 %v2605_v48, %v1902_v47  ;;  %v4903_v52 = vpop.f32.mrb[147].mxu0  ;;  %v3376_v57 = vpop.f32.mrb[144].mxu1 }
 0x20d   : > { %2817 = vst.msk [vmem:[#allocation2 + $0x90] sm:$0xff] %vm175_vm3, %v2763_v44  ;;  %v3535_v50 = vadd.f32 %v3368_v34, %v2869_v46  ;;  %v3641_v53 = vld [vmem:[#allocation2 + $0x70] sm:$0xff]  ;;  %v2870_v54 = vld [vmem:[#allocation2 + $0x88] sm:$0xff]  ;;  %v5018_v59 = vpop.f32.mrb[145].mxu1  ;;  %v1907_v48 = vld [vmem:[#allocation2 + $0xc0] sm:$0xff] }
 0x20e   : > { %4026 = vst.msk [vmem:[%s6184_s4 + $0x34] sm:$0xf] %vm4012_vm6, %v4459_v49  ;;  %v3702_v55 = vadd.f32 %v6173_v5, %v3641_v53  ;;  %v3536_v56 = vadd.f32 %v3371_v38, %v2870_v54  ;;  %v3379_v62 = vpop.f32.mrb[146].mxu1 }
 0x20f   : > { %3589 = vst.msk [vmem:[#allocation2 + $0x80] sm:$0xff] %vm175_vm3, %v3535_v50  ;;  %2818 = vst.msk [vmem:[#allocation2 + $0x98] sm:$0xff] %vm175_vm3, %v2764_v51  ;;  %v3642_v58 = vld [vmem:[#allocation2 + $0x78] sm:$0xff]  ;;  %v5019_v2 = vpop.f32.mrb[147].mxu1 }
 0x210   : > { %v3756_v60 = vmax.f32 %v3702_v55, 0.0  ;;  %v3703_v61 = vadd.f32 %v6173_v5, %v3642_v58  ;;  %3590 = vst.msk [vmem:[#allocation2 + $0x88] sm:$0xff] %vm175_vm3, %v3536_v56  ;;  %v1908_v56 = vld [vmem:[#allocation2 + $0xc8] sm:$0xff] }
 0x211   : > { %v2610_v0 = vpop.f32.mrb[148].mxu0 }
 0x212   : > { %v4460_v3 = vpack.c.bf16 %v3756_v60, %v3756_v60  ;;  %v3757_v4 = vmax.f32 %v3703_v61, 0.0  ;;  %v2765_v6 = vadd.f32 %v2610_v0, %v1903_v63  ;;  %v4906_v7 = vpop.f32.mrb[149].mxu0 }
 0x213   : > { %v2613_v10 = vpop.f32.mrb[150].mxu0 }
 0x214   : > { %v2871_v8 = vld [vmem:[#allocation2 + $0x90] sm:$0xff]  ;;  %4027 = vst.msk [vmem:[%s6184_s4 + $0x38] sm:$0xf] %vm4012_vm6, %v4460_v3  ;;  %v4461_v11 = vpack.c.bf16 %v3757_v4, %v3757_v4  ;;  %v2766_v13 = vadd.f32 %v2613_v10, %v1904_v9  ;;  %v4907_v14 = vpop.f32.mrb[151].mxu0  ;;  %v3384_v19 = vpop.f32.mrb[148].mxu1 }
 0x215   : > { %2819 = vst.msk [vmem:[#allocation2 + $0xa0] sm:$0xff] %vm175_vm3, %v2765_v6  ;;  %v3537_v12 = vadd.f32 %v3376_v57, %v2871_v8  ;;  %v5022_v21 = vpop.f32.mrb[149].mxu1  ;;  %v1909_v10 = vld [vmem:[#allocation2 + $0xd0] sm:$0xff] }
 0x216   : > { %v3643_v15 = vld [vmem:[#allocation2 + $0x80] sm:$0xff]  ;;  %v2872_v16 = vld [vmem:[#allocation2 + $0x98] sm:$0xff]  ;;  %4028 = vst.msk [vmem:[%s6184_s4 + $0x3c] sm:$0xf] %vm4012_vm6, %v4461_v11  ;;  %v3387_v24 = vpop.f32.mrb[150].mxu1 }
 0x217   : > { %v3704_v17 = vadd.f32 %v6173_v5, %v3643_v15  ;;  %3591 = vst.msk [vmem:[#allocation2 + $0x90] sm:$0xff] %vm175_vm3, %v3537_v12  ;;  %2820 = vst.msk [vmem:[#allocation2 + $0xa8] sm:$0xff] %vm175_vm3, %v2766_v13  ;;  %v3538_v18 = vadd.f32 %v3379_v62, %v2872_v16  ;;  %v3644_v20 = vld [vmem:[#allocation2 + $0x88] sm:$0xff]  ;;  %v5023_v27 = vpop.f32.mrb[151].mxu1 }
 0x218   : > { %v3705_v23 = vadd.f32 %v6173_v5, %v3644_v20 }
 0x219   : > { %v3758_v22 = vmax.f32 %v3704_v17, 0.0  ;;  %3592 = vst.msk [vmem:[#allocation2 + $0x98] sm:$0xff] %vm175_vm3, %v3538_v18  ;;  %v2618_v26 = vpop.f32.mrb[152].mxu0  ;;  %v1910_v18 = vld [vmem:[#allocation2 + $0xd8] sm:$0xff] }
 0x21a   : > { %v3759_v29 = vmax.f32 %v3705_v23, 0.0  ;;  %v2767_v30 = vadd.f32 %v2618_v26, %v1905_v25  ;;  %v4910_v31 = vpop.f32.mrb[153].mxu0 }
 0x21b   : > { %v4462_v28 = vpack.c.bf16 %v3758_v22, %v3758_v22  ;;  %v2621_v34 = vpop.f32.mrb[154].mxu0 }
 0x21c   : > { %v2873_v32 = vld [vmem:[#allocation2 + $0xa0] sm:$0xff]  ;;  %v4463_v1 = vpack.c.bf16 %v3759_v29, %v3759_v29  ;;  %2821 = vst.msk [vmem:[#allocation2 + $0xb0] sm:$0xff] %vm175_vm3, %v2767_v30  ;;  %v2768_v36 = vadd.f32 %v2621_v34, %v1906_v33  ;;  %v4911_v37 = vpop.f32.mrb[155].mxu0  ;;  %v3392_v42 = vpop.f32.mrb[152].mxu1 }
 0x21d   : > { %4029 = vst.msk [vmem:[%s6184_s4 + $0x40] sm:$0xf] %vm4012_vm6, %v4462_v28  ;;  %v3539_v35 = vadd.f32 %v3384_v19, %v2873_v32  ;;  %v5026_v44 = vpop.f32.mrb[153].mxu1  ;;  %v1911_v34 = vld [vmem:[#allocation2 + $0xe0] sm:$0xff] }
 0x21e   : > { %v3645_v38 = vld [vmem:[#allocation2 + $0x90] sm:$0xff]  ;;  %v2874_v39 = vld [vmem:[#allocation2 + $0xa8] sm:$0xff]  ;;  %4030 = vst.msk [vmem:[%s6184_s4 + $0x44] sm:$0xf] %vm4012_vm6, %v4463_v1  ;;  %v3395_v47 = vpop.f32.mrb[154].mxu1 }
 0x21f   : > { %v3706_v40 = vadd.f32 %v6173_v5, %v3645_v38  ;;  %3593 = vst.msk [vmem:[#allocation2 + $0xa0] sm:$0xff] %vm175_vm3, %v3539_v35  ;;  %2822 = vst.msk [vmem:[#allocation2 + $0xb8] sm:$0xff] %vm175_vm3, %v2768_v36  ;;  %v3540_v41 = vadd.f32 %v3387_v24, %v2874_v39  ;;  %v5027_v50 = vpop.f32.mrb[155].mxu1 }
 0x220   : > { %v3646_v43 = vld [vmem:[#allocation2 + $0x98] sm:$0xff] }
 0x221   : > { %v3760_v45 = vmax.f32 %v3706_v40, 0.0  ;;  %v3707_v46 = vadd.f32 %v6173_v5, %v3646_v43  ;;  %3594 = vst.msk [vmem:[#allocation2 + $0xa8] sm:$0xff] %vm175_vm3, %v3540_v41  ;;  %v2626_v49 = vpop.f32.mrb[156].mxu0  ;;  %v1912_v41 = vld [vmem:[#allocation2 + $0xe8] sm:$0xff] }
 0x222   : > { %v2769_v53 = vadd.f32 %v2626_v49, %v1907_v48  ;;  %v4914_v54 = vpop.f32.mrb[157].mxu0 }
 0x223   : > { %v4464_v51 = vpack.c.bf16 %v3760_v45, %v3760_v45  ;;  %v3761_v52 = vmax.f32 %v3707_v46, 0.0  ;;  %v2875_v55 = vld [vmem:[#allocation2 + $0xb0] sm:$0xff]  ;;  %v2629_v57 = vpop.f32.mrb[158].mxu0 }
 0x224   : > { %2823 = vst.msk [vmem:[#allocation2 + $0xc0] sm:$0xff] %vm175_vm3, %v2769_v53  ;;  %v3541_v59 = vadd.f32 %v3392_v42, %v2875_v55  ;;  %v2770_v60 = vadd.f32 %v2629_v57, %v1908_v56  ;;  %v4915_v61 = vpop.f32.mrb[159].mxu0  ;;  %v3400_v3 = vpop.f32.mrb[156].mxu1  ;;  %v1913_v57 = vld [vmem:[#allocation2 + $0xf0] sm:$0xff] }
 0x225   : > { %4031 = vst.msk [vmem:[%s6184_s4 + $0x48] sm:$0xf] %vm4012_vm6, %v4464_v51  ;;  %v4465_v58 = vpack.c.bf16 %v3761_v52, %v3761_v52  ;;  %v5030_v6 = vpop.f32.mrb[157].mxu1 }
 0x226   : > { %v3647_v62 = vld [vmem:[#allocation2 + $0xa0] sm:$0xff]  ;;  %v2876_v63 = vld [vmem:[#allocation2 + $0xb8] sm:$0xff]  ;;  %3595 = vst.msk [vmem:[#allocation2 + $0xb0] sm:$0xff] %vm175_vm3, %v3541_v59  ;;  %2824 = vst.msk [vmem:[#allocation2 + $0xc8] sm:$0xff] %vm175_vm3, %v2770_v60  ;;  %v3403_v9 = vpop.f32.mrb[158].mxu1 }
 0x227   : > { %4032 = vst.msk [vmem:[%s6184_s4 + $0x4c] sm:$0xf] %vm4012_vm6, %v4465_v58  ;;  %v3708_v0 = vadd.f32 %v6173_v5, %v3647_v62  ;;  %v3542_v2 = vadd.f32 %v3395_v47, %v2876_v63  ;;  %v5031_v12 = vpop.f32.mrb[159].mxu1 }
 0x228   : > { %v3648_v4 = vld [vmem:[#allocation2 + $0xa8] sm:$0xff] }
 0x229   : > { %v3762_v7 = vmax.f32 %v3708_v0, 0.0  ;;  %v3709_v8 = vadd.f32 %v6173_v5, %v3648_v4  ;;  %3596 = vst.msk [vmem:[#allocation2 + $0xb8] sm:$0xff] %vm175_vm3, %v3542_v2  ;;  %v2634_v11 = vpop.f32.mrb[160].mxu0  ;;  %v1914_v2 = vld [vmem:[#allocation2 + $0xf8] sm:$0xff] }
 0x22a   : > { %v2771_v15 = vadd.f32 %v2634_v11, %v1909_v10  ;;  %v4918_v16 = vpop.f32.mrb[161].mxu0 }
 0x22b   : > { %v4466_v13 = vpack.c.bf16 %v3762_v7, %v3762_v7  ;;  %v3763_v14 = vmax.f32 %v3709_v8, 0.0  ;;  %v2877_v17 = vld [vmem:[#allocation2 + $0xc0] sm:$0xff]  ;;  %v2637_v19 = vpop.f32.mrb[162].mxu0 }
 0x22c   : > { %2825 = vst.msk [vmem:[#allocation2 + $0xd0] sm:$0xff] %vm175_vm3, %v2771_v15  ;;  %v3543_v21 = vadd.f32 %v3400_v3, %v2877_v17  ;;  %v2772_v22 = vadd.f32 %v2637_v19, %v1910_v18  ;;  %v4919_v23 = vpop.f32.mrb[163].mxu0  ;;  %v3408_v28 = vpop.f32.mrb[160].mxu1  ;;  %v1915_v19 = vld [vmem:[#allocation2 + $0x100] sm:$0xff] }
 0x22d   : > { %4033 = vst.msk [vmem:[%s6184_s4 + $0x50] sm:$0xf] %vm4012_vm6, %v4466_v13  ;;  %v4467_v20 = vpack.c.bf16 %v3763_v14, %v3763_v14  ;;  %v3649_v24 = vld [vmem:[#allocation2 + $0xb0] sm:$0xff]  ;;  %v2878_v25 = vld [vmem:[#allocation2 + $0xc8] sm:$0xff]  ;;  %v5034_v30 = vpop.f32.mrb[161].mxu1 }
 0x22e   : > { %v3710_v26 = vadd.f32 %v6173_v5, %v3649_v24  ;;  %3597 = vst.msk [vmem:[#allocation2 + $0xc0] sm:$0xff] %vm175_vm3, %v3543_v21  ;;  %2826 = vst.msk [vmem:[#allocation2 + $0xd8] sm:$0xff] %vm175_vm3, %v2772_v22  ;;  %v3544_v27 = vadd.f32 %v3403_v9, %v2878_v25  ;;  %v3411_v33 = vpop.f32.mrb[162].mxu1 }
 0x22f   : > { %4034 = vst.msk [vmem:[%s6184_s4 + $0x54] sm:$0xf] %vm4012_vm6, %v4467_v20  ;;  %v5035_v35 = vpop.f32.mrb[163].mxu1 }
 0x230   : > { %v3650_v29 = vld [vmem:[#allocation2 + $0xb8] sm:$0xff]  ;;  %v3764_v31 = vmax.f32 %v3710_v26, 0.0  ;;  %3598 = vst.msk [vmem:[#allocation2 + $0xc8] sm:$0xff] %vm175_vm3, %v3544_v27  ;;  %v1916_v27 = vld [vmem:[#allocation2 + $0x108] sm:$0xff] }
 0x231   : > { %v3711_v32 = vadd.f32 %v6173_v5, %v3650_v29  ;;  %v2642_v1 = vpop.f32.mrb[164].mxu0 }
 0x232   : > { %v4468_v36 = vpack.c.bf16 %v3764_v31, %v3764_v31  ;;  %v2773_v38 = vadd.f32 %v2642_v1, %v1911_v34  ;;  %v4922_v39 = vpop.f32.mrb[165].mxu0 }
 0x233   : > { %v3765_v37 = vmax.f32 %v3711_v32, 0.0  ;;  %v2879_v40 = vld [vmem:[#allocation2 + $0xd0] sm:$0xff]  ;;  %v2645_v42 = vpop.f32.mrb[166].mxu0 }
 0x234   : > { %4035 = vst.msk [vmem:[%s6184_s4 + $0x58] sm:$0xf] %vm4012_vm6, %v4468_v36  ;;  %v3545_v44 = vadd.f32 %v3408_v28, %v2879_v40  ;;  %v2774_v45 = vadd.f32 %v2645_v42, %v1912_v41  ;;  %v4923_v46 = vpop.f32.mrb[167].mxu0  ;;  %v3416_v51 = vpop.f32.mrb[164].mxu1  ;;  %v1917_v42 = vld [vmem:[#allocation2 + $0x110] sm:$0xff] }
 0x235   : > { %v4469_v43 = vpack.c.bf16 %v3765_v37, %v3765_v37  ;;  %2827 = vst.msk [vmem:[#allocation2 + $0xe0] sm:$0xff] %vm175_vm3, %v2773_v38  ;;  %v3651_v47 = vld [vmem:[#allocation2 + $0xc0] sm:$0xff]  ;;  %v2880_v48 = vld [vmem:[#allocation2 + $0xd8] sm:$0xff]  ;;  %v5038_v53 = vpop.f32.mrb[165].mxu1 }
 0x236   : > { %v3712_v49 = vadd.f32 %v6173_v5, %v3651_v47  ;;  %3599 = vst.msk [vmem:[#allocation2 + $0xd0] sm:$0xff] %vm175_vm3, %v3545_v44  ;;  %2828 = vst.msk [vmem:[#allocation2 + $0xe8] sm:$0xff] %vm175_vm3, %v2774_v45  ;;  %v3546_v50 = vadd.f32 %v3411_v33, %v2880_v48  ;;  %v3419_v56 = vpop.f32.mrb[166].mxu1 }
 0x237   : > { %4036 = vst.msk [vmem:[%s6184_s4 + $0x5c] sm:$0xf] %vm4012_vm6, %v4469_v43  ;;  %v3652_v52 = vld [vmem:[#allocation2 + $0xc8] sm:$0xff]  ;;  %v5039_v59 = vpop.f32.mrb[167].mxu1 }
 0x238   : > { %v3766_v54 = vmax.f32 %v3712_v49, 0.0  ;;  %v3713_v55 = vadd.f32 %v6173_v5, %v3652_v52  ;;  %3600 = vst.msk [vmem:[#allocation2 + $0xd8] sm:$0xff] %vm175_vm3, %v3546_v50  ;;  %v1918_v50 = vld [vmem:[#allocation2 + $0x118] sm:$0xff] }
 0x239   : > { %v2650_v58 = vpop.f32.mrb[168].mxu0 }
 0x23a   : > { %v4470_v60 = vpack.c.bf16 %v3766_v54, %v3766_v54  ;;  %v3767_v61 = vmax.f32 %v3713_v55, 0.0  ;;  %v2775_v62 = vadd.f32 %v2650_v58, %v1913_v57  ;;  %v4926_v63 = vpop.f32.mrb[169].mxu0 }
 0x23b   : > { %v2653_v3 = vpop.f32.mrb[170].mxu0 }
 0x23c   : > { %v2881_v0 = vld [vmem:[#allocation2 + $0xe0] sm:$0xff]  ;;  %4037 = vst.msk [vmem:[%s6184_s4 + $0x60] sm:$0xf] %vm4012_vm6, %v4470_v60  ;;  %v4471_v4 = vpack.c.bf16 %v3767_v61, %v3767_v61  ;;  %v2776_v7 = vadd.f32 %v2653_v3, %v1914_v2  ;;  %v4927_v8 = vpop.f32.mrb[171].mxu0  ;;  %v3424_v13 = vpop.f32.mrb[168].mxu1 }
 0x23d   : > { %2829 = vst.msk [vmem:[#allocation2 + $0xf0] sm:$0xff] %vm175_vm3, %v2775_v62  ;;  %v3547_v6 = vadd.f32 %v3416_v51, %v2881_v0  ;;  %v3653_v9 = vld [vmem:[#allocation2 + $0xd0] sm:$0xff]  ;;  %v2882_v10 = vld [vmem:[#allocation2 + $0xe8] sm:$0xff]  ;;  %v5042_v15 = vpop.f32.mrb[169].mxu1  ;;  %v1919_v3 = vld [vmem:[#allocation2 + $0x120] sm:$0xff] }
 0x23e   : > { %4038 = vst.msk [vmem:[%s6184_s4 + $0x64] sm:$0xf] %vm4012_vm6, %v4471_v4  ;;  %v3714_v11 = vadd.f32 %v6173_v5, %v3653_v9  ;;  %v3548_v12 = vadd.f32 %v3419_v56, %v2882_v10  ;;  %v3427_v18 = vpop.f32.mrb[170].mxu1 }
 0x23f   : > { %3601 = vst.msk [vmem:[#allocation2 + $0xe0] sm:$0xff] %vm175_vm3, %v3547_v6  ;;  %2830 = vst.msk [vmem:[#allocation2 + $0xf8] sm:$0xff] %vm175_vm3, %v2776_v7  ;;  %v3654_v14 = vld [vmem:[#allocation2 + $0xd8] sm:$0xff]  ;;  %v5043_v21 = vpop.f32.mrb[171].mxu1 }
 0x240   : > { %v3768_v16 = vmax.f32 %v3714_v11, 0.0  ;;  %v3715_v17 = vadd.f32 %v6173_v5, %v3654_v14  ;;  %3602 = vst.msk [vmem:[#allocation2 + $0xe8] sm:$0xff] %vm175_vm3, %v3548_v12  ;;  %v1920_v12 = vld [vmem:[#allocation2 + $0x128] sm:$0xff] }
 0x241   : > { %v2658_v20 = vpop.f32.mrb[172].mxu0 }
 0x242   : > { %v4472_v22 = vpack.c.bf16 %v3768_v16, %v3768_v16  ;;  %v3769_v23 = vmax.f32 %v3715_v17, 0.0  ;;  %v2777_v24 = vadd.f32 %v2658_v20, %v1915_v19  ;;  %v4930_v25 = vpop.f32.mrb[173].mxu0 }
 0x243   : > { %v2661_v28 = vpop.f32.mrb[174].mxu0 }
 0x244   : > { %v2883_v26 = vld [vmem:[#allocation2 + $0xf0] sm:$0xff]  ;;  %4039 = vst.msk [vmem:[%s6184_s4 + $0x68] sm:$0xf] %vm4012_vm6, %v4472_v22  ;;  %v4473_v29 = vpack.c.bf16 %v3769_v23, %v3769_v23  ;;  %v2778_v31 = vadd.f32 %v2661_v28, %v1916_v27  ;;  %v4931_v32 = vpop.f32.mrb[175].mxu0  ;;  %v3432_v36 = vpop.f32.mrb[172].mxu1 }
 0x245   : > { %2831 = vst.msk [vmem:[#allocation2 + $0x100] sm:$0xff] %vm175_vm3, %v2777_v24  ;;  %v3549_v30 = vadd.f32 %v3424_v13, %v2883_v26  ;;  %v5046_v38 = vpop.f32.mrb[173].mxu1  ;;  %v1921_v28 = vld [vmem:[#allocation2 + $0x130] sm:$0xff] }
 0x246   : > { %v3655_v33 = vld [vmem:[#allocation2 + $0xe0] sm:$0xff]  ;;  %v2884_v34 = vld [vmem:[#allocation2 + $0xf8] sm:$0xff]  ;;  %4040 = vst.msk [vmem:[%s6184_s4 + $0x6c] sm:$0xf] %vm4012_vm6, %v4473_v29  ;;  %v3435_v41 = vpop.f32.mrb[174].mxu1 }
 0x247   : > { %v3716_v1 = vadd.f32 %v6173_v5, %v3655_v33  ;;  %3603 = vst.msk [vmem:[#allocation2 + $0xf0] sm:$0xff] %vm175_vm3, %v3549_v30  ;;  %2832 = vst.msk [vmem:[#allocation2 + $0x108] sm:$0xff] %vm175_vm3, %v2778_v31  ;;  %v3550_v35 = vadd.f32 %v3427_v18, %v2884_v34  ;;  %v3656_v37 = vld [vmem:[#allocation2 + $0xe8] sm:$0xff]  ;;  %v5047_v44 = vpop.f32.mrb[175].mxu1 }
 0x248   : > { %v3717_v40 = vadd.f32 %v6173_v5, %v3656_v37 }
 0x249   : > { %v3770_v39 = vmax.f32 %v3716_v1, 0.0  ;;  %3604 = vst.msk [vmem:[#allocation2 + $0xf8] sm:$0xff] %vm175_vm3, %v3550_v35  ;;  %v2666_v43 = vpop.f32.mrb[176].mxu0  ;;  %v1922_v35 = vld [vmem:[#allocation2 + $0x138] sm:$0xff] }
 0x24a   : > { %v3771_v46 = vmax.f32 %v3717_v40, 0.0  ;;  %v2779_v47 = vadd.f32 %v2666_v43, %v1917_v42  ;;  %v4934_v48 = vpop.f32.mrb[177].mxu0  ;;  %v6354_v42 = vld [vmem:[%s6454_s2] ss:$0 sm:$0xff] }
 0x24b   : > { %v4474_v45 = vpack.c.bf16 %v3770_v39, %v3770_v39  ;;  %v2669_v51 = vpop.f32.mrb[178].mxu0 }
 0x24c   : > { %v2885_v49 = vld [vmem:[#allocation2 + $0x100] sm:$0xff]  ;;  %v4475_v52 = vpack.c.bf16 %v3771_v46, %v3771_v46  ;;  %2833 = vst.msk [vmem:[#allocation2 + $0x110] sm:$0xff] %vm175_vm3, %v2779_v47  ;;  %v2780_v54 = vadd.f32 %v2669_v51, %v1918_v50  ;;  %v4935_v55 = vpop.f32.mrb[179].mxu0  ;;  %v3440_v60 = vpop.f32.mrb[176].mxu1 }
 0x24d   : > { %4041 = vst.msk [vmem:[%s6184_s4 + $0x70] sm:$0xf] %vm4012_vm6, %v4474_v45  ;;  %v3551_v53 = vadd.f32 %v3432_v36, %v2885_v49  ;;  %v5050_v62 = vpop.f32.mrb[177].mxu1  ;;  %v1923_v51 = vld [vmem:[#allocation2 + $0x140] sm:$0xff] }
 0x24e   : > { %v3657_v56 = vld [vmem:[#allocation2 + $0xf0] sm:$0xff]  ;;  %v2886_v57 = vld [vmem:[#allocation2 + $0x108] sm:$0xff]  ;;  %4042 = vst.msk [vmem:[%s6184_s4 + $0x74] sm:$0xf] %vm4012_vm6, %v4475_v52  ;;  %v3443_v2 = vpop.f32.mrb[178].mxu1 }
 0x24f   : > { %v3718_v58 = vadd.f32 %v6173_v5, %v3657_v56  ;;  %3605 = vst.msk [vmem:[#allocation2 + $0x100] sm:$0xff] %vm175_vm3, %v3551_v53  ;;  %2834 = vst.msk [vmem:[#allocation2 + $0x118] sm:$0xff] %vm175_vm3, %v2780_v54  ;;  %v3552_v59 = vadd.f32 %v3435_v41, %v2886_v57  ;;  %v5051_v6 = vpop.f32.mrb[179].mxu1 }
 0x250   : > { %v3658_v61 = vld [vmem:[#allocation2 + $0xf8] sm:$0xff] }
 0x251   : > { %v3772_v63 = vmax.f32 %v3718_v58, 0.0  ;;  %v3719_v0 = vadd.f32 %v6173_v5, %v3658_v61  ;;  %3606 = vst.msk [vmem:[#allocation2 + $0x108] sm:$0xff] %vm175_vm3, %v3552_v59  ;;  %v2674_v4 = vpop.f32.mrb[180].mxu0  ;;  %v1924_v59 = vld [vmem:[#allocation2 + $0x148] sm:$0xff] }
 0x252   : > { %v2781_v9 = vadd.f32 %v2674_v4, %v1919_v3  ;;  %v4938_v10 = vpop.f32.mrb[181].mxu0 }
 0x253   : > { %v4476_v7 = vpack.c.bf16 %v3772_v63, %v3772_v63  ;;  %v3773_v8 = vmax.f32 %v3719_v0, 0.0  ;;  %v2887_v11 = vld [vmem:[#allocation2 + $0x110] sm:$0xff]  ;;  %v2677_v13 = vpop.f32.mrb[182].mxu0 }
 0x254   : > { %2835 = vst.msk [vmem:[#allocation2 + $0x120] sm:$0xff] %vm175_vm3, %v2781_v9  ;;  %v3553_v15 = vadd.f32 %v3440_v60, %v2887_v11  ;;  %v2782_v16 = vadd.f32 %v2677_v13, %v1920_v12  ;;  %v4939_v17 = vpop.f32.mrb[183].mxu0  ;;  %v3448_v22 = vpop.f32.mrb[180].mxu1  ;;  %v1925_v13 = vld [vmem:[#allocation2 + $0x150] sm:$0xff] }
 0x255   : > { %4043 = vst.msk [vmem:[%s6184_s4 + $0x78] sm:$0xf] %vm4012_vm6, %v4476_v7  ;;  %v4477_v14 = vpack.c.bf16 %v3773_v8, %v3773_v8  ;;  %v5054_v24 = vpop.f32.mrb[181].mxu1 }
 0x256   : > { %v3659_v18 = vld [vmem:[#allocation2 + $0x100] sm:$0xff]  ;;  %v2888_v19 = vld [vmem:[#allocation2 + $0x118] sm:$0xff]  ;;  %3607 = vst.msk [vmem:[#allocation2 + $0x110] sm:$0xff] %vm175_vm3, %v3553_v15  ;;  %2836 = vst.msk [vmem:[#allocation2 + $0x128] sm:$0xff] %vm175_vm3, %v2782_v16  ;;  %v3451_v27 = vpop.f32.mrb[182].mxu1 }
 0x257   : > { %4044 = vst.msk [vmem:[%s6184_s4 + $0x7c] sm:$0xf] %vm4012_vm6, %v4477_v14  ;;  %v3720_v20 = vadd.f32 %v6173_v5, %v3659_v18  ;;  %v3554_v21 = vadd.f32 %v3443_v2, %v2888_v19  ;;  %v5055_v30 = vpop.f32.mrb[183].mxu1 }
 0x258   : > { %v3660_v23 = vld [vmem:[#allocation2 + $0x108] sm:$0xff] }
 0x259   : > { %v3774_v25 = vmax.f32 %v3720_v20, 0.0  ;;  %v3721_v26 = vadd.f32 %v6173_v5, %v3660_v23  ;;  %3608 = vst.msk [vmem:[#allocation2 + $0x118] sm:$0xff] %vm175_vm3, %v3554_v21  ;;  %v2682_v29 = vpop.f32.mrb[184].mxu0  ;;  %v1926_v21 = vld [vmem:[#allocation2 + $0x158] sm:$0xff] }
 0x25a   : > { %v2783_v33 = vadd.f32 %v2682_v29, %v1921_v28  ;;  %v4942_v34 = vpop.f32.mrb[185].mxu0 }
 0x25b   : > { %v4478_v31 = vpack.c.bf16 %v3774_v25, %v3774_v25  ;;  %v3775_v32 = vmax.f32 %v3721_v26, 0.0  ;;  %v2889_v1 = vld [vmem:[#allocation2 + $0x120] sm:$0xff]  ;;  %v2685_v36 = vpop.f32.mrb[186].mxu0 }
 0x25c   : > { %2837 = vst.msk [vmem:[#allocation2 + $0x130] sm:$0xff] %vm175_vm3, %v2783_v33  ;;  %v3555_v5 = vadd.f32 %v3448_v22, %v2889_v1  ;;  %v2784_v38 = vadd.f32 %v2685_v36, %v1922_v35  ;;  %v4943_v39 = vpop.f32.mrb[187].mxu0  ;;  %v3456_v45 = vpop.f32.mrb[184].mxu1  ;;  %v1927_v36 = vld [vmem:[#allocation2 + $0x160] sm:$0xff] }
 0x25d   : > { %4045 = vst.msk [vmem:[%s6184_s4 + $0x80] sm:$0xf] %vm4012_vm6, %v4478_v31  ;;  %v4479_v37 = vpack.c.bf16 %v3775_v32, %v3775_v32  ;;  %v3661_v40 = vld [vmem:[#allocation2 + $0x110] sm:$0xff]  ;;  %v2890_v41 = vld [vmem:[#allocation2 + $0x128] sm:$0xff]  ;;  %v5058_v47 = vpop.f32.mrb[185].mxu1 }
 0x25e   : > { %v3722_v43 = vadd.f32 %v6354_v42, %v3661_v40  ;;  %3609 = vst.msk [vmem:[#allocation2 + $0x120] sm:$0xff] %vm175_vm3, %v3555_v5  ;;  %2838 = vst.msk [vmem:[#allocation2 + $0x138] sm:$0xff] %vm175_vm3, %v2784_v38  ;;  %v3556_v44 = vadd.f32 %v3451_v27, %v2890_v41  ;;  %v3459_v50 = vpop.f32.mrb[186].mxu1 }
 0x25f   : > { %4046 = vst.msk [vmem:[%s6184_s4 + $0x84] sm:$0xf] %vm4012_vm6, %v4479_v37  ;;  %v5059_v53 = vpop.f32.mrb[187].mxu1 }
 0x260   : > { %v3662_v46 = vld [vmem:[#allocation2 + $0x118] sm:$0xff]  ;;  %v3776_v48 = vmax.f32 %v3722_v43, 0.0  ;;  %3610 = vst.msk [vmem:[#allocation2 + $0x128] sm:$0xff] %vm175_vm3, %v3556_v44  ;;  %v1928_v44 = vld [vmem:[#allocation2 + $0x168] sm:$0xff] }
 0x261   : > { %v3723_v49 = vadd.f32 %v6354_v42, %v3662_v46  ;;  %v2690_v52 = vpop.f32.mrb[188].mxu0 }
 0x262   : > { %v4480_v54 = vpack.c.bf16 %v3776_v48, %v3776_v48  ;;  %v2785_v56 = vadd.f32 %v2690_v52, %v1923_v51  ;;  %v4946_v57 = vpop.f32.mrb[189].mxu0 }
 0x263   : > { %v3777_v55 = vmax.f32 %v3723_v49, 0.0  ;;  %v2891_v58 = vld [vmem:[#allocation2 + $0x130] sm:$0xff]  ;;  %v2693_v60 = vpop.f32.mrb[190].mxu0 }
 0x264   : > { %4047 = vst.msk [vmem:[%s6184_s4 + $0x88] sm:$0xf] %vm4012_vm6, %v4480_v54  ;;  %v3557_v62 = vadd.f32 %v3456_v45, %v2891_v58  ;;  %v2786_v63 = vadd.f32 %v2693_v60, %v1924_v59  ;;  %v4947_v0 = vpop.f32.mrb[191].mxu0  ;;  %v3464_v7 = vpop.f32.mrb[188].mxu1  ;;  %v1929_v60 = vld [vmem:[#allocation2 + $0x170] sm:$0xff] }
 0x265   : > { %v4481_v61 = vpack.c.bf16 %v3777_v55, %v3777_v55  ;;  %2839 = vst.msk [vmem:[#allocation2 + $0x140] sm:$0xff] %vm175_vm3, %v2785_v56  ;;  %v3663_v2 = vld [vmem:[#allocation2 + $0x120] sm:$0xff]  ;;  %v2892_v3 = vld [vmem:[#allocation2 + $0x138] sm:$0xff]  ;;  %v5062_v9 = vpop.f32.mrb[189].mxu1 }
 0x266   : > { %v3724_v4 = vadd.f32 %v6354_v42, %v3663_v2  ;;  %3611 = vst.msk [vmem:[#allocation2 + $0x130] sm:$0xff] %vm175_vm3, %v3557_v62  ;;  %2840 = vst.msk [vmem:[#allocation2 + $0x148] sm:$0xff] %vm175_vm3, %v2786_v63  ;;  %v3558_v6 = vadd.f32 %v3459_v50, %v2892_v3  ;;  %v3467_v12 = vpop.f32.mrb[190].mxu1 }
 0x267   : > { %4048 = vst.msk [vmem:[%s6184_s4 + $0x8c] sm:$0xf] %vm4012_vm6, %v4481_v61  ;;  %v3664_v8 = vld [vmem:[#allocation2 + $0x128] sm:$0xff]  ;;  %v5063_v15 = vpop.f32.mrb[191].mxu1 }
 0x268   : > { %v3778_v10 = vmax.f32 %v3724_v4, 0.0  ;;  %v3725_v11 = vadd.f32 %v6354_v42, %v3664_v8  ;;  %3612 = vst.msk [vmem:[#allocation2 + $0x138] sm:$0xff] %vm175_vm3, %v3558_v6  ;;  %v1930_v6 = vld [vmem:[#allocation2 + $0x178] sm:$0xff] }
 0x269   : > { %v2698_v14 = vpop.f32.mrb[192].mxu0 }
 0x26a   : > { %v4482_v16 = vpack.c.bf16 %v3778_v10, %v3778_v10  ;;  %v3779_v17 = vmax.f32 %v3725_v11, 0.0  ;;  %v2787_v18 = vadd.f32 %v2698_v14, %v1925_v13  ;;  %v4950_v19 = vpop.f32.mrb[193].mxu0 }
 0x26b   : > { %v2701_v22 = vpop.f32.mrb[194].mxu0 }
 0x26c   : > { %v2893_v20 = vld [vmem:[#allocation2 + $0x140] sm:$0xff]  ;;  %4049 = vst.msk [vmem:[%s6184_s4 + $0x90] sm:$0xf] %vm4012_vm6, %v4482_v16  ;;  %v4483_v23 = vpack.c.bf16 %v3779_v17, %v3779_v17  ;;  %v2788_v25 = vadd.f32 %v2701_v22, %v1926_v21  ;;  %v4951_v26 = vpop.f32.mrb[195].mxu0  ;;  %v3472_v31 = vpop.f32.mrb[192].mxu1 }
 0x26d   : > { %2841 = vst.msk [vmem:[#allocation2 + $0x150] sm:$0xff] %vm175_vm3, %v2787_v18  ;;  %v3559_v24 = vadd.f32 %v3464_v7, %v2893_v20  ;;  %v3665_v27 = vld [vmem:[#allocation2 + $0x130] sm:$0xff]  ;;  %v2894_v28 = vld [vmem:[#allocation2 + $0x148] sm:$0xff]  ;;  %v5066_v33 = vpop.f32.mrb[193].mxu1  ;;  %v1931_v22 = vld [vmem:[#allocation2 + $0x180] sm:$0xff] }
 0x26e   : > { %4050 = vst.msk [vmem:[%s6184_s4 + $0x94] sm:$0xf] %vm4012_vm6, %v4483_v23  ;;  %v3726_v29 = vadd.f32 %v6354_v42, %v3665_v27  ;;  %v3560_v30 = vadd.f32 %v3467_v12, %v2894_v28  ;;  %v3475_v35 = vpop.f32.mrb[194].mxu1 }
 0x26f   : > { %3613 = vst.msk [vmem:[#allocation2 + $0x140] sm:$0xff] %vm175_vm3, %v3559_v24  ;;  %2842 = vst.msk [vmem:[#allocation2 + $0x158] sm:$0xff] %vm175_vm3, %v2788_v25  ;;  %v3666_v32 = vld [vmem:[#allocation2 + $0x138] sm:$0xff]  ;;  %v5067_v5 = vpop.f32.mrb[195].mxu1 }
 0x270   : > { %v3780_v34 = vmax.f32 %v3726_v29, 0.0  ;;  %v3727_v1 = vadd.f32 %v6354_v42, %v3666_v32  ;;  %3614 = vst.msk [vmem:[#allocation2 + $0x148] sm:$0xff] %vm175_vm3, %v3560_v30  ;;  %v1932_v30 = vld [vmem:[#allocation2 + $0x188] sm:$0xff] }
 0x271   : > { %v2706_v37 = vpop.f32.mrb[196].mxu0 }
 0x272   : > { %v4484_v38 = vpack.c.bf16 %v3780_v34, %v3780_v34  ;;  %v3781_v39 = vmax.f32 %v3727_v1, 0.0  ;;  %v2789_v40 = vadd.f32 %v2706_v37, %v1927_v36  ;;  %v4954_v41 = vpop.f32.mrb[197].mxu0 }
 0x273   : > { %v2709_v45 = vpop.f32.mrb[198].mxu0 }
 0x274   : > { %v2895_v43 = vld [vmem:[#allocation2 + $0x150] sm:$0xff]  ;;  %4051 = vst.msk [vmem:[%s6184_s4 + $0x98] sm:$0xf] %vm4012_vm6, %v4484_v38  ;;  %v4485_v46 = vpack.c.bf16 %v3781_v39, %v3781_v39  ;;  %v2790_v48 = vadd.f32 %v2709_v45, %v1928_v44  ;;  %v4955_v49 = vpop.f32.mrb[199].mxu0  ;;  %v3480_v54 = vpop.f32.mrb[196].mxu1 }
 0x275   : > { %2843 = vst.msk [vmem:[#allocation2 + $0x160] sm:$0xff] %vm175_vm3, %v2789_v40  ;;  %v3561_v47 = vadd.f32 %v3472_v31, %v2895_v43  ;;  %v5070_v56 = vpop.f32.mrb[197].mxu1  ;;  %v1933_v45 = vld [vmem:[#allocation2 + $0x190] sm:$0xff] }
 0x276   : > { %v3667_v50 = vld [vmem:[#allocation2 + $0x140] sm:$0xff]  ;;  %v2896_v51 = vld [vmem:[#allocation2 + $0x158] sm:$0xff]  ;;  %4052 = vst.msk [vmem:[%s6184_s4 + $0x9c] sm:$0xf] %vm4012_vm6, %v4485_v46  ;;  %v3483_v59 = vpop.f32.mrb[198].mxu1 }
 0x277   : > { %v3728_v52 = vadd.f32 %v6354_v42, %v3667_v50  ;;  %3615 = vst.msk [vmem:[#allocation2 + $0x150] sm:$0xff] %vm175_vm3, %v3561_v47  ;;  %2844 = vst.msk [vmem:[#allocation2 + $0x168] sm:$0xff] %vm175_vm3, %v2790_v48  ;;  %v3562_v53 = vadd.f32 %v3475_v35, %v2896_v51  ;;  %v3668_v55 = vld [vmem:[#allocation2 + $0x148] sm:$0xff]  ;;  %v5071_v62 = vpop.f32.mrb[199].mxu1 }
 0x278   : > { %v3729_v58 = vadd.f32 %v6354_v42, %v3668_v55 }
 0x279   : > { %v3782_v57 = vmax.f32 %v3728_v52, 0.0  ;;  %3616 = vst.msk [vmem:[#allocation2 + $0x158] sm:$0xff] %vm175_vm3, %v3562_v53  ;;  %v2714_v61 = vpop.f32.mrb[200].mxu0  ;;  %v1934_v53 = vld [vmem:[#allocation2 + $0x198] sm:$0xff] }
 0x27a   : > { %v3783_v0 = vmax.f32 %v3729_v58, 0.0  ;;  %v2791_v2 = vadd.f32 %v2714_v61, %v1929_v60  ;;  %v4958_v3 = vpop.f32.mrb[201].mxu0 }
 0x27b   : > { %v4486_v63 = vpack.c.bf16 %v3782_v57, %v3782_v57  ;;  %v2717_v7 = vpop.f32.mrb[202].mxu0 }
 0x27c   : > { %v2897_v4 = vld [vmem:[#allocation2 + $0x160] sm:$0xff]  ;;  %v4487_v8 = vpack.c.bf16 %v3783_v0, %v3783_v0  ;;  %2845 = vst.msk [vmem:[#allocation2 + $0x170] sm:$0xff] %vm175_vm3, %v2791_v2  ;;  %v2792_v10 = vadd.f32 %v2717_v7, %v1930_v6  ;;  %v4959_v11 = vpop.f32.mrb[203].mxu0  ;;  %v3488_v16 = vpop.f32.mrb[200].mxu1 }
 0x27d   : > { %4053 = vst.msk [vmem:[%s6184_s4 + $0xa0] sm:$0xf] %vm4012_vm6, %v4486_v63  ;;  %v3563_v9 = vadd.f32 %v3480_v54, %v2897_v4  ;;  %v5074_v18 = vpop.f32.mrb[201].mxu1  ;;  %v1935_v7 = vld [vmem:[#allocation2 + $0x1a0] sm:$0xff] }
 0x27e   : > { %v3669_v12 = vld [vmem:[#allocation2 + $0x150] sm:$0xff]  ;;  %v2898_v13 = vld [vmem:[#allocation2 + $0x168] sm:$0xff]  ;;  %4054 = vst.msk [vmem:[%s6184_s4 + $0xa4] sm:$0xf] %vm4012_vm6, %v4487_v8  ;;  %v3491_v21 = vpop.f32.mrb[202].mxu1 }
 0x27f   : > { %v3730_v14 = vadd.f32 %v6354_v42, %v3669_v12  ;;  %3617 = vst.msk [vmem:[#allocation2 + $0x160] sm:$0xff] %vm175_vm3, %v3563_v9  ;;  %2846 = vst.msk [vmem:[#allocation2 + $0x178] sm:$0xff] %vm175_vm3, %v2792_v10  ;;  %v3564_v15 = vadd.f32 %v3483_v59, %v2898_v13  ;;  %v5075_v24 = vpop.f32.mrb[203].mxu1 }
 0x280   : > { %v3670_v17 = vld [vmem:[#allocation2 + $0x158] sm:$0xff] }
 0x281   : > { %v3784_v19 = vmax.f32 %v3730_v14, 0.0  ;;  %v3731_v20 = vadd.f32 %v6354_v42, %v3670_v17  ;;  %3618 = vst.msk [vmem:[#allocation2 + $0x168] sm:$0xff] %vm175_vm3, %v3564_v15  ;;  %v2722_v23 = vpop.f32.mrb[204].mxu0  ;;  %v1936_v15 = vld [vmem:[#allocation2 + $0x1a8] sm:$0xff] }
 0x282   : > { %v2793_v27 = vadd.f32 %v2722_v23, %v1931_v22  ;;  %v4962_v28 = vpop.f32.mrb[205].mxu0 }
 0x283   : > { %v4488_v25 = vpack.c.bf16 %v3784_v19, %v3784_v19  ;;  %v3785_v26 = vmax.f32 %v3731_v20, 0.0  ;;  %v2899_v29 = vld [vmem:[#allocation2 + $0x170] sm:$0xff]  ;;  %v2725_v31 = vpop.f32.mrb[206].mxu0 }
 0x284   : > { %2847 = vst.msk [vmem:[#allocation2 + $0x180] sm:$0xff] %vm175_vm3, %v2793_v27  ;;  %v3565_v33 = vadd.f32 %v3488_v16, %v2899_v29  ;;  %v2794_v34 = vadd.f32 %v2725_v31, %v1932_v30  ;;  %v4963_v1 = vpop.f32.mrb[207].mxu0  ;;  %v3496_v38 = vpop.f32.mrb[204].mxu1 }
 0x285   : > { %4055 = vst.msk [vmem:[%s6184_s4 + $0xa8] sm:$0xf] %vm4012_vm6, %v4488_v25  ;;  %v4489_v32 = vpack.c.bf16 %v3785_v26, %v3785_v26  ;;  %v5078_v40 = vpop.f32.mrb[205].mxu1 }
 0x286   : > { %v3671_v35 = vld [vmem:[#allocation2 + $0x160] sm:$0xff]  ;;  %v2900_v36 = vld [vmem:[#allocation2 + $0x178] sm:$0xff]  ;;  %3619 = vst.msk [vmem:[#allocation2 + $0x170] sm:$0xff] %vm175_vm3, %v3565_v33  ;;  %2848 = vst.msk [vmem:[#allocation2 + $0x188] sm:$0xff] %vm175_vm3, %v2794_v34  ;;  %v3499_v44 = vpop.f32.mrb[206].mxu1 }
 0x287   : > { %4056 = vst.msk [vmem:[%s6184_s4 + $0xac] sm:$0xf] %vm4012_vm6, %v4489_v32  ;;  %v3732_v37 = vadd.f32 %v6354_v42, %v3671_v35  ;;  %v3566_v5 = vadd.f32 %v3491_v21, %v2900_v36  ;;  %v5079_v47 = vpop.f32.mrb[207].mxu1 }
 0x288   : > { %v3672_v39 = vld [vmem:[#allocation2 + $0x168] sm:$0xff] }
 0x289   : > { %v3786_v41 = vmax.f32 %v3732_v37, 0.0  ;;  %v3733_v43 = vadd.f32 %v6354_v42, %v3672_v39  ;;  %3620 = vst.msk [vmem:[#allocation2 + $0x178] sm:$0xff] %vm175_vm3, %v3566_v5  ;;  %v2730_v46 = vpop.f32.mrb[208].mxu0 }
 0x28a   : > { %v2795_v50 = vadd.f32 %v2730_v46, %v1933_v45  ;;  %v4966_v51 = vpop.f32.mrb[209].mxu0 }
 0x28b   : > { %v4490_v48 = vpack.c.bf16 %v3786_v41, %v3786_v41  ;;  %v3787_v49 = vmax.f32 %v3733_v43, 0.0  ;;  %v2901_v52 = vld [vmem:[#allocation2 + $0x180] sm:$0xff]  ;;  %v2733_v54 = vpop.f32.mrb[210].mxu0 }
 0x28c   : > { %2849 = vst.msk [vmem:[#allocation2 + $0x190] sm:$0xff] %vm175_vm3, %v2795_v50  ;;  %v3567_v56 = vadd.f32 %v3496_v38, %v2901_v52  ;;  %v2796_v57 = vadd.f32 %v2733_v54, %v1934_v53  ;;  %v4967_v58 = vpop.f32.mrb[211].mxu0  ;;  %v3504_v63 = vpop.f32.mrb[208].mxu1 }
 0x28d   : > { %4057 = vst.msk [vmem:[%s6184_s4 + $0xb0] sm:$0xf] %vm4012_vm6, %v4490_v48  ;;  %v4491_v55 = vpack.c.bf16 %v3787_v49, %v3787_v49  ;;  %v3673_v59 = vld [vmem:[#allocation2 + $0x170] sm:$0xff]  ;;  %v2902_v60 = vld [vmem:[#allocation2 + $0x188] sm:$0xff]  ;;  %v5082_v2 = vpop.f32.mrb[209].mxu1 }
 0x28e   : > { %v3734_v61 = vadd.f32 %v6354_v42, %v3673_v59  ;;  %3621 = vst.msk [vmem:[#allocation2 + $0x180] sm:$0xff] %vm175_vm3, %v3567_v56  ;;  %2850 = vst.msk [vmem:[#allocation2 + $0x198] sm:$0xff] %vm175_vm3, %v2796_v57  ;;  %v3568_v62 = vadd.f32 %v3499_v44, %v2902_v60  ;;  %v3507_v6 = vpop.f32.mrb[210].mxu1 }
 0x28f   : > { %4058 = vst.msk [vmem:[%s6184_s4 + $0xb4] sm:$0xf] %vm4012_vm6, %v4491_v55  ;;  %v5083_v9 = vpop.f32.mrb[211].mxu1 }
 0x290   : > { %v3674_v0 = vld [vmem:[#allocation2 + $0x178] sm:$0xff]  ;;  %v3788_v3 = vmax.f32 %v3734_v61, 0.0  ;;  %3622 = vst.msk [vmem:[#allocation2 + $0x188] sm:$0xff] %vm175_vm3, %v3568_v62 }
 0x291   : > { %v3735_v4 = vadd.f32 %v6354_v42, %v3674_v0  ;;  %v2738_v8 = vpop.f32.mrb[212].mxu0 }
 0x292   : > { %v4492_v10 = vpack.c.bf16 %v3788_v3, %v3788_v3  ;;  %v2797_v12 = vadd.f32 %v2738_v8, %v1935_v7  ;;  %v4970_v13 = vpop.f32.mrb[213].mxu0 }
 0x293   : > { %v3789_v11 = vmax.f32 %v3735_v4, 0.0  ;;  %v2903_v14 = vld [vmem:[#allocation2 + $0x190] sm:$0xff]  ;;  %v2741_v16 = vpop.f32.mrb[214].mxu0 }
 0x294   : > { %4059 = vst.msk [vmem:[%s6184_s4 + $0xb8] sm:$0xf] %vm4012_vm6, %v4492_v10  ;;  %v3569_v18 = vadd.f32 %v3504_v63, %v2903_v14  ;;  %v2798_v19 = vadd.f32 %v2741_v16, %v1936_v15  ;;  %v4971_v20 = vpop.f32.mrb[215].mxu0  ;;  %v3512_v25 = vpop.f32.mrb[212].mxu1 }
 0x295   : > { %v4493_v17 = vpack.c.bf16 %v3789_v11, %v3789_v11  ;;  %2851 = vst.msk [vmem:[#allocation2 + $0x1a0] sm:$0xff] %vm175_vm3, %v2797_v12  ;;  %v3675_v21 = vld [vmem:[#allocation2 + $0x180] sm:$0xff]  ;;  %v2904_v22 = vld [vmem:[#allocation2 + $0x198] sm:$0xff]  ;;  %v5086_v27 = vpop.f32.mrb[213].mxu1 }
 0x296   : > { %v3736_v23 = vadd.f32 %v6354_v42, %v3675_v21  ;;  %3623 = vst.msk [vmem:[#allocation2 + $0x190] sm:$0xff] %vm175_vm3, %v3569_v18  ;;  %2852 = vst.msk [vmem:[#allocation2 + $0x1a8] sm:$0xff] %vm175_vm3, %v2798_v19  ;;  %v3570_v24 = vadd.f32 %v3507_v6, %v2904_v22  ;;  %v3515_v30 = vpop.f32.mrb[214].mxu1 }
 0x297   : > { %4060 = vst.msk [vmem:[%s6184_s4 + $0xbc] sm:$0xf] %vm4012_vm6, %v4493_v17  ;;  %v3676_v26 = vld [vmem:[#allocation2 + $0x188] sm:$0xff]  ;;  %v5087_v31 = vpop.f32.mrb[215].mxu1 }
 0x298   : > { %v3790_v28 = vmax.f32 %v3736_v23, 0.0  ;;  %v3737_v29 = vadd.f32 %v6354_v42, %v3676_v26  ;;  %3624 = vst.msk [vmem:[#allocation2 + $0x198] sm:$0xff] %vm175_vm3, %v3570_v24 }
 0x29a   : > { %v4494_v32 = vpack.c.bf16 %v3790_v28, %v3790_v28  ;;  %v3791_v33 = vmax.f32 %v3737_v29, 0.0 }
 0x29c   : > { %v2905_v34 = vld [vmem:[#allocation2 + $0x1a0] sm:$0xff]  ;;  %4061 = vst.msk [vmem:[%s6184_s4 + $0xc0] sm:$0xf] %vm4012_vm6, %v4494_v32  ;;  %v4495_v1 = vpack.c.bf16 %v3791_v33, %v3791_v33 }
 0x29d   : > { %v3571_v35 = vadd.f32 %v3512_v25, %v2905_v34  ;;  %v3677_v36 = vld [vmem:[#allocation2 + $0x190] sm:$0xff]  ;;  %v2906_v37 = vld [vmem:[#allocation2 + $0x1a8] sm:$0xff] }
 0x29e   : > { %4062 = vst.msk [vmem:[%s6184_s4 + $0xc4] sm:$0xf] %vm4012_vm6, %v4495_v1  ;;  %v3738_v5 = vadd.f32 %v6354_v42, %v3677_v36  ;;  %v3572_v38 = vadd.f32 %v3515_v30, %v2906_v37 }
 0x29f   : > { %3625 = vst.msk [vmem:[#allocation2 + $0x1a0] sm:$0xff] %vm175_vm3, %v3571_v35  ;;  %v3678_v39 = vld [vmem:[#allocation2 + $0x198] sm:$0xff] }
 0x2a0   : > { %v3792_v40 = vmax.f32 %v3738_v5, 0.0  ;;  %v3739_v41 = vadd.f32 %v6354_v42, %v3678_v39  ;;  %3626 = vst.msk [vmem:[#allocation2 + $0x1a8] sm:$0xff] %vm175_vm3, %v3572_v38 }
 0x2a2   : > { %v4496_v43 = vpack.c.bf16 %v3792_v40, %v3792_v40  ;;  %v3793_v44 = vmax.f32 %v3739_v41, 0.0 }
 0x2a4   : > { %4063 = vst.msk [vmem:[%s6184_s4 + $0xc8] sm:$0xf] %vm4012_vm6, %v4496_v43  ;;  %v4497_v45 = vpack.c.bf16 %v3793_v44, %v3793_v44 }
 0x2a6   : > { %v3679_v46 = vld [vmem:[#allocation2 + $0x1a0] sm:$0xff]  ;;  %4064 = vst.msk [vmem:[%s6184_s4 + $0xcc] sm:$0xf] %vm4012_vm6, %v4497_v45 }
 0x2a7   : > { %v3740_v47 = vadd.f32 %v6354_v42, %v3679_v46  ;;  %v3680_v48 = vld [vmem:[#allocation2 + $0x1a8] sm:$0xff] }
 0x2a8   : > { %v3741_v50 = vadd.f32 %v6354_v42, %v3680_v48 }
 0x2a9   : > { %v3794_v49 = vmax.f32 %v3740_v47, 0.0 }
 0x2aa   : > { %v3795_v52 = vmax.f32 %v3741_v50, 0.0 }
 0x2ab   : > { %v4498_v51 = vpack.c.bf16 %v3794_v49, %v3794_v49 }
 0x2ac   : > { %v4499_v53 = vpack.c.bf16 %v3795_v52, %v3795_v52 }
 0x2ad   : > { %4065 = vst.msk [vmem:[%s6184_s4 + $0xd0] sm:$0xf] %vm4012_vm6, %v4498_v51 }
 0x2ae   : > { %4066 = vst.msk [vmem:[%s6184_s4 + $0xd4] sm:$0xf] %vm4012_vm6, %v4499_v53 }
 0x2af PF: > { %s13_s12 = sadd.s32 1, %s5232_s12  }
 0x2b0   : > { %p10_p5 = scmp.ge.s32.totalorder %s13_s12, 4  }
 0x2b2   :  { %12 = sbr.rel (!%p10_p5) target bundleno = 1 (0x1), region = 65 }

// kernel: policy_forward.5
= control target key start
LH: loop header
LB: loop body
LE: loop exit
PB: predicated region body
PF: predicated region fallthrough
CT: control target
= control target key end

     0   :  { %s1815_s12 = smov 0   ;;  %s2096_s0 = inlined_call_operand.vmem [shape: bf16[224,128], index: 0, kind: input, shape index: {}]   ;;  %s2097_s1 = inlined_call_operand.vmem [shape: bf16[4,128,64], index: 1, kind: input, shape index: {}]   ;;  %s2098_s2 = inlined_call_operand.vmem [shape: f32[1,64], index: 2, kind: input, shape index: {}]   ;;  %s2099_s3 = inlined_call_operand.vmem [shape: bf16[192,64], index: 3, kind: output, shape index: {}]  }
   0x1 LB: > { %s1409_s13 = sadd.s32 4294967295, %s1792_s12   ;;  %p1413_p0 = scmp.ge.s32.totalorder %s1792_s12, 1  ;;  %s1792_s12 = sphi %s1815_s12, %s13_s12  }
   0x2   : > { %p138_p1 = scmp.lt.s32.totalorder %s1792_s12, 3 }
   0x4   : > { %p139_p2 = pnand %p1413_p0, %p138_p1 }
   0x5   : > { %v1727_v0 = vld [vmem:[%s2097_s1] sm:$0xff] (!%p139_p2)   ;;  %s162_s16 = smul.u32 (!%p139_p2), 14, %s1409_s13  ;;  %v1728_v1 = vld [vmem:[%s2097_s1 + $0x8] sm:$0xff] (!%p139_p2)   ;;  %v1730_v3 = vld [vmem:[%s2097_s1 + $0x10] sm:$0xff] (!%p139_p2)   ;;  %vm175_vm0 = vcmask (!%p139_p2), 523264   ;;  %v1794_v6 = vmov (!%p139_p2), 0.0  }
   0x6   : > { %142 = sbr.rel (%p139_p2) target bundleno = 328 (0x148), region = 32  ;;  %1606 = vmatprep.subr.bf16.mxu0 (!%p139_p2), %v1727_v0  ;;  %v1729_v2 = vld [vmem:[%s2097_s1 + $0x40] sm:$0xff] (!%p139_p2)   ;;  %v1731_v4 = vld [vmem:[%s2097_s1 + $0x48] sm:$0xff] (!%p139_p2)   ;;  %v1733_v5 = vld [vmem:[%s2097_s1 + $0x50] sm:$0xff] (!%p139_p2)   ;;  %178 = vst.msk [vmem:[#allocation2 + $0x10] sm:$0xff] (!%p139_p2), %vm175_vm0, %v1794_v6  ;;  %vm779_vm2 = vcmask (!%p139_p2), 1046528  }
   0x7   : > { %p163_p3 = scmp.lt.s32.totalorder (!%p139_p2), %s162_s16, 27  ;;  %1607 = vmatpush3.bf16.msra.mxu0 (!%p139_p2), %v1727_v0  ;;  %1634 = vmatprep.subr.bf16.mxu1 (!%p139_p2), %v1729_v2  ;;  %176 = vst.msk [vmem:[#allocation2] sm:$0xff] (!%p139_p2), %vm175_vm0, %v1794_v6  ;;  %177 = vst.msk [vmem:[#allocation2 + $0x8] sm:$0xff] (!%p139_p2), %vm175_vm0, %v1794_v6  ;;  %v1732_v7 = vld [vmem:[%s2097_s1 + $0x18] sm:$0xff] (!%p139_p2)   ;;  %v1734_v9 = vld [vmem:[%s2097_s1 + $0x20] sm:$0xff] (!%p139_p2)   ;;  %vm1340_vm4 = vcmask (!%p139_p2), 519168  }
   0x8   : > { %1608 = vmatprep.subr.bf16.mxu0 (!%p139_p2), %v1728_v1  ;;  %1635 = vmatpush3.bf16.msra.mxu1 (!%p139_p2), %v1729_v2  ;;  %179 = vst.msk [vmem:[#allocation2 + $0x18] sm:$0xff] (!%p139_p2), %vm175_vm0, %v1794_v6  ;;  %180 = vst.msk [vmem:[#allocation2 + $0x20] sm:$0xff] (!%p139_p2), %vm175_vm0, %v1794_v6  ;;  %v1735_v8 = vld [vmem:[%s2097_s1 + $0x58] sm:$0xff] (!%p139_p2)   ;;  %v1737_v10 = vld [vmem:[%s2097_s1 + $0x60] sm:$0xff] (!%p139_p2)   ;;  %vm492_vm1 = vsmask.f32 (!%p139_p2), 7424 }
   0x9   : > { %1636 = vmatprep.subr.bf16.mxu1 (!%p139_p2), %v1731_v4  ;;  %181 = vst.msk [vmem:[#allocation2 + $0x28] sm:$0xff] (!%p139_p2), %vm175_vm0, %v1794_v6  ;;  %182 = vst.msk [vmem:[#allocation2 + $0x30] sm:$0xff] (!%p139_p2), %vm175_vm0, %v1794_v6  ;;  %v1736_v12 = vld [vmem:[%s2097_s1 + $0x28] sm:$0xff] (!%p139_p2)   ;;  %v1738_v14 = vld [vmem:[%s2097_s1 + $0x30] sm:$0xff] (!%p139_p2)   ;;  %vm1027_vm3 = vsmask.f32 (!%p139_p2), 6400 }
   0xa   : > { %183 = vst.msk [vmem:[#allocation2 + $0x38] sm:$0xff] (!%p139_p2), %vm175_vm0, %v1794_v6  ;;  %184 = vst.msk [vmem:[#allocation2 + $0x40] sm:$0xff] (!%p139_p2), %vm175_vm0, %v1794_v6  ;;  %v1739_v13 = vld [vmem:[%s2097_s1 + $0x68] sm:$0xff] (!%p139_p2)   ;;  %v1740_v17 = vld [vmem:[%s2097_s1 + $0x38] sm:$0xff] (!%p139_p2)  }
   0xb   : > { %185 = vst.msk [vmem:[#allocation2 + $0x48] sm:$0xff] (!%p139_p2), %vm175_vm0, %v1794_v6  ;;  %186 = vst.msk [vmem:[#allocation2 + $0x50] sm:$0xff] (!%p139_p2), %vm175_vm0, %v1794_v6  ;;  %1609 = vmatpush3.bf16.msra.mxu0 (!%p139_p2), %v1728_v1  ;;  %v1742_v18 = vld [vmem:[%s2097_s1 + $0x70] sm:$0xff] (!%p139_p2)   ;;  %v1745_v23 = vld [vmem:[%s2097_s1 + $0x78] sm:$0xff] (!%p139_p2)  }
   0xc   : > { %187 = vst.msk [vmem:[#allocation2 + $0x58] sm:$0xff] (!%p139_p2), %vm175_vm0, %v1794_v6  ;;  %1610 = vmatprep.subr.bf16.mxu0 (!%p139_p2), %v1730_v3  ;;  %1637 = vmatpush3.bf16.msra.mxu1 (!%p139_p2), %v1731_v4  ;;  %v1744_v29 = vld [vmem:[%s2097_s1 + $0x80] sm:$0xff] (!%p139_p2)   ;;  %v1746_v36 = vld [vmem:[%s2097_s1 + $0x88] sm:$0xff] (!%p139_p2)   ;;  %v1751_v40 = vld [vmem:[%s2097_s1 + $0x90] sm:$0xff] (!%p139_p2)  }
   0xd   : > { %s2101_s16 = smov (!%p163_p3, %s162_s16), 27  ;;  %1638 = vmatprep.subr.bf16.mxu1 %v1733_v5  ;;  %v1749_v34 = vld [vmem:[%s2097_s1 + $0xc0] sm:$0xff]   ;;  %v1752_v38 = vld [vmem:[%s2097_s1 + $0xc8] sm:$0xff]   ;;  %v1754_v43 = vld [vmem:[%s2097_s1 + $0x98] sm:$0xff]  }
   0xe   : > { %s1414_s29 = sshll.u32 %s2101_s16, 2  ;;  %v1756_v45 = vld [vmem:[%s2097_s1 + $0xd0] sm:$0xff]   ;;  %v1758_v51 = vld [vmem:[%s2097_s1 + $0xd8] sm:$0xff]   ;;  %v1757_v55 = vld [vmem:[%s2097_s1 + $0xa0] sm:$0xff]  }
   0xf   : > { %1611 = vmatpush3.bf16.msra.mxu0 %v1730_v3  ;;  %s1864_s7 = scalar_lea.vmem %s2096_s0, %s1414_s29  ;;  %v1764_v0 = vld [vmem:[%s2097_s1 + $0xe0] sm:$0xff]  }
  0x10   : > { %1612 = vmatprep.subr.bf16.mxu0 %v1732_v7  ;;  %1639 = vmatpush3.bf16.msra.mxu1 %v1733_v5  ;;  %v1741_v11 = vld [vmem:[%s1864_s7] sm:$0xff]   ;;  %v1748_v16 = vld [vmem:[%s1864_s7 + $0x8] sm:$0xff]   ;;  %v1750_v22 = vld [vmem:[%s1864_s7 + $0x10] sm:$0xff]  }
  0x11   : > { %1640 = vmatprep.subr.bf16.mxu1 %v1735_v8  ;;  %1622 = vmatprep.mubr.bf16.mxu0 %v1741_v11  ;;  %v1747_v15 = vld [vmem:[%s1864_s7] sm:$0xff]   ;;  %v501_v21 = vshll.u32 %v1748_v16, 16  ;;  %v505_v26 = vshrl.u32 %v1748_v16, 16  ;;  %v509_v27 = vshll.u32 %v1750_v22, 16  ;;  %v1743_v30 = vld [vmem:[%s1864_s7 + $0x8] sm:$0xff]   ;;  %v1753_v35 = vld [vmem:[%s1864_s7 + $0x10] sm:$0xff]  }
  0x12   : > { %v494_v19 = vshrl.u32 %v1747_v15, 16  ;;  %v496_v20 = vshll.u32 %v1747_v15, 16  ;;  %v513_v39 = vshrl.u32 %v1750_v22, 16  ;;  %v1762_v41 = vld [vmem:[%s1864_s7 + $0x18] sm:$0xff]   ;;  %v1763_v42 = vld [vmem:[%s1864_s7 + $0x20] sm:$0xff]   ;;  %v1768_v54 = vld [vmem:[%s1864_s7 + $0x28] sm:$0xff]  }
  0x13   : > { %1613 = vmatpush3.bf16.msra.mxu0 %v1732_v7  ;;  %v503_v25 = vrot.slane %v501_v21, 1  ;;  %v511_v33 = vrot.slane %v509_v27, 1  ;;  %v1755_v44 = vld [vmem:[%s1864_s7 + $0x18] sm:$0xff]   ;;  %v517_v47 = vshll.u32 %v1762_v41, 16  ;;  %v521_v48 = vshrl.u32 %v1762_v41, 16  ;;  %v1759_v49 = vld [vmem:[%s1864_s7 + $0x20] sm:$0xff]  }
  0x14   : > { %1614 = vmatprep.subr.bf16.mxu0 %v1734_v9  ;;  %1641 = vmatpush3.bf16.msra.mxu1 %v1735_v8  ;;  %v498_v24 = vrot.slane %v496_v20, 1  ;;  %v525_v50 = vshll.u32 %v1763_v42, 16  ;;  %v529_v58 = vshrl.u32 %v1763_v42, 16  ;;  %v1932_v59 = vld [vmem:[%s1864_s7 + $0xc] sm:$0xff]   ;;  %v533_v60 = vshll.u32 %v1768_v54, 16  ;;  %v1778_v21 = vld [vmem:[%s1864_s7 + $0x14] sm:$0xff]  }
  0x15   : > { %1642 = vmatprep.subr.bf16.mxu1 %v1737_v10  ;;  %v507_v32 = vor.u32 %v505_v26, %v503_v25  ;;  %v515_v46 = vor.u32 %v513_v39, %v511_v33  ;;  %v519_v52 = vrot.slane %v517_v47, 1  ;;  %v1769_v61 = vld [vmem:[%s1864_s7 + $0x30] ss:$0 sps:$4 sm:$0x11]   ;;  %v1761_v62 = vld [vmem:[%s1864_s7 + $0x28] sm:$0xff]   ;;  %v537_v2 = vshrl.u32 %v1768_v54, 16 }
  0x16   : > { %v499_v28 = vor.u32 %v498_v24, %v494_v19  ;;  %v527_v53 = vrot.slane %v525_v50, 1  ;;  %v781_v3 = vrot.slane %v1932_v59, 1  ;;  %v535_v4 = vrot.slane %v533_v60, 1  ;;  %v1770_v6 = vld [vmem:[%s1864_s7 + $0x4] sm:$0xfe]   ;;  %v1776_v15 = vld [vmem:[%s1864_s7 + $0xc] sm:$0xff]  }
  0x17   : > { %1615 = vmatpush3.bf16.msra.mxu0 %v1734_v9  ;;  %v512_v37 = vsel %vm492_vm1, %v507_v32, %v511_v33  ;;  %v520_v56 = vsel %vm492_vm1, %v515_v46, %v519_v52  ;;  %v523_v57 = vor.u32 %v521_v48, %v519_v52  ;;  %v541_v5 = vshll.u32 %v1769_v61, 16  ;;  %v1767_v24 = vld [vmem:[%s2097_s1 + $0xb8] sm:$0xff]   ;;  %v1782_v42 = vld [vmem:[%s1864_s7 + $0x24] sm:$0xff]   ;;  %v1784_v50 = vld [vmem:[%s1864_s7 + $0x2c] sm:$0xff]  }
  0x18   : > { %1616 = vmatprep.subr.bf16.mxu0 %v1736_v12  ;;  %1643 = vmatpush3.bf16.msra.mxu1 %v1737_v10  ;;  %v504_v31 = vsel %vm492_vm1, %v499_v28, %v503_v25  ;;  %v531_v1 = vor.u32 %v529_v58, %v527_v53  ;;  %v539_v8 = vor.u32 %v537_v2, %v535_v4  ;;  %v1760_v10 = vld [vmem:[%s2097_s1 + $0xa8] sm:$0xff]   ;;  %v780_v11 = vrot.slane %v1770_v6, 1  ;;  %v1773_v25 = vld [vmem:[%s1864_s7 + $0x14] sm:$0xff]  }
  0x19   : > { %1644 = vmatprep.subr.bf16.mxu1 %v1739_v13  ;;  %1650 = vmatprep.mubr.bf16.mxu1 %v504_v31  ;;  %v528_v63 = vsel %vm492_vm1, %v523_v57, %v527_v53  ;;  %v543_v9 = vrot.slane %v541_v5, 1  ;;  %v1037_v19 = vshrl.u32 %v1776_v15, 16  ;;  %v1040_v20 = vshll.u32 %v1776_v15, 16  ;;  %v1777_v31 = vld [vmem:[%s1864_s7 + $0x1c] sm:$0xff]   ;;  %v1779_v53 = vld [vmem:[%s1864_s7 + $0x24] sm:$0xff]   ;;  %v1781_v57 = vld [vmem:[%s1864_s7 + $0x2c] sm:$0xff]  }
  0x1a   : > { %v536_v7 = vsel %vm492_vm1, %v531_v1, %v535_v4  ;;  %v1046_v28 = vshrl.u32 %v1778_v21, 16  ;;  %v1049_v32 = vshll.u32 %v1778_v21, 16  ;;  %v1774_v33 = vld [vmem:[%s2097_s1 + $0xf8] sm:$0xff]   ;;  %v783_v39 = vrot.slane %v1773_v25, 1 }
  0x1b   : > { %1617 = vmatpush3.bf16.msra.mxu0 %v1736_v12  ;;  %v1766_v12 = vld [vmem:[%s2097_s1 + $0xe8] sm:$0xff]   ;;  %v544_v16 = vsel %vm492_vm1, %v539_v8, %v543_v9  ;;  %v1039_v26 = vrot.slane %v1037_v19, 1  ;;  %v1042_v27 = vrot.slane %v1040_v20, 2  ;;  %v1064_v48 = vshrl.u32 %v1782_v42, 16  ;;  %v188_v19 = vld [vmem:[#allocation2] sm:$0xff]  ;;  %v191_v21 = vld [vmem:[#allocation2 + $0x18] sm:$0xff] }
  0x1c   : > { %1618 = vmatprep.subr.bf16.mxu0 %v1738_v14  ;;  %1645 = vmatpush3.bf16.msra.mxu1 %v1739_v13  ;;  %v1765_v13 = vld [vmem:[%s2097_s1 + $0xb0] sm:$0xff]   ;;  %v784_v52 = vsel %vm779_vm2, %v781_v3, %v783_v39  ;;  %v1073_v54 = vshrl.u32 %v1784_v50, 16  ;;  %v787_v1 = vrot.slane %v1779_v53, 1  ;;  %v789_v2 = vrot.slane %v1781_v57, 1 }
  0x1d   : > { %1646 = vmatprep.subr.bf16.mxu1 %v1742_v18  ;;  %v1066_v60 = vrot.slane %v1064_v48, 1  ;;  %v1783_v8 = vld [vmem:[%s1864_s7 + $0x34] ss:$0 sps:$4 sm:$0x11]  }
  0x1e   : > { %v790_v9 = vsel %vm779_vm2, %v787_v1, %v789_v2 }
  0x1f   : > { %1619 = vmatpush3.bf16.msra.mxu0 %v1738_v14  ;;  %v782_v14 = vsel %vm779_vm2, %v780_v11, %v781_v3 }
  0x20   : > { %1620 = vmatprep.subr.bf16.mxu0 %v1740_v17  ;;  %1647 = vmatpush3.bf16.msra.mxu1 %v1742_v18  ;;  %v1772_v18 = vld [vmem:[%s2097_s1 + $0xf0] sm:$0xff]  }
  0x21   : > { %1648 = vmatprep.subr.bf16.mxu1 %v1745_v23 }
  0x23   : > { %1621 = vmatpush3.bf16.msra.mxu0 %v1740_v17  ;;  %v1775_v17 = vld [vmem:[%s1864_s7 + $0x4] sm:$0xfe]  }
  0x24   : > { %1662 = vmatprep.subr.bf16.mxu0 %v1744_v29  ;;  %1649 = vmatpush3.bf16.msra.mxu1 %v1745_v23  ;;  %v1029_v22 = vshrl.u32 %v1775_v17, 16  ;;  %v1032_v23 = vshll.u32 %v1775_v17, 16 }
  0x25   : > { %1690 = vmatprep.subr.bf16.mxu1 %v1749_v34 }
  0x26   : > { %1623 = vmatmul.mubr.bf16.vlgmr.msra.gmra.mrb[0].mxu0 %v1743_v30  ;;  %v1034_v30 = vrot.slane %v1032_v23, 2 }
  0x27   : > { %1663 = vmatpush3.bf16.msra.mxu0 %v1744_v29  ;;  %1626 = vmatprep.mubr.bf16.mxu0 %v1753_v35  ;;  %v1031_v29 = vrot.slane %v1029_v22, 1  ;;  %v1780_v35 = vld [vmem:[%s1864_s7 + $0x1c] sm:$0xff]  }
  0x28   : > { %1664 = vmatprep.subr.bf16.mxu0 %v1746_v36  ;;  %1651 = vmatmul.mubr.bf16.vlgmr.msra.gmra.mrb[0].mxu1 %v512_v37  ;;  %v1048_v37 = vrot.slane %v1046_v28, 1  ;;  %v1058_v41 = vshll.u32 %v1780_v35, 16 }
  0x29   : > { %1691 = vmatpush3.bf16.msra.mxu1 %v1749_v34  ;;  %1654 = vmatprep.mubr.bf16.mxu1 %v520_v56  ;;  %v1043_v34 = vor.u32 %v1042_v27, %v1039_v26 }
  0x2a   : > { %1692 = vmatprep.subr.bf16.mxu1 %v1752_v38  ;;  %v1060_v46 = vrot.slane %v1058_v41, 2 }
  0x2b   : > { %1665 = vmatpush3.bf16.msra.mxu0 %v1746_v36  ;;  %v1035_v36 = vor.u32 %v1034_v30, %v1031_v29 }
  0x2c   : > { %1666 = vmatprep.subr.bf16.mxu0 %v1751_v40 }
  0x2d   : > { %1693 = vmatpush3.bf16.msra.mxu1 %v1752_v38  ;;  %v1051_v38 = vrot.slane %v1049_v32, 2 }
  0x2e   : > { %1627 = vmatmul.mubr.bf16.gmra.mrb[4].mxu0 %v1755_v44  ;;  %1694 = vmatprep.subr.bf16.mxu1 %v1756_v45  ;;  %v785_v44 = vrot.slane %v1777_v31, 1 }
  0x2f   : > { %1667 = vmatpush3.bf16.msra.mxu0 %v1751_v40  ;;  %1630 = vmatprep.mubr.bf16.mxu0 %v1759_v49  ;;  %v1055_v40 = vshrl.u32 %v1780_v35, 16  ;;  %v1052_v47 = vor.u32 %v1051_v38, %v1048_v37  ;;  %v1067_v49 = vshll.u32 %v1782_v42, 16  ;;  %v192_v35 = vld [vmem:[#allocation2 + $0x20] sm:$0xff]  ;;  %v195_v37 = vld [vmem:[#allocation2 + $0x38] sm:$0xff] }
  0x30   : > { %1668 = vmatprep.subr.bf16.mxu0 %v1754_v43  ;;  %1655 = vmatmul.mubr.bf16.gmra.mrb[4].mxu1 %v528_v63  ;;  %v786_v56 = vsel %vm779_vm2, %v783_v39, %v785_v44 }
  0x31   : > { %1695 = vmatpush3.bf16.msra.mxu1 %v1756_v45  ;;  %1658 = vmatprep.mubr.bf16.mxu1 %v536_v7  ;;  %v1057_v45 = vrot.slane %v1055_v40, 1  ;;  %v1053_v58 = vsel %vm1027_vm3, %v1043_v34, %v1052_v47  ;;  %v1069_v61 = vrot.slane %v1067_v49, 2  ;;  %v788_v7 = vsel %vm779_vm2, %v785_v44, %v787_v1  ;;  %v193_v40 = vld [vmem:[#allocation2 + $0x28] sm:$0xff] }
  0x32   : > { %1696 = vmatprep.subr.bf16.mxu1 %v1758_v51 }
  0x33   : > { %1669 = vmatpush3.bf16.msra.mxu0 %v1754_v43  ;;  %v1044_v43 = vsel %vm1027_vm3, %v1035_v36, %v1043_v34  ;;  %v1070_v3 = vor.u32 %v1069_v61, %v1066_v60  ;;  %v194_v34 = vld [vmem:[#allocation2 + $0x30] sm:$0xff] }
  0x34   : > { %1670 = vmatprep.subr.bf16.mxu0 %v1757_v55 }
  0x35   : > { %1697 = vmatpush3.bf16.msra.mxu1 %v1758_v51  ;;  %v1061_v51 = vor.u32 %v1060_v46, %v1057_v45 }
  0x36   : > { %1631 = vmatmul.mubr.bf16.gmra.mrb[8].mxu0 %v1761_v62  ;;  %1698 = vmatprep.subr.bf16.mxu1 %v1764_v0  ;;  %v1785_v62 = vld [vmem:[%s1864_s7 + $0x34] ss:$0 sps:$4 sm:$0x33]   ;;  %s2020_s7 = smul.u32 12, %s1409_s13 }
  0x37   : > { %1671 = vmatpush3.bf16.msra.mxu0 %v1757_v55  ;;  %1678 = vmatprep.mubr.bf16.mxu0 %v782_v14  ;;  %v1076_v55 = vshll.u32 %v1784_v50, 16  ;;  %v1062_v63 = vsel %vm1027_vm3, %v1052_v47, %v1061_v51  ;;  %v1082_v4 = vshrl.u32 %v1785_v62, 16  ;;  %v1085_v5 = vshll.u32 %v1785_v62, 16  ;;  %v199_v62 = vld [vmem:[#allocation2 + $0x58] sm:$0xff] }
  0x38   : > { %1672 = vmatprep.subr.bf16.mxu0 %v1760_v10  ;;  %1659 = vmatmul.mubr.bf16.gmra.mrb[8].mxu1 %v544_v16  ;;  %v791_v14 = vrot.slane %v1783_v8, 1  ;;  %p169_p4 = scmp.lt.s32.totalorder %s2020_s7, 23 }
  0x39   : > { %1699 = vmatpush3.bf16.msra.mxu1 %v1764_v0  ;;  %1706 = vmatprep.mubr.bf16.mxu1 %v1044_v43  ;;  %v1075_v0 = vrot.slane %v1073_v54, 1  ;;  %v1078_v59 = vrot.slane %v1076_v55, 2  ;;  %v1084_v11 = vrot.slane %v1082_v4, 1 }
  0x3a   : > { %1700 = vmatprep.subr.bf16.mxu1 %v1766_v12  ;;  %v792_v16 = vsel %vm779_vm2, %v789_v2, %v791_v14  ;;  %s2103_s7 = smov (!%p169_p4, %s2020_s7), 23 }
  0x3b   : > { %1673 = vmatpush3.bf16.msra.mxu0 %v1760_v10  ;;  %v1079_v6 = vor.u32 %v1078_v59, %v1075_v0  ;;  %v1071_v10 = vsel %vm1027_vm3, %v1061_v51, %v1070_v3  ;;  %v197_v59 = vld [vmem:[#allocation2 + $0x48] sm:$0xff]  ;;  %s1415_s9 = sshll.u32 %s2103_s7, 2 }
  0x3c   : > { %1674 = vmatprep.subr.bf16.mxu0 %v1765_v13  ;;  %s2053_s14 = scalar_lea.vmem %s2099_s3, %s1415_s9 }
  0x3d   : > { %1701 = vmatpush3.bf16.msra.mxu1 %v1766_v12  ;;  %v1087_v12 = vrot.slane %v1085_v5, 2 }
  0x3e   : > { %1702 = vmatprep.subr.bf16.mxu1 %v1772_v18 }
  0x3f   : > { %1675 = vmatpush3.bf16.msra.mxu0 %v1765_v13  ;;  %v1080_v13 = vsel %vm1027_vm3, %v1070_v3, %v1079_v6  ;;  %v1088_v15 = vor.u32 %v1087_v12, %v1084_v11 }
  0x40   : > { %1676 = vmatprep.subr.bf16.mxu0 %v1767_v24 }
  0x41   : > { %1703 = vmatpush3.bf16.msra.mxu1 %v1772_v18  ;;  %v1089_v17 = vsel %vm1027_vm3, %v1079_v6, %v1088_v15  ;;  %v190_v18 = vld [vmem:[#allocation2 + $0x10] sm:$0xff] }
  0x42   : > { %1704 = vmatprep.subr.bf16.mxu1 %v1774_v33 }
  0x43   : > { %1677 = vmatpush3.bf16.msra.mxu0 %v1767_v24  ;;  %v189_v24 = vld [vmem:[#allocation2 + $0x8] sm:$0xff] }
  0x45   : > { %1705 = vmatpush3.bf16.msra.mxu1 %v1774_v33 }
  0x46   : > { %1679 = vmatmul.mubr.bf16.vlgmr.msra.gmra.mrb[12].mxu0 %v784_v52 }
  0x47   : > { %1682 = vmatprep.mubr.bf16.mxu0 %v786_v56  ;;  %v198_v56 = vld [vmem:[#allocation2 + $0x50] sm:$0xff] }
  0x48   : > { %1707 = vmatmul.mubr.bf16.vlgmr.msra.gmra.mrb[12].mxu1 %v1053_v58  ;;  %v196_v58 = vld [vmem:[#allocation2 + $0x40] sm:$0xff] }
  0x49   : > { %1710 = vmatprep.mubr.bf16.mxu1 %v1062_v63 }
  0x4e   : > { %1683 = vmatmul.mubr.bf16.gmra.mrb[16].mxu0 %v788_v7 }
  0x4f   : > { %1686 = vmatprep.mubr.bf16.mxu0 %v790_v9 }
  0x50   : > { %1711 = vmatmul.mubr.bf16.gmra.mrb[16].mxu1 %v1071_v10 }
  0x51   : > { %1714 = vmatprep.mubr.bf16.mxu1 %v1080_v13 }
  0x56   : > { %1687 = vmatmul.mubr.bf16.gmra.mrb[20].mxu0 %v792_v16 }
  0x58   : > { %1715 = vmatmul.mubr.bf16.gmra.mrb[20].mxu1 %v1089_v17 }
  0xf9   : > { %v1624_v20 = vpop.f32.mrb[0].mxu0 }
  0xfa   : > { %v395_v22 = vadd.f32 %v1624_v20, %v190_v18  ;;  %v346_v23 = vpop.f32.mrb[1].mxu0 }
  0xfb   : > { %v393_v25 = vadd.f32 %v346_v23, %v188_v19  ;;  %v1625_v26 = vpop.f32.mrb[2].mxu0  ;;  %v1652_v27 = vpop.f32.mrb[0].mxu1 }
  0xfc   : > { %407 = vst.msk [vmem:[#allocation2 + $0x10] sm:$0xff] %vm175_vm0, %v395_v22  ;;  %v396_v28 = vadd.f32 %v1625_v26, %v191_v21  ;;  %v349_v29 = vpop.f32.mrb[3].mxu0  ;;  %v633_v30 = vpop.f32.mrb[1].mxu1 }
  0xfd   : > { %405 = vst.msk [vmem:[#allocation2] sm:$0xff] %vm175_vm0, %v393_v25  ;;  %v394_v31 = vadd.f32 %v349_v29, %v189_v24  ;;  %v1653_v32 = vpop.f32.mrb[2].mxu1 }
  0xfe   : > { %408 = vst.msk [vmem:[#allocation2 + $0x18] sm:$0xff] %vm175_vm0, %v396_v28  ;;  %v636_v33 = vpop.f32.mrb[3].mxu1 }
  0xff   : > { %406 = vst.msk [vmem:[#allocation2 + $0x8] sm:$0xff] %vm175_vm0, %v394_v31 }
 0x101   : > { %v1628_v36 = vpop.f32.mrb[4].mxu0 }
 0x102   : > { %v399_v38 = vadd.f32 %v1628_v36, %v194_v34  ;;  %v362_v39 = vpop.f32.mrb[5].mxu0 }
 0x103   : > { %v419_v41 = vld [vmem:[#allocation2 + $0x10] sm:$0xff]  ;;  %v397_v42 = vadd.f32 %v362_v39, %v192_v35  ;;  %v1629_v43 = vpop.f32.mrb[6].mxu0  ;;  %v1656_v51 = vpop.f32.mrb[4].mxu1 }
 0x104   : > { %v682_v44 = vadd.f32 %v1652_v27, %v419_v41  ;;  %v417_v45 = vld [vmem:[#allocation2] sm:$0xff]  ;;  %411 = vst.msk [vmem:[#allocation2 + $0x30] sm:$0xff] %vm175_vm0, %v399_v38  ;;  %v400_v46 = vadd.f32 %v1629_v43, %v195_v37  ;;  %v365_v47 = vpop.f32.mrb[7].mxu0  ;;  %v649_v54 = vpop.f32.mrb[5].mxu1 }
 0x105   : > { %v680_v48 = vadd.f32 %v633_v30, %v417_v45  ;;  %v420_v49 = vld [vmem:[#allocation2 + $0x18] sm:$0xff]  ;;  %409 = vst.msk [vmem:[#allocation2 + $0x20] sm:$0xff] %vm175_vm0, %v397_v42  ;;  %v398_v50 = vadd.f32 %v365_v47, %v193_v40  ;;  %v1657_v57 = vpop.f32.mrb[6].mxu1 }
 0x106   : > { %694 = vst.msk [vmem:[#allocation2 + $0x10] sm:$0xff] %vm175_vm0, %v682_v44  ;;  %v683_v52 = vadd.f32 %v1653_v32, %v420_v49  ;;  %v418_v53 = vld [vmem:[#allocation2 + $0x8] sm:$0xff]  ;;  %412 = vst.msk [vmem:[#allocation2 + $0x38] sm:$0xff] %vm175_vm0, %v400_v46  ;;  %v652_v60 = vpop.f32.mrb[7].mxu1 }
 0x107   : > { %692 = vst.msk [vmem:[#allocation2] sm:$0xff] %vm175_vm0, %v680_v48  ;;  %v681_v55 = vadd.f32 %v636_v33, %v418_v53  ;;  %410 = vst.msk [vmem:[#allocation2 + $0x28] sm:$0xff] %vm175_vm0, %v398_v50 }
 0x108   : > { %695 = vst.msk [vmem:[#allocation2 + $0x18] sm:$0xff] %vm175_vm0, %v683_v52 }
 0x109   : > { %693 = vst.msk [vmem:[#allocation2 + $0x8] sm:$0xff] %vm175_vm0, %v681_v55  ;;  %v1632_v61 = vpop.f32.mrb[8].mxu0 }
 0x10a   : > { %v403_v63 = vadd.f32 %v1632_v61, %v198_v56  ;;  %v378_v0 = vpop.f32.mrb[9].mxu0 }
 0x10b   : > { %v401_v1 = vadd.f32 %v378_v0, %v196_v58  ;;  %v1633_v2 = vpop.f32.mrb[10].mxu0  ;;  %v423_v3 = vld [vmem:[#allocation2 + $0x30] sm:$0xff]  ;;  %v1660_v11 = vpop.f32.mrb[8].mxu1 }
 0x10c   : > { %415 = vst.msk [vmem:[#allocation2 + $0x50] sm:$0xff] %vm175_vm0, %v403_v63  ;;  %v404_v4 = vadd.f32 %v1633_v2, %v199_v62  ;;  %v686_v5 = vadd.f32 %v1656_v51, %v423_v3  ;;  %v381_v6 = vpop.f32.mrb[11].mxu0  ;;  %v421_v7 = vld [vmem:[#allocation2 + $0x20] sm:$0xff]  ;;  %v665_v14 = vpop.f32.mrb[9].mxu1 }
 0x10d   : > { %413 = vst.msk [vmem:[#allocation2 + $0x40] sm:$0xff] %vm175_vm0, %v401_v1  ;;  %v402_v8 = vadd.f32 %v381_v6, %v197_v59  ;;  %v684_v9 = vadd.f32 %v649_v54, %v421_v7  ;;  %v424_v10 = vld [vmem:[#allocation2 + $0x38] sm:$0xff]  ;;  %v1661_v16 = vpop.f32.mrb[10].mxu1  ;;  %v706_v26 = vld [vmem:[#allocation2 + $0x10] sm:$0xff]  ;;  %v2037_v7 = vld [vmem:[%s2098_s2] ss:$0 sm:$0xff] }
 0x10e   : > { %416 = vst.msk [vmem:[#allocation2 + $0x58] sm:$0xff] %vm175_vm0, %v404_v4  ;;  %698 = vst.msk [vmem:[#allocation2 + $0x30] sm:$0xff] %vm175_vm0, %v686_v5  ;;  %v687_v12 = vadd.f32 %v1657_v57, %v424_v10  ;;  %v422_v13 = vld [vmem:[#allocation2 + $0x28] sm:$0xff]  ;;  %v668_v17 = vpop.f32.mrb[11].mxu1  ;;  %v704_v29 = vld [vmem:[#allocation2] sm:$0xff] }
 0x10f   : > { %414 = vst.msk [vmem:[#allocation2 + $0x48] sm:$0xff] %vm175_vm0, %v402_v8  ;;  %696 = vst.msk [vmem:[#allocation2 + $0x20] sm:$0xff] %vm175_vm0, %v684_v9  ;;  %v685_v15 = vadd.f32 %v652_v60, %v422_v13  ;;  %v707_v32 = vld [vmem:[#allocation2 + $0x18] sm:$0xff] }
 0x110   : > { %699 = vst.msk [vmem:[#allocation2 + $0x38] sm:$0xff] %vm175_vm0, %v687_v12  ;;  %v705_v36 = vld [vmem:[#allocation2 + $0x8] sm:$0xff] }
 0x111   : > { %697 = vst.msk [vmem:[#allocation2 + $0x28] sm:$0xff] %vm175_vm0, %v685_v15 }
 0x113   : > { %v427_v18 = vld [vmem:[#allocation2 + $0x50] sm:$0xff] }
 0x114   : > { %v690_v19 = vadd.f32 %v1660_v11, %v427_v18  ;;  %v425_v20 = vld [vmem:[#allocation2 + $0x40] sm:$0xff] }
 0x115   : > { %v688_v21 = vadd.f32 %v665_v14, %v425_v20  ;;  %v428_v22 = vld [vmem:[#allocation2 + $0x58] sm:$0xff]  ;;  %v710_v42 = vld [vmem:[#allocation2 + $0x30] sm:$0xff] }
 0x116   : > { %702 = vst.msk [vmem:[#allocation2 + $0x50] sm:$0xff] %vm175_vm0, %v690_v19  ;;  %v691_v23 = vadd.f32 %v1661_v16, %v428_v22  ;;  %v426_v24 = vld [vmem:[#allocation2 + $0x48] sm:$0xff]  ;;  %v708_v45 = vld [vmem:[#allocation2 + $0x20] sm:$0xff] }
 0x117   : > { %700 = vst.msk [vmem:[#allocation2 + $0x40] sm:$0xff] %vm175_vm0, %v688_v21  ;;  %v689_v25 = vadd.f32 %v668_v17, %v426_v24  ;;  %v711_v49 = vld [vmem:[#allocation2 + $0x38] sm:$0xff] }
 0x118   : > { %703 = vst.msk [vmem:[#allocation2 + $0x58] sm:$0xff] %vm175_vm0, %v691_v23  ;;  %v709_v55 = vld [vmem:[#allocation2 + $0x28] sm:$0xff] }
 0x119   : > { %v1680_v27 = vpop.f32.mrb[12].mxu0  ;;  %701 = vst.msk [vmem:[#allocation2 + $0x48] sm:$0xff] %vm175_vm0, %v689_v25 }
 0x11a   : > { %v930_v28 = vadd.f32 %v1680_v27, %v706_v26  ;;  %v881_v30 = vpop.f32.mrb[13].mxu0 }
 0x11b   : > { %v928_v31 = vadd.f32 %v881_v30, %v704_v29  ;;  %v1681_v33 = vpop.f32.mrb[14].mxu0  ;;  %v1708_v34 = vpop.f32.mrb[12].mxu1 }
 0x11c   : > { %942 = vst.msk [vmem:[#allocation2 + $0x10] sm:$0xff] %vm175_vm0, %v930_v28  ;;  %v931_v35 = vadd.f32 %v1681_v33, %v707_v32  ;;  %v884_v37 = vpop.f32.mrb[15].mxu0  ;;  %v1178_v38 = vpop.f32.mrb[13].mxu1 }
 0x11d   : > { %940 = vst.msk [vmem:[#allocation2] sm:$0xff] %vm175_vm0, %v928_v31  ;;  %v929_v39 = vadd.f32 %v884_v37, %v705_v36  ;;  %v1709_v40 = vpop.f32.mrb[14].mxu1  ;;  %v714_v2 = vld [vmem:[#allocation2 + $0x50] sm:$0xff] }
 0x11e   : > { %943 = vst.msk [vmem:[#allocation2 + $0x18] sm:$0xff] %vm175_vm0, %v931_v35  ;;  %v1181_v41 = vpop.f32.mrb[15].mxu1  ;;  %v712_v5 = vld [vmem:[#allocation2 + $0x40] sm:$0xff] }
 0x11f   : > { %941 = vst.msk [vmem:[#allocation2 + $0x8] sm:$0xff] %vm175_vm0, %v929_v39  ;;  %v715_v10 = vld [vmem:[#allocation2 + $0x58] sm:$0xff] }
 0x120   : > { %v713_v16 = vld [vmem:[#allocation2 + $0x48] sm:$0xff] }
 0x121   : > { %v1684_v43 = vpop.f32.mrb[16].mxu0 }
 0x122   : > { %v934_v44 = vadd.f32 %v1684_v43, %v710_v42  ;;  %v897_v46 = vpop.f32.mrb[17].mxu0 }
 0x123   : > { %v954_v47 = vld [vmem:[#allocation2 + $0x10] sm:$0xff]  ;;  %v932_v48 = vadd.f32 %v897_v46, %v708_v45  ;;  %v1685_v50 = vpop.f32.mrb[18].mxu0  ;;  %v1712_v51 = vpop.f32.mrb[16].mxu1 }
 0x124   : > { %v1227_v52 = vadd.f32 %v1708_v34, %v954_v47  ;;  %946 = vst.msk [vmem:[#allocation2 + $0x30] sm:$0xff] %vm175_vm0, %v934_v44  ;;  %v952_v53 = vld [vmem:[#allocation2] sm:$0xff]  ;;  %v935_v54 = vadd.f32 %v1685_v50, %v711_v49  ;;  %v900_v56 = vpop.f32.mrb[19].mxu0  ;;  %v1194_v57 = vpop.f32.mrb[17].mxu1 }
 0x125   : > { %v1225_v58 = vadd.f32 %v1178_v38, %v952_v53  ;;  %944 = vst.msk [vmem:[#allocation2 + $0x20] sm:$0xff] %vm175_vm0, %v932_v48  ;;  %v955_v60 = vld [vmem:[#allocation2 + $0x18] sm:$0xff]  ;;  %v933_v61 = vadd.f32 %v900_v56, %v709_v55  ;;  %v1713_v62 = vpop.f32.mrb[18].mxu1 }
 0x126   : > { %1239 = vst.msk [vmem:[#allocation2 + $0x10] sm:$0xff] %vm175_vm0, %v1227_v52  ;;  %v1228_v63 = vadd.f32 %v1709_v40, %v955_v60  ;;  %947 = vst.msk [vmem:[#allocation2 + $0x38] sm:$0xff] %vm175_vm0, %v935_v54  ;;  %v953_v0 = vld [vmem:[#allocation2 + $0x8] sm:$0xff]  ;;  %v1197_v59 = vpop.f32.mrb[19].mxu1 }
 0x127   : > { %1237 = vst.msk [vmem:[#allocation2] sm:$0xff] %vm175_vm0, %v1225_v58  ;;  %v1226_v1 = vadd.f32 %v1181_v41, %v953_v0  ;;  %945 = vst.msk [vmem:[#allocation2 + $0x28] sm:$0xff] %vm175_vm0, %v933_v61 }
 0x128   : > { %1240 = vst.msk [vmem:[#allocation2 + $0x18] sm:$0xff] %vm175_vm0, %v1228_v63 }
 0x129   : > { %1238 = vst.msk [vmem:[#allocation2 + $0x8] sm:$0xff] %vm175_vm0, %v1226_v1  ;;  %v1688_v3 = vpop.f32.mrb[20].mxu0 }
 0x12a   : > { %v938_v4 = vadd.f32 %v1688_v3, %v714_v2  ;;  %v913_v6 = vpop.f32.mrb[21].mxu0 }
 0x12b   : > { %v958_v8 = vld [vmem:[#allocation2 + $0x30] sm:$0xff]  ;;  %v936_v9 = vadd.f32 %v913_v6, %v712_v5  ;;  %v1689_v11 = vpop.f32.mrb[22].mxu0  ;;  %v1716_v12 = vpop.f32.mrb[20].mxu1 }
 0x12c   : > { %v1231_v13 = vadd.f32 %v1712_v51, %v958_v8  ;;  %950 = vst.msk [vmem:[#allocation2 + $0x50] sm:$0xff] %vm175_vm0, %v938_v4  ;;  %v956_v14 = vld [vmem:[#allocation2 + $0x20] sm:$0xff]  ;;  %v939_v15 = vadd.f32 %v1689_v11, %v715_v10  ;;  %v916_v17 = vpop.f32.mrb[23].mxu0  ;;  %v1210_v18 = vpop.f32.mrb[21].mxu1 }
 0x12d   : > { %v1251_v19 = vld [vmem:[#allocation2 + $0x10] sm:$0xff]  ;;  %v1229_v20 = vadd.f32 %v1194_v57, %v956_v14  ;;  %948 = vst.msk [vmem:[#allocation2 + $0x40] sm:$0xff] %vm175_vm0, %v936_v9  ;;  %v959_v21 = vld [vmem:[#allocation2 + $0x38] sm:$0xff]  ;;  %v937_v22 = vadd.f32 %v916_v17, %v713_v16  ;;  %v1717_v23 = vpop.f32.mrb[22].mxu1 }
 0x12e   : > { %v1270_v24 = vadd.f32 %v2037_v7, %v1251_v19  ;;  %v1249_v25 = vld [vmem:[#allocation2] sm:$0xff]  ;;  %1243 = vst.msk [vmem:[#allocation2 + $0x30] sm:$0xff] %vm175_vm0, %v1231_v13  ;;  %v1232_v26 = vadd.f32 %v1713_v62, %v959_v21  ;;  %951 = vst.msk [vmem:[#allocation2 + $0x58] sm:$0xff] %vm175_vm0, %v939_v15  ;;  %v957_v27 = vld [vmem:[#allocation2 + $0x28] sm:$0xff]  ;;  %v1213_v28 = vpop.f32.mrb[23].mxu1 }
 0x12f   : > { %v1268_v29 = vadd.f32 %v2037_v7, %v1249_v25  ;;  %v1252_v30 = vld [vmem:[#allocation2 + $0x18] sm:$0xff]  ;;  %1241 = vst.msk [vmem:[#allocation2 + $0x20] sm:$0xff] %vm175_vm0, %v1229_v20  ;;  %v1230_v31 = vadd.f32 %v1197_v59, %v957_v27  ;;  %949 = vst.msk [vmem:[#allocation2 + $0x48] sm:$0xff] %vm175_vm0, %v937_v22 }
 0x130   : > { %v1282_v32 = vmax.f32 %v1270_v24, 0.0  ;;  %v1271_v33 = vadd.f32 %v2037_v7, %v1252_v30  ;;  %v1250_v34 = vld [vmem:[#allocation2 + $0x8] sm:$0xff]  ;;  %1244 = vst.msk [vmem:[#allocation2 + $0x38] sm:$0xff] %vm175_vm0, %v1232_v26 }
 0x131   : > { %v1280_v35 = vmax.f32 %v1268_v29, 0.0  ;;  %v1269_v36 = vadd.f32 %v2037_v7, %v1250_v34  ;;  %1242 = vst.msk [vmem:[#allocation2 + $0x28] sm:$0xff] %vm175_vm0, %v1230_v31 }
 0x132   : > { %v1540_v37 = vpack.c.bf16 %v1282_v32, %v1282_v32  ;;  %v1283_v38 = vmax.f32 %v1271_v33, 0.0 }
 0x133   : > { %v1538_v39 = vpack.c.bf16 %v1280_v35, %v1280_v35  ;;  %v1281_v40 = vmax.f32 %v1269_v36, 0.0  ;;  %v962_v41 = vld [vmem:[#allocation2 + $0x50] sm:$0xff] }
 0x134   : > { %1343 = vst.msk [vmem:[%s2053_s14 + $0x8] sm:$0xf] %vm1340_vm4, %v1540_v37  ;;  %v1541_v42 = vpack.c.bf16 %v1283_v38, %v1283_v38  ;;  %v1235_v43 = vadd.f32 %v1716_v12, %v962_v41  ;;  %v960_v44 = vld [vmem:[#allocation2 + $0x40] sm:$0xff] }
 0x135   : > { %1341 = vst.msk [vmem:[%s2053_s14] sm:$0xf] %vm1340_vm4, %v1538_v39  ;;  %v1539_v45 = vpack.c.bf16 %v1281_v40, %v1281_v40  ;;  %v1255_v46 = vld [vmem:[#allocation2 + $0x30] sm:$0xff]  ;;  %v1233_v47 = vadd.f32 %v1210_v18, %v960_v44  ;;  %v963_v48 = vld [vmem:[#allocation2 + $0x58] sm:$0xff] }
 0x136   : > { %1344 = vst.msk [vmem:[%s2053_s14 + $0xc] sm:$0xf] %vm1340_vm4, %v1541_v42  ;;  %v1274_v49 = vadd.f32 %v2037_v7, %v1255_v46  ;;  %v1253_v50 = vld [vmem:[#allocation2 + $0x20] sm:$0xff]  ;;  %v1236_v51 = vadd.f32 %v1717_v23, %v963_v48  ;;  %v961_v52 = vld [vmem:[#allocation2 + $0x48] sm:$0xff] }
 0x137   : > { %1247 = vst.msk [vmem:[#allocation2 + $0x50] sm:$0xff] %vm175_vm0, %v1235_v43  ;;  %v1272_v53 = vadd.f32 %v2037_v7, %v1253_v50  ;;  %v1256_v54 = vld [vmem:[#allocation2 + $0x38] sm:$0xff]  ;;  %1245 = vst.msk [vmem:[#allocation2 + $0x40] sm:$0xff] %vm175_vm0, %v1233_v47  ;;  %v1234_v55 = vadd.f32 %v1213_v28, %v961_v52 }
 0x138   : > { %1342 = vst.msk [vmem:[%s2053_s14 + $0x4] sm:$0xf] %vm1340_vm4, %v1539_v45  ;;  %v1286_v56 = vmax.f32 %v1274_v49, 0.0  ;;  %v1275_v57 = vadd.f32 %v2037_v7, %v1256_v54  ;;  %v1254_v58 = vld [vmem:[#allocation2 + $0x28] sm:$0xff] }
 0x139   : > { %1248 = vst.msk [vmem:[#allocation2 + $0x58] sm:$0xff] %vm175_vm0, %v1236_v51  ;;  %v1284_v60 = vmax.f32 %v1272_v53, 0.0  ;;  %v1273_v61 = vadd.f32 %v2037_v7, %v1254_v58  ;;  %1246 = vst.msk [vmem:[#allocation2 + $0x48] sm:$0xff] %vm175_vm0, %v1234_v55 }
 0x13a   : > { %v1544_v62 = vpack.c.bf16 %v1286_v56, %v1286_v56  ;;  %v1287_v63 = vmax.f32 %v1275_v57, 0.0 }
 0x13b   : > { %v1542_v0 = vpack.c.bf16 %v1284_v60, %v1284_v60  ;;  %v1285_v59 = vmax.f32 %v1273_v61, 0.0 }
 0x13c   : > { %1347 = vst.msk [vmem:[%s2053_s14 + $0x18] sm:$0xf] %vm1340_vm4, %v1544_v62  ;;  %v1545_v1 = vpack.c.bf16 %v1287_v63, %v1287_v63 }
 0x13d   : > { %1345 = vst.msk [vmem:[%s2053_s14 + $0x10] sm:$0xf] %vm1340_vm4, %v1542_v0  ;;  %v1543_v2 = vpack.c.bf16 %v1285_v59, %v1285_v59 }
 0x13e   : > { %v1259_v3 = vld [vmem:[#allocation2 + $0x50] sm:$0xff]  ;;  %1348 = vst.msk [vmem:[%s2053_s14 + $0x1c] sm:$0xf] %vm1340_vm4, %v1545_v1  ;;  %v1257_v5 = vld [vmem:[#allocation2 + $0x40] sm:$0xff] }
 0x13f   : > { %v1278_v4 = vadd.f32 %v2037_v7, %v1259_v3  ;;  %1346 = vst.msk [vmem:[%s2053_s14 + $0x14] sm:$0xf] %vm1340_vm4, %v1543_v2  ;;  %v1276_v6 = vadd.f32 %v2037_v7, %v1257_v5 }
 0x140   : > { %v1260_v8 = vld [vmem:[#allocation2 + $0x58] sm:$0xff]  ;;  %v1258_v11 = vld [vmem:[#allocation2 + $0x48] sm:$0xff] }
 0x141   : > { %v1290_v9 = vmax.f32 %v1278_v4, 0.0  ;;  %v1279_v10 = vadd.f32 %v2037_v7, %v1260_v8  ;;  %v1288_v12 = vmax.f32 %v1276_v6, 0.0  ;;  %v1277_v13 = vadd.f32 %v2037_v7, %v1258_v11 }
 0x143   : > { %v1548_v14 = vpack.c.bf16 %v1290_v9, %v1290_v9  ;;  %v1291_v15 = vmax.f32 %v1279_v10, 0.0  ;;  %v1546_v16 = vpack.c.bf16 %v1288_v12, %v1288_v12  ;;  %v1289_v17 = vmax.f32 %v1277_v13, 0.0 }
 0x145   : > { %1351 = vst.msk [vmem:[%s2053_s14 + $0x28] sm:$0xf] %vm1340_vm4, %v1548_v14  ;;  %v1549_v18 = vpack.c.bf16 %v1291_v15, %v1291_v15  ;;  %1349 = vst.msk [vmem:[%s2053_s14 + $0x20] sm:$0xf] %vm1340_vm4, %v1546_v16  ;;  %v1547_v19 = vpack.c.bf16 %v1289_v17, %v1289_v17 }
 0x147   : > { %1352 = vst.msk [vmem:[%s2053_s14 + $0x2c] sm:$0xf] %vm1340_vm4, %v1549_v18  ;;  %1350 = vst.msk [vmem:[%s2053_s14 + $0x24] sm:$0xf] %vm1340_vm4, %v1547_v19 }
 0x148 PF: > { %s13_s12 = sadd.s32 1, %s1792_s12  }
 0x149   : > { %p10_p5 = scmp.ge.s32.totalorder %s13_s12, 4  }
 0x14b   :  { %12 = sbr.rel (!%p10_p5) target bundleno = 1 (0x1), region = 65 }

// kernel: policy_forward.6
= control target key start
LH: loop header
LB: loop body
LE: loop exit
PB: predicated region body
PF: predicated region fallthrough
CT: control target
= control target key end

     0   :  { %s2550_s12 = smov 0   ;;  %s2894_s0 = inlined_call_operand.vmem [shape: bf16[192,64], index: 0, kind: input, shape index: {}]   ;;  %s2895_s1 = inlined_call_operand.vmem [shape: bf16[9,64,64], index: 1, kind: input, shape index: {}]   ;;  %s2896_s2 = inlined_call_operand.vmem [shape: f32[1,64], index: 2, kind: input, shape index: {}]   ;;  %s2897_s3 = inlined_call_operand.vmem [shape: bf16[128,64], index: 3, kind: output, shape index: {}]  }
   0x1 LB: > { %s2001_s13 = sadd.s32 4294967295, %s2527_s12   ;;  %p2005_p0 = scmp.ge.s32.totalorder %s2527_s12, 1  ;;  %s2527_s12 = sphi %s2550_s12, %s13_s12  }
   0x2   : > { %p138_p1 = scmp.lt.s32.totalorder %s2527_s12, 3 }
   0x4   : > { %p139_p2 = pnand %p2005_p0, %p138_p1 }
   0x5   : > { %v2441_v0 = vld [vmem:[%s2895_s1] sm:$0xff] (!%p139_p2)   ;;  %s162_s16 = smul.u32 (!%p139_p2), 12, %s2001_s13  ;;  %v2442_v1 = vld [vmem:[%s2895_s1 + $0x8] sm:$0xff] (!%p139_p2)   ;;  %v2444_v3 = vld [vmem:[%s2895_s1 + $0x10] sm:$0xff] (!%p139_p2)   ;;  %vm175_vm0 = vcmask (!%p139_p2), 523264   ;;  %v2529_v8 = vmov (!%p139_p2), 0.0  }
   0x6   : > { %142 = sbr.rel (%p139_p2) target bundleno = 342 (0x156), region = 32  ;;  %2280 = vmatprep.subr.bf16.mxu0 (!%p139_p2), %v2441_v0  ;;  %v2443_v2 = vld [vmem:[%s2895_s1 + $0x20] sm:$0xff] (!%p139_p2)   ;;  %v2445_v4 = vld [vmem:[%s2895_s1 + $0x28] sm:$0xff] (!%p139_p2)   ;;  %v2448_v5 = vld [vmem:[%s2895_s1 + $0x30] sm:$0xff] (!%p139_p2)   ;;  %178 = vst.msk [vmem:[#allocation2 + $0x10] sm:$0xff] (!%p139_p2), %vm175_vm0, %v2529_v8  ;;  %vm597_vm2 = vcmask (!%p139_p2), 1046528  }
   0x7   : > { %p163_p3 = scmp.lt.s32.totalorder (!%p139_p2), %s162_s16, 23  ;;  %2281 = vmatpush3.bf16.msra.mxu0 (!%p139_p2), %v2441_v0  ;;  %2296 = vmatprep.subr.bf16.mxu1 (!%p139_p2), %v2443_v2  ;;  %v2446_v6 = vld [vmem:[%s2895_s1 + $0x18] sm:$0xff] (!%p139_p2)   ;;  %176 = vst.msk [vmem:[#allocation2] sm:$0xff] (!%p139_p2), %vm175_vm0, %v2529_v8  ;;  %177 = vst.msk [vmem:[#allocation2 + $0x8] sm:$0xff] (!%p139_p2), %vm175_vm0, %v2529_v8  ;;  %v2450_v10 = vld [vmem:[%s2895_s1 + $0x40] sm:$0xff] (!%p139_p2)   ;;  %vm1746_vm4 = vcmask (!%p139_p2), 1045504  }
   0x8   : > { %2282 = vmatprep.subr.bf16.mxu0 (!%p139_p2), %v2442_v1  ;;  %2297 = vmatpush3.bf16.msra.mxu1 (!%p139_p2), %v2443_v2  ;;  %179 = vst.msk [vmem:[#allocation2 + $0x18] sm:$0xff] (!%p139_p2), %vm175_vm0, %v2529_v8  ;;  %180 = vst.msk [vmem:[#allocation2 + $0x20] sm:$0xff] (!%p139_p2), %vm175_vm0, %v2529_v8  ;;  %v2451_v9 = vld [vmem:[%s2895_s1 + $0x38] sm:$0xff] (!%p139_p2)   ;;  %v2452_v14 = vld [vmem:[%s2895_s1 + $0x48] sm:$0xff] (!%p139_p2)   ;;  %vm394_vm1 = vsmask.f32 (!%p139_p2), 7424 }
   0x9   : > { %2298 = vmatprep.subr.bf16.mxu1 (!%p139_p2), %v2445_v4  ;;  %181 = vst.msk [vmem:[#allocation2 + $0x28] sm:$0xff] (!%p139_p2), %vm175_vm0, %v2529_v8  ;;  %182 = vst.msk [vmem:[#allocation2 + $0x30] sm:$0xff] (!%p139_p2), %vm175_vm0, %v2529_v8  ;;  %v2459_v24 = vld [vmem:[%s2895_s1 + $0x60] sm:$0xff] (!%p139_p2)   ;;  %v2458_v29 = vld [vmem:[%s2895_s1 + $0x50] sm:$0xff] (!%p139_p2)   ;;  %vm1150_vm3 = vsmask.f32 (!%p139_p2), 6400 }
   0xa   : > { %183 = vst.msk [vmem:[#allocation2 + $0x38] sm:$0xff] (!%p139_p2), %vm175_vm0, %v2529_v8  ;;  %v2460_v34 = vld [vmem:[%s2895_s1 + $0x58] sm:$0xff] (!%p139_p2)   ;;  %v2463_v36 = vld [vmem:[%s2895_s1 + $0x68] sm:$0xff] (!%p139_p2)   ;;  %v2467_v51 = vld [vmem:[%s2895_s1 + $0x70] sm:$0xff] (!%p139_p2)   ;;  %vm1936_vm5 = vcmask (!%p139_p2), 519168  }
   0xb   : > { %2283 = vmatpush3.bf16.msra.mxu0 (!%p139_p2), %v2442_v1  ;;  %v2468_v54 = vld [vmem:[%s2895_s1 + $0x80] sm:$0xff] (!%p139_p2)   ;;  %v2469_v55 = vld [vmem:[%s2895_s1 + $0x78] sm:$0xff] (!%p139_p2)   ;;  %v2472_v59 = vld [vmem:[%s2895_s1 + $0x88] sm:$0xff] (!%p139_p2)  }
   0xc   : > { %2284 = vmatprep.subr.bf16.mxu0 (!%p139_p2), %v2444_v3  ;;  %2299 = vmatpush3.bf16.msra.mxu1 (!%p139_p2), %v2445_v4  ;;  %v2476_v4 = vld [vmem:[%s2895_s1 + $0x90] sm:$0xff] (!%p139_p2)  }
   0xd   : > { %s2899_s16 = smov (!%p163_p3, %s162_s16), 23  ;;  %2300 = vmatprep.subr.bf16.mxu1 %v2448_v5 }
   0xe   : > { %s2006_s25 = sshll.u32 %s2899_s16, 2 }
   0xf   : > { %s2584_s5 = scalar_lea.vmem %s2894_s0, %s2006_s25  ;;  %2285 = vmatpush3.bf16.msra.mxu0 %v2444_v3 }
  0x10   : > { %v2447_v7 = vld [vmem:[%s2584_s5] sm:$0xff]   ;;  %2286 = vmatprep.subr.bf16.mxu0 %v2446_v6  ;;  %v2449_v11 = vld [vmem:[%s2584_s5 + $0x8] sm:$0xff]   ;;  %2301 = vmatpush3.bf16.msra.mxu1 %v2448_v5  ;;  %v2455_v15 = vld [vmem:[%s2584_s5 + $0x10] sm:$0xff]  }
  0x11   : > { %2288 = vmatprep.mubr.msk.bf16.mxu0 %vm175_vm0, %v2447_v7  ;;  %v2453_v12 = vld [vmem:[%s2584_s5] sm:$0xff]   ;;  %v2454_v13 = vld [vmem:[%s2584_s5 + $0x8] sm:$0xff]   ;;  %2302 = vmatprep.subr.bf16.mxu1 %v2451_v9  ;;  %v2456_v20 = vld [vmem:[%s2584_s5 + $0x10] sm:$0xff]  }
  0x12   : > { %v396_v16 = vshrl.u32 %v2453_v12, 16  ;;  %v398_v17 = vshll.u32 %v2453_v12, 16  ;;  %v403_v18 = vshll.u32 %v2454_v13, 16  ;;  %v407_v19 = vshrl.u32 %v2454_v13, 16  ;;  %v2457_v28 = vld [vmem:[%s2584_s5 + $0x18] sm:$0xff]   ;;  %v2465_v41 = vld [vmem:[%s2584_s5 + $0x8] sm:$0xff]  }
  0x13   : > { %2287 = vmatpush3.bf16.msra.mxu0 %v2446_v6  ;;  %v411_v23 = vshll.u32 %v2456_v20, 16  ;;  %v2461_v31 = vld [vmem:[%s2584_s5 + $0x18] sm:$0xff]   ;;  %v415_v32 = vshrl.u32 %v2456_v20, 16  ;;  %v2462_v35 = vld [vmem:[%s2584_s5 + $0x20] ss:$0 sps:$4 sm:$0x11]  }
  0x14   : > { %2312 = vmatprep.subr.bf16.mxu0 %v2450_v10  ;;  %2303 = vmatpush3.bf16.msra.mxu1 %v2451_v9  ;;  %v400_v21 = vrot.slane %v398_v17, 1  ;;  %v405_v22 = vrot.slane %v403_v18, 1  ;;  %v419_v38 = vshll.u32 %v2461_v31, 16  ;;  %v423_v39 = vshrl.u32 %v2461_v31, 16  ;;  %v2464_v43 = vld [vmem:[%s2584_s5] sm:$0xfe]  }
  0x15   : > { %v413_v27 = vrot.slane %v411_v23, 1  ;;  %2328 = vmatprep.subr.bf16.mxu1 %v2459_v24  ;;  %v427_v40 = vshll.u32 %v2462_v35, 16  ;;  %v2466_v44 = vld [vmem:[%s2584_s5 + $0x10] sm:$0xff]   ;;  %v599_v46 = vrot.slane %v2465_v41, 1  ;;  %v598_v49 = vrot.slane %v2464_v43, 1  ;;  %v2470_v57 = vld [vmem:[%s2584_s5 + $0x18] sm:$0xff]  }
  0x16   : > { %2289 = vmatmul.mubr.msk.bf16.vlgmr.msra.gmra.mrb[0].mxu0 %vm175_vm0, %v2449_v11  ;;  %v401_v25 = vor.u32 %v400_v21, %v396_v16  ;;  %v409_v26 = vor.u32 %v407_v19, %v405_v22  ;;  %v421_v42 = vrot.slane %v419_v38, 1  ;;  %v601_v50 = vrot.slane %v2466_v44, 1  ;;  %v2471_v58 = vld [vmem:[%s2584_s5 + $0x20] ss:$0 sps:$4 sm:$0x11]   ;;  %v2473_v61 = vld [vmem:[%s2584_s5 + $0x4] sm:$0xff]  }
  0x17   : > { %2313 = vmatpush3.bf16.msra.mxu0 %v2450_v10  ;;  %2292 = vmatprep.mubr.msk.bf16.mxu0 %vm175_vm0, %v2455_v15  ;;  %v417_v37 = vor.u32 %v415_v32, %v413_v27  ;;  %v429_v45 = vrot.slane %v427_v40, 1  ;;  %v600_v53 = vsel %vm597_vm2, %v598_v49, %v599_v46  ;;  %v603_v60 = vrot.slane %v2470_v57, 1  ;;  %v2474_v0 = vld [vmem:[%s2584_s5 + $0xc] sm:$0xff]   ;;  %v2475_v3 = vld [vmem:[%s2584_s5 + $0x14] sm:$0xff]   ;;  %v2477_v9 = vld [vmem:[%s2895_s1 + $0xa0] sm:$0xff]  }
  0x18   : > { %2314 = vmatprep.subr.bf16.mxu0 %v2452_v14  ;;  %v406_v30 = vsel %vm394_vm1, %v401_v25, %v405_v22  ;;  %v414_v33 = vsel %vm394_vm1, %v409_v26, %v413_v27  ;;  %v425_v48 = vor.u32 %v423_v39, %v421_v42  ;;  %v602_v56 = vsel %vm597_vm2, %v599_v46, %v601_v50  ;;  %v2478_v10 = vld [vmem:[%s2895_s1 + $0x98] sm:$0xff]   ;;  %v2480_v19 = vld [vmem:[%s2584_s5 + $0x24] ss:$0 sps:$4 sm:$0x11]   ;;  %v2481_v23 = vld [vmem:[%s2895_s1 + $0xa8] sm:$0xff]  }
  0x19   : > { %2304 = vmatprep.mubr.msk.bf16.mxu1 %vm175_vm0, %v406_v30  ;;  %v422_v47 = vsel %vm394_vm1, %v417_v37, %v421_v42  ;;  %v604_v62 = vsel %vm597_vm2, %v601_v50, %v603_v60  ;;  %v605_v63 = vrot.slane %v2471_v58, 1  ;;  %v774_v1 = vshrl.u32 %v2473_v61, 16  ;;  %v2479_v13 = vld [vmem:[%s2584_s5 + $0x1c] sm:$0xff]   ;;  %v2482_v27 = vld [vmem:[%s2584_s5 + $0x4] sm:$0xfe]   ;;  %v2483_v31 = vld [vmem:[%s2584_s5 + $0xc] sm:$0xff]  }
  0x1a   : > { %2305 = vmatmul.mubr.msk.bf16.vlgmr.msra.gmra.mrb[0].mxu1 %vm175_vm0, %v414_v33  ;;  %v430_v52 = vsel %vm394_vm1, %v425_v48, %v429_v45  ;;  %v776_v2 = vshll.u32 %v2473_v61, 16  ;;  %v781_v5 = vshll.u32 %v2474_v0, 16  ;;  %v785_v6 = vshrl.u32 %v2474_v0, 16  ;;  %v2484_v33 = vld [vmem:[%s2584_s5 + $0x14] sm:$0xff]   ;;  %v2486_v37 = vld [vmem:[%s2895_s1 + $0xc0] sm:$0xff]   ;;  %v2490_v44 = vld [vmem:[%s2895_s1 + $0xc8] sm:$0xff]  }
  0x1b   : > { %2315 = vmatpush3.bf16.msra.mxu0 %v2452_v14  ;;  %2329 = vmatpush3.bf16.msra.mxu1 %v2459_v24  ;;  %v789_v8 = vshll.u32 %v2475_v3, 16  ;;  %v606_v11 = vsel %vm597_vm2, %v603_v60, %v605_v63  ;;  %v793_v16 = vshrl.u32 %v2475_v3, 16  ;;  %v797_v18 = vshll.u32 %v2479_v13, 16  ;;  %v2485_v35 = vld [vmem:[%s2895_s1 + $0xb0] sm:$0xff]   ;;  %v2487_v40 = vld [vmem:[%s2895_s1 + $0xb8] sm:$0xff]   ;;  %v2495_v61 = vld [vmem:[%s2895_s1 + $0xe0] sm:$0xff]  }
  0x1c   : > { %2316 = vmatprep.subr.bf16.mxu0 %v2458_v29  ;;  %2330 = vmatprep.subr.bf16.mxu1 %v2463_v36  ;;  %v778_v7 = vrot.slane %v776_v2, 1  ;;  %v783_v12 = vrot.slane %v781_v5, 1  ;;  %v801_v22 = vshrl.u32 %v2479_v13, 16  ;;  %v805_v26 = vshll.u32 %v2480_v19, 16  ;;  %v2488_v42 = vld [vmem:[%s2584_s5 + $0x1c] sm:$0xff]   ;;  %v2492_v49 = vld [vmem:[%s2584_s5 + $0xc] sm:$0xff]  }
  0x1d   : > { %2308 = vmatprep.mubr.msk.bf16.mxu1 %vm175_vm0, %v422_v47  ;;  %v791_v15 = vrot.slane %v789_v8, 1  ;;  %v799_v25 = vrot.slane %v797_v18, 1  ;;  %v975_v32 = vrot.slane %v2482_v27, 1  ;;  %v2489_v43 = vld [vmem:[%s2584_s5 + $0x24] ss:$0 sps:$4 sm:$0x11]  }
  0x1e   : > { %2293 = vmatmul.mubr.msk.bf16.gmra.mrb[4].mxu0 %vm175_vm0, %v2457_v28  ;;  %v779_v14 = vor.u32 %v778_v7, %v774_v1  ;;  %v787_v17 = vor.u32 %v785_v6, %v783_v12  ;;  %v807_v30 = vrot.slane %v805_v26, 1  ;;  %v980_v45 = vrot.slane %v2488_v42, 1  ;;  %v2491_v47 = vld [vmem:[%s2584_s5 + $0x4] sm:$0xfe]   ;;  %v2493_v50 = vld [vmem:[%s2584_s5 + $0x14] sm:$0xff]   ;;  %v2497_v6 = vld [vmem:[%s2584_s5 + $0x1c] sm:$0xff]  }
  0x1f   : > { %2317 = vmatpush3.bf16.msra.mxu0 %v2458_v29  ;;  %2331 = vmatpush3.bf16.msra.mxu1 %v2463_v36  ;;  %v795_v21 = vor.u32 %v793_v16, %v791_v15  ;;  %v803_v29 = vor.u32 %v801_v22, %v799_v25  ;;  %v978_v36 = vrot.slane %v2484_v33, 1  ;;  %v982_v46 = vrot.slane %v2489_v43, 1  ;;  %v2494_v60 = vld [vmem:[%s2895_s1 + $0xd0] sm:$0xff]   ;;  %v2496_v3 = vld [vmem:[%s2895_s1 + $0xd8] sm:$0xff]   ;;  %v2499_v8 = vld [vmem:[%s2895_s1 + $0xe8] sm:$0xff]  }
  0x20   : > { %2318 = vmatprep.subr.bf16.mxu0 %v2460_v34  ;;  %2320 = vmatprep.mubr.msk.bf16.mxu0 %vm175_vm0, %v600_v53  ;;  %v784_v20 = vsel %vm394_vm1, %v779_v14, %v783_v12  ;;  %v792_v24 = vsel %vm394_vm1, %v787_v17, %v791_v15  ;;  %v1155_v53 = vshll.u32 %v2491_v47, 16  ;;  %v1172_v57 = vshll.u32 %v2493_v50, 16  ;;  %v2498_v7 = vld [vmem:[%s2584_s5 + $0x24] ss:$0 sps:$4 sm:$0x33]   ;;  %v2503_v27 = vld [vmem:[%s2895_s1 + $0xf0] sm:$0xff]  }
  0x21   : > { %2332 = vmatprep.subr.bf16.mxu1 %v2467_v51  ;;  %v800_v28 = vsel %vm394_vm1, %v795_v21, %v799_v25  ;;  %v808_v38 = vsel %vm394_vm1, %v803_v29, %v807_v30  ;;  %v981_v48 = vsel %vm597_vm2, %v978_v36, %v980_v45  ;;  %v1181_v12 = vshll.u32 %v2497_v6, 16  ;;  %v2500_v19 = vld [vmem:[%s2584_s5 + $0x8] sm:$0xfe]   ;;  %v2502_v21 = vld [vmem:[%s2584_s5 + $0x18] sm:$0xff]   ;;  %v2505_v33 = vld [vmem:[%s2584_s5 + $0x20] sm:$0xff]  }
  0x22   : > { %2309 = vmatmul.mubr.msk.bf16.gmra.mrb[4].mxu1 %vm175_vm0, %v430_v52  ;;  %v1152_v52 = vshrl.u32 %v2491_v47, 16  ;;  %v1174_v1 = vrot.slane %v1172_v57, 2  ;;  %v1187_v13 = vshrl.u32 %v2498_v7, 16  ;;  %v1190_v14 = vshll.u32 %v2498_v7, 16  ;;  %v2504_v29 = vld [vmem:[%s2895_s1 + $0xf8] sm:$0xff]  }
  0x23   : > { %2319 = vmatpush3.bf16.msra.mxu0 %v2460_v34  ;;  %2333 = vmatpush3.bf16.msra.mxu1 %v2467_v51  ;;  %v976_v34 = vrot.slane %v2483_v31, 1  ;;  %v983_v51 = vsel %vm597_vm2, %v980_v45, %v982_v46  ;;  %v1183_v16 = vrot.slane %v1181_v12, 2  ;;  %v1364_v26 = vrot.slane %v2502_v21, 1  ;;  %v2511_v45 = vld [vmem:[%s2895_s1 + $0x108] sm:$0xff]  }
  0x24   : > { %2344 = vmatprep.subr.bf16.mxu0 %v2468_v54  ;;  %2334 = vmatprep.subr.bf16.mxu1 %v2469_v55  ;;  %v1154_v58 = vrot.slane %v1152_v52, 1  ;;  %v1189_v17 = vrot.slane %v1187_v13, 1  ;;  %v1192_v18 = vrot.slane %v1190_v14, 2  ;;  %v2518_v13 = vld [vmem:[%s2584_s5 + $0x18] sm:$0xff]  }
  0x25   : > { %2336 = vmatprep.mubr.msk.bf16.mxu1 %vm175_vm0, %v784_v20  ;;  %v977_v39 = vsel %vm597_vm2, %v975_v32, %v976_v34  ;;  %v979_v41 = vsel %vm597_vm2, %v976_v34, %v978_v36  ;;  %v2501_v20 = vld [vmem:[%s2584_s5 + $0x10] sm:$0xff]   ;;  %v2506_v34 = vld [vmem:[%s2895_s1 + $0x100] sm:$0xff]   ;;  %v2507_v36 = vld [vmem:[%s2584_s5 + $0x28] ss:$0 sps:$4 sm:$0x11]  }
  0x26   : > { %2321 = vmatmul.mubr.msk.bf16.vlgmr.msra.gmra.mrb[8].mxu0 %vm175_vm0, %v602_v56  ;;  %v1169_v56 = vshrl.u32 %v2493_v50, 16  ;;  %v1362_v25 = vrot.slane %v2501_v20, 1  ;;  %v2512_v50 = vld [vmem:[%s2895_s1 + $0x110] sm:$0xff]  }
  0x27   : > { %2345 = vmatpush3.bf16.msra.mxu0 %v2468_v54  ;;  %2324 = vmatprep.mubr.msk.bf16.mxu0 %vm175_vm0, %v604_v62  ;;  %v1160_v54 = vshrl.u32 %v2492_v49, 16 }
  0x28   : > { %2346 = vmatprep.subr.bf16.mxu0 %v2472_v59  ;;  %2335 = vmatpush3.bf16.msra.mxu1 %v2469_v55  ;;  %v1163_v55 = vshll.u32 %v2492_v49, 16  ;;  %v1171_v0 = vrot.slane %v1169_v56, 1  ;;  %v1365_v32 = vsel %vm597_vm2, %v1362_v25, %v1364_v26 }
  0x29   : > { %2360 = vmatprep.subr.bf16.mxu1 %v2477_v9  ;;  %v1162_v62 = vrot.slane %v1160_v54, 1  ;;  %v2513_v54 = vld [vmem:[%s2584_s5 + $0x20] sm:$0xff]  }
  0x2a   : > { %v1165_v63 = vrot.slane %v1163_v55, 2  ;;  %v1175_v5 = vor.u32 %v1174_v1, %v1171_v0  ;;  %v2514_v0 = vld [vmem:[%s2584_s5 + $0x28] ss:$0 sps:$4 sm:$0x33]   ;;  %v2517_v1 = vld [vmem:[%s2584_s5 + $0x10] sm:$0xff]  }
  0x2b   : > { %2347 = vmatpush3.bf16.msra.mxu0 %v2472_v59  ;;  %2337 = vmatmul.mubr.msk.bf16.vlgmr.msra.gmra.mrb[8].mxu1 %vm175_vm0, %v792_v24  ;;  %v1157_v59 = vrot.slane %v1155_v53, 2  ;;  %v1361_v24 = vrot.slane %v2500_v19, 1  ;;  %v1575_v7 = vshll.u32 %v2514_v0, 16  ;;  %v1748_v12 = vrot.slane %v2517_v1, 2 }
  0x2c   : > { %2348 = vmatprep.subr.bf16.mxu0 %v2476_v4  ;;  %2361 = vmatpush3.bf16.msra.mxu1 %v2477_v9 }
  0x2d   : > { %2340 = vmatprep.mubr.msk.bf16.mxu1 %vm175_vm0, %v800_v28  ;;  %2362 = vmatprep.subr.bf16.mxu1 %v2481_v23  ;;  %v1158_v2 = vor.u32 %v1157_v59, %v1154_v58  ;;  %v1363_v31 = vsel %vm597_vm2, %v1361_v24, %v1362_v25  ;;  %v2515_v58 = vld [vmem:[%s2895_s1 + $0x118] sm:$0xff]  }
  0x2e   : > { %2325 = vmatmul.mubr.msk.bf16.gmra.mrb[12].mxu0 %vm175_vm0, %v606_v11  ;;  %v1178_v11 = vshrl.u32 %v2497_v6, 16  ;;  %v1572_v6 = vshrl.u32 %v2514_v0, 16 }
  0x2f   : > { %2349 = vmatpush3.bf16.msra.mxu0 %v2476_v4  ;;  %2352 = vmatprep.mubr.msk.bf16.mxu0 %vm175_vm0, %v977_v39  ;;  %v1166_v4 = vor.u32 %v1165_v63, %v1162_v62  ;;  %v2508_v39 = vld [vmem:[%s2584_s5 + $0x8] sm:$0xfe]  }
  0x30   : > { %2350 = vmatprep.subr.bf16.mxu0 %v2478_v10  ;;  %2363 = vmatpush3.bf16.msra.mxu1 %v2481_v23  ;;  %v1180_v15 = vrot.slane %v1178_v11, 1  ;;  %v1193_v23 = vor.u32 %v1192_v18, %v1189_v17  ;;  %v1537_v42 = vshrl.u32 %v2508_v39, 16  ;;  %v1540_v43 = vshll.u32 %v2508_v39, 16 }
  0x31   : > { %2364 = vmatprep.subr.bf16.mxu1 %v2485_v35  ;;  %v1167_v9 = vsel %vm1150_vm3, %v1158_v2, %v1166_v4  ;;  %v1577_v11 = vrot.slane %v1575_v7, 2  ;;  %v1750_v18 = vrot.slane %v2518_v13, 2 }
  0x32   : > { %v1184_v22 = vor.u32 %v1183_v16, %v1180_v15  ;;  %v1542_v52 = vrot.slane %v1540_v43, 2  ;;  %v2519_v16 = vld [vmem:[%s2584_s5 + $0x20] sm:$0xff]  }
  0x33   : > { %2351 = vmatpush3.bf16.msra.mxu0 %v2478_v10  ;;  %2341 = vmatmul.mubr.msk.bf16.gmra.mrb[12].mxu1 %vm175_vm0, %v808_v38  ;;  %v1176_v10 = vsel %vm1150_vm3, %v1166_v4, %v1175_v5  ;;  %v1368_v38 = vrot.slane %v2507_v36, 1  ;;  %v1752_v20 = vrot.slane %v2519_v16, 2  ;;  %v1751_v21 = vsel %vm1746_vm4, %v1748_v12, %v1750_v18 }
  0x34   : > { %2376 = vmatprep.subr.bf16.mxu0 %v2486_v37  ;;  %2365 = vmatpush3.bf16.msra.mxu1 %v2485_v35  ;;  %v1185_v28 = vsel %vm1150_vm3, %v1175_v5, %v1184_v22  ;;  %v1194_v30 = vsel %vm1150_vm3, %v1184_v22, %v1193_v23  ;;  %v1366_v35 = vrot.slane %v2505_v33, 1  ;;  %v2520_v23 = vld [vmem:[%s2584_s5 + $0x28] ss:$0 sps:$4 sm:$0x33]  }
  0x35   : > { %2366 = vmatprep.subr.bf16.mxu1 %v2487_v40  ;;  %2368 = vmatprep.mubr.msk.bf16.mxu1 %vm175_vm0, %v1167_v9  ;;  %v2516_v9 = vld [vmem:[%s2584_s5 + $0x8] sm:$0xfc]   ;;  %v1753_v24 = vsel %vm1746_vm4, %v1750_v18, %v1752_v20  ;;  %v1754_v25 = vrot.slane %v2520_v23, 2 }
  0x36   : > { %2353 = vmatmul.mubr.msk.bf16.vlgmr.msra.gmra.mrb[16].mxu0 %vm175_vm0, %v979_v41  ;;  %v2510_v41 = vld [vmem:[%s2584_s5 + $0x18] sm:$0xff]   ;;  %v1369_v46 = vsel %vm597_vm2, %v1366_v35, %v1368_v38  ;;  %v1747_v15 = vrot.slane %v2516_v9, 2  ;;  %v185_v33 = vld [vmem:[#allocation2 + $0x8] sm:$0xff] }
  0x37   : > { %2377 = vmatpush3.bf16.msra.mxu0 %v2486_v37  ;;  %2356 = vmatprep.mubr.msk.bf16.mxu0 %vm175_vm0, %v981_v48  ;;  %v1367_v37 = vsel %vm597_vm2, %v1364_v26, %v1366_v35  ;;  %v1554_v48 = vshrl.u32 %v2510_v41, 16  ;;  %v1557_v49 = vshll.u32 %v2510_v41, 16  ;;  %v1755_v26 = vsel %vm1746_vm4, %v1752_v20, %v1754_v25 }
  0x38   : > { %2378 = vmatprep.subr.bf16.mxu0 %v2490_v44  ;;  %2367 = vmatpush3.bf16.msra.mxu1 %v2487_v40  ;;  %v2509_v40 = vld [vmem:[%s2584_s5 + $0x10] sm:$0xff]   ;;  %v1749_v19 = vsel %vm1746_vm4, %v1747_v15, %v1748_v12  ;;  %s2007_s5 = sshll.u32 %s2001_s13, 3 }
  0x39   : > { %2392 = vmatprep.subr.bf16.mxu1 %v2495_v61  ;;  %v1548_v47 = vshll.u32 %v2509_v40, 16  ;;  %v1556_v56 = vrot.slane %v1554_v48, 1  ;;  %v1559_v57 = vrot.slane %v1557_v49, 2  ;;  %v189_v49 = vld [vmem:[#allocation2 + $0x28] sm:$0xff]  ;;  %p169_p4 = scmp.lt.s32.totalorder %s2007_s5, 15 }
  0x3b   : > { %2379 = vmatpush3.bf16.msra.mxu0 %v2490_v44  ;;  %2369 = vmatmul.mubr.msk.bf16.vlgmr.msra.gmra.mrb[16].mxu1 %vm175_vm0, %v1176_v10  ;;  %v1545_v44 = vshrl.u32 %v2509_v40, 16  ;;  %v1550_v55 = vrot.slane %v1548_v47, 2  ;;  %v1560_v63 = vor.u32 %v1559_v57, %v1556_v56  ;;  %v1574_v10 = vrot.slane %v1572_v6, 1  ;;  %v190_v40 = vld [vmem:[#allocation2 + $0x30] sm:$0xff]  ;;  %s2901_s5 = smov (!%p169_p4, %s2007_s5), 15 }
  0x3c   : > { %2380 = vmatprep.subr.bf16.mxu0 %v2494_v60  ;;  %2393 = vmatpush3.bf16.msra.mxu1 %v2495_v61  ;;  %v1566_v61 = vshll.u32 %v2513_v54, 16  ;;  %s2008_s19 = sshll.u32 %s2901_s5, 2 }
  0x3d   : > { %2394 = vmatprep.subr.bf16.mxu1 %v2499_v8  ;;  %2372 = vmatprep.mubr.msk.bf16.mxu1 %vm175_vm0, %v1185_v28  ;;  %v1547_v53 = vrot.slane %v1545_v44, 1  ;;  %v1578_v17 = vor.u32 %v1577_v11, %v1574_v10  ;;  %v184_v28 = vld [vmem:[#allocation2] sm:$0xff]  ;;  %s2872_s22 = scalar_lea.vmem %s2897_s3, %s2008_s19 }
  0x3e   : > { %2357 = vmatmul.mubr.msk.bf16.gmra.mrb[20].mxu0 %vm175_vm0, %v983_v51  ;;  %v1539_v51 = vrot.slane %v1537_v42, 1  ;;  %v188_v42 = vld [vmem:[#allocation2 + $0x20] sm:$0xff] }
  0x3f   : > { %2381 = vmatpush3.bf16.msra.mxu0 %v2494_v60  ;;  %2384 = vmatprep.mubr.msk.bf16.mxu0 %vm175_vm0, %v1363_v31  ;;  %v1563_v60 = vshrl.u32 %v2513_v54, 16  ;;  %v1551_v62 = vor.u32 %v1550_v55, %v1547_v53 }
  0x40   : > { %2382 = vmatprep.subr.bf16.mxu0 %v2496_v3  ;;  %2395 = vmatpush3.bf16.msra.mxu1 %v2499_v8  ;;  %v1543_v59 = vor.u32 %v1542_v52, %v1539_v51 }
  0x41   : > { %2396 = vmatprep.subr.bf16.mxu1 %v2503_v27  ;;  %v1565_v2 = vrot.slane %v1563_v60, 1  ;;  %v1561_v5 = vsel %vm1150_vm3, %v1551_v62, %v1560_v63 }
  0x42   : > { %v1552_v4 = vsel %vm1150_vm3, %v1543_v59, %v1551_v62 }
  0x43   : > { %2383 = vmatpush3.bf16.msra.mxu0 %v2496_v3  ;;  %2373 = vmatmul.mubr.msk.bf16.gmra.mrb[20].mxu1 %vm175_vm0, %v1194_v30  ;;  %v1568_v3 = vrot.slane %v1566_v61, 2  ;;  %v187_v30 = vld [vmem:[#allocation2 + $0x18] sm:$0xff] }
  0x44   : > { %2408 = vmatprep.subr.bf16.mxu0 %v2506_v34  ;;  %2397 = vmatpush3.bf16.msra.mxu1 %v2503_v27  ;;  %v186_v27 = vld [vmem:[#allocation2 + $0x10] sm:$0xff] }
  0x45   : > { %2398 = vmatprep.subr.bf16.mxu1 %v2504_v29  ;;  %2400 = vmatprep.mubr.msk.bf16.mxu1 %vm175_vm0, %v1552_v4  ;;  %v1569_v8 = vor.u32 %v1568_v3, %v1565_v2 }
  0x46   : > { %2385 = vmatmul.mubr.msk.bf16.vlgmr.msra.gmra.mrb[24].mxu0 %vm175_vm0, %v1365_v32 }
  0x47   : > { %2409 = vmatpush3.bf16.msra.mxu0 %v2506_v34  ;;  %2388 = vmatprep.mubr.msk.bf16.mxu0 %vm175_vm0, %v1367_v37  ;;  %v1570_v14 = vsel %vm1150_vm3, %v1560_v63, %v1569_v8  ;;  %v1579_v22 = vsel %vm1150_vm3, %v1569_v8, %v1578_v17 }
  0x48   : > { %2399 = vmatpush3.bf16.msra.mxu1 %v2504_v29  ;;  %2410 = vmatprep.subr.bf16.mxu0 %v2511_v45 }
  0x49   : > { %2424 = vmatprep.subr.bf16.mxu1 %v2506_v34 }
  0x4b   : > { %2411 = vmatpush3.bf16.msra.mxu0 %v2511_v45  ;;  %2401 = vmatmul.mubr.msk.bf16.vlgmr.msra.gmra.mrb[24].mxu1 %vm175_vm0, %v1561_v5 }
  0x4c   : > { %2412 = vmatprep.subr.bf16.mxu0 %v2512_v50  ;;  %2428 = vmatpush3.bf16.msra.mxu1 %v2506_v34 }
  0x4d   : > { %2425 = vmatprep.subr.bf16.mxu1 %v2511_v45  ;;  %2404 = vmatprep.mubr.msk.bf16.mxu1 %vm175_vm0, %v1570_v14 }
  0x4e   : > { %2389 = vmatmul.mubr.msk.bf16.gmra.mrb[28].mxu0 %vm175_vm0, %v1369_v46 }
  0x4f   : > { %2413 = vmatpush3.bf16.msra.mxu0 %v2512_v50  ;;  %2416 = vmatprep.mubr.msk.bf16.mxu0 %vm175_vm0, %v1749_v19 }
  0x50   : > { %2414 = vmatprep.subr.bf16.mxu0 %v2515_v58  ;;  %2429 = vmatpush3.bf16.msra.mxu1 %v2511_v45  ;;  %v191_v45 = vld [vmem:[#allocation2 + $0x38] sm:$0xff] }
  0x51   : > { %2426 = vmatprep.subr.bf16.mxu1 %v2512_v50 }
  0x53   : > { %2415 = vmatpush3.bf16.msra.mxu0 %v2515_v58  ;;  %2405 = vmatmul.mubr.msk.bf16.gmra.mrb[28].mxu1 %vm175_vm0, %v1579_v22 }
  0x54   : > { %2430 = vmatpush3.bf16.msra.mxu1 %v2512_v50  ;;  %2420 = vmatprep.mubr.msk.bf16.mxu1 %vm175_vm0, %v1753_v24 }
  0x55   : > { %2427 = vmatprep.subr.bf16.mxu1 %v2515_v58 }
  0x56   : > { %2417 = vmatmul.mubr.msk.bf16.vlgmr.msra.gmra.mrb[32].mxu0 %vm175_vm0, %v1751_v21 }
  0x58   : > { %2431 = vmatpush3.bf16.msra.mxu1 %v2515_v58 }
  0x5b   : > { %2421 = vmatmul.mubr.msk.bf16.vlgmr.msra.gmra.mrb[32].mxu1 %vm175_vm0, %v1755_v26 }
  0xe9   : > { %v2290_v29 = vpop.f32.mrb[0].mxu0 }
  0xea   : > { %v331_v31 = vadd.f32 %v2290_v29, %v186_v27  ;;  %v298_v32 = vpop.f32.mrb[1].mxu0 }
  0xeb   : > { %v329_v34 = vadd.f32 %v298_v32, %v184_v28  ;;  %v2291_v35 = vpop.f32.mrb[2].mxu0 }
  0xec   : > { %339 = vst.msk [vmem:[#allocation2 + $0x10] sm:$0xff] %vm175_vm0, %v331_v31  ;;  %v332_v36 = vadd.f32 %v2291_v35, %v187_v30  ;;  %v301_v37 = vpop.f32.mrb[3].mxu0 }
  0xed   : > { %337 = vst.msk [vmem:[#allocation2] sm:$0xff] %vm175_vm0, %v329_v34  ;;  %v330_v38 = vadd.f32 %v301_v37, %v185_v33  ;;  %v2306_v39 = vpop.f32.mrb[0].mxu1 }
  0xee   : > { %340 = vst.msk [vmem:[#allocation2 + $0x18] sm:$0xff] %vm175_vm0, %v332_v36  ;;  %v501_v41 = vpop.f32.mrb[1].mxu1 }
  0xef   : > { %338 = vst.msk [vmem:[#allocation2 + $0x8] sm:$0xff] %vm175_vm0, %v330_v38  ;;  %v2307_v43 = vpop.f32.mrb[2].mxu1 }
  0xf0   : > { %v504_v46 = vpop.f32.mrb[3].mxu1 }
  0xf1   : > { %v2294_v44 = vpop.f32.mrb[4].mxu0 }
  0xf2   : > { %v335_v47 = vadd.f32 %v2294_v44, %v190_v40  ;;  %v314_v48 = vpop.f32.mrb[5].mxu0 }
  0xf3   : > { %v347_v50 = vld [vmem:[#allocation2 + $0x10] sm:$0xff]  ;;  %v333_v51 = vadd.f32 %v314_v48, %v188_v42  ;;  %v2295_v52 = vpop.f32.mrb[6].mxu0 }
  0xf4   : > { %v534_v53 = vadd.f32 %v2306_v39, %v347_v50  ;;  %343 = vst.msk [vmem:[#allocation2 + $0x30] sm:$0xff] %vm175_vm0, %v335_v47  ;;  %v345_v54 = vld [vmem:[#allocation2] sm:$0xff]  ;;  %v336_v55 = vadd.f32 %v2295_v52, %v191_v45  ;;  %v317_v56 = vpop.f32.mrb[7].mxu0 }
  0xf5   : > { %v532_v57 = vadd.f32 %v501_v41, %v345_v54  ;;  %341 = vst.msk [vmem:[#allocation2 + $0x20] sm:$0xff] %vm175_vm0, %v333_v51  ;;  %v348_v58 = vld [vmem:[#allocation2 + $0x18] sm:$0xff]  ;;  %v334_v59 = vadd.f32 %v317_v56, %v189_v49  ;;  %v2310_v62 = vpop.f32.mrb[4].mxu1 }
  0xf6   : > { %542 = vst.msk [vmem:[#allocation2 + $0x10] sm:$0xff] %vm175_vm0, %v534_v53  ;;  %v535_v60 = vadd.f32 %v2307_v43, %v348_v58  ;;  %344 = vst.msk [vmem:[#allocation2 + $0x38] sm:$0xff] %vm175_vm0, %v336_v55  ;;  %v346_v61 = vld [vmem:[#allocation2 + $0x8] sm:$0xff]  ;;  %v517_v0 = vpop.f32.mrb[5].mxu1 }
  0xf7   : > { %540 = vst.msk [vmem:[#allocation2] sm:$0xff] %vm175_vm0, %v532_v57  ;;  %v533_v63 = vadd.f32 %v504_v46, %v346_v61  ;;  %342 = vst.msk [vmem:[#allocation2 + $0x28] sm:$0xff] %vm175_vm0, %v334_v59  ;;  %v2311_v1 = vpop.f32.mrb[6].mxu1 }
  0xf8   : > { %543 = vst.msk [vmem:[#allocation2 + $0x18] sm:$0xff] %vm175_vm0, %v535_v60  ;;  %v520_v3 = vpop.f32.mrb[7].mxu1 }
  0xf9   : > { %541 = vst.msk [vmem:[#allocation2 + $0x8] sm:$0xff] %vm175_vm0, %v533_v63  ;;  %v2322_v2 = vpop.f32.mrb[8].mxu0 }
  0xfa   : > { %v677_v4 = vpop.f32.mrb[9].mxu0 }
  0xfb   : > { %v351_v5 = vld [vmem:[#allocation2 + $0x30] sm:$0xff]  ;;  %v2323_v6 = vpop.f32.mrb[10].mxu0 }
  0xfc   : > { %v538_v7 = vadd.f32 %v2310_v62, %v351_v5  ;;  %v349_v8 = vld [vmem:[#allocation2 + $0x20] sm:$0xff]  ;;  %v680_v9 = vpop.f32.mrb[11].mxu0 }
  0xfd   : > { %v536_v10 = vadd.f32 %v517_v0, %v349_v8  ;;  %v352_v11 = vld [vmem:[#allocation2 + $0x38] sm:$0xff]  ;;  %v550_v12 = vld [vmem:[#allocation2 + $0x10] sm:$0xff] }
  0xfe   : > { %546 = vst.msk [vmem:[#allocation2 + $0x30] sm:$0xff] %vm175_vm0, %v538_v7  ;;  %v539_v13 = vadd.f32 %v2311_v1, %v352_v11  ;;  %v710_v14 = vadd.f32 %v2322_v2, %v550_v12  ;;  %v350_v15 = vld [vmem:[#allocation2 + $0x28] sm:$0xff]  ;;  %v548_v16 = vld [vmem:[#allocation2] sm:$0xff]  ;;  %v2338_v26 = vpop.f32.mrb[8].mxu1 }
  0xff   : > { %544 = vst.msk [vmem:[#allocation2 + $0x20] sm:$0xff] %vm175_vm0, %v536_v10  ;;  %v537_v17 = vadd.f32 %v520_v3, %v350_v15  ;;  %v708_v18 = vadd.f32 %v677_v4, %v548_v16  ;;  %v551_v19 = vld [vmem:[#allocation2 + $0x18] sm:$0xff]  ;;  %v879_v28 = vpop.f32.mrb[9].mxu1 }
 0x100   : > { %547 = vst.msk [vmem:[#allocation2 + $0x38] sm:$0xff] %vm175_vm0, %v539_v13  ;;  %718 = vst.msk [vmem:[#allocation2 + $0x10] sm:$0xff] %vm175_vm0, %v710_v14  ;;  %v711_v20 = vadd.f32 %v2323_v6, %v551_v19  ;;  %v549_v21 = vld [vmem:[#allocation2 + $0x8] sm:$0xff]  ;;  %v2339_v30 = vpop.f32.mrb[10].mxu1 }
 0x101   : > { %545 = vst.msk [vmem:[#allocation2 + $0x28] sm:$0xff] %vm175_vm0, %v537_v17  ;;  %716 = vst.msk [vmem:[#allocation2] sm:$0xff] %vm175_vm0, %v708_v18  ;;  %v709_v22 = vadd.f32 %v680_v9, %v549_v21  ;;  %v2326_v23 = vpop.f32.mrb[12].mxu0  ;;  %v882_v33 = vpop.f32.mrb[11].mxu1 }
 0x102   : > { %719 = vst.msk [vmem:[#allocation2 + $0x18] sm:$0xff] %vm175_vm0, %v711_v20  ;;  %v693_v24 = vpop.f32.mrb[13].mxu0 }
 0x103   : > { %717 = vst.msk [vmem:[#allocation2 + $0x8] sm:$0xff] %vm175_vm0, %v709_v22  ;;  %v2327_v25 = vpop.f32.mrb[14].mxu0 }
 0x104   : > { %v696_v27 = vpop.f32.mrb[15].mxu0 }
 0x105   : > { %v554_v29 = vld [vmem:[#allocation2 + $0x30] sm:$0xff] }
 0x106   : > { %v714_v31 = vadd.f32 %v2326_v23, %v554_v29  ;;  %v552_v32 = vld [vmem:[#allocation2 + $0x20] sm:$0xff]  ;;  %v2342_v48 = vpop.f32.mrb[12].mxu1 }
 0x107   : > { %v712_v34 = vadd.f32 %v693_v24, %v552_v32  ;;  %v555_v35 = vld [vmem:[#allocation2 + $0x38] sm:$0xff]  ;;  %v726_v36 = vld [vmem:[#allocation2 + $0x10] sm:$0xff]  ;;  %v895_v50 = vpop.f32.mrb[13].mxu1 }
 0x108   : > { %722 = vst.msk [vmem:[#allocation2 + $0x30] sm:$0xff] %vm175_vm0, %v714_v31  ;;  %v715_v37 = vadd.f32 %v2327_v25, %v555_v35  ;;  %v912_v38 = vadd.f32 %v2338_v26, %v726_v36  ;;  %v553_v39 = vld [vmem:[#allocation2 + $0x28] sm:$0xff]  ;;  %v724_v40 = vld [vmem:[#allocation2] sm:$0xff]  ;;  %v2343_v52 = vpop.f32.mrb[14].mxu1 }
 0x109   : > { %720 = vst.msk [vmem:[#allocation2 + $0x20] sm:$0xff] %vm175_vm0, %v712_v34  ;;  %v713_v41 = vadd.f32 %v696_v27, %v553_v39  ;;  %v910_v42 = vadd.f32 %v879_v28, %v724_v40  ;;  %v727_v43 = vld [vmem:[#allocation2 + $0x18] sm:$0xff]  ;;  %v2354_v46 = vpop.f32.mrb[16].mxu0  ;;  %v898_v54 = vpop.f32.mrb[15].mxu1 }
 0x10a   : > { %723 = vst.msk [vmem:[#allocation2 + $0x38] sm:$0xff] %vm175_vm0, %v715_v37  ;;  %920 = vst.msk [vmem:[#allocation2 + $0x10] sm:$0xff] %vm175_vm0, %v912_v38  ;;  %v913_v44 = vadd.f32 %v2339_v30, %v727_v43  ;;  %v725_v45 = vld [vmem:[#allocation2 + $0x8] sm:$0xff]  ;;  %v1054_v49 = vpop.f32.mrb[17].mxu0 }
 0x10b   : > { %721 = vst.msk [vmem:[#allocation2 + $0x28] sm:$0xff] %vm175_vm0, %v713_v41  ;;  %918 = vst.msk [vmem:[#allocation2] sm:$0xff] %vm175_vm0, %v910_v42  ;;  %v911_v47 = vadd.f32 %v882_v33, %v725_v45  ;;  %v2355_v51 = vpop.f32.mrb[18].mxu0 }
 0x10c   : > { %921 = vst.msk [vmem:[#allocation2 + $0x18] sm:$0xff] %vm175_vm0, %v913_v44  ;;  %v1057_v53 = vpop.f32.mrb[19].mxu0 }
 0x10d   : > { %919 = vst.msk [vmem:[#allocation2 + $0x8] sm:$0xff] %vm175_vm0, %v911_v47 }
 0x10e   : > { %v2370_v11 = vpop.f32.mrb[16].mxu1 }
 0x10f   : > { %v730_v55 = vld [vmem:[#allocation2 + $0x30] sm:$0xff]  ;;  %v1265_v12 = vpop.f32.mrb[17].mxu1 }
 0x110   : > { %v916_v56 = vadd.f32 %v2342_v48, %v730_v55  ;;  %v728_v57 = vld [vmem:[#allocation2 + $0x20] sm:$0xff]  ;;  %v2371_v14 = vpop.f32.mrb[18].mxu1 }
 0x111   : > { %v914_v58 = vadd.f32 %v895_v50, %v728_v57  ;;  %v731_v59 = vld [vmem:[#allocation2 + $0x38] sm:$0xff]  ;;  %v928_v60 = vld [vmem:[#allocation2 + $0x10] sm:$0xff]  ;;  %v2358_v1 = vpop.f32.mrb[20].mxu0  ;;  %v1268_v17 = vpop.f32.mrb[19].mxu1 }
 0x112   : > { %924 = vst.msk [vmem:[#allocation2 + $0x30] sm:$0xff] %vm175_vm0, %v916_v56  ;;  %v917_v61 = vadd.f32 %v2343_v52, %v731_v59  ;;  %v1087_v62 = vadd.f32 %v2354_v46, %v928_v60  ;;  %v729_v63 = vld [vmem:[#allocation2 + $0x28] sm:$0xff]  ;;  %v926_v0 = vld [vmem:[#allocation2] sm:$0xff]  ;;  %v1070_v5 = vpop.f32.mrb[21].mxu0 }
 0x113   : > { %922 = vst.msk [vmem:[#allocation2 + $0x20] sm:$0xff] %vm175_vm0, %v914_v58  ;;  %v915_v2 = vadd.f32 %v898_v54, %v729_v63  ;;  %v1085_v3 = vadd.f32 %v1054_v49, %v926_v0  ;;  %v929_v4 = vld [vmem:[#allocation2 + $0x18] sm:$0xff]  ;;  %v2359_v8 = vpop.f32.mrb[22].mxu0 }
 0x114   : > { %925 = vst.msk [vmem:[#allocation2 + $0x38] sm:$0xff] %vm175_vm0, %v917_v61  ;;  %1095 = vst.msk [vmem:[#allocation2 + $0x10] sm:$0xff] %vm175_vm0, %v1087_v62  ;;  %v1088_v6 = vadd.f32 %v2355_v51, %v929_v4  ;;  %v927_v7 = vld [vmem:[#allocation2 + $0x8] sm:$0xff]  ;;  %v1073_v10 = vpop.f32.mrb[23].mxu0 }
 0x115   : > { %923 = vst.msk [vmem:[#allocation2 + $0x28] sm:$0xff] %vm175_vm0, %v915_v2  ;;  %1093 = vst.msk [vmem:[#allocation2] sm:$0xff] %vm175_vm0, %v1085_v3  ;;  %v1086_v9 = vadd.f32 %v1057_v53, %v927_v7 }
 0x116   : > { %1096 = vst.msk [vmem:[#allocation2 + $0x18] sm:$0xff] %vm175_vm0, %v1088_v6  ;;  %v2374_v32 = vpop.f32.mrb[20].mxu1 }
 0x117   : > { %1094 = vst.msk [vmem:[#allocation2 + $0x8] sm:$0xff] %vm175_vm0, %v1086_v9  ;;  %v1281_v34 = vpop.f32.mrb[21].mxu1 }
 0x118   : > { %v2375_v36 = vpop.f32.mrb[22].mxu1 }
 0x119   : > { %v932_v13 = vld [vmem:[#allocation2 + $0x30] sm:$0xff]  ;;  %v2386_v30 = vpop.f32.mrb[24].mxu0  ;;  %v1284_v38 = vpop.f32.mrb[23].mxu1 }
 0x11a   : > { %v1091_v15 = vadd.f32 %v2358_v1, %v932_v13  ;;  %v930_v16 = vld [vmem:[#allocation2 + $0x20] sm:$0xff]  ;;  %v1440_v33 = vpop.f32.mrb[25].mxu0 }
 0x11b   : > { %v1089_v18 = vadd.f32 %v1070_v5, %v930_v16  ;;  %v933_v19 = vld [vmem:[#allocation2 + $0x38] sm:$0xff]  ;;  %v1103_v20 = vld [vmem:[#allocation2 + $0x10] sm:$0xff]  ;;  %v2387_v35 = vpop.f32.mrb[26].mxu0 }
 0x11c   : > { %1099 = vst.msk [vmem:[#allocation2 + $0x30] sm:$0xff] %vm175_vm0, %v1091_v15  ;;  %v1092_v21 = vadd.f32 %v2359_v8, %v933_v19  ;;  %v1298_v22 = vadd.f32 %v2370_v11, %v1103_v20  ;;  %v931_v23 = vld [vmem:[#allocation2 + $0x28] sm:$0xff]  ;;  %v1101_v24 = vld [vmem:[#allocation2] sm:$0xff]  ;;  %v1443_v37 = vpop.f32.mrb[27].mxu0 }
 0x11d   : > { %1097 = vst.msk [vmem:[#allocation2 + $0x20] sm:$0xff] %vm175_vm0, %v1089_v18  ;;  %v1090_v25 = vadd.f32 %v1073_v10, %v931_v23  ;;  %v1296_v26 = vadd.f32 %v1265_v12, %v1101_v24  ;;  %v1104_v27 = vld [vmem:[#allocation2 + $0x18] sm:$0xff] }
 0x11e   : > { %1100 = vst.msk [vmem:[#allocation2 + $0x38] sm:$0xff] %vm175_vm0, %v1092_v21  ;;  %1306 = vst.msk [vmem:[#allocation2 + $0x10] sm:$0xff] %vm175_vm0, %v1298_v22  ;;  %v1299_v28 = vadd.f32 %v2371_v14, %v1104_v27  ;;  %v1102_v29 = vld [vmem:[#allocation2 + $0x8] sm:$0xff]  ;;  %v2402_v59 = vpop.f32.mrb[24].mxu1 }
 0x11f   : > { %1098 = vst.msk [vmem:[#allocation2 + $0x28] sm:$0xff] %vm175_vm0, %v1090_v25  ;;  %1304 = vst.msk [vmem:[#allocation2] sm:$0xff] %vm175_vm0, %v1296_v26  ;;  %v1297_v31 = vadd.f32 %v1268_v17, %v1102_v29  ;;  %v1650_v60 = vpop.f32.mrb[25].mxu1 }
 0x120   : > { %1307 = vst.msk [vmem:[#allocation2 + $0x18] sm:$0xff] %vm175_vm0, %v1299_v28  ;;  %v2403_v62 = vpop.f32.mrb[26].mxu1 }
 0x121   : > { %1305 = vst.msk [vmem:[#allocation2 + $0x8] sm:$0xff] %vm175_vm0, %v1297_v31  ;;  %v2390_v49 = vpop.f32.mrb[28].mxu0  ;;  %v1653_v1 = vpop.f32.mrb[27].mxu1 }
 0x122   : > { %v1456_v53 = vpop.f32.mrb[29].mxu0 }
 0x123   : > { %v1107_v39 = vld [vmem:[#allocation2 + $0x30] sm:$0xff]  ;;  %v2391_v56 = vpop.f32.mrb[30].mxu0 }
 0x124   : > { %v1302_v40 = vadd.f32 %v2374_v32, %v1107_v39  ;;  %v1105_v41 = vld [vmem:[#allocation2 + $0x20] sm:$0xff]  ;;  %v1459_v58 = vpop.f32.mrb[31].mxu0 }
 0x125   : > { %v1300_v42 = vadd.f32 %v1281_v34, %v1105_v41  ;;  %v1108_v43 = vld [vmem:[#allocation2 + $0x38] sm:$0xff]  ;;  %v1314_v44 = vld [vmem:[#allocation2 + $0x10] sm:$0xff] }
 0x126   : > { %1310 = vst.msk [vmem:[#allocation2 + $0x30] sm:$0xff] %vm175_vm0, %v1302_v40  ;;  %v1303_v45 = vadd.f32 %v2375_v36, %v1108_v43  ;;  %v1473_v46 = vadd.f32 %v2386_v30, %v1314_v44  ;;  %v1106_v47 = vld [vmem:[#allocation2 + $0x28] sm:$0xff]  ;;  %v1312_v48 = vld [vmem:[#allocation2] sm:$0xff]  ;;  %v2406_v17 = vpop.f32.mrb[28].mxu1 }
 0x127   : > { %1308 = vst.msk [vmem:[#allocation2 + $0x20] sm:$0xff] %vm175_vm0, %v1300_v42  ;;  %v1301_v50 = vadd.f32 %v1284_v38, %v1106_v47  ;;  %v1471_v51 = vadd.f32 %v1440_v33, %v1312_v48  ;;  %v1315_v52 = vld [vmem:[#allocation2 + $0x18] sm:$0xff]  ;;  %v1666_v19 = vpop.f32.mrb[29].mxu1  ;;  %v2189_v43 = vld [vmem:[%s2896_s2] ss:$0 sm:$0xff] }
 0x128   : > { %1311 = vst.msk [vmem:[#allocation2 + $0x38] sm:$0xff] %vm175_vm0, %v1303_v45  ;;  %1481 = vst.msk [vmem:[#allocation2 + $0x10] sm:$0xff] %vm175_vm0, %v1473_v46  ;;  %v1474_v54 = vadd.f32 %v2387_v35, %v1315_v52  ;;  %v1313_v55 = vld [vmem:[#allocation2 + $0x8] sm:$0xff]  ;;  %v2407_v21 = vpop.f32.mrb[30].mxu1 }
 0x129   : > { %1309 = vst.msk [vmem:[#allocation2 + $0x28] sm:$0xff] %vm175_vm0, %v1301_v50  ;;  %1479 = vst.msk [vmem:[#allocation2] sm:$0xff] %vm175_vm0, %v1471_v51  ;;  %v1472_v57 = vadd.f32 %v1443_v37, %v1313_v55  ;;  %v2418_v12 = vpop.f32.mrb[32].mxu0  ;;  %v1669_v22 = vpop.f32.mrb[31].mxu1 }
 0x12a   : > { %1482 = vst.msk [vmem:[#allocation2 + $0x18] sm:$0xff] %vm175_vm0, %v1474_v54  ;;  %v1826_v15 = vpop.f32.mrb[33].mxu0 }
 0x12b   : > { %1480 = vst.msk [vmem:[#allocation2 + $0x8] sm:$0xff] %vm175_vm0, %v1472_v57  ;;  %v2419_v18 = vpop.f32.mrb[34].mxu0 }
 0x12c   : > { %v1829_v20 = vpop.f32.mrb[35].mxu0 }
 0x12d   : > { %v1318_v61 = vld [vmem:[#allocation2 + $0x30] sm:$0xff] }
 0x12e   : > { %v1477_v63 = vadd.f32 %v2390_v49, %v1318_v61  ;;  %v1316_v0 = vld [vmem:[#allocation2 + $0x20] sm:$0xff]  ;;  %v2422_v36 = vpop.f32.mrb[32].mxu1 }
 0x12f   : > { %v1475_v2 = vadd.f32 %v1456_v53, %v1316_v0  ;;  %v1319_v3 = vld [vmem:[#allocation2 + $0x38] sm:$0xff]  ;;  %v1489_v4 = vld [vmem:[#allocation2 + $0x10] sm:$0xff]  ;;  %v1842_v39 = vpop.f32.mrb[33].mxu1 }
 0x130   : > { %1485 = vst.msk [vmem:[#allocation2 + $0x30] sm:$0xff] %vm175_vm0, %v1477_v63  ;;  %v1478_v5 = vadd.f32 %v2391_v56, %v1319_v3  ;;  %v1683_v6 = vadd.f32 %v2402_v59, %v1489_v4  ;;  %v1317_v7 = vld [vmem:[#allocation2 + $0x28] sm:$0xff]  ;;  %v1487_v8 = vld [vmem:[#allocation2] sm:$0xff]  ;;  %v2423_v41 = vpop.f32.mrb[34].mxu1 }
 0x131   : > { %1483 = vst.msk [vmem:[#allocation2 + $0x20] sm:$0xff] %vm175_vm0, %v1475_v2  ;;  %v1476_v9 = vadd.f32 %v1459_v58, %v1317_v7  ;;  %v1681_v10 = vadd.f32 %v1650_v60, %v1487_v8  ;;  %v1490_v11 = vld [vmem:[#allocation2 + $0x18] sm:$0xff]  ;;  %v1845_v42 = vpop.f32.mrb[35].mxu1 }
 0x132   : > { %1486 = vst.msk [vmem:[#allocation2 + $0x38] sm:$0xff] %vm175_vm0, %v1478_v5  ;;  %1691 = vst.msk [vmem:[#allocation2 + $0x10] sm:$0xff] %vm175_vm0, %v1683_v6  ;;  %v1684_v13 = vadd.f32 %v2403_v62, %v1490_v11  ;;  %v1488_v14 = vld [vmem:[#allocation2 + $0x8] sm:$0xff] }
 0x133   : > { %1484 = vst.msk [vmem:[#allocation2 + $0x28] sm:$0xff] %vm175_vm0, %v1476_v9  ;;  %1689 = vst.msk [vmem:[#allocation2] sm:$0xff] %vm175_vm0, %v1681_v10  ;;  %v1682_v16 = vadd.f32 %v1653_v1, %v1488_v14 }
 0x134   : > { %1692 = vst.msk [vmem:[#allocation2 + $0x18] sm:$0xff] %vm175_vm0, %v1684_v13 }
 0x135   : > { %1690 = vst.msk [vmem:[#allocation2 + $0x8] sm:$0xff] %vm175_vm0, %v1682_v16 }
 0x137   : > { %v1493_v23 = vld [vmem:[#allocation2 + $0x30] sm:$0xff] }
 0x138   : > { %v1687_v24 = vadd.f32 %v2406_v17, %v1493_v23  ;;  %v1491_v25 = vld [vmem:[#allocation2 + $0x20] sm:$0xff] }
 0x139   : > { %v1685_v26 = vadd.f32 %v1666_v19, %v1491_v25  ;;  %v1494_v27 = vld [vmem:[#allocation2 + $0x38] sm:$0xff]  ;;  %v1699_v28 = vld [vmem:[#allocation2 + $0x10] sm:$0xff] }
 0x13a   : > { %1695 = vst.msk [vmem:[#allocation2 + $0x30] sm:$0xff] %vm175_vm0, %v1687_v24  ;;  %v1688_v29 = vadd.f32 %v2407_v21, %v1494_v27  ;;  %v1492_v30 = vld [vmem:[#allocation2 + $0x28] sm:$0xff]  ;;  %v1859_v31 = vadd.f32 %v2418_v12, %v1699_v28  ;;  %v1697_v32 = vld [vmem:[#allocation2] sm:$0xff] }
 0x13b   : > { %1693 = vst.msk [vmem:[#allocation2 + $0x20] sm:$0xff] %vm175_vm0, %v1685_v26  ;;  %v1686_v33 = vadd.f32 %v1669_v22, %v1492_v30  ;;  %v1857_v34 = vadd.f32 %v1826_v15, %v1697_v32  ;;  %v1700_v35 = vld [vmem:[#allocation2 + $0x18] sm:$0xff] }
 0x13c   : > { %1696 = vst.msk [vmem:[#allocation2 + $0x38] sm:$0xff] %vm175_vm0, %v1688_v29  ;;  %1867 = vst.msk [vmem:[#allocation2 + $0x10] sm:$0xff] %vm175_vm0, %v1859_v31  ;;  %v1860_v37 = vadd.f32 %v2419_v18, %v1700_v35  ;;  %v1698_v38 = vld [vmem:[#allocation2 + $0x8] sm:$0xff] }
 0x13d   : > { %1694 = vst.msk [vmem:[#allocation2 + $0x28] sm:$0xff] %vm175_vm0, %v1686_v33  ;;  %1865 = vst.msk [vmem:[#allocation2] sm:$0xff] %vm175_vm0, %v1857_v34  ;;  %v1858_v40 = vadd.f32 %v1829_v20, %v1698_v38 }
 0x13e   : > { %1868 = vst.msk [vmem:[#allocation2 + $0x18] sm:$0xff] %vm175_vm0, %v1860_v37 }
 0x13f   : > { %1866 = vst.msk [vmem:[#allocation2 + $0x8] sm:$0xff] %vm175_vm0, %v1858_v40 }
 0x141   : > { %v1703_v44 = vld [vmem:[#allocation2 + $0x30] sm:$0xff] }
 0x142   : > { %v1863_v45 = vadd.f32 %v2422_v36, %v1703_v44  ;;  %v1701_v46 = vld [vmem:[#allocation2 + $0x20] sm:$0xff] }
 0x143   : > { %v1875_v47 = vld [vmem:[#allocation2 + $0x10] sm:$0xff]  ;;  %v1861_v48 = vadd.f32 %v1842_v39, %v1701_v46  ;;  %v1704_v49 = vld [vmem:[#allocation2 + $0x38] sm:$0xff] }
 0x144   : > { %v1890_v50 = vadd.f32 %v2189_v43, %v1875_v47  ;;  %v1873_v51 = vld [vmem:[#allocation2] sm:$0xff]  ;;  %1871 = vst.msk [vmem:[#allocation2 + $0x30] sm:$0xff] %vm175_vm0, %v1863_v45  ;;  %v1864_v52 = vadd.f32 %v2423_v41, %v1704_v49  ;;  %v1702_v53 = vld [vmem:[#allocation2 + $0x28] sm:$0xff] }
 0x145   : > { %v1888_v54 = vadd.f32 %v2189_v43, %v1873_v51  ;;  %v1876_v55 = vld [vmem:[#allocation2 + $0x18] sm:$0xff]  ;;  %1869 = vst.msk [vmem:[#allocation2 + $0x20] sm:$0xff] %vm175_vm0, %v1861_v48  ;;  %v1862_v56 = vadd.f32 %v1845_v42, %v1702_v53 }
 0x146   : > { %v1898_v57 = vmax.f32 %v1890_v50, 0.0  ;;  %v1891_v58 = vadd.f32 %v2189_v43, %v1876_v55  ;;  %v1874_v59 = vld [vmem:[#allocation2 + $0x8] sm:$0xff]  ;;  %1872 = vst.msk [vmem:[#allocation2 + $0x38] sm:$0xff] %vm175_vm0, %v1864_v52 }
 0x147   : > { %v1896_v60 = vmax.f32 %v1888_v54, 0.0  ;;  %v1889_v61 = vadd.f32 %v2189_v43, %v1874_v59  ;;  %1870 = vst.msk [vmem:[#allocation2 + $0x28] sm:$0xff] %vm175_vm0, %v1862_v56 }
 0x148   : > { %v2202_v62 = vpack.c.bf16 %v1898_v57, %v1898_v57  ;;  %v1899_v63 = vmax.f32 %v1891_v58, 0.0 }
 0x149   : > { %v2200_v0 = vpack.c.bf16 %v1896_v60, %v1896_v60  ;;  %v1897_v1 = vmax.f32 %v1889_v61, 0.0 }
 0x14a   : > { %1939 = vst.msk [vmem:[%s2872_s22 + $0x8] sm:$0xf] %vm1936_vm5, %v2202_v62  ;;  %v2203_v2 = vpack.c.bf16 %v1899_v63, %v1899_v63 }
 0x14b   : > { %1937 = vst.msk [vmem:[%s2872_s22] sm:$0xf] %vm1936_vm5, %v2200_v0  ;;  %v2201_v3 = vpack.c.bf16 %v1897_v1, %v1897_v1  ;;  %v1879_v4 = vld [vmem:[#allocation2 + $0x30] sm:$0xff] }
 0x14c   : > { %1940 = vst.msk [vmem:[%s2872_s22 + $0xc] sm:$0xf] %vm1936_vm5, %v2203_v2  ;;  %v1894_v5 = vadd.f32 %v2189_v43, %v1879_v4  ;;  %v1877_v6 = vld [vmem:[#allocation2 + $0x20] sm:$0xff] }
 0x14d   : > { %1938 = vst.msk [vmem:[%s2872_s22 + $0x4] sm:$0xf] %vm1936_vm5, %v2201_v3  ;;  %v1892_v7 = vadd.f32 %v2189_v43, %v1877_v6  ;;  %v1880_v8 = vld [vmem:[#allocation2 + $0x38] sm:$0xff] }
 0x14e   : > { %v1902_v9 = vmax.f32 %v1894_v5, 0.0  ;;  %v1895_v10 = vadd.f32 %v2189_v43, %v1880_v8  ;;  %v1878_v11 = vld [vmem:[#allocation2 + $0x28] sm:$0xff] }
 0x14f   : > { %v1900_v12 = vmax.f32 %v1892_v7, 0.0  ;;  %v1893_v13 = vadd.f32 %v2189_v43, %v1878_v11 }
 0x150   : > { %v2206_v14 = vpack.c.bf16 %v1902_v9, %v1902_v9  ;;  %v1903_v15 = vmax.f32 %v1895_v10, 0.0 }
 0x151   : > { %v2204_v16 = vpack.c.bf16 %v1900_v12, %v1900_v12  ;;  %v1901_v17 = vmax.f32 %v1893_v13, 0.0 }
 0x152   : > { %1943 = vst.msk [vmem:[%s2872_s22 + $0x18] sm:$0xf] %vm1936_vm5, %v2206_v14  ;;  %v2207_v18 = vpack.c.bf16 %v1903_v15, %v1903_v15 }
 0x153   : > { %1941 = vst.msk [vmem:[%s2872_s22 + $0x10] sm:$0xf] %vm1936_vm5, %v2204_v16  ;;  %v2205_v19 = vpack.c.bf16 %v1901_v17, %v1901_v17 }
 0x154   : > { %1944 = vst.msk [vmem:[%s2872_s22 + $0x1c] sm:$0xf] %vm1936_vm5, %v2207_v18 }
 0x155   : > { %1942 = vst.msk [vmem:[%s2872_s22 + $0x14] sm:$0xf] %vm1936_vm5, %v2205_v19 }
 0x156 PF: > { %s13_s12 = sadd.s32 1, %s2527_s12  }
 0x157   : > { %p10_p5 = scmp.ge.s32.totalorder %s13_s12, 4  }
 0x159   :  { %12 = sbr.rel (!%p10_p5) target bundleno = 1 (0x1), region = 70 }

// kernel: policy_forward.7
= control target key start
LH: loop header
LB: loop body
LE: loop exit
PB: predicated region body
PF: predicated region fallthrough
CT: control target
= control target key end

     0   :  { %v811_v36 = vlaneseq  ;;  %v8571_v37 = vmov 1966171168   ;;  %vm4940_vm0 = vcmask 523264   ;;  %vm6365_vm2 = vcmask 1041408   ;;  %s11205_s1 = inlined_call_operand.vmem [shape: bf16[3136,512], index: 1, kind: input, shape index: {}]   ;;  %s11206_s0 = inlined_call_operand.vmem [shape: bf16[2,3136], index: 0, kind: input, shape index: {}]   ;;  %s11207_s3 = inlined_call_operand.vmem [shape: bf16[512,128], index: 3, kind: input, shape index: {}]   ;;  %s11208_s2 = inlined_call_operand.vmem [shape: f32[1,512], index: 2, kind: input, shape index: {}]   ;;  %s11209_s4 = inlined_call_operand.vmem [shape: f32[1,128], index: 4, kind: input, shape index: {}]   ;;  %s11210_s5 = inlined_call_operand.vmem [shape: f32[2,128], index: 5, kind: output, shape index: {}]  }
   0x1   :  { %v7354_v0 = vld [vmem:[%s11205_s1 + $0x4] ss:$16 sps:$4 sm:$0xff]   ;;  %v7356_v1 = vld [vmem:[%s11205_s1 + $0xc] ss:$16 sps:$4 sm:$0xff]   ;;  %v7358_v2 = vld [vmem:[%s11205_s1] ss:$16 sps:$4 sm:$0xff]   ;;  %v837_v38 = vunpack.c.l.s4 %v8571_v37 }
   0x2   :  { %4944 = vmatprep.subr.bf16.mxu0 %v7354_v0  ;;  %v7359_v3 = vld [vmem:[%s11205_s1 + $0x8] ss:$16 sps:$4 sm:$0xff]   ;;  %5477 = vmatprep.subr.bf16.mxu1 %v7356_v1  ;;  %v7360_v4 = vld [vmem:[%s11205_s1 + $0x24] ss:$16 sps:$4 sm:$0xff]   ;;  %v7362_v5 = vld [vmem:[%s11205_s1 + $0x2c] ss:$16 sps:$4 sm:$0xff]  }
   0x3   :  { %4945 = vmatpush1.bf16.msra.mxu0 %v7358_v2  ;;  %5478 = vmatpush1.bf16.msra.mxu1 %v7359_v3  ;;  %v7364_v6 = vld [vmem:[%s11205_s1 + $0x20] ss:$16 sps:$4 sm:$0xff]   ;;  %v7365_v7 = vld [vmem:[%s11205_s1 + $0x28] ss:$16 sps:$4 sm:$0xff]   ;;  %v7366_v8 = vld [vmem:[%s11205_s1 + $0x44] ss:$16 sps:$4 sm:$0xff]   ;;  %v838_v43 = vunpack.c.0.s8 %v837_v38 }
   0x4   :  { %4946 = vmatprep.subr.bf16.mxu0 %v7360_v4  ;;  %5479 = vmatprep.subr.bf16.mxu1 %v7362_v5  ;;  %v7368_v9 = vld [vmem:[%s11205_s1 + $0x4c] ss:$16 sps:$4 sm:$0xff]   ;;  %v7370_v10 = vld [vmem:[%s11205_s1 + $0x40] ss:$16 sps:$4 sm:$0xff]   ;;  %v7371_v11 = vld [vmem:[%s11205_s1 + $0x48] ss:$16 sps:$4 sm:$0xff]  }
   0x5   :  { %v7372_v12 = vld [vmem:[%s11205_s1 + $0x64] ss:$16 sps:$4 sm:$0xff]   ;;  %v7374_v13 = vld [vmem:[%s11205_s1 + $0x6c] ss:$16 sps:$4 sm:$0xff]   ;;  %v7376_v14 = vld [vmem:[%s11205_s1 + $0x60] ss:$16 sps:$4 sm:$0xff]  }
   0x6   :  { %v7377_v15 = vld [vmem:[%s11205_s1 + $0x68] ss:$16 sps:$4 sm:$0xff]   ;;  %v7378_v16 = vld [vmem:[%s11205_s1 + $0x84] ss:$16 sps:$4 sm:$0xff]   ;;  %v7380_v17 = vld [vmem:[%s11205_s1 + $0x8c] ss:$16 sps:$4 sm:$0xff]  }
   0x7   :  { %4947 = vmatpush1.bf16.msra.mxu0 %v7364_v6  ;;  %5480 = vmatpush1.bf16.msra.mxu1 %v7365_v7  ;;  %v7382_v18 = vld [vmem:[%s11205_s1 + $0x80] ss:$16 sps:$4 sm:$0xff]   ;;  %v7383_v19 = vld [vmem:[%s11205_s1 + $0x88] ss:$16 sps:$4 sm:$0xff]   ;;  %v7384_v20 = vld [vmem:[%s11205_s1 + $0xa4] ss:$16 sps:$4 sm:$0xff]  }
   0x8   :  { %4948 = vmatprep.subr.bf16.mxu0 %v7366_v8  ;;  %5481 = vmatprep.subr.bf16.mxu1 %v7368_v9  ;;  %v7386_v21 = vld [vmem:[%s11205_s1 + $0xac] ss:$16 sps:$4 sm:$0xff]   ;;  %v7388_v22 = vld [vmem:[%s11205_s1 + $0xa0] ss:$16 sps:$4 sm:$0xff]   ;;  %v7389_v23 = vld [vmem:[%s11205_s1 + $0xa8] ss:$16 sps:$4 sm:$0xff]  }
   0x9   :  { %v7390_v24 = vld [vmem:[%s11205_s1 + $0xc4] ss:$16 sps:$4 sm:$0xff]   ;;  %v7392_v25 = vld [vmem:[%s11205_s1 + $0xcc] ss:$16 sps:$4 sm:$0xff]   ;;  %v7394_v26 = vld [vmem:[%s11205_s1 + $0xc0] ss:$16 sps:$4 sm:$0xff]  }
   0xa   :  { %v7395_v27 = vld [vmem:[%s11205_s1 + $0xc8] ss:$16 sps:$4 sm:$0xff]   ;;  %v7396_v28 = vld [vmem:[%s11205_s1 + $0xe4] ss:$16 sps:$4 sm:$0xff]   ;;  %v7398_v29 = vld [vmem:[%s11205_s1 + $0xec] ss:$16 sps:$4 sm:$0xff]  }
   0xb   :  { %4949 = vmatpush1.bf16.msra.mxu0 %v7370_v10  ;;  %5482 = vmatpush1.bf16.msra.mxu1 %v7371_v11  ;;  %v7400_v30 = vld [vmem:[%s11205_s1 + $0xe0] ss:$16 sps:$4 sm:$0xff]   ;;  %v7401_v31 = vld [vmem:[%s11205_s1 + $0xe8] ss:$16 sps:$4 sm:$0xff]   ;;  %v7402_v32 = vld [vmem:[%s11205_s1 + $0x104] ss:$16 sps:$4 sm:$0xff]  }
   0xc   :  { %4950 = vmatprep.subr.bf16.mxu0 %v7372_v12  ;;  %5483 = vmatprep.subr.bf16.mxu1 %v7374_v13  ;;  %v7404_v33 = vld [vmem:[%s11205_s1 + $0x10c] ss:$16 sps:$4 sm:$0xff]   ;;  %v7406_v34 = vld [vmem:[%s11205_s1 + $0x100] ss:$16 sps:$4 sm:$0xff]   ;;  %v7407_v35 = vld [vmem:[%s11205_s1 + $0x108] ss:$16 sps:$4 sm:$0xff]  }
   0xd   :  { %v7408_v39 = vld [vmem:[%s11205_s1 + $0x124] ss:$16 sps:$4 sm:$0xff]   ;;  %v7410_v40 = vld [vmem:[%s11205_s1 + $0x12c] ss:$16 sps:$4 sm:$0xff]   ;;  %v7412_v41 = vld [vmem:[%s11205_s1 + $0x120] ss:$16 sps:$4 sm:$0xff]  }
   0xe   :  { %v8721_v42 = vshrl.u32 %v811_v36, 7  ;;  %v7413_v44 = vld [vmem:[%s11205_s1 + $0x128] ss:$16 sps:$4 sm:$0xff]   ;;  %v7414_v45 = vld [vmem:[%s11205_s1 + $0x144] ss:$16 sps:$4 sm:$0xff]  }
   0xf   :  { %4951 = vmatpush1.bf16.msra.mxu0 %v7376_v14  ;;  %5484 = vmatpush1.bf16.msra.mxu1 %v7377_v15  ;;  %v7416_v46 = vld [vmem:[%s11205_s1 + $0x14c] ss:$16 sps:$4 sm:$0xff]   ;;  %v7418_v47 = vld [vmem:[%s11205_s1 + $0x140] ss:$16 sps:$4 sm:$0xff]   ;;  %v7419_v48 = vld [vmem:[%s11205_s1 + $0x148] ss:$16 sps:$4 sm:$0xff]  }
  0x10   :  { %4952 = vmatprep.subr.bf16.mxu0 %v7378_v16  ;;  %5485 = vmatprep.subr.bf16.mxu1 %v7380_v17  ;;  %v8739_v49 = vsub.s32 %v838_v43, %v8721_v42  ;;  %v7420_v50 = vld [vmem:[%s11205_s1 + $0x164] ss:$16 sps:$4 sm:$0xff]   ;;  %v7422_v51 = vld [vmem:[%s11205_s1 + $0x16c] ss:$16 sps:$4 sm:$0xff]   ;;  %v7424_v53 = vld [vmem:[%s11205_s1 + $0x160] ss:$16 sps:$4 sm:$0xff]  }
  0x11   :  { %v8750_v52 = vld [vmem:[%s11206_s0] sm:$0xff]  ;;  %v7425_v55 = vld [vmem:[%s11205_s1 + $0x168] ss:$16 sps:$4 sm:$0xff]   ;;  %v7428_v57 = vld [vmem:[%s11205_s1 + $0x18c] ss:$16 sps:$4 sm:$0xff]  }
  0x12   :  { %v842_v54 = vrot.slane %v8750_v52, %v8739_v49  ;;  %v7426_v56 = vld [vmem:[%s11205_s1 + $0x184] ss:$16 sps:$4 sm:$0xff]   ;;  %v7430_v59 = vld [vmem:[%s11205_s1 + $0x180] ss:$16 sps:$4 sm:$0xff]   ;;  %v7431_v61 = vld [vmem:[%s11205_s1 + $0x188] ss:$16 sps:$4 sm:$0xff]  }
  0x13   :  { %4953 = vmatpush1.bf16.msra.mxu0 %v7382_v18  ;;  %5486 = vmatpush1.bf16.msra.mxu1 %v7383_v19  ;;  %v7432_v62 = vld [vmem:[%s11205_s1 + $0x1a4] ss:$16 sps:$4 sm:$0xff]   ;;  %v7434_v63 = vld [vmem:[%s11205_s1 + $0x1ac] ss:$16 sps:$4 sm:$0xff]   ;;  %v7436_v0 = vld [vmem:[%s11205_s1 + $0x1a0] ss:$16 sps:$4 sm:$0xff]  }
  0x14   :  { %4954 = vmatprep.subr.bf16.mxu0 %v7384_v20  ;;  %5487 = vmatprep.subr.bf16.mxu1 %v7386_v21  ;;  %v850_v58 = vcombine.high %v842_v54, %v842_v54  ;;  %v7437_v1 = vld [vmem:[%s11205_s1 + $0x1a8] ss:$16 sps:$4 sm:$0xff]   ;;  %v7438_v2 = vld [vmem:[%s11205_s1 + $0x1c4] ss:$16 sps:$4 sm:$0xff]   ;;  %v7440_v3 = vld [vmem:[%s11205_s1 + $0x1cc] ss:$16 sps:$4 sm:$0xff]   ;;  %v8819_v13 = vrot.slane %v842_v54, %v8739_v49 }
  0x15   :  { %v7442_v4 = vld [vmem:[%s11205_s1 + $0x1c0] ss:$16 sps:$4 sm:$0xff]   ;;  %v7443_v5 = vld [vmem:[%s11205_s1 + $0x1c8] ss:$16 sps:$4 sm:$0xff]   ;;  %v7444_v6 = vld [vmem:[%s11205_s1 + $0x1e4] ss:$16 sps:$4 sm:$0xff]  }
  0x16   :  { %v872_v60 = vrot.slane %v850_v58, %v8739_v49  ;;  %v7446_v7 = vld [vmem:[%s11205_s1 + $0x1ec] ss:$16 sps:$4 sm:$0xff]   ;;  %v7448_v8 = vld [vmem:[%s11205_s1 + $0x1e0] ss:$16 sps:$4 sm:$0xff]   ;;  %v7449_v9 = vld [vmem:[%s11205_s1 + $0x1e8] ss:$16 sps:$4 sm:$0xff]  }
  0x17   :  { %4955 = vmatpush1.bf16.msra.mxu0 %v7388_v22  ;;  %5488 = vmatpush1.bf16.msra.mxu1 %v7389_v23  ;;  %v7452_v10 = vld [vmem:[%s11205_s1 + $0x204] ss:$16 sps:$4 sm:$0xff]   ;;  %v7455_v11 = vld [vmem:[%s11205_s1 + $0x20c] ss:$16 sps:$4 sm:$0xff]   ;;  %v7450_v12 = vld [vmem:[%s11205_s1 + $0x200] ss:$16 sps:$4 sm:$0xff]  }
  0x18   :  { %4956 = vmatprep.subr.bf16.mxu0 %v7390_v24  ;;  %5489 = vmatprep.subr.bf16.mxu1 %v7392_v25  ;;  %v7453_v14 = vld [vmem:[%s11205_s1 + $0x208] ss:$16 sps:$4 sm:$0xff]   ;;  %v7458_v15 = vld [vmem:[%s11205_s1 + $0x224] ss:$16 sps:$4 sm:$0xff]   ;;  %v7461_v16 = vld [vmem:[%s11205_s1 + $0x22c] ss:$16 sps:$4 sm:$0xff]   ;;  %v882_v17 = vcombine.high %v872_v60, %v872_v60 }
  0x19   :  { %4976 = vmatprep.mubr.bf16.mxu0 %v872_v60  ;;  %5509 = vmatprep.mubr.bf16.mxu1 %v872_v60  ;;  %v7456_v18 = vld [vmem:[%s11205_s1 + $0x220] ss:$16 sps:$4 sm:$0xff]   ;;  %v7459_v19 = vld [vmem:[%s11205_s1 + $0x228] ss:$16 sps:$4 sm:$0xff]   ;;  %v7464_v20 = vld [vmem:[%s11205_s1 + $0x244] ss:$16 sps:$4 sm:$0xff]  }
  0x1a   :  { %v7467_v21 = vld [vmem:[%s11205_s1 + $0x24c] ss:$16 sps:$4 sm:$0xff]   ;;  %v7462_v22 = vld [vmem:[%s11205_s1 + $0x240] ss:$16 sps:$4 sm:$0xff]   ;;  %v7465_v23 = vld [vmem:[%s11205_s1 + $0x248] ss:$16 sps:$4 sm:$0xff]  }
  0x1b   :  { %4957 = vmatpush1.bf16.msra.mxu0 %v7394_v26  ;;  %5490 = vmatpush1.bf16.msra.mxu1 %v7395_v27  ;;  %v7470_v24 = vld [vmem:[%s11205_s1 + $0x264] ss:$16 sps:$4 sm:$0xff]   ;;  %v7473_v25 = vld [vmem:[%s11205_s1 + $0x26c] ss:$16 sps:$4 sm:$0xff]   ;;  %v7468_v26 = vld [vmem:[%s11205_s1 + $0x260] ss:$16 sps:$4 sm:$0xff]  }
  0x1c   :  { %4958 = vmatprep.subr.bf16.mxu0 %v7396_v28  ;;  %5491 = vmatprep.subr.bf16.mxu1 %v7398_v29  ;;  %v7471_v27 = vld [vmem:[%s11205_s1 + $0x268] ss:$16 sps:$4 sm:$0xff]   ;;  %v7476_v28 = vld [vmem:[%s11205_s1 + $0x284] ss:$16 sps:$4 sm:$0xff]   ;;  %v7479_v29 = vld [vmem:[%s11205_s1 + $0x28c] ss:$16 sps:$4 sm:$0xff]  }
  0x1d   :  { %v7488_v37 = vld [vmem:[%s11205_s1 + $0x2c4] ss:$16 sps:$4 sm:$0xff]   ;;  %v7491_v38 = vld [vmem:[%s11205_s1 + $0x2cc] ss:$16 sps:$4 sm:$0xff]   ;;  %v7504_v54 = vld [vmem:[%s11205_s1 + $0x320] ss:$16 sps:$4 sm:$0xff]  }
  0x1e   :  { %v7497_v43 = vld [vmem:[%s11205_s1 + $0x2ec] ss:$16 sps:$4 sm:$0xff]   ;;  %v7510_v58 = vld [vmem:[%s11205_s1 + $0x340] ss:$16 sps:$4 sm:$0xff]   ;;  %v7518_v60 = vld [vmem:[%s11205_s1 + $0x364] ss:$16 sps:$4 sm:$0xff]  }
  0x1f   :  { %4959 = vmatpush1.bf16.msra.mxu0 %v7400_v30  ;;  %5492 = vmatpush1.bf16.msra.mxu1 %v7401_v31  ;;  %v7474_v30 = vld [vmem:[%s11205_s1 + $0x280] ss:$16 sps:$4 sm:$0xff]   ;;  %v7477_v31 = vld [vmem:[%s11205_s1 + $0x288] ss:$16 sps:$4 sm:$0xff]  }
  0x20   :  { %4960 = vmatprep.subr.bf16.mxu0 %v7402_v32  ;;  %5493 = vmatprep.subr.bf16.mxu1 %v7404_v33  ;;  %v7482_v32 = vld [vmem:[%s11205_s1 + $0x2a4] ss:$16 sps:$4 sm:$0xff]   ;;  %v7485_v33 = vld [vmem:[%s11205_s1 + $0x2ac] ss:$16 sps:$4 sm:$0xff]  }
  0x23   :  { %4961 = vmatpush1.bf16.msra.mxu0 %v7406_v34  ;;  %5494 = vmatpush1.bf16.msra.mxu1 %v7407_v35  ;;  %v7480_v34 = vld [vmem:[%s11205_s1 + $0x2a0] ss:$16 sps:$4 sm:$0xff]   ;;  %v7483_v35 = vld [vmem:[%s11205_s1 + $0x2a8] ss:$16 sps:$4 sm:$0xff]  }
  0x24   :  { %4962 = vmatprep.subr.bf16.mxu0 %v7408_v39  ;;  %5495 = vmatprep.subr.bf16.mxu1 %v7410_v40  ;;  %v7486_v39 = vld [vmem:[%s11205_s1 + $0x2c0] ss:$16 sps:$4 sm:$0xff]   ;;  %v7489_v40 = vld [vmem:[%s11205_s1 + $0x2c8] ss:$16 sps:$4 sm:$0xff]  }
  0x27   :  { %4963 = vmatpush1.bf16.msra.mxu0 %v7412_v41  ;;  %5496 = vmatpush1.bf16.msra.mxu1 %v7413_v44  ;;  %v7494_v41 = vld [vmem:[%s11205_s1 + $0x2e4] ss:$16 sps:$4 sm:$0xff]   ;;  %v7492_v44 = vld [vmem:[%s11205_s1 + $0x2e0] ss:$16 sps:$4 sm:$0xff]  }
  0x28   :  { %4964 = vmatprep.subr.bf16.mxu0 %v7414_v45  ;;  %5497 = vmatprep.subr.bf16.mxu1 %v7416_v46  ;;  %v7495_v45 = vld [vmem:[%s11205_s1 + $0x2e8] ss:$16 sps:$4 sm:$0xff]   ;;  %v7500_v46 = vld [vmem:[%s11205_s1 + $0x304] ss:$16 sps:$4 sm:$0xff]  }
  0x2b   :  { %4965 = vmatpush1.bf16.msra.mxu0 %v7418_v47  ;;  %5498 = vmatpush1.bf16.msra.mxu1 %v7419_v48  ;;  %v7503_v47 = vld [vmem:[%s11205_s1 + $0x30c] ss:$16 sps:$4 sm:$0xff]   ;;  %v7498_v48 = vld [vmem:[%s11205_s1 + $0x300] ss:$16 sps:$4 sm:$0xff]  }
  0x2c   :  { %4966 = vmatprep.subr.bf16.mxu0 %v7420_v50  ;;  %5499 = vmatprep.subr.bf16.mxu1 %v7422_v51  ;;  %v7501_v50 = vld [vmem:[%s11205_s1 + $0x308] ss:$16 sps:$4 sm:$0xff]   ;;  %v7506_v51 = vld [vmem:[%s11205_s1 + $0x324] ss:$16 sps:$4 sm:$0xff]  }
  0x2f   :  { %4967 = vmatpush1.bf16.msra.mxu0 %v7424_v53  ;;  %5500 = vmatpush1.bf16.msra.mxu1 %v7425_v55  ;;  %v7509_v53 = vld [vmem:[%s11205_s1 + $0x32c] ss:$16 sps:$4 sm:$0xff]   ;;  %v7507_v55 = vld [vmem:[%s11205_s1 + $0x328] ss:$16 sps:$4 sm:$0xff]  }
  0x30   :  { %4968 = vmatprep.subr.bf16.mxu0 %v7426_v56  ;;  %5501 = vmatprep.subr.bf16.mxu1 %v7428_v57  ;;  %v7512_v56 = vld [vmem:[%s11205_s1 + $0x344] ss:$16 sps:$4 sm:$0xff]   ;;  %v7515_v57 = vld [vmem:[%s11205_s1 + $0x34c] ss:$16 sps:$4 sm:$0xff]  }
  0x33   :  { %4969 = vmatpush1.bf16.msra.mxu0 %v7430_v59  ;;  %5502 = vmatpush1.bf16.msra.mxu1 %v7431_v61  ;;  %v7513_v59 = vld [vmem:[%s11205_s1 + $0x348] ss:$16 sps:$4 sm:$0xff]   ;;  %v7521_v61 = vld [vmem:[%s11205_s1 + $0x36c] ss:$16 sps:$4 sm:$0xff]  }
  0x34   :  { %4970 = vmatprep.subr.bf16.mxu0 %v7432_v62  ;;  %5503 = vmatprep.subr.bf16.mxu1 %v7434_v63  ;;  %v7516_v62 = vld [vmem:[%s11205_s1 + $0x360] ss:$16 sps:$4 sm:$0xff]   ;;  %v7519_v63 = vld [vmem:[%s11205_s1 + $0x368] ss:$16 sps:$4 sm:$0xff]  }
  0x37   :  { %4971 = vmatpush1.bf16.msra.mxu0 %v7436_v0  ;;  %5504 = vmatpush1.bf16.msra.mxu1 %v7437_v1  ;;  %v7524_v0 = vld [vmem:[%s11205_s1 + $0x384] ss:$16 sps:$4 sm:$0xff]   ;;  %v7527_v1 = vld [vmem:[%s11205_s1 + $0x38c] ss:$16 sps:$4 sm:$0xff]  }
  0x38   :  { %4972 = vmatprep.subr.bf16.mxu0 %v7438_v2  ;;  %5505 = vmatprep.subr.bf16.mxu1 %v7440_v3  ;;  %v7522_v2 = vld [vmem:[%s11205_s1 + $0x380] ss:$16 sps:$4 sm:$0xff]   ;;  %v7525_v3 = vld [vmem:[%s11205_s1 + $0x388] ss:$16 sps:$4 sm:$0xff]  }
  0x3b   :  { %4973 = vmatpush1.bf16.msra.mxu0 %v7442_v4  ;;  %5506 = vmatpush1.bf16.msra.mxu1 %v7443_v5  ;;  %v7530_v4 = vld [vmem:[%s11205_s1 + $0x3a4] ss:$16 sps:$4 sm:$0xff]   ;;  %v7533_v5 = vld [vmem:[%s11205_s1 + $0x3ac] ss:$16 sps:$4 sm:$0xff]  }
  0x3c   :  { %4974 = vmatprep.subr.bf16.mxu0 %v7444_v6  ;;  %5507 = vmatprep.subr.bf16.mxu1 %v7446_v7  ;;  %v7528_v6 = vld [vmem:[%s11205_s1 + $0x3a0] ss:$16 sps:$4 sm:$0xff]   ;;  %v7531_v7 = vld [vmem:[%s11205_s1 + $0x3a8] ss:$16 sps:$4 sm:$0xff]  }
  0x3f   :  { %4975 = vmatpush1.bf16.msra.mxu0 %v7448_v8  ;;  %5508 = vmatpush1.bf16.msra.mxu1 %v7449_v9  ;;  %v7536_v8 = vld [vmem:[%s11205_s1 + $0x3c4] ss:$16 sps:$4 sm:$0xff]   ;;  %v7539_v9 = vld [vmem:[%s11205_s1 + $0x3cc] ss:$16 sps:$4 sm:$0xff]  }
  0x40   :  { %4985 = vmatprep.subr.bf16.mxu0 %v7452_v10  ;;  %5518 = vmatprep.subr.bf16.mxu1 %v7455_v11  ;;  %v835_v10 = vcombine.high %v8750_v52, %v8750_v52  ;;  %v7534_v11 = vld [vmem:[%s11205_s1 + $0x3c0] ss:$16 sps:$4 sm:$0xff]   ;;  %v7545_v52 = vld [vmem:[%s11205_s1 + $0x3ec] ss:$16 sps:$4 sm:$0xff]  }
  0x42   :  { %4977 = vmatmul.mubr.bf16.vlgmr.msra.gmra.mrb[0].mxu0 %v8819_v13  ;;  %5510 = vmatmul.mubr.bf16.vlgmr.msra.gmra.mrb[0].mxu1 %v8819_v13 }
  0x43   :  { %4986 = vmatpush1.bf16.msra.mxu0 %v7450_v12  ;;  %5519 = vmatpush1.bf16.msra.mxu1 %v7453_v14  ;;  %v7537_v12 = vld [vmem:[%s11205_s1 + $0x3c8] ss:$16 sps:$4 sm:$0xff]   ;;  %v7542_v14 = vld [vmem:[%s11205_s1 + $0x3e4] ss:$16 sps:$4 sm:$0xff]  }
  0x44   :  { %4987 = vmatprep.subr.bf16.mxu0 %v7458_v15  ;;  %5520 = vmatprep.subr.bf16.mxu1 %v7461_v16  ;;  %v9003_v15 = vrot.slane %v835_v10, %v8739_v49  ;;  %v7540_v16 = vld [vmem:[%s11205_s1 + $0x3e0] ss:$16 sps:$4 sm:$0xff]  }
  0x45   :  { %5017 = vmatprep.mubr.bf16.mxu0 %v882_v17  ;;  %5550 = vmatprep.mubr.bf16.mxu1 %v882_v17  ;;  %v7543_v17 = vld [vmem:[%s11205_s1 + $0x3e8] ss:$16 sps:$4 sm:$0xff]   ;;  %v7618_v10 = vld [vmem:[%s11205_s1 + $0x580] ss:$16 sps:$4 sm:$0xff]  }
  0x47   :  { %4988 = vmatpush1.bf16.msra.mxu0 %v7456_v18  ;;  %5521 = vmatpush1.bf16.msra.mxu1 %v7459_v19  ;;  %v7548_v18 = vld [vmem:[%s11205_s1 + $0x404] ss:$16 sps:$4 sm:$0xff]   ;;  %v7551_v19 = vld [vmem:[%s11205_s1 + $0x40c] ss:$16 sps:$4 sm:$0xff]  }
  0x48   :  { %4989 = vmatprep.subr.bf16.mxu0 %v7464_v20  ;;  %5522 = vmatprep.subr.bf16.mxu1 %v7467_v21  ;;  %v851_v20 = vcombine.high %v9003_v15, %v9003_v15  ;;  %v7546_v21 = vld [vmem:[%s11205_s1 + $0x400] ss:$16 sps:$4 sm:$0xff]  }
  0x4b   :  { %4990 = vmatpush1.bf16.msra.mxu0 %v7462_v22  ;;  %5523 = vmatpush1.bf16.msra.mxu1 %v7465_v23  ;;  %v880_v22 = vcombine.high %v8819_v13, %v8819_v13  ;;  %v7549_v23 = vld [vmem:[%s11205_s1 + $0x408] ss:$16 sps:$4 sm:$0xff]   ;;  %v7552_v13 = vld [vmem:[%s11205_s1 + $0x420] ss:$16 sps:$4 sm:$0xff]  }
  0x4c   :  { %4991 = vmatprep.subr.bf16.mxu0 %v7470_v24  ;;  %5524 = vmatprep.subr.bf16.mxu1 %v7473_v25  ;;  %v7554_v24 = vld [vmem:[%s11205_s1 + $0x424] ss:$16 sps:$4 sm:$0xff]   ;;  %v7557_v25 = vld [vmem:[%s11205_s1 + $0x42c] ss:$16 sps:$4 sm:$0xff]  }
  0x4f   :  { %4992 = vmatpush1.bf16.msra.mxu0 %v7468_v26  ;;  %5525 = vmatpush1.bf16.msra.mxu1 %v7471_v27  ;;  %v9034_v26 = vrot.slane %v851_v20, %v8739_v49  ;;  %v7555_v27 = vld [vmem:[%s11205_s1 + $0x428] ss:$16 sps:$4 sm:$0xff]  }
  0x50   :  { %4993 = vmatprep.subr.bf16.mxu0 %v7476_v28  ;;  %5526 = vmatprep.subr.bf16.mxu1 %v7479_v29  ;;  %v7560_v28 = vld [vmem:[%s11205_s1 + $0x444] ss:$16 sps:$4 sm:$0xff]   ;;  %v7563_v29 = vld [vmem:[%s11205_s1 + $0x44c] ss:$16 sps:$4 sm:$0xff]   ;;  %v7633_v20 = vld [vmem:[%s11205_s1 + $0x5c8] ss:$16 sps:$4 sm:$0xff]  }
  0x53   :  { %4994 = vmatpush1.bf16.msra.mxu0 %v7474_v30  ;;  %5527 = vmatpush1.bf16.msra.mxu1 %v7477_v31  ;;  %v7558_v30 = vld [vmem:[%s11205_s1 + $0x440] ss:$16 sps:$4 sm:$0xff]   ;;  %v7561_v31 = vld [vmem:[%s11205_s1 + $0x448] ss:$16 sps:$4 sm:$0xff]  }
  0x54   :  { %4995 = vmatprep.subr.bf16.mxu0 %v7482_v32  ;;  %5528 = vmatprep.subr.bf16.mxu1 %v7485_v33  ;;  %v7566_v32 = vld [vmem:[%s11205_s1 + $0x464] ss:$16 sps:$4 sm:$0xff]   ;;  %v7569_v33 = vld [vmem:[%s11205_s1 + $0x46c] ss:$16 sps:$4 sm:$0xff]  }
  0x57   :  { %4996 = vmatpush1.bf16.msra.mxu0 %v7480_v34  ;;  %5529 = vmatpush1.bf16.msra.mxu1 %v7483_v35  ;;  %v7564_v34 = vld [vmem:[%s11205_s1 + $0x460] ss:$16 sps:$4 sm:$0xff]   ;;  %v7567_v35 = vld [vmem:[%s11205_s1 + $0x468] ss:$16 sps:$4 sm:$0xff]  }
  0x58   :  { %4997 = vmatprep.subr.bf16.mxu0 %v7488_v37  ;;  %5530 = vmatprep.subr.bf16.mxu1 %v7491_v38  ;;  %v7572_v37 = vld [vmem:[%s11205_s1 + $0x484] ss:$16 sps:$4 sm:$0xff]   ;;  %v7575_v38 = vld [vmem:[%s11205_s1 + $0x48c] ss:$16 sps:$4 sm:$0xff]  }
  0x5b   :  { %4998 = vmatpush1.bf16.msra.mxu0 %v7486_v39  ;;  %5531 = vmatpush1.bf16.msra.mxu1 %v7489_v40  ;;  %v7570_v39 = vld [vmem:[%s11205_s1 + $0x480] ss:$16 sps:$4 sm:$0xff]   ;;  %v7573_v40 = vld [vmem:[%s11205_s1 + $0x488] ss:$16 sps:$4 sm:$0xff]  }
  0x5c   :  { %4999 = vmatprep.subr.bf16.mxu0 %v7494_v41  ;;  %5532 = vmatprep.subr.bf16.mxu1 %v7497_v43  ;;  %v7578_v41 = vld [vmem:[%s11205_s1 + $0x4a4] ss:$16 sps:$4 sm:$0xff]   ;;  %v7581_v43 = vld [vmem:[%s11205_s1 + $0x4ac] ss:$16 sps:$4 sm:$0xff]  }
  0x5f   :  { %5000 = vmatpush1.bf16.msra.mxu0 %v7492_v44  ;;  %5533 = vmatpush1.bf16.msra.mxu1 %v7495_v45  ;;  %v7576_v44 = vld [vmem:[%s11205_s1 + $0x4a0] ss:$16 sps:$4 sm:$0xff]   ;;  %v7579_v45 = vld [vmem:[%s11205_s1 + $0x4a8] ss:$16 sps:$4 sm:$0xff]  }
  0x60   :  { %5001 = vmatprep.subr.bf16.mxu0 %v7500_v46  ;;  %5534 = vmatprep.subr.bf16.mxu1 %v7503_v47  ;;  %v7584_v46 = vld [vmem:[%s11205_s1 + $0x4c4] ss:$16 sps:$4 sm:$0xff]   ;;  %v7587_v47 = vld [vmem:[%s11205_s1 + $0x4cc] ss:$16 sps:$4 sm:$0xff]  }
  0x63   :  { %5002 = vmatpush1.bf16.msra.mxu0 %v7498_v48  ;;  %5535 = vmatpush1.bf16.msra.mxu1 %v7501_v50  ;;  %v7582_v48 = vld [vmem:[%s11205_s1 + $0x4c0] ss:$16 sps:$4 sm:$0xff]   ;;  %v7585_v50 = vld [vmem:[%s11205_s1 + $0x4c8] ss:$16 sps:$4 sm:$0xff]  }
  0x64   :  { %5003 = vmatprep.subr.bf16.mxu0 %v7506_v51  ;;  %5536 = vmatprep.subr.bf16.mxu1 %v7509_v53  ;;  %v7590_v51 = vld [vmem:[%s11205_s1 + $0x4e4] ss:$16 sps:$4 sm:$0xff]   ;;  %v7593_v53 = vld [vmem:[%s11205_s1 + $0x4ec] ss:$16 sps:$4 sm:$0xff]  }
  0x67   :  { %5004 = vmatpush1.bf16.msra.mxu0 %v7504_v54  ;;  %5537 = vmatpush1.bf16.msra.mxu1 %v7507_v55  ;;  %v7588_v54 = vld [vmem:[%s11205_s1 + $0x4e0] ss:$16 sps:$4 sm:$0xff]   ;;  %v7591_v55 = vld [vmem:[%s11205_s1 + $0x4e8] ss:$16 sps:$4 sm:$0xff]  }
  0x68   :  { %5005 = vmatprep.subr.bf16.mxu0 %v7512_v56  ;;  %5538 = vmatprep.subr.bf16.mxu1 %v7515_v57  ;;  %v7596_v56 = vld [vmem:[%s11205_s1 + $0x504] ss:$16 sps:$4 sm:$0xff]   ;;  %v7599_v57 = vld [vmem:[%s11205_s1 + $0x50c] ss:$16 sps:$4 sm:$0xff]  }
  0x6b   :  { %5006 = vmatpush1.bf16.msra.mxu0 %v7510_v58  ;;  %5539 = vmatpush1.bf16.msra.mxu1 %v7513_v59  ;;  %v7594_v58 = vld [vmem:[%s11205_s1 + $0x500] ss:$16 sps:$4 sm:$0xff]   ;;  %v7597_v59 = vld [vmem:[%s11205_s1 + $0x508] ss:$16 sps:$4 sm:$0xff]  }
  0x6c   :  { %5007 = vmatprep.subr.bf16.mxu0 %v7518_v60  ;;  %5540 = vmatprep.subr.bf16.mxu1 %v7521_v61  ;;  %v7602_v60 = vld [vmem:[%s11205_s1 + $0x524] ss:$16 sps:$4 sm:$0xff]   ;;  %v7605_v61 = vld [vmem:[%s11205_s1 + $0x52c] ss:$16 sps:$4 sm:$0xff]  }
  0x6f   :  { %5008 = vmatpush1.bf16.msra.mxu0 %v7516_v62  ;;  %5541 = vmatpush1.bf16.msra.mxu1 %v7519_v63  ;;  %v7600_v62 = vld [vmem:[%s11205_s1 + $0x520] ss:$16 sps:$4 sm:$0xff]   ;;  %v7603_v63 = vld [vmem:[%s11205_s1 + $0x528] ss:$16 sps:$4 sm:$0xff]  }
  0x70   :  { %5009 = vmatprep.subr.bf16.mxu0 %v7524_v0  ;;  %5542 = vmatprep.subr.bf16.mxu1 %v7527_v1  ;;  %v7608_v0 = vld [vmem:[%s11205_s1 + $0x544] ss:$16 sps:$4 sm:$0xff]   ;;  %v7611_v1 = vld [vmem:[%s11205_s1 + $0x54c] ss:$16 sps:$4 sm:$0xff]  }
  0x73   :  { %5010 = vmatpush1.bf16.msra.mxu0 %v7522_v2  ;;  %5543 = vmatpush1.bf16.msra.mxu1 %v7525_v3  ;;  %v7606_v2 = vld [vmem:[%s11205_s1 + $0x540] ss:$16 sps:$4 sm:$0xff]   ;;  %v7609_v3 = vld [vmem:[%s11205_s1 + $0x548] ss:$16 sps:$4 sm:$0xff]  }
  0x74   :  { %5011 = vmatprep.subr.bf16.mxu0 %v7530_v4  ;;  %5544 = vmatprep.subr.bf16.mxu1 %v7533_v5  ;;  %v7614_v4 = vld [vmem:[%s11205_s1 + $0x564] ss:$16 sps:$4 sm:$0xff]   ;;  %v7617_v5 = vld [vmem:[%s11205_s1 + $0x56c] ss:$16 sps:$4 sm:$0xff]  }
  0x77   :  { %5012 = vmatpush1.bf16.msra.mxu0 %v7528_v6  ;;  %5545 = vmatpush1.bf16.msra.mxu1 %v7531_v7  ;;  %v7612_v6 = vld [vmem:[%s11205_s1 + $0x560] ss:$16 sps:$4 sm:$0xff]   ;;  %v7615_v7 = vld [vmem:[%s11205_s1 + $0x568] ss:$16 sps:$4 sm:$0xff]  }
  0x78   :  { %5013 = vmatprep.subr.bf16.mxu0 %v7536_v8  ;;  %5546 = vmatprep.subr.bf16.mxu1 %v7539_v9  ;;  %v7620_v8 = vld [vmem:[%s11205_s1 + $0x584] ss:$16 sps:$4 sm:$0xff]   ;;  %v7623_v9 = vld [vmem:[%s11205_s1 + $0x58c] ss:$16 sps:$4 sm:$0xff]  }
  0x7b   :  { %5014 = vmatpush1.bf16.msra.mxu0 %v7534_v11  ;;  %5547 = vmatpush1.bf16.msra.mxu1 %v7537_v12  ;;  %v7621_v11 = vld [vmem:[%s11205_s1 + $0x588] ss:$16 sps:$4 sm:$0xff]   ;;  %v7626_v12 = vld [vmem:[%s11205_s1 + $0x5a4] ss:$16 sps:$4 sm:$0xff]  }
  0x7c   :  { %5015 = vmatprep.subr.bf16.mxu0 %v7542_v14  ;;  %5548 = vmatprep.subr.bf16.mxu1 %v7545_v52  ;;  %v7629_v14 = vld [vmem:[%s11205_s1 + $0x5ac] ss:$16 sps:$4 sm:$0xff]   ;;  %v7624_v52 = vld [vmem:[%s11205_s1 + $0x5a0] ss:$16 sps:$4 sm:$0xff]  }
  0x7f   :  { %5016 = vmatpush1.bf16.msra.mxu0 %v7540_v16  ;;  %5549 = vmatpush1.bf16.msra.mxu1 %v7543_v17  ;;  %v7627_v16 = vld [vmem:[%s11205_s1 + $0x5a8] ss:$16 sps:$4 sm:$0xff]   ;;  %v7632_v17 = vld [vmem:[%s11205_s1 + $0x5c4] ss:$16 sps:$4 sm:$0xff]  }
  0x80   :  { %5026 = vmatprep.subr.bf16.mxu0 %v7548_v18  ;;  %5559 = vmatprep.subr.bf16.mxu1 %v7551_v19  ;;  %v7635_v18 = vld [vmem:[%s11205_s1 + $0x5cc] ss:$16 sps:$4 sm:$0xff]   ;;  %v7630_v19 = vld [vmem:[%s11205_s1 + $0x5c0] ss:$16 sps:$4 sm:$0xff]  }
  0x82   :  { %5018 = vmatmul.mubr.bf16.vlgmr.msra.gmra.mrb[0].mxu0 %v880_v22  ;;  %5551 = vmatmul.mubr.bf16.vlgmr.msra.gmra.mrb[0].mxu1 %v880_v22  ;;  %v7641_v22 = vld [vmem:[%s11205_s1 + $0x5ec] ss:$16 sps:$4 sm:$0xff]  }
  0x83   :  { %5027 = vmatpush1.bf16.msra.mxu0 %v7546_v21  ;;  %5560 = vmatpush1.bf16.msra.mxu1 %v7549_v23  ;;  %v7638_v21 = vld [vmem:[%s11205_s1 + $0x5e4] ss:$16 sps:$4 sm:$0xff]   ;;  %v7636_v23 = vld [vmem:[%s11205_s1 + $0x5e0] ss:$16 sps:$4 sm:$0xff]  }
  0x84   :  { %5028 = vmatprep.subr.bf16.mxu0 %v7554_v24  ;;  %5561 = vmatprep.subr.bf16.mxu1 %v7557_v25  ;;  %v7639_v24 = vld [vmem:[%s11205_s1 + $0x5e8] ss:$16 sps:$4 sm:$0xff]   ;;  %v7645_v25 = vld [vmem:[%s11205_s1 + $0x604] ss:$16 sps:$4 sm:$0xff]  }
  0x85   :  { %5058 = vmatprep.mubr.bf16.mxu0 %v9034_v26  ;;  %5591 = vmatprep.mubr.bf16.mxu1 %v9034_v26 }
  0x87   :  { %5029 = vmatpush1.bf16.msra.mxu0 %v7552_v13  ;;  %5562 = vmatpush1.bf16.msra.mxu1 %v7555_v27  ;;  %v7648_v13 = vld [vmem:[%s11205_s1 + $0x60c] ss:$16 sps:$4 sm:$0xff]   ;;  %v7643_v27 = vld [vmem:[%s11205_s1 + $0x600] ss:$16 sps:$4 sm:$0xff]  }
  0x88   :  { %5030 = vmatprep.subr.bf16.mxu0 %v7560_v28  ;;  %5563 = vmatprep.subr.bf16.mxu1 %v7563_v29  ;;  %v9223_v28 = vrot.slane %v9003_v15, %v8739_v49  ;;  %v7646_v29 = vld [vmem:[%s11205_s1 + $0x608] ss:$16 sps:$4 sm:$0xff]   ;;  %v883_v15 = vcombine.high %v9034_v26, %v9034_v26  ;;  %v7657_v26 = vld [vmem:[%s11205_s1 + $0x644] ss:$16 sps:$4 sm:$0xff]  }
  0x8b   :  { %5031 = vmatpush1.bf16.msra.mxu0 %v7558_v30  ;;  %5564 = vmatpush1.bf16.msra.mxu1 %v7561_v31  ;;  %v7651_v30 = vld [vmem:[%s11205_s1 + $0x624] ss:$16 sps:$4 sm:$0xff]   ;;  %v7654_v31 = vld [vmem:[%s11205_s1 + $0x62c] ss:$16 sps:$4 sm:$0xff]  }
  0x8c   :  { %5032 = vmatprep.subr.bf16.mxu0 %v7566_v32  ;;  %5565 = vmatprep.subr.bf16.mxu1 %v7569_v33  ;;  %v7649_v32 = vld [vmem:[%s11205_s1 + $0x620] ss:$16 sps:$4 sm:$0xff]   ;;  %v7652_v33 = vld [vmem:[%s11205_s1 + $0x628] ss:$16 sps:$4 sm:$0xff]  }
  0x8f   :  { %5033 = vmatpush1.bf16.msra.mxu0 %v7564_v34  ;;  %5566 = vmatpush1.bf16.msra.mxu1 %v7567_v35  ;;  %v7660_v34 = vld [vmem:[%s11205_s1 + $0x64c] ss:$16 sps:$4 sm:$0xff]   ;;  %v7655_v35 = vld [vmem:[%s11205_s1 + $0x640] ss:$16 sps:$4 sm:$0xff]  }
  0x90   :  { %5034 = vmatprep.subr.bf16.mxu0 %v7572_v37  ;;  %5567 = vmatprep.subr.bf16.mxu1 %v7575_v38  ;;  %v7658_v37 = vld [vmem:[%s11205_s1 + $0x648] ss:$16 sps:$4 sm:$0xff]   ;;  %v7663_v38 = vld [vmem:[%s11205_s1 + $0x664] ss:$16 sps:$4 sm:$0xff]  }
  0x93   :  { %5035 = vmatpush1.bf16.msra.mxu0 %v7570_v39  ;;  %5568 = vmatpush1.bf16.msra.mxu1 %v7573_v40  ;;  %v7666_v39 = vld [vmem:[%s11205_s1 + $0x66c] ss:$16 sps:$4 sm:$0xff]   ;;  %v7661_v40 = vld [vmem:[%s11205_s1 + $0x660] ss:$16 sps:$4 sm:$0xff]  }
  0x94   :  { %5036 = vmatprep.subr.bf16.mxu0 %v7578_v41  ;;  %5569 = vmatprep.subr.bf16.mxu1 %v7581_v43  ;;  %v7664_v41 = vld [vmem:[%s11205_s1 + $0x668] ss:$16 sps:$4 sm:$0xff]   ;;  %v7669_v43 = vld [vmem:[%s11205_s1 + $0x684] ss:$16 sps:$4 sm:$0xff]  }
  0x97   :  { %5037 = vmatpush1.bf16.msra.mxu0 %v7576_v44  ;;  %5570 = vmatpush1.bf16.msra.mxu1 %v7579_v45  ;;  %v7672_v44 = vld [vmem:[%s11205_s1 + $0x68c] ss:$16 sps:$4 sm:$0xff]   ;;  %v7667_v45 = vld [vmem:[%s11205_s1 + $0x680] ss:$16 sps:$4 sm:$0xff]  }
  0x98   :  { %5038 = vmatprep.subr.bf16.mxu0 %v7584_v46  ;;  %5571 = vmatprep.subr.bf16.mxu1 %v7587_v47  ;;  %v7670_v46 = vld [vmem:[%s11205_s1 + $0x688] ss:$16 sps:$4 sm:$0xff]   ;;  %v7675_v47 = vld [vmem:[%s11205_s1 + $0x6a4] ss:$16 sps:$4 sm:$0xff]  }
  0x9b   :  { %5039 = vmatpush1.bf16.msra.mxu0 %v7582_v48  ;;  %5572 = vmatpush1.bf16.msra.mxu1 %v7585_v50  ;;  %v7678_v48 = vld [vmem:[%s11205_s1 + $0x6ac] ss:$16 sps:$4 sm:$0xff]   ;;  %v7673_v50 = vld [vmem:[%s11205_s1 + $0x6a0] ss:$16 sps:$4 sm:$0xff]  }
  0x9c   :  { %5040 = vmatprep.subr.bf16.mxu0 %v7590_v51  ;;  %5573 = vmatprep.subr.bf16.mxu1 %v7593_v53  ;;  %v7676_v51 = vld [vmem:[%s11205_s1 + $0x6a8] ss:$16 sps:$4 sm:$0xff]   ;;  %v7681_v53 = vld [vmem:[%s11205_s1 + $0x6c4] ss:$16 sps:$4 sm:$0xff]  }
  0x9f   :  { %5041 = vmatpush1.bf16.msra.mxu0 %v7588_v54  ;;  %5574 = vmatpush1.bf16.msra.mxu1 %v7591_v55  ;;  %v7684_v54 = vld [vmem:[%s11205_s1 + $0x6cc] ss:$16 sps:$4 sm:$0xff]   ;;  %v7679_v55 = vld [vmem:[%s11205_s1 + $0x6c0] ss:$16 sps:$4 sm:$0xff]  }
  0xa0   :  { %5042 = vmatprep.subr.bf16.mxu0 %v7596_v56  ;;  %5575 = vmatprep.subr.bf16.mxu1 %v7599_v57  ;;  %v7682_v56 = vld [vmem:[%s11205_s1 + $0x6c8] ss:$16 sps:$4 sm:$0xff]   ;;  %v7687_v57 = vld [vmem:[%s11205_s1 + $0x6e4] ss:$16 sps:$4 sm:$0xff]  }
  0xa3   :  { %5043 = vmatpush1.bf16.msra.mxu0 %v7594_v58  ;;  %5576 = vmatpush1.bf16.msra.mxu1 %v7597_v59  ;;  %v7690_v58 = vld [vmem:[%s11205_s1 + $0x6ec] ss:$16 sps:$4 sm:$0xff]   ;;  %v7685_v59 = vld [vmem:[%s11205_s1 + $0x6e0] ss:$16 sps:$4 sm:$0xff]  }
  0xa4   :  { %5044 = vmatprep.subr.bf16.mxu0 %v7602_v60  ;;  %5577 = vmatprep.subr.bf16.mxu1 %v7605_v61  ;;  %v7688_v60 = vld [vmem:[%s11205_s1 + $0x6e8] ss:$16 sps:$4 sm:$0xff]   ;;  %v7693_v61 = vld [vmem:[%s11205_s1 + $0x704] ss:$16 sps:$4 sm:$0xff]  }
  0xa7   :  { %5045 = vmatpush1.bf16.msra.mxu0 %v7600_v62  ;;  %5578 = vmatpush1.bf16.msra.mxu1 %v7603_v63  ;;  %v7696_v62 = vld [vmem:[%s11205_s1 + $0x70c] ss:$16 sps:$4 sm:$0xff]   ;;  %v7691_v63 = vld [vmem:[%s11205_s1 + $0x700] ss:$16 sps:$4 sm:$0xff]  }
  0xa8   :  { %5046 = vmatprep.subr.bf16.mxu0 %v7608_v0  ;;  %5579 = vmatprep.subr.bf16.mxu1 %v7611_v1  ;;  %v7694_v0 = vld [vmem:[%s11205_s1 + $0x708] ss:$16 sps:$4 sm:$0xff]   ;;  %v7699_v1 = vld [vmem:[%s11205_s1 + $0x724] ss:$16 sps:$4 sm:$0xff]  }
  0xab   :  { %5047 = vmatpush1.bf16.msra.mxu0 %v7606_v2  ;;  %5580 = vmatpush1.bf16.msra.mxu1 %v7609_v3  ;;  %v7702_v2 = vld [vmem:[%s11205_s1 + $0x72c] ss:$16 sps:$4 sm:$0xff]   ;;  %v7697_v3 = vld [vmem:[%s11205_s1 + $0x720] ss:$16 sps:$4 sm:$0xff]  }
  0xac   :  { %5048 = vmatprep.subr.bf16.mxu0 %v7614_v4  ;;  %5581 = vmatprep.subr.bf16.mxu1 %v7617_v5  ;;  %v7700_v4 = vld [vmem:[%s11205_s1 + $0x728] ss:$16 sps:$4 sm:$0xff]   ;;  %v7705_v5 = vld [vmem:[%s11205_s1 + $0x744] ss:$16 sps:$4 sm:$0xff]  }
  0xaf   :  { %5049 = vmatpush1.bf16.msra.mxu0 %v7612_v6  ;;  %5582 = vmatpush1.bf16.msra.mxu1 %v7615_v7  ;;  %v7708_v6 = vld [vmem:[%s11205_s1 + $0x74c] ss:$16 sps:$4 sm:$0xff]   ;;  %v7703_v7 = vld [vmem:[%s11205_s1 + $0x740] ss:$16 sps:$4 sm:$0xff]  }
  0xb0   :  { %5050 = vmatprep.subr.bf16.mxu0 %v7620_v8  ;;  %5583 = vmatprep.subr.bf16.mxu1 %v7623_v9  ;;  %v7706_v8 = vld [vmem:[%s11205_s1 + $0x748] ss:$16 sps:$4 sm:$0xff]   ;;  %v7711_v9 = vld [vmem:[%s11205_s1 + $0x764] ss:$16 sps:$4 sm:$0xff]  }
  0xb3   :  { %5051 = vmatpush1.bf16.msra.mxu0 %v7618_v10  ;;  %5584 = vmatpush1.bf16.msra.mxu1 %v7621_v11  ;;  %v7714_v10 = vld [vmem:[%s11205_s1 + $0x76c] ss:$16 sps:$4 sm:$0xff]   ;;  %v7709_v11 = vld [vmem:[%s11205_s1 + $0x760] ss:$16 sps:$4 sm:$0xff]  }
  0xb4   :  { %5052 = vmatprep.subr.bf16.mxu0 %v7626_v12  ;;  %5585 = vmatprep.subr.bf16.mxu1 %v7629_v14  ;;  %v7712_v12 = vld [vmem:[%s11205_s1 + $0x768] ss:$16 sps:$4 sm:$0xff]   ;;  %v7717_v14 = vld [vmem:[%s11205_s1 + $0x784] ss:$16 sps:$4 sm:$0xff]  }
  0xb7   :  { %5053 = vmatpush1.bf16.msra.mxu0 %v7624_v52  ;;  %5586 = vmatpush1.bf16.msra.mxu1 %v7627_v16  ;;  %v7720_v52 = vld [vmem:[%s11205_s1 + $0x78c] ss:$16 sps:$4 sm:$0xff]   ;;  %v7715_v16 = vld [vmem:[%s11205_s1 + $0x780] ss:$16 sps:$4 sm:$0xff]  }
  0xb8   :  { %5054 = vmatprep.subr.bf16.mxu0 %v7632_v17  ;;  %5587 = vmatprep.subr.bf16.mxu1 %v7635_v18  ;;  %v7718_v17 = vld [vmem:[%s11205_s1 + $0x788] ss:$16 sps:$4 sm:$0xff]   ;;  %v7723_v18 = vld [vmem:[%s11205_s1 + $0x7a4] ss:$16 sps:$4 sm:$0xff]  }
  0xbb   :  { %5055 = vmatpush1.bf16.msra.mxu0 %v7630_v19  ;;  %5588 = vmatpush1.bf16.msra.mxu1 %v7633_v20  ;;  %v7726_v19 = vld [vmem:[%s11205_s1 + $0x7ac] ss:$16 sps:$4 sm:$0xff]   ;;  %v7721_v20 = vld [vmem:[%s11205_s1 + $0x7a0] ss:$16 sps:$4 sm:$0xff]  }
  0xbc   :  { %5056 = vmatprep.subr.bf16.mxu0 %v7638_v21  ;;  %5589 = vmatprep.subr.bf16.mxu1 %v7641_v22  ;;  %v7724_v21 = vld [vmem:[%s11205_s1 + $0x7a8] ss:$16 sps:$4 sm:$0xff]   ;;  %v7729_v22 = vld [vmem:[%s11205_s1 + $0x7c4] ss:$16 sps:$4 sm:$0xff]  }
  0xbf   :  { %5057 = vmatpush1.bf16.msra.mxu0 %v7636_v23  ;;  %5590 = vmatpush1.bf16.msra.mxu1 %v7639_v24  ;;  %v7732_v23 = vld [vmem:[%s11205_s1 + $0x7cc] ss:$16 sps:$4 sm:$0xff]  }
  0xc0   :  { %5067 = vmatprep.subr.bf16.mxu0 %v7645_v25  ;;  %5600 = vmatprep.subr.bf16.mxu1 %v7648_v13  ;;  %v9397_v24 = vld.sshfl [vmem:[%s11206_s0 + $0x8] sm:$0xff pattern:$0x75316420]  ;;  %v7727_v25 = vld [vmem:[%s11205_s1 + $0x7c0] ss:$16 sps:$4 sm:$0xff]  }
  0xc1   :  { %v7730_v13 = vld [vmem:[%s11205_s1 + $0x7c8] ss:$16 sps:$4 sm:$0xff]  }
  0xc2   :  { %5059 = vmatmul.mubr.bf16.vlgmr.msra.gmra.mrb[0].mxu0 %v9223_v28  ;;  %5592 = vmatmul.mubr.bf16.vlgmr.msra.gmra.mrb[0].mxu1 %v9223_v28 }
  0xc3   :  { %5068 = vmatpush1.bf16.msra.mxu0 %v7643_v27  ;;  %5601 = vmatpush1.bf16.msra.mxu1 %v7646_v29  ;;  %v7735_v27 = vld [vmem:[%s11205_s1 + $0x7e4] ss:$16 sps:$4 sm:$0xff]   ;;  %v7738_v29 = vld [vmem:[%s11205_s1 + $0x7ec] ss:$16 sps:$4 sm:$0xff]  }
  0xc4   :  { %5069 = vmatprep.subr.bf16.mxu0 %v7651_v30  ;;  %5602 = vmatprep.subr.bf16.mxu1 %v7654_v31  ;;  %v7733_v30 = vld [vmem:[%s11205_s1 + $0x7e0] ss:$16 sps:$4 sm:$0xff]   ;;  %v7736_v31 = vld [vmem:[%s11205_s1 + $0x7e8] ss:$16 sps:$4 sm:$0xff]  }
  0xc5   :  { %5099 = vmatprep.mubr.bf16.mxu0 %v883_v15  ;;  %5632 = vmatprep.mubr.bf16.mxu1 %v883_v15  ;;  %v7741_v15 = vld [vmem:[%s11205_s1 + $0x804] ss:$16 sps:$4 sm:$0xff]  }
  0xc7   :  { %5070 = vmatpush1.bf16.msra.mxu0 %v7649_v32  ;;  %5603 = vmatpush1.bf16.msra.mxu1 %v7652_v33  ;;  %v7744_v32 = vld [vmem:[%s11205_s1 + $0x80c] ss:$16 sps:$4 sm:$0xff]   ;;  %v899_v33 = vcombine.high %v9397_v24, %v9397_v24 }
  0xc8   :  { %5071 = vmatprep.subr.bf16.mxu0 %v7657_v26  ;;  %5604 = vmatprep.subr.bf16.mxu1 %v7660_v34  ;;  %v881_v26 = vcombine.high %v9223_v28, %v9223_v28  ;;  %v7739_v34 = vld [vmem:[%s11205_s1 + $0x800] ss:$16 sps:$4 sm:$0xff]   ;;  %v7750_v28 = vld [vmem:[%s11205_s1 + $0x82c] ss:$16 sps:$4 sm:$0xff]  }
  0xcb   :  { %5072 = vmatpush1.bf16.msra.mxu0 %v7655_v35  ;;  %5605 = vmatpush1.bf16.msra.mxu1 %v7658_v37  ;;  %v7742_v35 = vld [vmem:[%s11205_s1 + $0x808] ss:$16 sps:$4 sm:$0xff]   ;;  %v7747_v37 = vld [vmem:[%s11205_s1 + $0x824] ss:$16 sps:$4 sm:$0xff]  }
  0xcc   :  { %5073 = vmatprep.subr.bf16.mxu0 %v7663_v38  ;;  %5606 = vmatprep.subr.bf16.mxu1 %v7666_v39  ;;  %v9440_v38 = vrot.slane %v899_v33, %v8739_v49  ;;  %v7745_v39 = vld [vmem:[%s11205_s1 + $0x820] ss:$16 sps:$4 sm:$0xff]   ;;  %v7826_v33 = vld [vmem:[%s11205_s1 + $0x9c8] ss:$16 sps:$4 sm:$0xff]  }
  0xcf   :  { %5074 = vmatpush1.bf16.msra.mxu0 %v7661_v40  ;;  %5607 = vmatpush1.bf16.msra.mxu1 %v7664_v41  ;;  %v7748_v40 = vld [vmem:[%s11205_s1 + $0x828] ss:$16 sps:$4 sm:$0xff]   ;;  %v7753_v41 = vld [vmem:[%s11205_s1 + $0x844] ss:$16 sps:$4 sm:$0xff]  }
  0xd0   :  { %5075 = vmatprep.subr.bf16.mxu0 %v7669_v43  ;;  %5608 = vmatprep.subr.bf16.mxu1 %v7672_v44  ;;  %v7756_v43 = vld [vmem:[%s11205_s1 + $0x84c] ss:$16 sps:$4 sm:$0xff]   ;;  %v7751_v44 = vld [vmem:[%s11205_s1 + $0x840] ss:$16 sps:$4 sm:$0xff]  }
  0xd3   :  { %5076 = vmatpush1.bf16.msra.mxu0 %v7667_v45  ;;  %5609 = vmatpush1.bf16.msra.mxu1 %v7670_v46  ;;  %v7754_v45 = vld [vmem:[%s11205_s1 + $0x848] ss:$16 sps:$4 sm:$0xff]   ;;  %v7759_v46 = vld [vmem:[%s11205_s1 + $0x864] ss:$16 sps:$4 sm:$0xff]  }
  0xd4   :  { %5077 = vmatprep.subr.bf16.mxu0 %v7675_v47  ;;  %5610 = vmatprep.subr.bf16.mxu1 %v7678_v48  ;;  %v7762_v47 = vld [vmem:[%s11205_s1 + $0x86c] ss:$16 sps:$4 sm:$0xff]   ;;  %v7757_v48 = vld [vmem:[%s11205_s1 + $0x860] ss:$16 sps:$4 sm:$0xff]  }
  0xd7   :  { %5078 = vmatpush1.bf16.msra.mxu0 %v7673_v50  ;;  %5611 = vmatpush1.bf16.msra.mxu1 %v7676_v51  ;;  %v7760_v50 = vld [vmem:[%s11205_s1 + $0x868] ss:$16 sps:$4 sm:$0xff]   ;;  %v7765_v51 = vld [vmem:[%s11205_s1 + $0x884] ss:$16 sps:$4 sm:$0xff]  }
  0xd8   :  { %5079 = vmatprep.subr.bf16.mxu0 %v7681_v53  ;;  %5612 = vmatprep.subr.bf16.mxu1 %v7684_v54  ;;  %v7768_v53 = vld [vmem:[%s11205_s1 + $0x88c] ss:$16 sps:$4 sm:$0xff]   ;;  %v7763_v54 = vld [vmem:[%s11205_s1 + $0x880] ss:$16 sps:$4 sm:$0xff]  }
  0xdb   :  { %5080 = vmatpush1.bf16.msra.mxu0 %v7679_v55  ;;  %5613 = vmatpush1.bf16.msra.mxu1 %v7682_v56  ;;  %v7766_v55 = vld [vmem:[%s11205_s1 + $0x888] ss:$16 sps:$4 sm:$0xff]   ;;  %v7771_v56 = vld [vmem:[%s11205_s1 + $0x8a4] ss:$16 sps:$4 sm:$0xff]  }
  0xdc   :  { %5081 = vmatprep.subr.bf16.mxu0 %v7687_v57  ;;  %5614 = vmatprep.subr.bf16.mxu1 %v7690_v58  ;;  %v7774_v57 = vld [vmem:[%s11205_s1 + $0x8ac] ss:$16 sps:$4 sm:$0xff]   ;;  %v7769_v58 = vld [vmem:[%s11205_s1 + $0x8a0] ss:$16 sps:$4 sm:$0xff]  }
  0xdf   :  { %5082 = vmatpush1.bf16.msra.mxu0 %v7685_v59  ;;  %5615 = vmatpush1.bf16.msra.mxu1 %v7688_v60  ;;  %v7772_v59 = vld [vmem:[%s11205_s1 + $0x8a8] ss:$16 sps:$4 sm:$0xff]   ;;  %v7777_v60 = vld [vmem:[%s11205_s1 + $0x8c4] ss:$16 sps:$4 sm:$0xff]  }
  0xe0   :  { %5083 = vmatprep.subr.bf16.mxu0 %v7693_v61  ;;  %5616 = vmatprep.subr.bf16.mxu1 %v7696_v62  ;;  %v7780_v61 = vld [vmem:[%s11205_s1 + $0x8cc] ss:$16 sps:$4 sm:$0xff]   ;;  %v7775_v62 = vld [vmem:[%s11205_s1 + $0x8c0] ss:$16 sps:$4 sm:$0xff]  }
  0xe3   :  { %5084 = vmatpush1.bf16.msra.mxu0 %v7691_v63  ;;  %5617 = vmatpush1.bf16.msra.mxu1 %v7694_v0  ;;  %v7778_v63 = vld [vmem:[%s11205_s1 + $0x8c8] ss:$16 sps:$4 sm:$0xff]   ;;  %v7783_v0 = vld [vmem:[%s11205_s1 + $0x8e4] ss:$16 sps:$4 sm:$0xff]  }
  0xe4   :  { %5085 = vmatprep.subr.bf16.mxu0 %v7699_v1  ;;  %5618 = vmatprep.subr.bf16.mxu1 %v7702_v2  ;;  %v7786_v1 = vld [vmem:[%s11205_s1 + $0x8ec] ss:$16 sps:$4 sm:$0xff]   ;;  %v7781_v2 = vld [vmem:[%s11205_s1 + $0x8e0] ss:$16 sps:$4 sm:$0xff]  }
  0xe7   :  { %5086 = vmatpush1.bf16.msra.mxu0 %v7697_v3  ;;  %5619 = vmatpush1.bf16.msra.mxu1 %v7700_v4  ;;  %v7784_v3 = vld [vmem:[%s11205_s1 + $0x8e8] ss:$16 sps:$4 sm:$0xff]   ;;  %v7789_v4 = vld [vmem:[%s11205_s1 + $0x904] ss:$16 sps:$4 sm:$0xff]  }
  0xe8   :  { %5087 = vmatprep.subr.bf16.mxu0 %v7705_v5  ;;  %5620 = vmatprep.subr.bf16.mxu1 %v7708_v6  ;;  %v7792_v5 = vld [vmem:[%s11205_s1 + $0x90c] ss:$16 sps:$4 sm:$0xff]   ;;  %v7787_v6 = vld [vmem:[%s11205_s1 + $0x900] ss:$16 sps:$4 sm:$0xff]  }
  0xeb   :  { %5088 = vmatpush1.bf16.msra.mxu0 %v7703_v7  ;;  %5621 = vmatpush1.bf16.msra.mxu1 %v7706_v8  ;;  %v7790_v7 = vld [vmem:[%s11205_s1 + $0x908] ss:$16 sps:$4 sm:$0xff]   ;;  %v7795_v8 = vld [vmem:[%s11205_s1 + $0x924] ss:$16 sps:$4 sm:$0xff]  }
  0xec   :  { %5089 = vmatprep.subr.bf16.mxu0 %v7711_v9  ;;  %5622 = vmatprep.subr.bf16.mxu1 %v7714_v10  ;;  %v7798_v9 = vld [vmem:[%s11205_s1 + $0x92c] ss:$16 sps:$4 sm:$0xff]   ;;  %v7793_v10 = vld [vmem:[%s11205_s1 + $0x920] ss:$16 sps:$4 sm:$0xff]  }
  0xef   :  { %5090 = vmatpush1.bf16.msra.mxu0 %v7709_v11  ;;  %5623 = vmatpush1.bf16.msra.mxu1 %v7712_v12  ;;  %v7796_v11 = vld [vmem:[%s11205_s1 + $0x928] ss:$16 sps:$4 sm:$0xff]   ;;  %v7801_v12 = vld [vmem:[%s11205_s1 + $0x944] ss:$16 sps:$4 sm:$0xff]  }
  0xf0   :  { %5091 = vmatprep.subr.bf16.mxu0 %v7717_v14  ;;  %5624 = vmatprep.subr.bf16.mxu1 %v7720_v52  ;;  %v7804_v14 = vld [vmem:[%s11205_s1 + $0x94c] ss:$16 sps:$4 sm:$0xff]   ;;  %v7799_v52 = vld [vmem:[%s11205_s1 + $0x940] ss:$16 sps:$4 sm:$0xff]  }
  0xf3   :  { %5092 = vmatpush1.bf16.msra.mxu0 %v7715_v16  ;;  %5625 = vmatpush1.bf16.msra.mxu1 %v7718_v17  ;;  %v7802_v16 = vld [vmem:[%s11205_s1 + $0x948] ss:$16 sps:$4 sm:$0xff]   ;;  %v7807_v17 = vld [vmem:[%s11205_s1 + $0x964] ss:$16 sps:$4 sm:$0xff]  }
  0xf4   :  { %5093 = vmatprep.subr.bf16.mxu0 %v7723_v18  ;;  %5626 = vmatprep.subr.bf16.mxu1 %v7726_v19  ;;  %v7810_v18 = vld [vmem:[%s11205_s1 + $0x96c] ss:$16 sps:$4 sm:$0xff]   ;;  %v7805_v19 = vld [vmem:[%s11205_s1 + $0x960] ss:$16 sps:$4 sm:$0xff]  }
  0xf7   :  { %5094 = vmatpush1.bf16.msra.mxu0 %v7721_v20  ;;  %5627 = vmatpush1.bf16.msra.mxu1 %v7724_v21  ;;  %v7808_v20 = vld [vmem:[%s11205_s1 + $0x968] ss:$16 sps:$4 sm:$0xff]   ;;  %v7813_v21 = vld [vmem:[%s11205_s1 + $0x984] ss:$16 sps:$4 sm:$0xff]  }
  0xf8   :  { %5095 = vmatprep.subr.bf16.mxu0 %v7729_v22  ;;  %5628 = vmatprep.subr.bf16.mxu1 %v7732_v23  ;;  %v7816_v22 = vld [vmem:[%s11205_s1 + $0x98c] ss:$16 sps:$4 sm:$0xff]   ;;  %v7811_v23 = vld [vmem:[%s11205_s1 + $0x980] ss:$16 sps:$4 sm:$0xff]  }
  0xfb   :  { %5096 = vmatpush1.bf16.msra.mxu0 %v7727_v25  ;;  %5629 = vmatpush1.bf16.msra.mxu1 %v7730_v13  ;;  %v7814_v25 = vld [vmem:[%s11205_s1 + $0x988] ss:$16 sps:$4 sm:$0xff]   ;;  %v7819_v13 = vld [vmem:[%s11205_s1 + $0x9a4] ss:$16 sps:$4 sm:$0xff]  }
  0xfc   :  { %5097 = vmatprep.subr.bf16.mxu0 %v7735_v27  ;;  %5630 = vmatprep.subr.bf16.mxu1 %v7738_v29  ;;  %v7822_v27 = vld [vmem:[%s11205_s1 + $0x9ac] ss:$16 sps:$4 sm:$0xff]   ;;  %v7817_v29 = vld [vmem:[%s11205_s1 + $0x9a0] ss:$16 sps:$4 sm:$0xff]  }
  0xff   :  { %5098 = vmatpush1.bf16.msra.mxu0 %v7733_v30  ;;  %5631 = vmatpush1.bf16.msra.mxu1 %v7736_v31  ;;  %v7820_v30 = vld [vmem:[%s11205_s1 + $0x9a8] ss:$16 sps:$4 sm:$0xff]   ;;  %v7825_v31 = vld [vmem:[%s11205_s1 + $0x9c4] ss:$16 sps:$4 sm:$0xff]  }
 0x100   :  { %5108 = vmatprep.subr.bf16.mxu0 %v7741_v15  ;;  %5641 = vmatprep.subr.bf16.mxu1 %v7744_v32  ;;  %v7828_v15 = vld [vmem:[%s11205_s1 + $0x9cc] ss:$16 sps:$4 sm:$0xff]   ;;  %v7823_v32 = vld [vmem:[%s11205_s1 + $0x9c0] ss:$16 sps:$4 sm:$0xff]  }
 0x102   :  { %5100 = vmatmul.mubr.bf16.vlgmr.msra.gmra.mrb[0].mxu0 %v881_v26  ;;  %5633 = vmatmul.mubr.bf16.vlgmr.msra.gmra.mrb[0].mxu1 %v881_v26  ;;  %v7831_v26 = vld [vmem:[%s11205_s1 + $0x9e4] ss:$16 sps:$4 sm:$0xff]  }
 0x103   :  { %5109 = vmatpush1.bf16.msra.mxu0 %v7739_v34  ;;  %5642 = vmatpush1.bf16.msra.mxu1 %v7742_v35  ;;  %v7834_v34 = vld [vmem:[%s11205_s1 + $0x9ec] ss:$16 sps:$4 sm:$0xff]   ;;  %v7829_v35 = vld [vmem:[%s11205_s1 + $0x9e0] ss:$16 sps:$4 sm:$0xff]  }
 0x104   :  { %5110 = vmatprep.subr.bf16.mxu0 %v7747_v37  ;;  %5643 = vmatprep.subr.bf16.mxu1 %v7750_v28  ;;  %v7832_v37 = vld [vmem:[%s11205_s1 + $0x9e8] ss:$16 sps:$4 sm:$0xff]   ;;  %v7837_v28 = vld [vmem:[%s11205_s1 + $0xa04] ss:$16 sps:$4 sm:$0xff]  }
 0x105   :  { %5140 = vmatprep.mubr.bf16.mxu0 %v9440_v38  ;;  %5673 = vmatprep.mubr.bf16.mxu1 %v9440_v38 }
 0x107   :  { %5111 = vmatpush1.bf16.msra.mxu0 %v7745_v39  ;;  %5644 = vmatpush1.bf16.msra.mxu1 %v7748_v40  ;;  %v7840_v39 = vld [vmem:[%s11205_s1 + $0xa0c] ss:$16 sps:$4 sm:$0xff]   ;;  %v9626_v40 = vrot.slane %v9397_v24, %v8739_v49 }
 0x108   :  { %5112 = vmatprep.subr.bf16.mxu0 %v7753_v41  ;;  %5645 = vmatprep.subr.bf16.mxu1 %v7756_v43  ;;  %v7835_v41 = vld [vmem:[%s11205_s1 + $0xa00] ss:$16 sps:$4 sm:$0xff]   ;;  %v7838_v43 = vld [vmem:[%s11205_s1 + $0xa08] ss:$16 sps:$4 sm:$0xff]   ;;  %v7846_v24 = vld [vmem:[%s11205_s1 + $0xa2c] ss:$16 sps:$4 sm:$0xff]  }
 0x10b   :  { %5113 = vmatpush1.bf16.msra.mxu0 %v7751_v44  ;;  %5646 = vmatpush1.bf16.msra.mxu1 %v7754_v45  ;;  %v7843_v44 = vld [vmem:[%s11205_s1 + $0xa24] ss:$16 sps:$4 sm:$0xff]   ;;  %v931_v45 = vcombine.high %v9440_v38, %v9440_v38 }
 0x10c   :  { %5114 = vmatprep.subr.bf16.mxu0 %v7759_v46  ;;  %5647 = vmatprep.subr.bf16.mxu1 %v7762_v47  ;;  %v7841_v46 = vld [vmem:[%s11205_s1 + $0xa20] ss:$16 sps:$4 sm:$0xff]   ;;  %v7844_v47 = vld [vmem:[%s11205_s1 + $0xa28] ss:$16 sps:$4 sm:$0xff]   ;;  %v7849_v38 = vld [vmem:[%s11205_s1 + $0xa44] ss:$16 sps:$4 sm:$0xff]  }
 0x10f   :  { %5115 = vmatpush1.bf16.msra.mxu0 %v7757_v48  ;;  %5648 = vmatpush1.bf16.msra.mxu1 %v7760_v50  ;;  %v7852_v48 = vld [vmem:[%s11205_s1 + $0xa4c] ss:$16 sps:$4 sm:$0xff]   ;;  %v7847_v50 = vld [vmem:[%s11205_s1 + $0xa40] ss:$16 sps:$4 sm:$0xff]  }
 0x110   :  { %5116 = vmatprep.subr.bf16.mxu0 %v7765_v51  ;;  %5649 = vmatprep.subr.bf16.mxu1 %v7768_v53  ;;  %v7850_v51 = vld [vmem:[%s11205_s1 + $0xa48] ss:$16 sps:$4 sm:$0xff]   ;;  %v7855_v53 = vld [vmem:[%s11205_s1 + $0xa64] ss:$16 sps:$4 sm:$0xff]  }
 0x113   :  { %5117 = vmatpush1.bf16.msra.mxu0 %v7763_v54  ;;  %5650 = vmatpush1.bf16.msra.mxu1 %v7766_v55  ;;  %v7858_v54 = vld [vmem:[%s11205_s1 + $0xa6c] ss:$16 sps:$4 sm:$0xff]   ;;  %v7853_v55 = vld [vmem:[%s11205_s1 + $0xa60] ss:$16 sps:$4 sm:$0xff]  }
 0x114   :  { %5118 = vmatprep.subr.bf16.mxu0 %v7771_v56  ;;  %5651 = vmatprep.subr.bf16.mxu1 %v7774_v57  ;;  %v7856_v56 = vld [vmem:[%s11205_s1 + $0xa68] ss:$16 sps:$4 sm:$0xff]   ;;  %v7861_v57 = vld [vmem:[%s11205_s1 + $0xa84] ss:$16 sps:$4 sm:$0xff]  }
 0x117   :  { %5119 = vmatpush1.bf16.msra.mxu0 %v7769_v58  ;;  %5652 = vmatpush1.bf16.msra.mxu1 %v7772_v59  ;;  %v7864_v58 = vld [vmem:[%s11205_s1 + $0xa8c] ss:$16 sps:$4 sm:$0xff]   ;;  %v7859_v59 = vld [vmem:[%s11205_s1 + $0xa80] ss:$16 sps:$4 sm:$0xff]  }
 0x118   :  { %5120 = vmatprep.subr.bf16.mxu0 %v7777_v60  ;;  %5653 = vmatprep.subr.bf16.mxu1 %v7780_v61  ;;  %v7862_v60 = vld [vmem:[%s11205_s1 + $0xa88] ss:$16 sps:$4 sm:$0xff]   ;;  %v7867_v61 = vld [vmem:[%s11205_s1 + $0xaa4] ss:$16 sps:$4 sm:$0xff]  }
 0x11b   :  { %5121 = vmatpush1.bf16.msra.mxu0 %v7775_v62  ;;  %5654 = vmatpush1.bf16.msra.mxu1 %v7778_v63  ;;  %v7870_v62 = vld [vmem:[%s11205_s1 + $0xaac] ss:$16 sps:$4 sm:$0xff]   ;;  %v7865_v63 = vld [vmem:[%s11205_s1 + $0xaa0] ss:$16 sps:$4 sm:$0xff]  }
 0x11c   :  { %5122 = vmatprep.subr.bf16.mxu0 %v7783_v0  ;;  %5655 = vmatprep.subr.bf16.mxu1 %v7786_v1  ;;  %v7868_v0 = vld [vmem:[%s11205_s1 + $0xaa8] ss:$16 sps:$4 sm:$0xff]   ;;  %v7873_v1 = vld [vmem:[%s11205_s1 + $0xac4] ss:$16 sps:$4 sm:$0xff]  }
 0x11f   :  { %5123 = vmatpush1.bf16.msra.mxu0 %v7781_v2  ;;  %5656 = vmatpush1.bf16.msra.mxu1 %v7784_v3  ;;  %v7876_v2 = vld [vmem:[%s11205_s1 + $0xacc] ss:$16 sps:$4 sm:$0xff]   ;;  %v7871_v3 = vld [vmem:[%s11205_s1 + $0xac0] ss:$16 sps:$4 sm:$0xff]  }
 0x120   :  { %5124 = vmatprep.subr.bf16.mxu0 %v7789_v4  ;;  %5657 = vmatprep.subr.bf16.mxu1 %v7792_v5  ;;  %v7874_v4 = vld [vmem:[%s11205_s1 + $0xac8] ss:$16 sps:$4 sm:$0xff]   ;;  %v7879_v5 = vld [vmem:[%s11205_s1 + $0xae4] ss:$16 sps:$4 sm:$0xff]  }
 0x123   :  { %5125 = vmatpush1.bf16.msra.mxu0 %v7787_v6  ;;  %5658 = vmatpush1.bf16.msra.mxu1 %v7790_v7  ;;  %v7882_v6 = vld [vmem:[%s11205_s1 + $0xaec] ss:$16 sps:$4 sm:$0xff]   ;;  %v7877_v7 = vld [vmem:[%s11205_s1 + $0xae0] ss:$16 sps:$4 sm:$0xff]  }
 0x124   :  { %5126 = vmatprep.subr.bf16.mxu0 %v7795_v8  ;;  %5659 = vmatprep.subr.bf16.mxu1 %v7798_v9  ;;  %v7880_v8 = vld [vmem:[%s11205_s1 + $0xae8] ss:$16 sps:$4 sm:$0xff]   ;;  %v7885_v9 = vld [vmem:[%s11205_s1 + $0xb04] ss:$16 sps:$4 sm:$0xff]  }
 0x127   :  { %5127 = vmatpush1.bf16.msra.mxu0 %v7793_v10  ;;  %5660 = vmatpush1.bf16.msra.mxu1 %v7796_v11  ;;  %v7888_v10 = vld [vmem:[%s11205_s1 + $0xb0c] ss:$16 sps:$4 sm:$0xff]   ;;  %v7883_v11 = vld [vmem:[%s11205_s1 + $0xb00] ss:$16 sps:$4 sm:$0xff]  }
 0x128   :  { %5128 = vmatprep.subr.bf16.mxu0 %v7801_v12  ;;  %5661 = vmatprep.subr.bf16.mxu1 %v7804_v14  ;;  %v7886_v12 = vld [vmem:[%s11205_s1 + $0xb08] ss:$16 sps:$4 sm:$0xff]   ;;  %v7891_v14 = vld [vmem:[%s11205_s1 + $0xb24] ss:$16 sps:$4 sm:$0xff]  }
 0x12b   :  { %5129 = vmatpush1.bf16.msra.mxu0 %v7799_v52  ;;  %5662 = vmatpush1.bf16.msra.mxu1 %v7802_v16  ;;  %v7894_v52 = vld [vmem:[%s11205_s1 + $0xb2c] ss:$16 sps:$4 sm:$0xff]   ;;  %v7889_v16 = vld [vmem:[%s11205_s1 + $0xb20] ss:$16 sps:$4 sm:$0xff]  }
 0x12c   :  { %5130 = vmatprep.subr.bf16.mxu0 %v7807_v17  ;;  %5663 = vmatprep.subr.bf16.mxu1 %v7810_v18  ;;  %v7892_v17 = vld [vmem:[%s11205_s1 + $0xb28] ss:$16 sps:$4 sm:$0xff]   ;;  %v7897_v18 = vld [vmem:[%s11205_s1 + $0xb44] ss:$16 sps:$4 sm:$0xff]  }
 0x12f   :  { %5131 = vmatpush1.bf16.msra.mxu0 %v7805_v19  ;;  %5664 = vmatpush1.bf16.msra.mxu1 %v7808_v20  ;;  %v7900_v19 = vld [vmem:[%s11205_s1 + $0xb4c] ss:$16 sps:$4 sm:$0xff]   ;;  %v7895_v20 = vld [vmem:[%s11205_s1 + $0xb40] ss:$16 sps:$4 sm:$0xff]  }
 0x130   :  { %5132 = vmatprep.subr.bf16.mxu0 %v7813_v21  ;;  %5665 = vmatprep.subr.bf16.mxu1 %v7816_v22  ;;  %v7898_v21 = vld [vmem:[%s11205_s1 + $0xb48] ss:$16 sps:$4 sm:$0xff]   ;;  %v7903_v22 = vld [vmem:[%s11205_s1 + $0xb64] ss:$16 sps:$4 sm:$0xff]  }
 0x133   :  { %5133 = vmatpush1.bf16.msra.mxu0 %v7811_v23  ;;  %5666 = vmatpush1.bf16.msra.mxu1 %v7814_v25  ;;  %v7906_v23 = vld [vmem:[%s11205_s1 + $0xb6c] ss:$16 sps:$4 sm:$0xff]   ;;  %v7901_v25 = vld [vmem:[%s11205_s1 + $0xb60] ss:$16 sps:$4 sm:$0xff]  }
 0x134   :  { %5134 = vmatprep.subr.bf16.mxu0 %v7819_v13  ;;  %5667 = vmatprep.subr.bf16.mxu1 %v7822_v27  ;;  %v7904_v13 = vld [vmem:[%s11205_s1 + $0xb68] ss:$16 sps:$4 sm:$0xff]   ;;  %v7909_v27 = vld [vmem:[%s11205_s1 + $0xb84] ss:$16 sps:$4 sm:$0xff]  }
 0x137   :  { %5135 = vmatpush1.bf16.msra.mxu0 %v7817_v29  ;;  %5668 = vmatpush1.bf16.msra.mxu1 %v7820_v30  ;;  %v7912_v29 = vld [vmem:[%s11205_s1 + $0xb8c] ss:$16 sps:$4 sm:$0xff]   ;;  %v7907_v30 = vld [vmem:[%s11205_s1 + $0xb80] ss:$16 sps:$4 sm:$0xff]  }
 0x138   :  { %5136 = vmatprep.subr.bf16.mxu0 %v7825_v31  ;;  %5669 = vmatprep.subr.bf16.mxu1 %v7828_v15  ;;  %v7910_v31 = vld [vmem:[%s11205_s1 + $0xb88] ss:$16 sps:$4 sm:$0xff]   ;;  %v7915_v15 = vld [vmem:[%s11205_s1 + $0xba4] ss:$16 sps:$4 sm:$0xff]  }
 0x13b   :  { %5137 = vmatpush1.bf16.msra.mxu0 %v7823_v32  ;;  %5670 = vmatpush1.bf16.msra.mxu1 %v7826_v33  ;;  %v7918_v32 = vld [vmem:[%s11205_s1 + $0xbac] ss:$16 sps:$4 sm:$0xff]   ;;  %v7913_v33 = vld [vmem:[%s11205_s1 + $0xba0] ss:$16 sps:$4 sm:$0xff]  }
 0x13c   :  { %5138 = vmatprep.subr.bf16.mxu0 %v7831_v26  ;;  %5671 = vmatprep.subr.bf16.mxu1 %v7834_v34  ;;  %v7916_v26 = vld [vmem:[%s11205_s1 + $0xba8] ss:$16 sps:$4 sm:$0xff]   ;;  %v7921_v34 = vld [vmem:[%s11205_s1 + $0xbc4] ss:$16 sps:$4 sm:$0xff]  }
 0x13f   :  { %5139 = vmatpush1.bf16.msra.mxu0 %v7829_v35  ;;  %5672 = vmatpush1.bf16.msra.mxu1 %v7832_v37  ;;  %v7924_v35 = vld [vmem:[%s11205_s1 + $0xbcc] ss:$16 sps:$4 sm:$0xff]  }
 0x140   :  { %5149 = vmatprep.subr.bf16.mxu0 %v7837_v28  ;;  %5682 = vmatprep.subr.bf16.mxu1 %v7840_v39  ;;  %v8569_v37 = vld [vmem:[%s11206_s0 + $0x8] sm:$0xff]  ;;  %v7919_v39 = vld [vmem:[%s11205_s1 + $0xbc0] ss:$16 sps:$4 sm:$0xff]  }
 0x141   :  { %v884_v28 = vcombine.high %v8569_v37, %v8569_v37  ;;  %v8008_v37 = vld [vmem:[%s11205_s1 + $0xd8c] ss:$16 sps:$4 sm:$0xff]  }
 0x142   :  { %5141 = vmatmul.mubr.bf16.vlgmr.msra.gmra.mrb[0].mxu0 %v9626_v40  ;;  %5674 = vmatmul.mubr.bf16.vlgmr.msra.gmra.mrb[0].mxu1 %v9626_v40 }
 0x143   :  { %5150 = vmatpush1.bf16.msra.mxu0 %v7835_v41  ;;  %5683 = vmatpush1.bf16.msra.mxu1 %v7838_v43  ;;  %v7922_v41 = vld [vmem:[%s11205_s1 + $0xbc8] ss:$16 sps:$4 sm:$0xff]   ;;  %v7927_v43 = vld [vmem:[%s11205_s1 + $0xbe4] ss:$16 sps:$4 sm:$0xff]  }
 0x144   :  { %5151 = vmatprep.subr.bf16.mxu0 %v7843_v44  ;;  %5684 = vmatprep.subr.bf16.mxu1 %v7846_v24  ;;  %v7930_v44 = vld [vmem:[%s11205_s1 + $0xbec] ss:$16 sps:$4 sm:$0xff]   ;;  %v9816_v24 = vrot.slane %v884_v28, %v8739_v49  ;;  %v8003_v28 = vld [vmem:[%s11205_s1 + $0xd80] ss:$16 sps:$4 sm:$0xff]  }
 0x145   :  { %5181 = vmatprep.mubr.bf16.mxu0 %v931_v45  ;;  %5714 = vmatprep.mubr.bf16.mxu1 %v931_v45  ;;  %v7925_v45 = vld [vmem:[%s11205_s1 + $0xbe0] ss:$16 sps:$4 sm:$0xff]  }
 0x147   :  { %5152 = vmatpush1.bf16.msra.mxu0 %v7841_v46  ;;  %5685 = vmatpush1.bf16.msra.mxu1 %v7844_v47  ;;  %v7928_v46 = vld [vmem:[%s11205_s1 + $0xbe8] ss:$16 sps:$4 sm:$0xff]   ;;  %v7933_v47 = vld [vmem:[%s11205_s1 + $0xc04] ss:$16 sps:$4 sm:$0xff]  }
 0x148   :  { %5153 = vmatprep.subr.bf16.mxu0 %v7849_v38  ;;  %5686 = vmatprep.subr.bf16.mxu1 %v7852_v48  ;;  %v7936_v38 = vld [vmem:[%s11205_s1 + $0xc0c] ss:$16 sps:$4 sm:$0xff]   ;;  %v900_v48 = vcombine.high %v9816_v24, %v9816_v24 }
 0x14b   :  { %5154 = vmatpush1.bf16.msra.mxu0 %v7847_v50  ;;  %5687 = vmatpush1.bf16.msra.mxu1 %v7850_v51  ;;  %v929_v50 = vcombine.high %v9626_v40, %v9626_v40  ;;  %v7931_v51 = vld [vmem:[%s11205_s1 + $0xc00] ss:$16 sps:$4 sm:$0xff]   ;;  %v7942_v40 = vld [vmem:[%s11205_s1 + $0xc2c] ss:$16 sps:$4 sm:$0xff]  }
 0x14c   :  { %5155 = vmatprep.subr.bf16.mxu0 %v7855_v53  ;;  %5688 = vmatprep.subr.bf16.mxu1 %v7858_v54  ;;  %v7934_v53 = vld [vmem:[%s11205_s1 + $0xc08] ss:$16 sps:$4 sm:$0xff]   ;;  %v7939_v54 = vld [vmem:[%s11205_s1 + $0xc24] ss:$16 sps:$4 sm:$0xff]  }
 0x14f   :  { %5156 = vmatpush1.bf16.msra.mxu0 %v7853_v55  ;;  %5689 = vmatpush1.bf16.msra.mxu1 %v7856_v56  ;;  %v9847_v55 = vrot.slane %v900_v48, %v8739_v49  ;;  %v7937_v56 = vld [vmem:[%s11205_s1 + $0xc20] ss:$16 sps:$4 sm:$0xff]   ;;  %v8018_v48 = vld [vmem:[%s11205_s1 + $0xdc8] ss:$16 sps:$4 sm:$0xff]  }
 0x150   :  { %5157 = vmatprep.subr.bf16.mxu0 %v7861_v57  ;;  %5690 = vmatprep.subr.bf16.mxu1 %v7864_v58  ;;  %v7940_v57 = vld [vmem:[%s11205_s1 + $0xc28] ss:$16 sps:$4 sm:$0xff]   ;;  %v7945_v58 = vld [vmem:[%s11205_s1 + $0xc44] ss:$16 sps:$4 sm:$0xff]  }
 0x153   :  { %5158 = vmatpush1.bf16.msra.mxu0 %v7859_v59  ;;  %5691 = vmatpush1.bf16.msra.mxu1 %v7862_v60  ;;  %v7948_v59 = vld [vmem:[%s11205_s1 + $0xc4c] ss:$16 sps:$4 sm:$0xff]   ;;  %v7943_v60 = vld [vmem:[%s11205_s1 + $0xc40] ss:$16 sps:$4 sm:$0xff]  }
 0x154   :  { %5159 = vmatprep.subr.bf16.mxu0 %v7867_v61  ;;  %5692 = vmatprep.subr.bf16.mxu1 %v7870_v62  ;;  %v7946_v61 = vld [vmem:[%s11205_s1 + $0xc48] ss:$16 sps:$4 sm:$0xff]   ;;  %v7951_v62 = vld [vmem:[%s11205_s1 + $0xc64] ss:$16 sps:$4 sm:$0xff]  }
 0x157   :  { %5160 = vmatpush1.bf16.msra.mxu0 %v7865_v63  ;;  %5693 = vmatpush1.bf16.msra.mxu1 %v7868_v0  ;;  %v7954_v63 = vld [vmem:[%s11205_s1 + $0xc6c] ss:$16 sps:$4 sm:$0xff]   ;;  %v7949_v0 = vld [vmem:[%s11205_s1 + $0xc60] ss:$16 sps:$4 sm:$0xff]  }
 0x158   :  { %5161 = vmatprep.subr.bf16.mxu0 %v7873_v1  ;;  %5694 = vmatprep.subr.bf16.mxu1 %v7876_v2  ;;  %v7952_v1 = vld [vmem:[%s11205_s1 + $0xc68] ss:$16 sps:$4 sm:$0xff]   ;;  %v7957_v2 = vld [vmem:[%s11205_s1 + $0xc84] ss:$16 sps:$4 sm:$0xff]  }
 0x15b   :  { %5162 = vmatpush1.bf16.msra.mxu0 %v7871_v3  ;;  %5695 = vmatpush1.bf16.msra.mxu1 %v7874_v4  ;;  %v7960_v3 = vld [vmem:[%s11205_s1 + $0xc8c] ss:$16 sps:$4 sm:$0xff]   ;;  %v7955_v4 = vld [vmem:[%s11205_s1 + $0xc80] ss:$16 sps:$4 sm:$0xff]  }
 0x15c   :  { %5163 = vmatprep.subr.bf16.mxu0 %v7879_v5  ;;  %5696 = vmatprep.subr.bf16.mxu1 %v7882_v6  ;;  %v7958_v5 = vld [vmem:[%s11205_s1 + $0xc88] ss:$16 sps:$4 sm:$0xff]   ;;  %v7963_v6 = vld [vmem:[%s11205_s1 + $0xca4] ss:$16 sps:$4 sm:$0xff]  }
 0x15f   :  { %5164 = vmatpush1.bf16.msra.mxu0 %v7877_v7  ;;  %5697 = vmatpush1.bf16.msra.mxu1 %v7880_v8  ;;  %v7966_v7 = vld [vmem:[%s11205_s1 + $0xcac] ss:$16 sps:$4 sm:$0xff]   ;;  %v7961_v8 = vld [vmem:[%s11205_s1 + $0xca0] ss:$16 sps:$4 sm:$0xff]  }
 0x160   :  { %5165 = vmatprep.subr.bf16.mxu0 %v7885_v9  ;;  %5698 = vmatprep.subr.bf16.mxu1 %v7888_v10  ;;  %v7964_v9 = vld [vmem:[%s11205_s1 + $0xca8] ss:$16 sps:$4 sm:$0xff]   ;;  %v7969_v10 = vld [vmem:[%s11205_s1 + $0xcc4] ss:$16 sps:$4 sm:$0xff]  }
 0x163   :  { %5166 = vmatpush1.bf16.msra.mxu0 %v7883_v11  ;;  %5699 = vmatpush1.bf16.msra.mxu1 %v7886_v12  ;;  %v7972_v11 = vld [vmem:[%s11205_s1 + $0xccc] ss:$16 sps:$4 sm:$0xff]   ;;  %v7967_v12 = vld [vmem:[%s11205_s1 + $0xcc0] ss:$16 sps:$4 sm:$0xff]  }
 0x164   :  { %5167 = vmatprep.subr.bf16.mxu0 %v7891_v14  ;;  %5700 = vmatprep.subr.bf16.mxu1 %v7894_v52  ;;  %v7970_v14 = vld [vmem:[%s11205_s1 + $0xcc8] ss:$16 sps:$4 sm:$0xff]   ;;  %v7975_v52 = vld [vmem:[%s11205_s1 + $0xce4] ss:$16 sps:$4 sm:$0xff]  }
 0x167   :  { %5168 = vmatpush1.bf16.msra.mxu0 %v7889_v16  ;;  %5701 = vmatpush1.bf16.msra.mxu1 %v7892_v17  ;;  %v7978_v16 = vld [vmem:[%s11205_s1 + $0xcec] ss:$16 sps:$4 sm:$0xff]   ;;  %v7973_v17 = vld [vmem:[%s11205_s1 + $0xce0] ss:$16 sps:$4 sm:$0xff]  }
 0x168   :  { %5169 = vmatprep.subr.bf16.mxu0 %v7897_v18  ;;  %5702 = vmatprep.subr.bf16.mxu1 %v7900_v19  ;;  %v7976_v18 = vld [vmem:[%s11205_s1 + $0xce8] ss:$16 sps:$4 sm:$0xff]   ;;  %v7981_v19 = vld [vmem:[%s11205_s1 + $0xd04] ss:$16 sps:$4 sm:$0xff]  }
 0x16b   :  { %5170 = vmatpush1.bf16.msra.mxu0 %v7895_v20  ;;  %5703 = vmatpush1.bf16.msra.mxu1 %v7898_v21  ;;  %v7984_v20 = vld [vmem:[%s11205_s1 + $0xd0c] ss:$16 sps:$4 sm:$0xff]   ;;  %v7979_v21 = vld [vmem:[%s11205_s1 + $0xd00] ss:$16 sps:$4 sm:$0xff]  }
 0x16c   :  { %5171 = vmatprep.subr.bf16.mxu0 %v7903_v22  ;;  %5704 = vmatprep.subr.bf16.mxu1 %v7906_v23  ;;  %v7982_v22 = vld [vmem:[%s11205_s1 + $0xd08] ss:$16 sps:$4 sm:$0xff]   ;;  %v7987_v23 = vld [vmem:[%s11205_s1 + $0xd24] ss:$16 sps:$4 sm:$0xff]  }
 0x16f   :  { %5172 = vmatpush1.bf16.msra.mxu0 %v7901_v25  ;;  %5705 = vmatpush1.bf16.msra.mxu1 %v7904_v13  ;;  %v7990_v25 = vld [vmem:[%s11205_s1 + $0xd2c] ss:$16 sps:$4 sm:$0xff]   ;;  %v7985_v13 = vld [vmem:[%s11205_s1 + $0xd20] ss:$16 sps:$4 sm:$0xff]  }
 0x170   :  { %5173 = vmatprep.subr.bf16.mxu0 %v7909_v27  ;;  %5706 = vmatprep.subr.bf16.mxu1 %v7912_v29  ;;  %v7988_v27 = vld [vmem:[%s11205_s1 + $0xd28] ss:$16 sps:$4 sm:$0xff]   ;;  %v7993_v29 = vld [vmem:[%s11205_s1 + $0xd44] ss:$16 sps:$4 sm:$0xff]  }
 0x173   :  { %5174 = vmatpush1.bf16.msra.mxu0 %v7907_v30  ;;  %5707 = vmatpush1.bf16.msra.mxu1 %v7910_v31  ;;  %v7996_v30 = vld [vmem:[%s11205_s1 + $0xd4c] ss:$16 sps:$4 sm:$0xff]   ;;  %v7991_v31 = vld [vmem:[%s11205_s1 + $0xd40] ss:$16 sps:$4 sm:$0xff]  }
 0x174   :  { %5175 = vmatprep.subr.bf16.mxu0 %v7915_v15  ;;  %5708 = vmatprep.subr.bf16.mxu1 %v7918_v32  ;;  %v7994_v15 = vld [vmem:[%s11205_s1 + $0xd48] ss:$16 sps:$4 sm:$0xff]   ;;  %v7999_v32 = vld [vmem:[%s11205_s1 + $0xd64] ss:$16 sps:$4 sm:$0xff]  }
 0x177   :  { %5176 = vmatpush1.bf16.msra.mxu0 %v7913_v33  ;;  %5709 = vmatpush1.bf16.msra.mxu1 %v7916_v26  ;;  %v8002_v33 = vld [vmem:[%s11205_s1 + $0xd6c] ss:$16 sps:$4 sm:$0xff]   ;;  %v7997_v26 = vld [vmem:[%s11205_s1 + $0xd60] ss:$16 sps:$4 sm:$0xff]  }
 0x178   :  { %5177 = vmatprep.subr.bf16.mxu0 %v7921_v34  ;;  %5710 = vmatprep.subr.bf16.mxu1 %v7924_v35  ;;  %v8000_v34 = vld [vmem:[%s11205_s1 + $0xd68] ss:$16 sps:$4 sm:$0xff]   ;;  %v8005_v35 = vld [vmem:[%s11205_s1 + $0xd84] ss:$16 sps:$4 sm:$0xff]  }
 0x17b   :  { %5178 = vmatpush1.bf16.msra.mxu0 %v7919_v39  ;;  %5711 = vmatpush1.bf16.msra.mxu1 %v7922_v41  ;;  %v8006_v39 = vld [vmem:[%s11205_s1 + $0xd88] ss:$16 sps:$4 sm:$0xff]   ;;  %v8011_v41 = vld [vmem:[%s11205_s1 + $0xda4] ss:$16 sps:$4 sm:$0xff]  }
 0x17c   :  { %5179 = vmatprep.subr.bf16.mxu0 %v7927_v43  ;;  %5712 = vmatprep.subr.bf16.mxu1 %v7930_v44  ;;  %v8014_v43 = vld [vmem:[%s11205_s1 + $0xdac] ss:$16 sps:$4 sm:$0xff]   ;;  %v8009_v44 = vld [vmem:[%s11205_s1 + $0xda0] ss:$16 sps:$4 sm:$0xff]  }
 0x17f   :  { %5180 = vmatpush1.bf16.msra.mxu0 %v7925_v45  ;;  %5713 = vmatpush1.bf16.msra.mxu1 %v7928_v46  ;;  %v8012_v45 = vld [vmem:[%s11205_s1 + $0xda8] ss:$16 sps:$4 sm:$0xff]   ;;  %v8017_v46 = vld [vmem:[%s11205_s1 + $0xdc4] ss:$16 sps:$4 sm:$0xff]  }
 0x180   :  { %5190 = vmatprep.subr.bf16.mxu0 %v7933_v47  ;;  %5723 = vmatprep.subr.bf16.mxu1 %v7936_v38  ;;  %v8020_v47 = vld [vmem:[%s11205_s1 + $0xdcc] ss:$16 sps:$4 sm:$0xff]   ;;  %v8015_v38 = vld [vmem:[%s11205_s1 + $0xdc0] ss:$16 sps:$4 sm:$0xff]  }
 0x182   :  { %5182 = vmatmul.mubr.bf16.vlgmr.msra.gmra.mrb[0].mxu0 %v929_v50  ;;  %5715 = vmatmul.mubr.bf16.vlgmr.msra.gmra.mrb[0].mxu1 %v929_v50  ;;  %v8023_v50 = vld [vmem:[%s11205_s1 + $0xde4] ss:$16 sps:$4 sm:$0xff]  }
 0x183   :  { %5191 = vmatpush1.bf16.msra.mxu0 %v7931_v51  ;;  %5724 = vmatpush1.bf16.msra.mxu1 %v7934_v53  ;;  %v8026_v51 = vld [vmem:[%s11205_s1 + $0xdec] ss:$16 sps:$4 sm:$0xff]   ;;  %v8021_v53 = vld [vmem:[%s11205_s1 + $0xde0] ss:$16 sps:$4 sm:$0xff]  }
 0x184   :  { %5192 = vmatprep.subr.bf16.mxu0 %v7939_v54  ;;  %5725 = vmatprep.subr.bf16.mxu1 %v7942_v40  ;;  %v8024_v54 = vld [vmem:[%s11205_s1 + $0xde8] ss:$16 sps:$4 sm:$0xff]   ;;  %v8030_v40 = vld [vmem:[%s11205_s1 + $0xe04] ss:$16 sps:$4 sm:$0xff]  }
 0x185   :  { %5222 = vmatprep.mubr.bf16.mxu0 %v9847_v55  ;;  %5755 = vmatprep.mubr.bf16.mxu1 %v9847_v55 }
 0x187   :  { %5193 = vmatpush1.bf16.msra.mxu0 %v7937_v56  ;;  %5726 = vmatpush1.bf16.msra.mxu1 %v7940_v57  ;;  %v8033_v56 = vld [vmem:[%s11205_s1 + $0xe0c] ss:$16 sps:$4 sm:$0xff]   ;;  %v10033_v57 = vrot.slane %v9816_v24, %v8739_v49 }
 0x188   :  { %5194 = vmatprep.subr.bf16.mxu0 %v7945_v58  ;;  %5727 = vmatprep.subr.bf16.mxu1 %v7948_v59  ;;  %v8028_v58 = vld [vmem:[%s11205_s1 + $0xe00] ss:$16 sps:$4 sm:$0xff]   ;;  %v8031_v59 = vld [vmem:[%s11205_s1 + $0xe08] ss:$16 sps:$4 sm:$0xff]   ;;  %v8039_v24 = vld [vmem:[%s11205_s1 + $0xe2c] ss:$16 sps:$4 sm:$0xff]  }
 0x18b   :  { %5195 = vmatpush1.bf16.msra.mxu0 %v7943_v60  ;;  %5728 = vmatpush1.bf16.msra.mxu1 %v7946_v61  ;;  %v8036_v60 = vld [vmem:[%s11205_s1 + $0xe24] ss:$16 sps:$4 sm:$0xff]   ;;  %v932_v61 = vcombine.high %v9847_v55, %v9847_v55 }
 0x18c   :  { %5196 = vmatprep.subr.bf16.mxu0 %v7951_v62  ;;  %5729 = vmatprep.subr.bf16.mxu1 %v7954_v63  ;;  %v8034_v62 = vld [vmem:[%s11205_s1 + $0xe20] ss:$16 sps:$4 sm:$0xff]   ;;  %v8037_v63 = vld [vmem:[%s11205_s1 + $0xe28] ss:$16 sps:$4 sm:$0xff]   ;;  %v8042_v55 = vld [vmem:[%s11205_s1 + $0xe44] ss:$16 sps:$4 sm:$0xff]  }
 0x18f   :  { %5197 = vmatpush1.bf16.msra.mxu0 %v7949_v0  ;;  %5730 = vmatpush1.bf16.msra.mxu1 %v7952_v1  ;;  %v8045_v0 = vld [vmem:[%s11205_s1 + $0xe4c] ss:$16 sps:$4 sm:$0xff]   ;;  %v8040_v1 = vld [vmem:[%s11205_s1 + $0xe40] ss:$16 sps:$4 sm:$0xff]  }
 0x190   :  { %5198 = vmatprep.subr.bf16.mxu0 %v7957_v2  ;;  %5731 = vmatprep.subr.bf16.mxu1 %v7960_v3  ;;  %v8043_v2 = vld [vmem:[%s11205_s1 + $0xe48] ss:$16 sps:$4 sm:$0xff]   ;;  %v8048_v3 = vld [vmem:[%s11205_s1 + $0xe64] ss:$16 sps:$4 sm:$0xff]  }
 0x193   :  { %5199 = vmatpush1.bf16.msra.mxu0 %v7955_v4  ;;  %5732 = vmatpush1.bf16.msra.mxu1 %v7958_v5  ;;  %v8051_v4 = vld [vmem:[%s11205_s1 + $0xe6c] ss:$16 sps:$4 sm:$0xff]   ;;  %v8046_v5 = vld [vmem:[%s11205_s1 + $0xe60] ss:$16 sps:$4 sm:$0xff]  }
 0x194   :  { %5200 = vmatprep.subr.bf16.mxu0 %v7963_v6  ;;  %5733 = vmatprep.subr.bf16.mxu1 %v7966_v7  ;;  %v8049_v6 = vld [vmem:[%s11205_s1 + $0xe68] ss:$16 sps:$4 sm:$0xff]   ;;  %v8054_v7 = vld [vmem:[%s11205_s1 + $0xe84] ss:$16 sps:$4 sm:$0xff]  }
 0x197   :  { %5201 = vmatpush1.bf16.msra.mxu0 %v7961_v8  ;;  %5734 = vmatpush1.bf16.msra.mxu1 %v7964_v9  ;;  %v8057_v8 = vld [vmem:[%s11205_s1 + $0xe8c] ss:$16 sps:$4 sm:$0xff]   ;;  %v8052_v9 = vld [vmem:[%s11205_s1 + $0xe80] ss:$16 sps:$4 sm:$0xff]  }
 0x198   :  { %5202 = vmatprep.subr.bf16.mxu0 %v7969_v10  ;;  %5735 = vmatprep.subr.bf16.mxu1 %v7972_v11  ;;  %v8055_v10 = vld [vmem:[%s11205_s1 + $0xe88] ss:$16 sps:$4 sm:$0xff]   ;;  %v8060_v11 = vld [vmem:[%s11205_s1 + $0xea4] ss:$16 sps:$4 sm:$0xff]  }
 0x19b   :  { %5203 = vmatpush1.bf16.msra.mxu0 %v7967_v12  ;;  %5736 = vmatpush1.bf16.msra.mxu1 %v7970_v14  ;;  %v8063_v12 = vld [vmem:[%s11205_s1 + $0xeac] ss:$16 sps:$4 sm:$0xff]   ;;  %v8058_v14 = vld [vmem:[%s11205_s1 + $0xea0] ss:$16 sps:$4 sm:$0xff]  }
 0x19c   :  { %5204 = vmatprep.subr.bf16.mxu0 %v7975_v52  ;;  %5737 = vmatprep.subr.bf16.mxu1 %v7978_v16  ;;  %v8061_v52 = vld [vmem:[%s11205_s1 + $0xea8] ss:$16 sps:$4 sm:$0xff]   ;;  %v8066_v16 = vld [vmem:[%s11205_s1 + $0xec4] ss:$16 sps:$4 sm:$0xff]  }
 0x19f   :  { %5205 = vmatpush1.bf16.msra.mxu0 %v7973_v17  ;;  %5738 = vmatpush1.bf16.msra.mxu1 %v7976_v18  ;;  %v8069_v17 = vld [vmem:[%s11205_s1 + $0xecc] ss:$16 sps:$4 sm:$0xff]   ;;  %v8064_v18 = vld [vmem:[%s11205_s1 + $0xec0] ss:$16 sps:$4 sm:$0xff]  }
 0x1a0   :  { %5206 = vmatprep.subr.bf16.mxu0 %v7981_v19  ;;  %5739 = vmatprep.subr.bf16.mxu1 %v7984_v20  ;;  %v8067_v19 = vld [vmem:[%s11205_s1 + $0xec8] ss:$16 sps:$4 sm:$0xff]   ;;  %v8072_v20 = vld [vmem:[%s11205_s1 + $0xee4] ss:$16 sps:$4 sm:$0xff]  }
 0x1a3   :  { %5207 = vmatpush1.bf16.msra.mxu0 %v7979_v21  ;;  %5740 = vmatpush1.bf16.msra.mxu1 %v7982_v22  ;;  %v8075_v21 = vld [vmem:[%s11205_s1 + $0xeec] ss:$16 sps:$4 sm:$0xff]   ;;  %v8070_v22 = vld [vmem:[%s11205_s1 + $0xee0] ss:$16 sps:$4 sm:$0xff]  }
 0x1a4   :  { %5208 = vmatprep.subr.bf16.mxu0 %v7987_v23  ;;  %5741 = vmatprep.subr.bf16.mxu1 %v7990_v25  ;;  %v8073_v23 = vld [vmem:[%s11205_s1 + $0xee8] ss:$16 sps:$4 sm:$0xff]   ;;  %v8078_v25 = vld [vmem:[%s11205_s1 + $0xf04] ss:$16 sps:$4 sm:$0xff]  }
 0x1a7   :  { %5209 = vmatpush1.bf16.msra.mxu0 %v7985_v13  ;;  %5742 = vmatpush1.bf16.msra.mxu1 %v7988_v27  ;;  %v8081_v13 = vld [vmem:[%s11205_s1 + $0xf0c] ss:$16 sps:$4 sm:$0xff]   ;;  %v8076_v27 = vld [vmem:[%s11205_s1 + $0xf00] ss:$16 sps:$4 sm:$0xff]  }
 0x1a8   :  { %5210 = vmatprep.subr.bf16.mxu0 %v7993_v29  ;;  %5743 = vmatprep.subr.bf16.mxu1 %v7996_v30  ;;  %v8079_v29 = vld [vmem:[%s11205_s1 + $0xf08] ss:$16 sps:$4 sm:$0xff]   ;;  %v8084_v30 = vld [vmem:[%s11205_s1 + $0xf24] ss:$16 sps:$4 sm:$0xff]  }
 0x1ab   :  { %5211 = vmatpush1.bf16.msra.mxu0 %v7991_v31  ;;  %5744 = vmatpush1.bf16.msra.mxu1 %v7994_v15  ;;  %v8087_v31 = vld [vmem:[%s11205_s1 + $0xf2c] ss:$16 sps:$4 sm:$0xff]   ;;  %v8082_v15 = vld [vmem:[%s11205_s1 + $0xf20] ss:$16 sps:$4 sm:$0xff]  }
 0x1ac   :  { %5212 = vmatprep.subr.bf16.mxu0 %v7999_v32  ;;  %5745 = vmatprep.subr.bf16.mxu1 %v8002_v33  ;;  %v8085_v32 = vld [vmem:[%s11205_s1 + $0xf28] ss:$16 sps:$4 sm:$0xff]   ;;  %v8090_v33 = vld [vmem:[%s11205_s1 + $0xf44] ss:$16 sps:$4 sm:$0xff]  }
 0x1af   :  { %5213 = vmatpush1.bf16.msra.mxu0 %v7997_v26  ;;  %5746 = vmatpush1.bf16.msra.mxu1 %v8000_v34  ;;  %v8093_v26 = vld [vmem:[%s11205_s1 + $0xf4c] ss:$16 sps:$4 sm:$0xff]   ;;  %v8088_v34 = vld [vmem:[%s11205_s1 + $0xf40] ss:$16 sps:$4 sm:$0xff]  }
 0x1b0   :  { %5214 = vmatprep.subr.bf16.mxu0 %v8005_v35  ;;  %5747 = vmatprep.subr.bf16.mxu1 %v8008_v37  ;;  %v8091_v35 = vld [vmem:[%s11205_s1 + $0xf48] ss:$16 sps:$4 sm:$0xff]   ;;  %v8096_v37 = vld [vmem:[%s11205_s1 + $0xf64] ss:$16 sps:$4 sm:$0xff]  }
 0x1b3   :  { %5215 = vmatpush1.bf16.msra.mxu0 %v8003_v28  ;;  %5748 = vmatpush1.bf16.msra.mxu1 %v8006_v39  ;;  %v8099_v28 = vld [vmem:[%s11205_s1 + $0xf6c] ss:$16 sps:$4 sm:$0xff]   ;;  %v8094_v39 = vld [vmem:[%s11205_s1 + $0xf60] ss:$16 sps:$4 sm:$0xff]  }
 0x1b4   :  { %5216 = vmatprep.subr.bf16.mxu0 %v8011_v41  ;;  %5749 = vmatprep.subr.bf16.mxu1 %v8014_v43  ;;  %v8097_v41 = vld [vmem:[%s11205_s1 + $0xf68] ss:$16 sps:$4 sm:$0xff]   ;;  %v8102_v43 = vld [vmem:[%s11205_s1 + $0xf84] ss:$16 sps:$4 sm:$0xff]  }
 0x1b7   :  { %5217 = vmatpush1.bf16.msra.mxu0 %v8009_v44  ;;  %5750 = vmatpush1.bf16.msra.mxu1 %v8012_v45  ;;  %v8105_v44 = vld [vmem:[%s11205_s1 + $0xf8c] ss:$16 sps:$4 sm:$0xff]   ;;  %v8100_v45 = vld [vmem:[%s11205_s1 + $0xf80] ss:$16 sps:$4 sm:$0xff]  }
 0x1b8   :  { %5218 = vmatprep.subr.bf16.mxu0 %v8017_v46  ;;  %5751 = vmatprep.subr.bf16.mxu1 %v8020_v47  ;;  %v8103_v46 = vld [vmem:[%s11205_s1 + $0xf88] ss:$16 sps:$4 sm:$0xff]   ;;  %v8108_v47 = vld [vmem:[%s11205_s1 + $0xfa4] ss:$16 sps:$4 sm:$0xff]  }
 0x1bb   :  { %5219 = vmatpush1.bf16.msra.mxu0 %v8015_v38  ;;  %5752 = vmatpush1.bf16.msra.mxu1 %v8018_v48  ;;  %v8111_v38 = vld [vmem:[%s11205_s1 + $0xfac] ss:$16 sps:$4 sm:$0xff]   ;;  %v8106_v48 = vld [vmem:[%s11205_s1 + $0xfa0] ss:$16 sps:$4 sm:$0xff]  }
 0x1bc   :  { %5220 = vmatprep.subr.bf16.mxu0 %v8023_v50  ;;  %5753 = vmatprep.subr.bf16.mxu1 %v8026_v51  ;;  %v8109_v50 = vld [vmem:[%s11205_s1 + $0xfa8] ss:$16 sps:$4 sm:$0xff]   ;;  %v8114_v51 = vld [vmem:[%s11205_s1 + $0xfc4] ss:$16 sps:$4 sm:$0xff]  }
 0x1bf   :  { %5221 = vmatpush1.bf16.msra.mxu0 %v8021_v53  ;;  %5754 = vmatpush1.bf16.msra.mxu1 %v8024_v54  ;;  %v8117_v53 = vld [vmem:[%s11205_s1 + $0xfcc] ss:$16 sps:$4 sm:$0xff]   ;;  %v10210_v54 = vld [vmem:[%s11206_s0 + $0x10] sm:$0xff] }
 0x1c0   :  { %5231 = vmatprep.subr.bf16.mxu0 %v8030_v40  ;;  %5764 = vmatprep.subr.bf16.mxu1 %v8033_v56  ;;  %v8112_v40 = vld [vmem:[%s11205_s1 + $0xfc0] ss:$16 sps:$4 sm:$0xff]   ;;  %v8115_v56 = vld [vmem:[%s11205_s1 + $0xfc8] ss:$16 sps:$4 sm:$0xff]  }
 0x1c2   :  { %5223 = vmatmul.mubr.bf16.vlgmr.msra.gmra.mrb[0].mxu0 %v10033_v57  ;;  %5756 = vmatmul.mubr.bf16.vlgmr.msra.gmra.mrb[0].mxu1 %v10033_v57 }
 0x1c3   :  { %5232 = vmatpush1.bf16.msra.mxu0 %v8028_v58  ;;  %5765 = vmatpush1.bf16.msra.mxu1 %v8031_v59  ;;  %v8120_v58 = vld [vmem:[%s11205_s1 + $0xfe4] ss:$16 sps:$4 sm:$0xff]   ;;  %v8123_v59 = vld [vmem:[%s11205_s1 + $0xfec] ss:$16 sps:$4 sm:$0xff]  }
 0x1c4   :  { %5233 = vmatprep.subr.bf16.mxu0 %v8036_v60  ;;  %5766 = vmatprep.subr.bf16.mxu1 %v8039_v24  ;;  %v10226_v60 = vrot.slane %v10210_v54, %v8739_v49  ;;  %v8118_v24 = vld [vmem:[%s11205_s1 + $0xfe0] ss:$16 sps:$4 sm:$0xff]  }
 0x1c5   :  { %5263 = vmatprep.mubr.bf16.mxu0 %v932_v61  ;;  %5796 = vmatprep.mubr.bf16.mxu1 %v932_v61  ;;  %v8121_v61 = vld [vmem:[%s11205_s1 + $0xfe8] ss:$16 sps:$4 sm:$0xff]  }
 0x1c7   :  { %5234 = vmatpush1.bf16.msra.mxu0 %v8034_v62  ;;  %5767 = vmatpush1.bf16.msra.mxu1 %v8037_v63  ;;  %v8126_v62 = vld [vmem:[%s11205_s1 + $0x1004] ss:$16 sps:$4 sm:$0xff]   ;;  %v8129_v63 = vld [vmem:[%s11205_s1 + $0x100c] ss:$16 sps:$4 sm:$0xff]  }
 0x1c8   :  { %5235 = vmatprep.subr.bf16.mxu0 %v8042_v55  ;;  %5768 = vmatprep.subr.bf16.mxu1 %v8045_v0  ;;  %v948_v55 = vcombine.high %v10226_v60, %v10226_v60  ;;  %v930_v0 = vcombine.high %v10033_v57, %v10033_v57  ;;  %v8135_v57 = vld [vmem:[%s11205_s1 + $0x102c] ss:$16 sps:$4 sm:$0xff]  }
 0x1cb   :  { %5236 = vmatpush1.bf16.msra.mxu0 %v8040_v1  ;;  %5769 = vmatpush1.bf16.msra.mxu1 %v8043_v2  ;;  %v8124_v1 = vld [vmem:[%s11205_s1 + $0x1000] ss:$16 sps:$4 sm:$0xff]   ;;  %v8127_v2 = vld [vmem:[%s11205_s1 + $0x1008] ss:$16 sps:$4 sm:$0xff]  }
 0x1cc   :  { %5237 = vmatprep.subr.bf16.mxu0 %v8048_v3  ;;  %5770 = vmatprep.subr.bf16.mxu1 %v8051_v4  ;;  %v8132_v3 = vld [vmem:[%s11205_s1 + $0x1024] ss:$16 sps:$4 sm:$0xff]   ;;  %v10257_v4 = vrot.slane %v948_v55, %v8739_v49  ;;  %v8208_v55 = vld [vmem:[%s11205_s1 + $0x11c0] ss:$16 sps:$4 sm:$0xff]  }
 0x1cf   :  { %5238 = vmatpush1.bf16.msra.mxu0 %v8046_v5  ;;  %5771 = vmatpush1.bf16.msra.mxu1 %v8049_v6  ;;  %v8130_v5 = vld [vmem:[%s11205_s1 + $0x1020] ss:$16 sps:$4 sm:$0xff]   ;;  %v8133_v6 = vld [vmem:[%s11205_s1 + $0x1028] ss:$16 sps:$4 sm:$0xff]  }
 0x1d0   :  { %5239 = vmatprep.subr.bf16.mxu0 %v8054_v7  ;;  %5772 = vmatprep.subr.bf16.mxu1 %v8057_v8  ;;  %v8138_v7 = vld [vmem:[%s11205_s1 + $0x1044] ss:$16 sps:$4 sm:$0xff]   ;;  %v8141_v8 = vld [vmem:[%s11205_s1 + $0x104c] ss:$16 sps:$4 sm:$0xff]  }
 0x1d3   :  { %5240 = vmatpush1.bf16.msra.mxu0 %v8052_v9  ;;  %5773 = vmatpush1.bf16.msra.mxu1 %v8055_v10  ;;  %v8136_v9 = vld [vmem:[%s11205_s1 + $0x1040] ss:$16 sps:$4 sm:$0xff]   ;;  %v8139_v10 = vld [vmem:[%s11205_s1 + $0x1048] ss:$16 sps:$4 sm:$0xff]  }
 0x1d4   :  { %5241 = vmatprep.subr.bf16.mxu0 %v8060_v11  ;;  %5774 = vmatprep.subr.bf16.mxu1 %v8063_v12  ;;  %v8144_v11 = vld [vmem:[%s11205_s1 + $0x1064] ss:$16 sps:$4 sm:$0xff]   ;;  %v8147_v12 = vld [vmem:[%s11205_s1 + $0x106c] ss:$16 sps:$4 sm:$0xff]  }
 0x1d7   :  { %5242 = vmatpush1.bf16.msra.mxu0 %v8058_v14  ;;  %5775 = vmatpush1.bf16.msra.mxu1 %v8061_v52  ;;  %v8142_v14 = vld [vmem:[%s11205_s1 + $0x1060] ss:$16 sps:$4 sm:$0xff]   ;;  %v8145_v52 = vld [vmem:[%s11205_s1 + $0x1068] ss:$16 sps:$4 sm:$0xff]  }
 0x1d8   :  { %5243 = vmatprep.subr.bf16.mxu0 %v8066_v16  ;;  %5776 = vmatprep.subr.bf16.mxu1 %v8069_v17  ;;  %v8150_v16 = vld [vmem:[%s11205_s1 + $0x1084] ss:$16 sps:$4 sm:$0xff]   ;;  %v8153_v17 = vld [vmem:[%s11205_s1 + $0x108c] ss:$16 sps:$4 sm:$0xff]  }
 0x1db   :  { %5244 = vmatpush1.bf16.msra.mxu0 %v8064_v18  ;;  %5777 = vmatpush1.bf16.msra.mxu1 %v8067_v19  ;;  %v8148_v18 = vld [vmem:[%s11205_s1 + $0x1080] ss:$16 sps:$4 sm:$0xff]   ;;  %v8151_v19 = vld [vmem:[%s11205_s1 + $0x1088] ss:$16 sps:$4 sm:$0xff]  }
 0x1dc   :  { %5245 = vmatprep.subr.bf16.mxu0 %v8072_v20  ;;  %5778 = vmatprep.subr.bf16.mxu1 %v8075_v21  ;;  %v8156_v20 = vld [vmem:[%s11205_s1 + $0x10a4] ss:$16 sps:$4 sm:$0xff]   ;;  %v8159_v21 = vld [vmem:[%s11205_s1 + $0x10ac] ss:$16 sps:$4 sm:$0xff]  }
 0x1df   :  { %5246 = vmatpush1.bf16.msra.mxu0 %v8070_v22  ;;  %5779 = vmatpush1.bf16.msra.mxu1 %v8073_v23  ;;  %v8154_v22 = vld [vmem:[%s11205_s1 + $0x10a0] ss:$16 sps:$4 sm:$0xff]   ;;  %v8157_v23 = vld [vmem:[%s11205_s1 + $0x10a8] ss:$16 sps:$4 sm:$0xff]  }
 0x1e0   :  { %5247 = vmatprep.subr.bf16.mxu0 %v8078_v25  ;;  %5780 = vmatprep.subr.bf16.mxu1 %v8081_v13  ;;  %v8162_v25 = vld [vmem:[%s11205_s1 + $0x10c4] ss:$16 sps:$4 sm:$0xff]   ;;  %v8165_v13 = vld [vmem:[%s11205_s1 + $0x10cc] ss:$16 sps:$4 sm:$0xff]  }
 0x1e3   :  { %5248 = vmatpush1.bf16.msra.mxu0 %v8076_v27  ;;  %5781 = vmatpush1.bf16.msra.mxu1 %v8079_v29  ;;  %v8160_v27 = vld [vmem:[%s11205_s1 + $0x10c0] ss:$16 sps:$4 sm:$0xff]   ;;  %v8163_v29 = vld [vmem:[%s11205_s1 + $0x10c8] ss:$16 sps:$4 sm:$0xff]  }
 0x1e4   :  { %5249 = vmatprep.subr.bf16.mxu0 %v8084_v30  ;;  %5782 = vmatprep.subr.bf16.mxu1 %v8087_v31  ;;  %v8168_v30 = vld [vmem:[%s11205_s1 + $0x10e4] ss:$16 sps:$4 sm:$0xff]   ;;  %v8171_v31 = vld [vmem:[%s11205_s1 + $0x10ec] ss:$16 sps:$4 sm:$0xff]  }
 0x1e7   :  { %5250 = vmatpush1.bf16.msra.mxu0 %v8082_v15  ;;  %5783 = vmatpush1.bf16.msra.mxu1 %v8085_v32  ;;  %v8166_v15 = vld [vmem:[%s11205_s1 + $0x10e0] ss:$16 sps:$4 sm:$0xff]   ;;  %v8169_v32 = vld [vmem:[%s11205_s1 + $0x10e8] ss:$16 sps:$4 sm:$0xff]  }
 0x1e8   :  { %5251 = vmatprep.subr.bf16.mxu0 %v8090_v33  ;;  %5784 = vmatprep.subr.bf16.mxu1 %v8093_v26  ;;  %v8174_v33 = vld [vmem:[%s11205_s1 + $0x1104] ss:$16 sps:$4 sm:$0xff]   ;;  %v8177_v26 = vld [vmem:[%s11205_s1 + $0x110c] ss:$16 sps:$4 sm:$0xff]  }
 0x1eb   :  { %5252 = vmatpush1.bf16.msra.mxu0 %v8088_v34  ;;  %5785 = vmatpush1.bf16.msra.mxu1 %v8091_v35  ;;  %v8172_v34 = vld [vmem:[%s11205_s1 + $0x1100] ss:$16 sps:$4 sm:$0xff]   ;;  %v8175_v35 = vld [vmem:[%s11205_s1 + $0x1108] ss:$16 sps:$4 sm:$0xff]  }
 0x1ec   :  { %5253 = vmatprep.subr.bf16.mxu0 %v8096_v37  ;;  %5786 = vmatprep.subr.bf16.mxu1 %v8099_v28  ;;  %v8180_v37 = vld [vmem:[%s11205_s1 + $0x1124] ss:$16 sps:$4 sm:$0xff]   ;;  %v8183_v28 = vld [vmem:[%s11205_s1 + $0x112c] ss:$16 sps:$4 sm:$0xff]  }
 0x1ef   :  { %5254 = vmatpush1.bf16.msra.mxu0 %v8094_v39  ;;  %5787 = vmatpush1.bf16.msra.mxu1 %v8097_v41  ;;  %v8178_v39 = vld [vmem:[%s11205_s1 + $0x1120] ss:$16 sps:$4 sm:$0xff]   ;;  %v8181_v41 = vld [vmem:[%s11205_s1 + $0x1128] ss:$16 sps:$4 sm:$0xff]  }
 0x1f0   :  { %5255 = vmatprep.subr.bf16.mxu0 %v8102_v43  ;;  %5788 = vmatprep.subr.bf16.mxu1 %v8105_v44  ;;  %v8186_v43 = vld [vmem:[%s11205_s1 + $0x1144] ss:$16 sps:$4 sm:$0xff]   ;;  %v8189_v44 = vld [vmem:[%s11205_s1 + $0x114c] ss:$16 sps:$4 sm:$0xff]  }
 0x1f3   :  { %5256 = vmatpush1.bf16.msra.mxu0 %v8100_v45  ;;  %5789 = vmatpush1.bf16.msra.mxu1 %v8103_v46  ;;  %v8184_v45 = vld [vmem:[%s11205_s1 + $0x1140] ss:$16 sps:$4 sm:$0xff]   ;;  %v8187_v46 = vld [vmem:[%s11205_s1 + $0x1148] ss:$16 sps:$4 sm:$0xff]  }
 0x1f4   :  { %5257 = vmatprep.subr.bf16.mxu0 %v8108_v47  ;;  %5790 = vmatprep.subr.bf16.mxu1 %v8111_v38  ;;  %v8192_v47 = vld [vmem:[%s11205_s1 + $0x1164] ss:$16 sps:$4 sm:$0xff]   ;;  %v8195_v38 = vld [vmem:[%s11205_s1 + $0x116c] ss:$16 sps:$4 sm:$0xff]  }
 0x1f7   :  { %5258 = vmatpush1.bf16.msra.mxu0 %v8106_v48  ;;  %5791 = vmatpush1.bf16.msra.mxu1 %v8109_v50  ;;  %v8190_v48 = vld [vmem:[%s11205_s1 + $0x1160] ss:$16 sps:$4 sm:$0xff]   ;;  %v8193_v50 = vld [vmem:[%s11205_s1 + $0x1168] ss:$16 sps:$4 sm:$0xff]  }
 0x1f8   :  { %5259 = vmatprep.subr.bf16.mxu0 %v8114_v51  ;;  %5792 = vmatprep.subr.bf16.mxu1 %v8117_v53  ;;  %v8198_v51 = vld [vmem:[%s11205_s1 + $0x1184] ss:$16 sps:$4 sm:$0xff]   ;;  %v8201_v53 = vld [vmem:[%s11205_s1 + $0x118c] ss:$16 sps:$4 sm:$0xff]  }
 0x1fb   :  { %5260 = vmatpush1.bf16.msra.mxu0 %v8112_v40  ;;  %5793 = vmatpush1.bf16.msra.mxu1 %v8115_v56  ;;  %v8196_v40 = vld [vmem:[%s11205_s1 + $0x1180] ss:$16 sps:$4 sm:$0xff]   ;;  %v8199_v56 = vld [vmem:[%s11205_s1 + $0x1188] ss:$16 sps:$4 sm:$0xff]  }
 0x1fc   :  { %5261 = vmatprep.subr.bf16.mxu0 %v8120_v58  ;;  %5794 = vmatprep.subr.bf16.mxu1 %v8123_v59  ;;  %v8204_v58 = vld [vmem:[%s11205_s1 + $0x11a4] ss:$16 sps:$4 sm:$0xff]   ;;  %v8207_v59 = vld [vmem:[%s11205_s1 + $0x11ac] ss:$16 sps:$4 sm:$0xff]  }
 0x1ff   :  { %5262 = vmatpush1.bf16.msra.mxu0 %v8118_v24  ;;  %5795 = vmatpush1.bf16.msra.mxu1 %v8121_v61  ;;  %v8202_v24 = vld [vmem:[%s11205_s1 + $0x11a0] ss:$16 sps:$4 sm:$0xff]   ;;  %v8205_v61 = vld [vmem:[%s11205_s1 + $0x11a8] ss:$16 sps:$4 sm:$0xff]  }
 0x200   :  { %5272 = vmatprep.subr.bf16.mxu0 %v8126_v62  ;;  %5805 = vmatprep.subr.bf16.mxu1 %v8129_v63  ;;  %v8210_v62 = vld [vmem:[%s11205_s1 + $0x11c4] ss:$16 sps:$4 sm:$0xff]   ;;  %v8213_v63 = vld [vmem:[%s11205_s1 + $0x11cc] ss:$16 sps:$4 sm:$0xff]  }
 0x202   :  { %5264 = vmatmul.mubr.bf16.vlgmr.msra.gmra.mrb[0].mxu0 %v930_v0  ;;  %5797 = vmatmul.mubr.bf16.vlgmr.msra.gmra.mrb[0].mxu1 %v930_v0  ;;  %v8211_v0 = vld [vmem:[%s11205_s1 + $0x11c8] ss:$16 sps:$4 sm:$0xff]  }
 0x203   :  { %5273 = vmatpush1.bf16.msra.mxu0 %v8124_v1  ;;  %5806 = vmatpush1.bf16.msra.mxu1 %v8127_v2  ;;  %v8216_v1 = vld [vmem:[%s11205_s1 + $0x11e4] ss:$16 sps:$4 sm:$0xff]   ;;  %v8219_v2 = vld [vmem:[%s11205_s1 + $0x11ec] ss:$16 sps:$4 sm:$0xff]  }
 0x204   :  { %5274 = vmatprep.subr.bf16.mxu0 %v8132_v3  ;;  %5807 = vmatprep.subr.bf16.mxu1 %v8135_v57  ;;  %v8214_v3 = vld [vmem:[%s11205_s1 + $0x11e0] ss:$16 sps:$4 sm:$0xff]   ;;  %v8217_v57 = vld [vmem:[%s11205_s1 + $0x11e8] ss:$16 sps:$4 sm:$0xff]  }
 0x205   :  { %5304 = vmatprep.mubr.bf16.mxu0 %v10257_v4  ;;  %5837 = vmatprep.mubr.bf16.mxu1 %v10257_v4 }
 0x207   :  { %5275 = vmatpush1.bf16.msra.mxu0 %v8130_v5  ;;  %5808 = vmatpush1.bf16.msra.mxu1 %v8133_v6  ;;  %v8222_v5 = vld [vmem:[%s11205_s1 + $0x1204] ss:$16 sps:$4 sm:$0xff]   ;;  %v8225_v6 = vld [vmem:[%s11205_s1 + $0x120c] ss:$16 sps:$4 sm:$0xff]  }
 0x208   :  { %5276 = vmatprep.subr.bf16.mxu0 %v8138_v7  ;;  %5809 = vmatprep.subr.bf16.mxu1 %v8141_v8  ;;  %v10443_v7 = vrot.slane %v10226_v60, %v8739_v49  ;;  %v8220_v8 = vld [vmem:[%s11205_s1 + $0x1200] ss:$16 sps:$4 sm:$0xff]   ;;  %v8231_v60 = vld [vmem:[%s11205_s1 + $0x122c] ss:$16 sps:$4 sm:$0xff]  }
 0x20b   :  { %5277 = vmatpush1.bf16.msra.mxu0 %v8136_v9  ;;  %5810 = vmatpush1.bf16.msra.mxu1 %v8139_v10  ;;  %v8223_v9 = vld [vmem:[%s11205_s1 + $0x1208] ss:$16 sps:$4 sm:$0xff]   ;;  %v8228_v10 = vld [vmem:[%s11205_s1 + $0x1224] ss:$16 sps:$4 sm:$0xff]  }
 0x20c   :  { %5278 = vmatprep.subr.bf16.mxu0 %v8144_v11  ;;  %5811 = vmatprep.subr.bf16.mxu1 %v8147_v12  ;;  %v980_v11 = vcombine.high %v10257_v4, %v10257_v4  ;;  %v8226_v12 = vld [vmem:[%s11205_s1 + $0x1220] ss:$16 sps:$4 sm:$0xff]   ;;  %v8234_v4 = vld [vmem:[%s11205_s1 + $0x1244] ss:$16 sps:$4 sm:$0xff]  }
 0x20f   :  { %5279 = vmatpush1.bf16.msra.mxu0 %v8142_v14  ;;  %5812 = vmatpush1.bf16.msra.mxu1 %v8145_v52  ;;  %v8229_v14 = vld [vmem:[%s11205_s1 + $0x1228] ss:$16 sps:$4 sm:$0xff]   ;;  %v8237_v52 = vld [vmem:[%s11205_s1 + $0x124c] ss:$16 sps:$4 sm:$0xff]  }
 0x210   :  { %5280 = vmatprep.subr.bf16.mxu0 %v8150_v16  ;;  %5813 = vmatprep.subr.bf16.mxu1 %v8153_v17  ;;  %v8232_v16 = vld [vmem:[%s11205_s1 + $0x1240] ss:$16 sps:$4 sm:$0xff]   ;;  %v8235_v17 = vld [vmem:[%s11205_s1 + $0x1248] ss:$16 sps:$4 sm:$0xff]  }
 0x213   :  { %5281 = vmatpush1.bf16.msra.mxu0 %v8148_v18  ;;  %5814 = vmatpush1.bf16.msra.mxu1 %v8151_v19  ;;  %v8240_v18 = vld [vmem:[%s11205_s1 + $0x1264] ss:$16 sps:$4 sm:$0xff]   ;;  %v8243_v19 = vld [vmem:[%s11205_s1 + $0x126c] ss:$16 sps:$4 sm:$0xff]  }
 0x214   :  { %5282 = vmatprep.subr.bf16.mxu0 %v8156_v20  ;;  %5815 = vmatprep.subr.bf16.mxu1 %v8159_v21  ;;  %v8238_v20 = vld [vmem:[%s11205_s1 + $0x1260] ss:$16 sps:$4 sm:$0xff]   ;;  %v8241_v21 = vld [vmem:[%s11205_s1 + $0x1268] ss:$16 sps:$4 sm:$0xff]  }
 0x217   :  { %5283 = vmatpush1.bf16.msra.mxu0 %v8154_v22  ;;  %5816 = vmatpush1.bf16.msra.mxu1 %v8157_v23  ;;  %v8246_v22 = vld [vmem:[%s11205_s1 + $0x1284] ss:$16 sps:$4 sm:$0xff]   ;;  %v8249_v23 = vld [vmem:[%s11205_s1 + $0x128c] ss:$16 sps:$4 sm:$0xff]  }
 0x218   :  { %5284 = vmatprep.subr.bf16.mxu0 %v8162_v25  ;;  %5817 = vmatprep.subr.bf16.mxu1 %v8165_v13  ;;  %v8244_v25 = vld [vmem:[%s11205_s1 + $0x1280] ss:$16 sps:$4 sm:$0xff]   ;;  %v8247_v13 = vld [vmem:[%s11205_s1 + $0x1288] ss:$16 sps:$4 sm:$0xff]  }
 0x21b   :  { %5285 = vmatpush1.bf16.msra.mxu0 %v8160_v27  ;;  %5818 = vmatpush1.bf16.msra.mxu1 %v8163_v29  ;;  %v8252_v27 = vld [vmem:[%s11205_s1 + $0x12a4] ss:$16 sps:$4 sm:$0xff]   ;;  %v8255_v29 = vld [vmem:[%s11205_s1 + $0x12ac] ss:$16 sps:$4 sm:$0xff]  }
 0x21c   :  { %5286 = vmatprep.subr.bf16.mxu0 %v8168_v30  ;;  %5819 = vmatprep.subr.bf16.mxu1 %v8171_v31  ;;  %v8250_v30 = vld [vmem:[%s11205_s1 + $0x12a0] ss:$16 sps:$4 sm:$0xff]   ;;  %v8253_v31 = vld [vmem:[%s11205_s1 + $0x12a8] ss:$16 sps:$4 sm:$0xff]  }
 0x21f   :  { %5287 = vmatpush1.bf16.msra.mxu0 %v8166_v15  ;;  %5820 = vmatpush1.bf16.msra.mxu1 %v8169_v32  ;;  %v8258_v15 = vld [vmem:[%s11205_s1 + $0x12c4] ss:$16 sps:$4 sm:$0xff]   ;;  %v8261_v32 = vld [vmem:[%s11205_s1 + $0x12cc] ss:$16 sps:$4 sm:$0xff]  }
 0x220   :  { %5288 = vmatprep.subr.bf16.mxu0 %v8174_v33  ;;  %5821 = vmatprep.subr.bf16.mxu1 %v8177_v26  ;;  %v8256_v33 = vld [vmem:[%s11205_s1 + $0x12c0] ss:$16 sps:$4 sm:$0xff]   ;;  %v8259_v26 = vld [vmem:[%s11205_s1 + $0x12c8] ss:$16 sps:$4 sm:$0xff]  }
 0x223   :  { %5289 = vmatpush1.bf16.msra.mxu0 %v8172_v34  ;;  %5822 = vmatpush1.bf16.msra.mxu1 %v8175_v35  ;;  %v8264_v34 = vld [vmem:[%s11205_s1 + $0x12e4] ss:$16 sps:$4 sm:$0xff]   ;;  %v8267_v35 = vld [vmem:[%s11205_s1 + $0x12ec] ss:$16 sps:$4 sm:$0xff]  }
 0x224   :  { %5290 = vmatprep.subr.bf16.mxu0 %v8180_v37  ;;  %5823 = vmatprep.subr.bf16.mxu1 %v8183_v28  ;;  %v8262_v37 = vld [vmem:[%s11205_s1 + $0x12e0] ss:$16 sps:$4 sm:$0xff]   ;;  %v8265_v28 = vld [vmem:[%s11205_s1 + $0x12e8] ss:$16 sps:$4 sm:$0xff]  }
 0x227   :  { %5291 = vmatpush1.bf16.msra.mxu0 %v8178_v39  ;;  %5824 = vmatpush1.bf16.msra.mxu1 %v8181_v41  ;;  %v8270_v39 = vld [vmem:[%s11205_s1 + $0x1304] ss:$16 sps:$4 sm:$0xff]   ;;  %v8273_v41 = vld [vmem:[%s11205_s1 + $0x130c] ss:$16 sps:$4 sm:$0xff]  }
 0x228   :  { %5292 = vmatprep.subr.bf16.mxu0 %v8186_v43  ;;  %5825 = vmatprep.subr.bf16.mxu1 %v8189_v44  ;;  %v8268_v43 = vld [vmem:[%s11205_s1 + $0x1300] ss:$16 sps:$4 sm:$0xff]   ;;  %v8271_v44 = vld [vmem:[%s11205_s1 + $0x1308] ss:$16 sps:$4 sm:$0xff]  }
 0x22b   :  { %5293 = vmatpush1.bf16.msra.mxu0 %v8184_v45  ;;  %5826 = vmatpush1.bf16.msra.mxu1 %v8187_v46  ;;  %v8276_v45 = vld [vmem:[%s11205_s1 + $0x1324] ss:$16 sps:$4 sm:$0xff]   ;;  %v8279_v46 = vld [vmem:[%s11205_s1 + $0x132c] ss:$16 sps:$4 sm:$0xff]  }
 0x22c   :  { %5294 = vmatprep.subr.bf16.mxu0 %v8192_v47  ;;  %5827 = vmatprep.subr.bf16.mxu1 %v8195_v38  ;;  %v8274_v47 = vld [vmem:[%s11205_s1 + $0x1320] ss:$16 sps:$4 sm:$0xff]   ;;  %v8277_v38 = vld [vmem:[%s11205_s1 + $0x1328] ss:$16 sps:$4 sm:$0xff]  }
 0x22f   :  { %5295 = vmatpush1.bf16.msra.mxu0 %v8190_v48  ;;  %5828 = vmatpush1.bf16.msra.mxu1 %v8193_v50  ;;  %v8282_v48 = vld [vmem:[%s11205_s1 + $0x1344] ss:$16 sps:$4 sm:$0xff]   ;;  %v8285_v50 = vld [vmem:[%s11205_s1 + $0x134c] ss:$16 sps:$4 sm:$0xff]  }
 0x230   :  { %5296 = vmatprep.subr.bf16.mxu0 %v8198_v51  ;;  %5829 = vmatprep.subr.bf16.mxu1 %v8201_v53  ;;  %v8280_v51 = vld [vmem:[%s11205_s1 + $0x1340] ss:$16 sps:$4 sm:$0xff]   ;;  %v8283_v53 = vld [vmem:[%s11205_s1 + $0x1348] ss:$16 sps:$4 sm:$0xff]  }
 0x233   :  { %5297 = vmatpush1.bf16.msra.mxu0 %v8196_v40  ;;  %5830 = vmatpush1.bf16.msra.mxu1 %v8199_v56  ;;  %v8288_v40 = vld [vmem:[%s11205_s1 + $0x1364] ss:$16 sps:$4 sm:$0xff]   ;;  %v8291_v56 = vld [vmem:[%s11205_s1 + $0x136c] ss:$16 sps:$4 sm:$0xff]  }
 0x234   :  { %5298 = vmatprep.subr.bf16.mxu0 %v8204_v58  ;;  %5831 = vmatprep.subr.bf16.mxu1 %v8207_v59  ;;  %v8286_v58 = vld [vmem:[%s11205_s1 + $0x1360] ss:$16 sps:$4 sm:$0xff]   ;;  %v8289_v59 = vld [vmem:[%s11205_s1 + $0x1368] ss:$16 sps:$4 sm:$0xff]  }
 0x237   :  { %5299 = vmatpush1.bf16.msra.mxu0 %v8202_v24  ;;  %5832 = vmatpush1.bf16.msra.mxu1 %v8205_v61  ;;  %v8294_v24 = vld [vmem:[%s11205_s1 + $0x1384] ss:$16 sps:$4 sm:$0xff]   ;;  %v8297_v61 = vld [vmem:[%s11205_s1 + $0x138c] ss:$16 sps:$4 sm:$0xff]  }
 0x238   :  { %5300 = vmatprep.subr.bf16.mxu0 %v8210_v62  ;;  %5833 = vmatprep.subr.bf16.mxu1 %v8213_v63  ;;  %v8292_v62 = vld [vmem:[%s11205_s1 + $0x1380] ss:$16 sps:$4 sm:$0xff]   ;;  %v8295_v63 = vld [vmem:[%s11205_s1 + $0x1388] ss:$16 sps:$4 sm:$0xff]  }
 0x23b   :  { %5301 = vmatpush1.bf16.msra.mxu0 %v8208_v55  ;;  %5834 = vmatpush1.bf16.msra.mxu1 %v8211_v0  ;;  %v8300_v55 = vld [vmem:[%s11205_s1 + $0x13a4] ss:$16 sps:$4 sm:$0xff]   ;;  %v8303_v0 = vld [vmem:[%s11205_s1 + $0x13ac] ss:$16 sps:$4 sm:$0xff]  }
 0x23c   :  { %5302 = vmatprep.subr.bf16.mxu0 %v8216_v1  ;;  %5835 = vmatprep.subr.bf16.mxu1 %v8219_v2  ;;  %v8298_v1 = vld [vmem:[%s11205_s1 + $0x13a0] ss:$16 sps:$4 sm:$0xff]   ;;  %v8301_v2 = vld [vmem:[%s11205_s1 + $0x13a8] ss:$16 sps:$4 sm:$0xff]  }
 0x23f   :  { %5303 = vmatpush1.bf16.msra.mxu0 %v8214_v3  ;;  %5836 = vmatpush1.bf16.msra.mxu1 %v8217_v57  ;;  %v8306_v3 = vld [vmem:[%s11205_s1 + $0x13c4] ss:$16 sps:$4 sm:$0xff]   ;;  %v8309_v57 = vld [vmem:[%s11205_s1 + $0x13cc] ss:$16 sps:$4 sm:$0xff]  }
 0x240   :  { %5313 = vmatprep.subr.bf16.mxu0 %v8222_v5  ;;  %5846 = vmatprep.subr.bf16.mxu1 %v8225_v6  ;;  %v933_v5 = vcombine.high %v10210_v54, %v10210_v54  ;;  %v8304_v6 = vld [vmem:[%s11205_s1 + $0x13c0] ss:$16 sps:$4 sm:$0xff]   ;;  %v8315_v54 = vld [vmem:[%s11205_s1 + $0x13ec] ss:$16 sps:$4 sm:$0xff]  }
 0x242   :  { %5305 = vmatmul.mubr.bf16.vlgmr.msra.gmra.mrb[0].mxu0 %v10443_v7  ;;  %5838 = vmatmul.mubr.bf16.vlgmr.msra.gmra.mrb[0].mxu1 %v10443_v7 }
 0x243   :  { %5314 = vmatpush1.bf16.msra.mxu0 %v8220_v8  ;;  %5847 = vmatpush1.bf16.msra.mxu1 %v8223_v9  ;;  %v8307_v8 = vld [vmem:[%s11205_s1 + $0x13c8] ss:$16 sps:$4 sm:$0xff]   ;;  %v8312_v9 = vld [vmem:[%s11205_s1 + $0x13e4] ss:$16 sps:$4 sm:$0xff]  }
 0x244   :  { %5315 = vmatprep.subr.bf16.mxu0 %v8228_v10  ;;  %5848 = vmatprep.subr.bf16.mxu1 %v8231_v60  ;;  %v10632_v10 = vrot.slane %v933_v5, %v8739_v49  ;;  %v8310_v60 = vld [vmem:[%s11205_s1 + $0x13e0] ss:$16 sps:$4 sm:$0xff]  }
 0x245   :  { %5345 = vmatprep.mubr.bf16.mxu0 %v980_v11  ;;  %5878 = vmatprep.mubr.bf16.mxu1 %v980_v11  ;;  %v8313_v11 = vld [vmem:[%s11205_s1 + $0x13e8] ss:$16 sps:$4 sm:$0xff]   ;;  %v8388_v5 = vld [vmem:[%s11205_s1 + $0x1580] ss:$16 sps:$4 sm:$0xff]  }
 0x247   :  { %5316 = vmatpush1.bf16.msra.mxu0 %v8226_v12  ;;  %5849 = vmatpush1.bf16.msra.mxu1 %v8229_v14  ;;  %v8318_v12 = vld [vmem:[%s11205_s1 + $0x1404] ss:$16 sps:$4 sm:$0xff]   ;;  %v8321_v14 = vld [vmem:[%s11205_s1 + $0x140c] ss:$16 sps:$4 sm:$0xff]  }
 0x248   :  { %5317 = vmatprep.subr.bf16.mxu0 %v8234_v4  ;;  %5850 = vmatprep.subr.bf16.mxu1 %v8237_v52  ;;  %v949_v4 = vcombine.high %v10632_v10, %v10632_v10  ;;  %v978_v52 = vcombine.high %v10443_v7, %v10443_v7  ;;  %v8327_v7 = vld [vmem:[%s11205_s1 + $0x142c] ss:$16 sps:$4 sm:$0xff]  }
 0x24b   :  { %5318 = vmatpush1.bf16.msra.mxu0 %v8232_v16  ;;  %5851 = vmatpush1.bf16.msra.mxu1 %v8235_v17  ;;  %v8316_v16 = vld [vmem:[%s11205_s1 + $0x1400] ss:$16 sps:$4 sm:$0xff]   ;;  %v8319_v17 = vld [vmem:[%s11205_s1 + $0x1408] ss:$16 sps:$4 sm:$0xff]  }
 0x24c   :  { %5319 = vmatprep.subr.bf16.mxu0 %v8240_v18  ;;  %5852 = vmatprep.subr.bf16.mxu1 %v8243_v19  ;;  %v8324_v18 = vld [vmem:[%s11205_s1 + $0x1424] ss:$16 sps:$4 sm:$0xff]   ;;  %v10663_v19 = vrot.slane %v949_v4, %v8739_v49  ;;  %v8403_v4 = vld [vmem:[%s11205_s1 + $0x15c8] ss:$16 sps:$4 sm:$0xff]  }
 0x24f   :  { %5320 = vmatpush1.bf16.msra.mxu0 %v8238_v20  ;;  %5853 = vmatpush1.bf16.msra.mxu1 %v8241_v21  ;;  %v8322_v20 = vld [vmem:[%s11205_s1 + $0x1420] ss:$16 sps:$4 sm:$0xff]   ;;  %v8325_v21 = vld [vmem:[%s11205_s1 + $0x1428] ss:$16 sps:$4 sm:$0xff]  }
 0x250   :  { %5321 = vmatprep.subr.bf16.mxu0 %v8246_v22  ;;  %5854 = vmatprep.subr.bf16.mxu1 %v8249_v23  ;;  %v8330_v22 = vld [vmem:[%s11205_s1 + $0x1444] ss:$16 sps:$4 sm:$0xff]   ;;  %v8333_v23 = vld [vmem:[%s11205_s1 + $0x144c] ss:$16 sps:$4 sm:$0xff]  }
 0x253   :  { %5322 = vmatpush1.bf16.msra.mxu0 %v8244_v25  ;;  %5855 = vmatpush1.bf16.msra.mxu1 %v8247_v13  ;;  %v8328_v25 = vld [vmem:[%s11205_s1 + $0x1440] ss:$16 sps:$4 sm:$0xff]   ;;  %v8331_v13 = vld [vmem:[%s11205_s1 + $0x1448] ss:$16 sps:$4 sm:$0xff]  }
 0x254   :  { %5323 = vmatprep.subr.bf16.mxu0 %v8252_v27  ;;  %5856 = vmatprep.subr.bf16.mxu1 %v8255_v29  ;;  %v8336_v27 = vld [vmem:[%s11205_s1 + $0x1464] ss:$16 sps:$4 sm:$0xff]   ;;  %v8339_v29 = vld [vmem:[%s11205_s1 + $0x146c] ss:$16 sps:$4 sm:$0xff]  }
 0x257   :  { %5324 = vmatpush1.bf16.msra.mxu0 %v8250_v30  ;;  %5857 = vmatpush1.bf16.msra.mxu1 %v8253_v31  ;;  %v8334_v30 = vld [vmem:[%s11205_s1 + $0x1460] ss:$16 sps:$4 sm:$0xff]   ;;  %v8337_v31 = vld [vmem:[%s11205_s1 + $0x1468] ss:$16 sps:$4 sm:$0xff]  }
 0x258   :  { %5325 = vmatprep.subr.bf16.mxu0 %v8258_v15  ;;  %5858 = vmatprep.subr.bf16.mxu1 %v8261_v32  ;;  %v8342_v15 = vld [vmem:[%s11205_s1 + $0x1484] ss:$16 sps:$4 sm:$0xff]   ;;  %v8345_v32 = vld [vmem:[%s11205_s1 + $0x148c] ss:$16 sps:$4 sm:$0xff]  }
 0x25b   :  { %5326 = vmatpush1.bf16.msra.mxu0 %v8256_v33  ;;  %5859 = vmatpush1.bf16.msra.mxu1 %v8259_v26  ;;  %v8340_v33 = vld [vmem:[%s11205_s1 + $0x1480] ss:$16 sps:$4 sm:$0xff]   ;;  %v8343_v26 = vld [vmem:[%s11205_s1 + $0x1488] ss:$16 sps:$4 sm:$0xff]  }
 0x25c   :  { %5327 = vmatprep.subr.bf16.mxu0 %v8264_v34  ;;  %5860 = vmatprep.subr.bf16.mxu1 %v8267_v35  ;;  %v8348_v34 = vld [vmem:[%s11205_s1 + $0x14a4] ss:$16 sps:$4 sm:$0xff]   ;;  %v8351_v35 = vld [vmem:[%s11205_s1 + $0x14ac] ss:$16 sps:$4 sm:$0xff]  }
 0x25f   :  { %5328 = vmatpush1.bf16.msra.mxu0 %v8262_v37  ;;  %5861 = vmatpush1.bf16.msra.mxu1 %v8265_v28  ;;  %v8346_v37 = vld [vmem:[%s11205_s1 + $0x14a0] ss:$16 sps:$4 sm:$0xff]   ;;  %v8349_v28 = vld [vmem:[%s11205_s1 + $0x14a8] ss:$16 sps:$4 sm:$0xff]  }
 0x260   :  { %5329 = vmatprep.subr.bf16.mxu0 %v8270_v39  ;;  %5862 = vmatprep.subr.bf16.mxu1 %v8273_v41  ;;  %v8354_v39 = vld [vmem:[%s11205_s1 + $0x14c4] ss:$16 sps:$4 sm:$0xff]   ;;  %v8357_v41 = vld [vmem:[%s11205_s1 + $0x14cc] ss:$16 sps:$4 sm:$0xff]  }
 0x263   :  { %5330 = vmatpush1.bf16.msra.mxu0 %v8268_v43  ;;  %5863 = vmatpush1.bf16.msra.mxu1 %v8271_v44  ;;  %v8352_v43 = vld [vmem:[%s11205_s1 + $0x14c0] ss:$16 sps:$4 sm:$0xff]   ;;  %v8355_v44 = vld [vmem:[%s11205_s1 + $0x14c8] ss:$16 sps:$4 sm:$0xff]  }
 0x264   :  { %5331 = vmatprep.subr.bf16.mxu0 %v8276_v45  ;;  %5864 = vmatprep.subr.bf16.mxu1 %v8279_v46  ;;  %v8360_v45 = vld [vmem:[%s11205_s1 + $0x14e4] ss:$16 sps:$4 sm:$0xff]   ;;  %v8363_v46 = vld [vmem:[%s11205_s1 + $0x14ec] ss:$16 sps:$4 sm:$0xff]  }
 0x267   :  { %5332 = vmatpush1.bf16.msra.mxu0 %v8274_v47  ;;  %5865 = vmatpush1.bf16.msra.mxu1 %v8277_v38  ;;  %v8358_v47 = vld [vmem:[%s11205_s1 + $0x14e0] ss:$16 sps:$4 sm:$0xff]   ;;  %v8361_v38 = vld [vmem:[%s11205_s1 + $0x14e8] ss:$16 sps:$4 sm:$0xff]  }
 0x268   :  { %5333 = vmatprep.subr.bf16.mxu0 %v8282_v48  ;;  %5866 = vmatprep.subr.bf16.mxu1 %v8285_v50  ;;  %v8366_v48 = vld [vmem:[%s11205_s1 + $0x1504] ss:$16 sps:$4 sm:$0xff]   ;;  %v8369_v50 = vld [vmem:[%s11205_s1 + $0x150c] ss:$16 sps:$4 sm:$0xff]  }
 0x26b   :  { %5334 = vmatpush1.bf16.msra.mxu0 %v8280_v51  ;;  %5867 = vmatpush1.bf16.msra.mxu1 %v8283_v53  ;;  %v8364_v51 = vld [vmem:[%s11205_s1 + $0x1500] ss:$16 sps:$4 sm:$0xff]   ;;  %v8367_v53 = vld [vmem:[%s11205_s1 + $0x1508] ss:$16 sps:$4 sm:$0xff]  }
 0x26c   :  { %5335 = vmatprep.subr.bf16.mxu0 %v8288_v40  ;;  %5868 = vmatprep.subr.bf16.mxu1 %v8291_v56  ;;  %v8372_v40 = vld [vmem:[%s11205_s1 + $0x1524] ss:$16 sps:$4 sm:$0xff]   ;;  %v8375_v56 = vld [vmem:[%s11205_s1 + $0x152c] ss:$16 sps:$4 sm:$0xff]  }
 0x26f   :  { %5336 = vmatpush1.bf16.msra.mxu0 %v8286_v58  ;;  %5869 = vmatpush1.bf16.msra.mxu1 %v8289_v59  ;;  %v8370_v58 = vld [vmem:[%s11205_s1 + $0x1520] ss:$16 sps:$4 sm:$0xff]   ;;  %v8373_v59 = vld [vmem:[%s11205_s1 + $0x1528] ss:$16 sps:$4 sm:$0xff]  }
 0x270   :  { %5337 = vmatprep.subr.bf16.mxu0 %v8294_v24  ;;  %5870 = vmatprep.subr.bf16.mxu1 %v8297_v61  ;;  %v8378_v24 = vld [vmem:[%s11205_s1 + $0x1544] ss:$16 sps:$4 sm:$0xff]   ;;  %v8381_v61 = vld [vmem:[%s11205_s1 + $0x154c] ss:$16 sps:$4 sm:$0xff]  }
 0x273   :  { %5338 = vmatpush1.bf16.msra.mxu0 %v8292_v62  ;;  %5871 = vmatpush1.bf16.msra.mxu1 %v8295_v63  ;;  %v8376_v62 = vld [vmem:[%s11205_s1 + $0x1540] ss:$16 sps:$4 sm:$0xff]   ;;  %v8379_v63 = vld [vmem:[%s11205_s1 + $0x1548] ss:$16 sps:$4 sm:$0xff]  }
 0x274   :  { %5339 = vmatprep.subr.bf16.mxu0 %v8300_v55  ;;  %5872 = vmatprep.subr.bf16.mxu1 %v8303_v0  ;;  %v8384_v55 = vld [vmem:[%s11205_s1 + $0x1564] ss:$16 sps:$4 sm:$0xff]   ;;  %v8387_v0 = vld [vmem:[%s11205_s1 + $0x156c] ss:$16 sps:$4 sm:$0xff]  }
 0x277   :  { %5340 = vmatpush1.bf16.msra.mxu0 %v8298_v1  ;;  %5873 = vmatpush1.bf16.msra.mxu1 %v8301_v2  ;;  %v8382_v1 = vld [vmem:[%s11205_s1 + $0x1560] ss:$16 sps:$4 sm:$0xff]   ;;  %v8385_v2 = vld [vmem:[%s11205_s1 + $0x1568] ss:$16 sps:$4 sm:$0xff]  }
 0x278   :  { %5341 = vmatprep.subr.bf16.mxu0 %v8306_v3  ;;  %5874 = vmatprep.subr.bf16.mxu1 %v8309_v57  ;;  %v8390_v3 = vld [vmem:[%s11205_s1 + $0x1584] ss:$16 sps:$4 sm:$0xff]   ;;  %v8393_v57 = vld [vmem:[%s11205_s1 + $0x158c] ss:$16 sps:$4 sm:$0xff]  }
 0x27b   :  { %5342 = vmatpush1.bf16.msra.mxu0 %v8304_v6  ;;  %5875 = vmatpush1.bf16.msra.mxu1 %v8307_v8  ;;  %v8391_v6 = vld [vmem:[%s11205_s1 + $0x1588] ss:$16 sps:$4 sm:$0xff]   ;;  %v8396_v8 = vld [vmem:[%s11205_s1 + $0x15a4] ss:$16 sps:$4 sm:$0xff]  }
 0x27c   :  { %5343 = vmatprep.subr.bf16.mxu0 %v8312_v9  ;;  %5876 = vmatprep.subr.bf16.mxu1 %v8315_v54  ;;  %v8399_v9 = vld [vmem:[%s11205_s1 + $0x15ac] ss:$16 sps:$4 sm:$0xff]   ;;  %v8394_v54 = vld [vmem:[%s11205_s1 + $0x15a0] ss:$16 sps:$4 sm:$0xff]  }
 0x27f   :  { %5344 = vmatpush1.bf16.msra.mxu0 %v8310_v60  ;;  %5877 = vmatpush1.bf16.msra.mxu1 %v8313_v11  ;;  %v8397_v60 = vld [vmem:[%s11205_s1 + $0x15a8] ss:$16 sps:$4 sm:$0xff]   ;;  %v8402_v11 = vld [vmem:[%s11205_s1 + $0x15c4] ss:$16 sps:$4 sm:$0xff]  }
 0x280   :  { %5354 = vmatprep.subr.bf16.mxu0 %v8318_v12  ;;  %5887 = vmatprep.subr.bf16.mxu1 %v8321_v14  ;;  %v8405_v12 = vld [vmem:[%s11205_s1 + $0x15cc] ss:$16 sps:$4 sm:$0xff]   ;;  %v8400_v14 = vld [vmem:[%s11205_s1 + $0x15c0] ss:$16 sps:$4 sm:$0xff]  }
 0x282   :  { %5346 = vmatmul.mubr.bf16.vlgmr.msra.gmra.mrb[0].mxu0 %v978_v52  ;;  %5879 = vmatmul.mubr.bf16.vlgmr.msra.gmra.mrb[0].mxu1 %v978_v52  ;;  %v8408_v52 = vld [vmem:[%s11205_s1 + $0x15e4] ss:$16 sps:$4 sm:$0xff]  }
 0x283   :  { %5355 = vmatpush1.bf16.msra.mxu0 %v8316_v16  ;;  %5888 = vmatpush1.bf16.msra.mxu1 %v8319_v17  ;;  %v8411_v16 = vld [vmem:[%s11205_s1 + $0x15ec] ss:$16 sps:$4 sm:$0xff]   ;;  %v8406_v17 = vld [vmem:[%s11205_s1 + $0x15e0] ss:$16 sps:$4 sm:$0xff]  }
 0x284   :  { %5356 = vmatprep.subr.bf16.mxu0 %v8324_v18  ;;  %5889 = vmatprep.subr.bf16.mxu1 %v8327_v7  ;;  %v8409_v18 = vld [vmem:[%s11205_s1 + $0x15e8] ss:$16 sps:$4 sm:$0xff]   ;;  %v8415_v7 = vld [vmem:[%s11205_s1 + $0x1604] ss:$16 sps:$4 sm:$0xff]  }
 0x285   :  { %5386 = vmatprep.mubr.bf16.mxu0 %v10663_v19  ;;  %5919 = vmatprep.mubr.bf16.mxu1 %v10663_v19 }
 0x287   :  { %5357 = vmatpush1.bf16.msra.mxu0 %v8322_v20  ;;  %5890 = vmatpush1.bf16.msra.mxu1 %v8325_v21  ;;  %v8418_v20 = vld [vmem:[%s11205_s1 + $0x160c] ss:$16 sps:$4 sm:$0xff]   ;;  %v10849_v21 = vrot.slane %v10632_v10, %v8739_v49 }
 0x288   :  { %5358 = vmatprep.subr.bf16.mxu0 %v8330_v22  ;;  %5891 = vmatprep.subr.bf16.mxu1 %v8333_v23  ;;  %v8413_v22 = vld [vmem:[%s11205_s1 + $0x1600] ss:$16 sps:$4 sm:$0xff]   ;;  %v8416_v23 = vld [vmem:[%s11205_s1 + $0x1608] ss:$16 sps:$4 sm:$0xff]   ;;  %v8424_v10 = vld [vmem:[%s11205_s1 + $0x162c] ss:$16 sps:$4 sm:$0xff]  }
 0x28b   :  { %5359 = vmatpush1.bf16.msra.mxu0 %v8328_v25  ;;  %5892 = vmatpush1.bf16.msra.mxu1 %v8331_v13  ;;  %v8421_v25 = vld [vmem:[%s11205_s1 + $0x1624] ss:$16 sps:$4 sm:$0xff]   ;;  %v981_v13 = vcombine.high %v10663_v19, %v10663_v19 }
 0x28c   :  { %5360 = vmatprep.subr.bf16.mxu0 %v8336_v27  ;;  %5893 = vmatprep.subr.bf16.mxu1 %v8339_v29  ;;  %v8419_v27 = vld [vmem:[%s11205_s1 + $0x1620] ss:$16 sps:$4 sm:$0xff]   ;;  %v8422_v29 = vld [vmem:[%s11205_s1 + $0x1628] ss:$16 sps:$4 sm:$0xff]   ;;  %v8427_v19 = vld [vmem:[%s11205_s1 + $0x1644] ss:$16 sps:$4 sm:$0xff]  }
 0x28f   :  { %5361 = vmatpush1.bf16.msra.mxu0 %v8334_v30  ;;  %5894 = vmatpush1.bf16.msra.mxu1 %v8337_v31  ;;  %v8430_v30 = vld [vmem:[%s11205_s1 + $0x164c] ss:$16 sps:$4 sm:$0xff]   ;;  %v8425_v31 = vld [vmem:[%s11205_s1 + $0x1640] ss:$16 sps:$4 sm:$0xff]  }
 0x290   :  { %5362 = vmatprep.subr.bf16.mxu0 %v8342_v15  ;;  %5895 = vmatprep.subr.bf16.mxu1 %v8345_v32  ;;  %v8428_v15 = vld [vmem:[%s11205_s1 + $0x1648] ss:$16 sps:$4 sm:$0xff]   ;;  %v8433_v32 = vld [vmem:[%s11205_s1 + $0x1664] ss:$16 sps:$4 sm:$0xff]  }
 0x293   :  { %5363 = vmatpush1.bf16.msra.mxu0 %v8340_v33  ;;  %5896 = vmatpush1.bf16.msra.mxu1 %v8343_v26  ;;  %v8436_v33 = vld [vmem:[%s11205_s1 + $0x166c] ss:$16 sps:$4 sm:$0xff]   ;;  %v8431_v26 = vld [vmem:[%s11205_s1 + $0x1660] ss:$16 sps:$4 sm:$0xff]  }
 0x294   :  { %5364 = vmatprep.subr.bf16.mxu0 %v8348_v34  ;;  %5897 = vmatprep.subr.bf16.mxu1 %v8351_v35  ;;  %v8434_v34 = vld [vmem:[%s11205_s1 + $0x1668] ss:$16 sps:$4 sm:$0xff]   ;;  %v8439_v35 = vld [vmem:[%s11205_s1 + $0x1684] ss:$16 sps:$4 sm:$0xff]  }
 0x297   :  { %5365 = vmatpush1.bf16.msra.mxu0 %v8346_v37  ;;  %5898 = vmatpush1.bf16.msra.mxu1 %v8349_v28  ;;  %v8442_v37 = vld [vmem:[%s11205_s1 + $0x168c] ss:$16 sps:$4 sm:$0xff]   ;;  %v8437_v28 = vld [vmem:[%s11205_s1 + $0x1680] ss:$16 sps:$4 sm:$0xff]  }
 0x298   :  { %5366 = vmatprep.subr.bf16.mxu0 %v8354_v39  ;;  %5899 = vmatprep.subr.bf16.mxu1 %v8357_v41  ;;  %v8440_v39 = vld [vmem:[%s11205_s1 + $0x1688] ss:$16 sps:$4 sm:$0xff]   ;;  %v8445_v41 = vld [vmem:[%s11205_s1 + $0x16a4] ss:$16 sps:$4 sm:$0xff]  }
 0x29b   :  { %5367 = vmatpush1.bf16.msra.mxu0 %v8352_v43  ;;  %5900 = vmatpush1.bf16.msra.mxu1 %v8355_v44  ;;  %v8448_v43 = vld [vmem:[%s11205_s1 + $0x16ac] ss:$16 sps:$4 sm:$0xff]   ;;  %v8443_v44 = vld [vmem:[%s11205_s1 + $0x16a0] ss:$16 sps:$4 sm:$0xff]  }
 0x29c   :  { %5368 = vmatprep.subr.bf16.mxu0 %v8360_v45  ;;  %5901 = vmatprep.subr.bf16.mxu1 %v8363_v46  ;;  %v8446_v45 = vld [vmem:[%s11205_s1 + $0x16a8] ss:$16 sps:$4 sm:$0xff]   ;;  %v8451_v46 = vld [vmem:[%s11205_s1 + $0x16c4] ss:$16 sps:$4 sm:$0xff]  }
 0x29f   :  { %5369 = vmatpush1.bf16.msra.mxu0 %v8358_v47  ;;  %5902 = vmatpush1.bf16.msra.mxu1 %v8361_v38  ;;  %v8454_v47 = vld [vmem:[%s11205_s1 + $0x16cc] ss:$16 sps:$4 sm:$0xff]   ;;  %v8449_v38 = vld [vmem:[%s11205_s1 + $0x16c0] ss:$16 sps:$4 sm:$0xff]  }
 0x2a0   :  { %5370 = vmatprep.subr.bf16.mxu0 %v8366_v48  ;;  %5903 = vmatprep.subr.bf16.mxu1 %v8369_v50  ;;  %v8452_v48 = vld [vmem:[%s11205_s1 + $0x16c8] ss:$16 sps:$4 sm:$0xff]   ;;  %v8457_v50 = vld [vmem:[%s11205_s1 + $0x16e4] ss:$16 sps:$4 sm:$0xff]  }
 0x2a3   :  { %5371 = vmatpush1.bf16.msra.mxu0 %v8364_v51  ;;  %5904 = vmatpush1.bf16.msra.mxu1 %v8367_v53  ;;  %v8460_v51 = vld [vmem:[%s11205_s1 + $0x16ec] ss:$16 sps:$4 sm:$0xff]   ;;  %v8455_v53 = vld [vmem:[%s11205_s1 + $0x16e0] ss:$16 sps:$4 sm:$0xff]  }
 0x2a4   :  { %5372 = vmatprep.subr.bf16.mxu0 %v8372_v40  ;;  %5905 = vmatprep.subr.bf16.mxu1 %v8375_v56  ;;  %v8458_v40 = vld [vmem:[%s11205_s1 + $0x16e8] ss:$16 sps:$4 sm:$0xff]   ;;  %v8463_v56 = vld [vmem:[%s11205_s1 + $0x1704] ss:$16 sps:$4 sm:$0xff]  }
 0x2a7   :  { %5373 = vmatpush1.bf16.msra.mxu0 %v8370_v58  ;;  %5906 = vmatpush1.bf16.msra.mxu1 %v8373_v59  ;;  %v8466_v58 = vld [vmem:[%s11205_s1 + $0x170c] ss:$16 sps:$4 sm:$0xff]   ;;  %v8461_v59 = vld [vmem:[%s11205_s1 + $0x1700] ss:$16 sps:$4 sm:$0xff]  }
 0x2a8   :  { %5374 = vmatprep.subr.bf16.mxu0 %v8378_v24  ;;  %5907 = vmatprep.subr.bf16.mxu1 %v8381_v61  ;;  %v8464_v24 = vld [vmem:[%s11205_s1 + $0x1708] ss:$16 sps:$4 sm:$0xff]   ;;  %v8469_v61 = vld [vmem:[%s11205_s1 + $0x1724] ss:$16 sps:$4 sm:$0xff]  }
 0x2ab   :  { %5375 = vmatpush1.bf16.msra.mxu0 %v8376_v62  ;;  %5908 = vmatpush1.bf16.msra.mxu1 %v8379_v63  ;;  %v8472_v62 = vld [vmem:[%s11205_s1 + $0x172c] ss:$16 sps:$4 sm:$0xff]   ;;  %v8467_v63 = vld [vmem:[%s11205_s1 + $0x1720] ss:$16 sps:$4 sm:$0xff]  }
 0x2ac   :  { %5376 = vmatprep.subr.bf16.mxu0 %v8384_v55  ;;  %5909 = vmatprep.subr.bf16.mxu1 %v8387_v0  ;;  %v8470_v55 = vld [vmem:[%s11205_s1 + $0x1728] ss:$16 sps:$4 sm:$0xff]   ;;  %v8475_v0 = vld [vmem:[%s11205_s1 + $0x1744] ss:$16 sps:$4 sm:$0xff]  }
 0x2af   :  { %5377 = vmatpush1.bf16.msra.mxu0 %v8382_v1  ;;  %5910 = vmatpush1.bf16.msra.mxu1 %v8385_v2  ;;  %v8478_v1 = vld [vmem:[%s11205_s1 + $0x174c] ss:$16 sps:$4 sm:$0xff]   ;;  %v8473_v2 = vld [vmem:[%s11205_s1 + $0x1740] ss:$16 sps:$4 sm:$0xff]  }
 0x2b0   :  { %5378 = vmatprep.subr.bf16.mxu0 %v8390_v3  ;;  %5911 = vmatprep.subr.bf16.mxu1 %v8393_v57  ;;  %v8476_v3 = vld [vmem:[%s11205_s1 + $0x1748] ss:$16 sps:$4 sm:$0xff]   ;;  %v8481_v57 = vld [vmem:[%s11205_s1 + $0x1764] ss:$16 sps:$4 sm:$0xff]  }
 0x2b3   :  { %5379 = vmatpush1.bf16.msra.mxu0 %v8388_v5  ;;  %5912 = vmatpush1.bf16.msra.mxu1 %v8391_v6  ;;  %v8484_v5 = vld [vmem:[%s11205_s1 + $0x176c] ss:$16 sps:$4 sm:$0xff]   ;;  %v8479_v6 = vld [vmem:[%s11205_s1 + $0x1760] ss:$16 sps:$4 sm:$0xff]  }
 0x2b4   :  { %5380 = vmatprep.subr.bf16.mxu0 %v8396_v8  ;;  %5913 = vmatprep.subr.bf16.mxu1 %v8399_v9  ;;  %v8482_v8 = vld [vmem:[%s11205_s1 + $0x1768] ss:$16 sps:$4 sm:$0xff]   ;;  %v8487_v9 = vld [vmem:[%s11205_s1 + $0x1784] ss:$16 sps:$4 sm:$0xff]  }
 0x2b7   :  { %5381 = vmatpush1.bf16.msra.mxu0 %v8394_v54  ;;  %5914 = vmatpush1.bf16.msra.mxu1 %v8397_v60  ;;  %v8490_v54 = vld [vmem:[%s11205_s1 + $0x178c] ss:$16 sps:$4 sm:$0xff]   ;;  %v8485_v60 = vld [vmem:[%s11205_s1 + $0x1780] ss:$16 sps:$4 sm:$0xff]  }
 0x2b8   :  { %5382 = vmatprep.subr.bf16.mxu0 %v8402_v11  ;;  %5915 = vmatprep.subr.bf16.mxu1 %v8405_v12  ;;  %v8488_v11 = vld [vmem:[%s11205_s1 + $0x1788] ss:$16 sps:$4 sm:$0xff]   ;;  %v8493_v12 = vld [vmem:[%s11205_s1 + $0x17a4] ss:$16 sps:$4 sm:$0xff]  }
 0x2bb   :  { %5383 = vmatpush1.bf16.msra.mxu0 %v8400_v14  ;;  %5916 = vmatpush1.bf16.msra.mxu1 %v8403_v4  ;;  %v8496_v14 = vld [vmem:[%s11205_s1 + $0x17ac] ss:$16 sps:$4 sm:$0xff]   ;;  %v8491_v4 = vld [vmem:[%s11205_s1 + $0x17a0] ss:$16 sps:$4 sm:$0xff]  }
 0x2bc   :  { %5384 = vmatprep.subr.bf16.mxu0 %v8408_v52  ;;  %5917 = vmatprep.subr.bf16.mxu1 %v8411_v16  ;;  %v8494_v52 = vld [vmem:[%s11205_s1 + $0x17a8] ss:$16 sps:$4 sm:$0xff]   ;;  %v8499_v16 = vld [vmem:[%s11205_s1 + $0x17c4] ss:$16 sps:$4 sm:$0xff]  }
 0x2bf   :  { %5385 = vmatpush1.bf16.msra.mxu0 %v8406_v17  ;;  %5918 = vmatpush1.bf16.msra.mxu1 %v8409_v18  ;;  %v8502_v17 = vld [vmem:[%s11205_s1 + $0x17cc] ss:$16 sps:$4 sm:$0xff]   ;;  %v8497_v18 = vld [vmem:[%s11205_s1 + $0x17c0] ss:$16 sps:$4 sm:$0xff]  }
 0x2c0   :  { %5395 = vmatprep.subr.bf16.mxu0 %v8415_v7  ;;  %5928 = vmatprep.subr.bf16.mxu1 %v8418_v20  ;;  %v8500_v7 = vld [vmem:[%s11205_s1 + $0x17c8] ss:$16 sps:$4 sm:$0xff]   ;;  %v8505_v20 = vld [vmem:[%s11205_s1 + $0x17e4] ss:$16 sps:$4 sm:$0xff]  }
 0x2c2   :  { %5387 = vmatmul.mubr.bf16.vlgmr.msra.gmra.mrb[0].mxu0 %v10849_v21  ;;  %5920 = vmatmul.mubr.bf16.vlgmr.msra.gmra.mrb[0].mxu1 %v10849_v21 }
 0x2c3   :  { %5396 = vmatpush1.bf16.msra.mxu0 %v8413_v22  ;;  %5929 = vmatpush1.bf16.msra.mxu1 %v8416_v23  ;;  %v8508_v22 = vld [vmem:[%s11205_s1 + $0x17ec] ss:$16 sps:$4 sm:$0xff]   ;;  %v8503_v23 = vld [vmem:[%s11205_s1 + $0x17e0] ss:$16 sps:$4 sm:$0xff]  }
 0x2c4   :  { %5397 = vmatprep.subr.bf16.mxu0 %v8421_v25  ;;  %5930 = vmatprep.subr.bf16.mxu1 %v8424_v10  ;;  %v8506_v25 = vld [vmem:[%s11205_s1 + $0x17e8] ss:$16 sps:$4 sm:$0xff]   ;;  %v8511_v10 = vld [vmem:[%s11205_s1 + $0x1804] ss:$16 sps:$4 sm:$0xff]  }
 0x2c5   :  { %5427 = vmatprep.mubr.bf16.mxu0 %v981_v13  ;;  %5960 = vmatprep.mubr.bf16.mxu1 %v981_v13  ;;  %v8514_v13 = vld [vmem:[%s11205_s1 + $0x180c] ss:$16 sps:$4 sm:$0xff]  }
 0x2c7   :  { %5398 = vmatpush1.bf16.msra.mxu0 %v8419_v27  ;;  %5931 = vmatpush1.bf16.msra.mxu1 %v8422_v29  ;;  %v979_v27 = vcombine.high %v10849_v21, %v10849_v21  ;;  %v8509_v29 = vld [vmem:[%s11205_s1 + $0x1800] ss:$16 sps:$4 sm:$0xff]   ;;  %v8520_v21 = vld [vmem:[%s11205_s1 + $0x182c] ss:$16 sps:$4 sm:$0xff]  }
 0x2c8   :  { %5399 = vmatprep.subr.bf16.mxu0 %v8427_v19  ;;  %5932 = vmatprep.subr.bf16.mxu1 %v8430_v30  ;;  %v8512_v19 = vld [vmem:[%s11205_s1 + $0x1808] ss:$16 sps:$4 sm:$0xff]   ;;  %v8517_v30 = vld [vmem:[%s11205_s1 + $0x1824] ss:$16 sps:$4 sm:$0xff]  }
 0x2cb   :  { %5400 = vmatpush1.bf16.msra.mxu0 %v8425_v31  ;;  %5933 = vmatpush1.bf16.msra.mxu1 %v8428_v15  ;;  %v8515_v31 = vld [vmem:[%s11205_s1 + $0x1820] ss:$16 sps:$4 sm:$0xff]   ;;  %v8518_v15 = vld [vmem:[%s11205_s1 + $0x1828] ss:$16 sps:$4 sm:$0xff]  }
 0x2cc   :  { %5401 = vmatprep.subr.bf16.mxu0 %v8433_v32  ;;  %5934 = vmatprep.subr.bf16.mxu1 %v8436_v33  ;;  %v8523_v32 = vld [vmem:[%s11205_s1 + $0x1844] ss:$16 sps:$4 sm:$0xff]   ;;  %v8526_v33 = vld [vmem:[%s11205_s1 + $0x184c] ss:$16 sps:$4 sm:$0xff]  }
 0x2cf   :  { %5402 = vmatpush1.bf16.msra.mxu0 %v8431_v26  ;;  %5935 = vmatpush1.bf16.msra.mxu1 %v8434_v34  ;;  %v8572_v26 = vmov 0   ;;  %v8521_v34 = vld [vmem:[%s11205_s1 + $0x1840] ss:$16 sps:$4 sm:$0xff]  }
 0x2d0   :  { %5403 = vmatprep.subr.bf16.mxu0 %v8439_v35  ;;  %5936 = vmatprep.subr.bf16.mxu1 %v8442_v37  ;;  %v8524_v35 = vld [vmem:[%s11205_s1 + $0x1848] ss:$16 sps:$4 sm:$0xff]   ;;  %v8529_v37 = vld [vmem:[%s11205_s1 + $0x1864] ss:$16 sps:$4 sm:$0xff]  }
 0x2d3   :  { %5404 = vmatpush1.bf16.msra.mxu0 %v8437_v28  ;;  %5937 = vmatpush1.bf16.msra.mxu1 %v8440_v39  ;;  %v8532_v28 = vld [vmem:[%s11205_s1 + $0x186c] ss:$16 sps:$4 sm:$0xff]   ;;  %v8527_v39 = vld [vmem:[%s11205_s1 + $0x1860] ss:$16 sps:$4 sm:$0xff]  }
 0x2d4   :  { %5405 = vmatprep.subr.bf16.mxu0 %v8445_v41  ;;  %5938 = vmatprep.subr.bf16.mxu1 %v8448_v43  ;;  %v8530_v41 = vld [vmem:[%s11205_s1 + $0x1868] ss:$16 sps:$4 sm:$0xff]  }
 0x2d5   :  { %v6388_v43 = vld.sshfl [vmem:[%s11206_s0 + $0x18] sm:$0x1 pattern:$0x75316420] }
 0x2d7   :  { %5406 = vmatpush1.bf16.msra.mxu0 %v8443_v44  ;;  %5939 = vmatpush1.bf16.msra.mxu1 %v8446_v45  ;;  %v8533_v44 = vld [vmem:[%s11207_s3 + $0x40] sm:$0xff]  }
 0x2d8   :  { %5407 = vmatprep.subr.bf16.mxu0 %v8451_v46  ;;  %5940 = vmatprep.subr.bf16.mxu1 %v8454_v47  ;;  %v8534_v45 = vld [vmem:[%s11207_s3 + $0xc0] sm:$0xff]   ;;  %v995_v46 = vrot.slane %v6388_v43, %v8739_v49  ;;  %v8538_v49 = vld [vmem:[%s11207_s3 + $0xc8] sm:$0xff]  }
 0x2d9   :  { %v8535_v47 = vld [vmem:[%s11207_s3] sm:$0xff]  }
 0x2db   :  { %5408 = vmatpush1.bf16.msra.mxu0 %v8449_v38  ;;  %5941 = vmatpush1.bf16.msra.mxu1 %v8452_v48  ;;  %v8536_v38 = vld [vmem:[%s11207_s3 + $0x80] sm:$0xff]   ;;  %v8537_v48 = vld [vmem:[%s11207_s3 + $0x48] sm:$0xff]  }
 0x2dc   :  { %5409 = vmatprep.subr.bf16.mxu0 %v8457_v50  ;;  %5942 = vmatprep.subr.bf16.mxu1 %v8460_v51  ;;  %v8539_v50 = vld [vmem:[%s11207_s3 + $0x8] sm:$0xff]  }
 0x2dd   :  { %v8540_v51 = vld [vmem:[%s11207_s3 + $0x88] sm:$0xff]  }
 0x2df   :  { %5410 = vmatpush1.bf16.msra.mxu0 %v8455_v53  ;;  %5943 = vmatpush1.bf16.msra.mxu1 %v8458_v40  ;;  %v8541_v53 = vld [vmem:[%s11207_s3 + $0x50] sm:$0xff]  }
 0x2e0   :  { %5411 = vmatprep.subr.bf16.mxu0 %v8463_v56  ;;  %5944 = vmatprep.subr.bf16.mxu1 %v8466_v58  ;;  %v8542_v40 = vld [vmem:[%s11207_s3 + $0xd0] sm:$0xff]  }
 0x2e1   :  { %v8543_v56 = vld [vmem:[%s11207_s3 + $0x10] sm:$0xff]  }
 0x2e2   :  { %v8544_v58 = vld [vmem:[%s11207_s3 + $0x90] sm:$0xff]  }
 0x2e3   :  { %5412 = vmatpush1.bf16.msra.mxu0 %v8461_v59  ;;  %5945 = vmatpush1.bf16.msra.mxu1 %v8464_v24  ;;  %v8545_v59 = vld [vmem:[%s11207_s3 + $0x58] sm:$0xff]  }
 0x2e4   :  { %5413 = vmatprep.subr.bf16.mxu0 %v8469_v61  ;;  %5946 = vmatprep.subr.bf16.mxu1 %v8472_v62  ;;  %v8546_v24 = vld [vmem:[%s11207_s3 + $0xd8] sm:$0xff]  }
 0x2e5   :  { %v8547_v61 = vld [vmem:[%s11207_s3 + $0x18] sm:$0xff]  }
 0x2e6   :  { %v8548_v62 = vld [vmem:[%s11207_s3 + $0x98] sm:$0xff]  }
 0x2e7   :  { %5414 = vmatpush1.bf16.msra.mxu0 %v8467_v63  ;;  %5947 = vmatpush1.bf16.msra.mxu1 %v8470_v55  ;;  %v8549_v63 = vld [vmem:[%s11207_s3 + $0x60] sm:$0xff]  }
 0x2e8   :  { %5415 = vmatprep.subr.bf16.mxu0 %v8475_v0  ;;  %5948 = vmatprep.subr.bf16.mxu1 %v8478_v1  ;;  %v8550_v55 = vld [vmem:[%s11207_s3 + $0xe0] sm:$0xff]  }
 0x2e9   :  { %v8551_v0 = vld [vmem:[%s11207_s3 + $0x20] sm:$0xff]  }
 0x2ea   :  { %v8552_v1 = vld [vmem:[%s11207_s3 + $0xa0] sm:$0xff]  }
 0x2eb   :  { %5416 = vmatpush1.bf16.msra.mxu0 %v8473_v2  ;;  %5949 = vmatpush1.bf16.msra.mxu1 %v8476_v3  ;;  %v8553_v2 = vld [vmem:[%s11207_s3 + $0x68] sm:$0xff]  }
 0x2ec   :  { %5417 = vmatprep.subr.bf16.mxu0 %v8481_v57  ;;  %5950 = vmatprep.subr.bf16.mxu1 %v8484_v5  ;;  %v8554_v3 = vld [vmem:[%s11207_s3 + $0xe8] sm:$0xff]  }
 0x2ed   :  { %v8555_v57 = vld [vmem:[%s11207_s3 + $0x28] sm:$0xff]  }
 0x2ee   :  { %v8556_v5 = vld [vmem:[%s11207_s3 + $0xa8] sm:$0xff]  }
 0x2ef   :  { %5418 = vmatpush1.bf16.msra.mxu0 %v8479_v6  ;;  %5951 = vmatpush1.bf16.msra.mxu1 %v8482_v8  ;;  %v8557_v6 = vld [vmem:[%s11207_s3 + $0x70] sm:$0xff]  }
 0x2f0   :  { %5419 = vmatprep.subr.bf16.mxu0 %v8487_v9  ;;  %5952 = vmatprep.subr.bf16.mxu1 %v8490_v54  ;;  %v8558_v8 = vld [vmem:[%s11207_s3 + $0xf0] sm:$0xff]  }
 0x2f1   :  { %v8559_v9 = vld [vmem:[%s11207_s3 + $0x30] sm:$0xff]  }
 0x2f2   :  { %v8560_v54 = vld [vmem:[%s11207_s3 + $0xb0] sm:$0xff]  }
 0x2f3   :  { %5420 = vmatpush1.bf16.msra.mxu0 %v8485_v60  ;;  %5953 = vmatpush1.bf16.msra.mxu1 %v8488_v11  ;;  %v8561_v60 = vld [vmem:[%s11207_s3 + $0x78] sm:$0xff]  }
 0x2f4   :  { %5421 = vmatprep.subr.bf16.mxu0 %v8493_v12  ;;  %5954 = vmatprep.subr.bf16.mxu1 %v8496_v14  ;;  %v8562_v11 = vld [vmem:[%s11207_s3 + $0xf8] sm:$0xff]  }
 0x2f5   :  { %v8563_v12 = vld [vmem:[%s11207_s3 + $0x38] sm:$0xff]  }
 0x2f6   :  { %v8564_v14 = vld [vmem:[%s11207_s3 + $0xb8] sm:$0xff]  }
 0x2f7   :  { %5422 = vmatpush1.bf16.msra.mxu0 %v8491_v4  ;;  %5955 = vmatpush1.bf16.msra.mxu1 %v8494_v52  ;;  %v813_v4 = vsub.s32 0, %v8721_v42  ;;  %v821_v52 = vsub.s32 2, %v8721_v42 }
 0x2f8   :  { %5423 = vmatprep.subr.bf16.mxu0 %v8499_v16  ;;  %5956 = vmatprep.subr.bf16.mxu1 %v8502_v17  ;;  %v809_v16 = vld [vmem:[%s11208_s2] sm:$0xf]  ;;  %v817_v17 = vsub.s32 1, %v8721_v42 }
 0x2fb   :  { %5424 = vmatpush1.bf16.msra.mxu0 %v8497_v18  ;;  %5957 = vmatpush1.bf16.msra.mxu1 %v8500_v7  ;;  %v825_v18 = vsub.s32 3, %v8721_v42  ;;  %v814_v7 = vrot.slane %v809_v16, %v813_v4 }
 0x2fc   :  { %5425 = vmatprep.subr.bf16.mxu0 %v8505_v20  ;;  %5958 = vmatprep.subr.bf16.mxu1 %v8508_v22  ;;  %v822_v20 = vrot.slane %v809_v16, %v821_v52  ;;  %v818_v22 = vrot.slane %v809_v16, %v817_v17 }
 0x2ff   :  { %5426 = vmatpush1.bf16.msra.mxu0 %v8503_v23  ;;  %5959 = vmatpush1.bf16.msra.mxu1 %v8506_v25  ;;  %v826_v23 = vrot.slane %v809_v16, %v825_v18 }
 0x300   :  { %5436 = vmatprep.subr.bf16.mxu0 %v8511_v10  ;;  %5969 = vmatprep.subr.bf16.mxu1 %v8514_v13 }
 0x302   :  { %5428 = vmatmul.mubr.bf16.vlgmr.msra.gmra.mrb[0].mxu0 %v979_v27  ;;  %5961 = vmatmul.mubr.bf16.vlgmr.msra.gmra.mrb[0].mxu1 %v979_v27 }
 0x303   :  { %5437 = vmatpush1.bf16.msra.mxu0 %v8509_v29  ;;  %5970 = vmatpush1.bf16.msra.mxu1 %v8512_v19 }
 0x304   :  { %5438 = vmatprep.subr.bf16.mxu0 %v8517_v30  ;;  %5971 = vmatprep.subr.bf16.mxu1 %v8520_v21 }
 0x305   :  { %5468 = vmatprep.mubr.bf16.mxu0 %v8572_v26  ;;  %6001 = vmatprep.mubr.bf16.mxu1 %v8572_v26 }
 0x307   :  { %5439 = vmatpush1.bf16.msra.mxu0 %v8515_v31  ;;  %5972 = vmatpush1.bf16.msra.mxu1 %v8518_v15 }
 0x308   :  { %5440 = vmatprep.subr.bf16.mxu0 %v8523_v32  ;;  %5973 = vmatprep.subr.bf16.mxu1 %v8526_v33 }
 0x30b   :  { %5441 = vmatpush1.bf16.msra.mxu0 %v8521_v34  ;;  %5974 = vmatpush1.bf16.msra.mxu1 %v8524_v35 }
 0x30c   :  { %5442 = vmatprep.subr.bf16.mxu0 %v8529_v37  ;;  %5975 = vmatprep.subr.bf16.mxu1 %v8532_v28 }
 0x30f   :  { %5443 = vmatpush1.bf16.msra.mxu0 %v8527_v39  ;;  %5976 = vmatpush1.bf16.msra.mxu1 %v8530_v41 }
 0x310   :  { %7208 = vmatprep.subr.bf16.mxu0 %v8533_v44  ;;  %7230 = vmatprep.subr.bf16.mxu1 %v8534_v45  ;;  %v7175_v45 = vld [vmem:[%s11209_s4] ss:$0 sm:$0xff] }
 0x312   :  { %7173 = vmatmul.mubr.msk.bf16.vlgmr.msra.gmra.mrb[0].mxu0 %vm4940_vm0, %v995_v46  ;;  %7174 = vmatmul.mubr.msk.bf16.vlgmr.msra.gmra.mrb[0].mxu1 %vm4940_vm0, %v995_v46 }
 0x313   :  { %7209 = vmatpush3.bf16.msra.mxu0 %v8535_v47  ;;  %7231 = vmatpush3.bf16.msra.mxu1 %v8536_v38  ;;  %v6362_v38 = vand.u32 127, %v811_v36 }
 0x314   :  { %7210 = vmatprep.subr.bf16.mxu0 %v8537_v48  ;;  %7232 = vmatprep.subr.bf16.mxu1 %v8538_v49 }
 0x315   :  { %vm6363_vm1 = vcmp.lt.s32.totalorder %v6362_v38, 3  ;;  %vm6380_vm3 = vcmp.eq.s32.totalorder %v6362_v38, 4  ;;  %vm6379_vm4 = vcmp.lt.s32.totalorder %v6362_v38, 4 }
 0x317   :  { %7211 = vmatpush3.bf16.msra.mxu0 %v8539_v50  ;;  %7233 = vmatpush3.bf16.msra.mxu1 %v8540_v51 }
 0x318   :  { %7212 = vmatprep.subr.bf16.mxu0 %v8541_v53  ;;  %7234 = vmatprep.subr.bf16.mxu1 %v8542_v40 }
 0x31b   :  { %7213 = vmatpush3.bf16.msra.mxu0 %v8543_v56  ;;  %7235 = vmatpush3.bf16.msra.mxu1 %v8544_v58 }
 0x31c   :  { %7214 = vmatprep.subr.bf16.mxu0 %v8545_v59  ;;  %7236 = vmatprep.subr.bf16.mxu1 %v8546_v24 }
 0x31f   :  { %7215 = vmatpush3.bf16.msra.mxu0 %v8547_v61  ;;  %7237 = vmatpush3.bf16.msra.mxu1 %v8548_v62 }
 0x320   :  { %7216 = vmatprep.subr.bf16.mxu0 %v8549_v63  ;;  %7238 = vmatprep.subr.bf16.mxu1 %v8550_v55 }
 0x323   :  { %7217 = vmatpush3.bf16.msra.mxu0 %v8551_v0  ;;  %7239 = vmatpush3.bf16.msra.mxu1 %v8552_v1 }
 0x324   :  { %7218 = vmatprep.subr.bf16.mxu0 %v8553_v2  ;;  %7240 = vmatprep.subr.bf16.mxu1 %v8554_v3 }
 0x327   :  { %7219 = vmatpush3.bf16.msra.mxu0 %v8555_v57  ;;  %7241 = vmatpush3.bf16.msra.mxu1 %v8556_v5 }
 0x328   :  { %7220 = vmatprep.subr.bf16.mxu0 %v8557_v6  ;;  %7242 = vmatprep.subr.bf16.mxu1 %v8558_v8 }
 0x32b   :  { %7221 = vmatpush3.bf16.msra.mxu0 %v8559_v9  ;;  %7243 = vmatpush3.bf16.msra.mxu1 %v8560_v54 }
 0x32c   :  { %7222 = vmatprep.subr.bf16.mxu0 %v8561_v60  ;;  %7244 = vmatprep.subr.bf16.mxu1 %v8562_v11 }
 0x32f   :  { %7223 = vmatpush3.bf16.msra.mxu0 %v8563_v12  ;;  %7245 = vmatpush3.bf16.msra.mxu1 %v8564_v14 }
 0x3e5   :  { %v5470_v25 = vpop.f32.mrb[0].mxu0  ;;  %v6003_v10 = vpop.f32.mrb[0].mxu1 }
 0x3e6   :  { %v7252_v13 = vadd.f32 %v5470_v25, %v814_v7  ;;  %v7254_v27 = vadd.f32 %v6003_v10, %v822_v20  ;;  %v5472_v29 = vpop.f32.mrb[1].mxu0  ;;  %v6005_v19 = vpop.f32.mrb[1].mxu1 }
 0x3e7   :  { %v7253_v30 = vadd.f32 %v5472_v29, %v818_v22  ;;  %v7255_v21 = vadd.f32 %v6005_v19, %v826_v23  ;;  %v5474_v31 = vpop.f32.mrb[2].mxu0  ;;  %v6007_v15 = vpop.f32.mrb[2].mxu1 }
 0x3e8   :  { %v6010_v32 = vmax.f32 %v7252_v13, 0.0  ;;  %v6012_v33 = vmax.f32 %v7254_v27, 0.0  ;;  %v5475_v26 = vpop.f32.mrb[3].mxu0  ;;  %v6008_v34 = vpop.f32.mrb[3].mxu1 }
 0x3e9   :  { %v6011_v35 = vmax.f32 %v7253_v30, 0.0  ;;  %v6013_v42 = vmax.f32 %v7255_v21, 0.0 }
 0x3ea   :  { %v6014_v39 = vpack.c.bf16 %v6010_v32, %v6010_v32  ;;  %v6016_v41 = vpack.c.bf16 %v6012_v33, %v6012_v33 }
 0x3eb   :  { %v6015_v37 = vpack.c.bf16 %v6011_v35, %v6011_v35  ;;  %v6017_v28 = vpack.c.bf16 %v6013_v42, %v6013_v42 }
 0x3ed   :  { %6313 = vmatprep.mubr.bf16.mxu0 %v6015_v37  ;;  %6353 = vmatprep.mubr.bf16.mxu1 %v6017_v28 }
 0x3ee   :  { %6314 = vmatmul.mubr.bf16.vlgmr.msra.gmra.mrb[4].mxu0 %v6014_v39  ;;  %6354 = vmatmul.mubr.bf16.vlgmr.msra.gmra.mrb[4].mxu1 %v6016_v41 }
 0x4c1   :  { %v7224_v43 = vpop.f32.mrb[4].mxu0  ;;  %v7246_v44 = vpop.f32.mrb[4].mxu1 }
 0x4c2   :  { %v7225_v46 = vpop.f32.mrb[5].mxu0  ;;  %v7247_v47 = vpop.f32.mrb[5].mxu1 }
 0x4c3   :  { %v7226_v48 = vadd.f32 %v7225_v46, %v7224_v43  ;;  %v7248_v49 = vadd.f32 %v7247_v47, %v7246_v44  ;;  %v7227_v50 = vpop.f32.mrb[6].mxu0  ;;  %v7249_v51 = vpop.f32.mrb[6].mxu1 }
 0x4c4   :  { %v7228_v53 = vpop.f32.mrb[7].mxu0  ;;  %v7250_v40 = vpop.f32.mrb[7].mxu1 }
 0x4c5   :  { %v6316_v56 = vadd.f32 %v7226_v48, %v7175_v45 }
 0x4c7   :  { %v6356_v58 = vadd.f32 %v7248_v49, %v6316_v56 }
 0x4c9   :  { %v6364_v59 = vsel %vm6363_vm1, %v6356_v58, -1e+30 }
 0x4ca   :  { %v6366_v24 = vsel %vm6365_vm2, %v6364_v59, -inf }
 0x4cb   :  { %6367 = vmax.xlane.f32.xlu0 %v6366_v24 }
 0x558   :  { %v6368_v61 = vpop.xlane.xlu0 %6367 }
 0x559   :  { %v6369_v62 = vsub.f32 %v6356_v58, %v6368_v61 }
 0x55b   :  { %v6370_v63 = vsel %vm6363_vm1, %v6369_v62, -1e+30 }
 0x55c   :  { %v6371_v55 = vmul.f32 1.442695, %v6370_v63 }
 0x55e   :  { %8565 = vpow2.f32 %v6371_v55 }
 0x568   :  { %v8566_v0 = vpop.eup %8565 }
 0x569   :  { %v6373_v36 = vsel %vm6365_vm2, %v8566_v0, 0.0 }
 0x56a   :  { %6374 = vadd.xlane.f32.xlu0 %v6373_v36 }
 0x5f7   :  { %v6375_v1 = vpop.xlane.xlu0 %6374 }
 0x5f8   :  { %8567 = vlog2.f32 %v6375_v1 }
 0x602   :  { %v8568_v2 = vpop.eup %8567 }
 0x603   :  { %v6377_v3 = vmul.f32 0.6931472, %v8568_v2 }
 0x605   :  { %v6378_v57 = vadd.f32 %v6377_v3, %v6368_v61 }
 0x607   :  { %v6381_v5 = vsel %vm6380_vm3, %v6378_v57, 0.0 }
 0x608   :  { %v6382_v6 = vsel %vm6379_vm4, %v6356_v58, %v6381_v5 }
 0x609   :  { %6383 = vst [vmem:[%s11210_s5] sm:$0x3] %v6382_v6 }

</bundles_post_ra>
